<compile_context>
chip_gen: v5e
topology: v5e:2x2
jax: 0.10.0
libtpu: 0.0.40
codegen_flags: <defaults>
</compile_context>

<pallas_src>
import jax
import jax.numpy as jnp
from jax.experimental import pallas as pl
from jax.experimental.pallas import tpu as pltpu

f32 = jnp.float32
bf16 = jnp.bfloat16


def _round_up(x, m):
    return ((x + m - 1) // m) * m


def _softmax_last(x):
    m = jnp.max(x, axis=-1, keepdims=True)
    e = jnp.exp(x - m)
    return e / jnp.sum(e, axis=-1, keepdims=True)


# --------------------------------------------------------------------------------------
# Single-buffering (pl.Buffered(1)) capability probe — used for all t-invariant blocks.
# Falls back to default double-buffering if the running JAX rejects buffer_count=1.
# --------------------------------------------------------------------------------------
_SINGLE_BUFFER_OK = None


def _single_buffer_supported():
    global _SINGLE_BUFFER_OK
    if _SINGLE_BUFFER_OK is None:
        try:
            def _k(x_ref, w_ref, o_ref):
                o_ref[...] = x_ref[...] + w_ref[...]

            x = jnp.zeros((16, 128), f32)
            w = jnp.zeros((8, 128), f32)
            out = pl.pallas_call(
                _k,
                out_shape=jax.ShapeDtypeStruct((16, 128), f32),
                grid=(2,),
                in_specs=[pl.BlockSpec((8, 128), lambda i: (i, 0),
                                       pipeline_mode=pl.Buffered(1)),
                          pl.BlockSpec((8, 128), lambda i: (0, 0),
                                       pipeline_mode=pl.Buffered(1))],
                out_specs=pl.BlockSpec((8, 128), lambda i: (i, 0)),
            )(x, w)
            jax.block_until_ready(out)
            _SINGLE_BUFFER_OK = True
        except Exception:
            _SINGLE_BUFFER_OK = False
    return _SINGLE_BUFFER_OK


def _spec(shape, index_map, single_buffer):
    if single_buffer:
        return pl.BlockSpec(shape, index_map, pipeline_mode=pl.Buffered(1))
    return pl.BlockSpec(shape, index_map)


def _default_vmem_limit():
    # ~112 MiB on v5e/v6e (128 MiB VMEM), ~56 MiB on v7x (64 MiB VMEM).
    try:
        cap = pltpu.get_tpu_info().vmem_capacity_bytes
    except Exception:
        cap = 64 * 1024 * 1024
    return int(cap * 7 // 8)


# --------------------------------------------------------------------------------------
# Recurrent (per-time-step) kernel: attention + graph weighting + the two LSTM cells.
# Grid = (batch_tiles, T); LSTM state is carried across T in VMEM scratch.
# --------------------------------------------------------------------------------------
def _recurrent_kernel(
    enc_pre_ref, enc_ref, rwe_ref, trip_ref, cap_ref, init_ref,
    h2p_w, h2p_b, wf_ref, att_bf, pixmask_ref,
    ds_wih, ds_whh, ds_b,
    cp_wih, cp_whh, cp_b,
    out_h1, out_h2, out_alpha,
    h1_s, c1_s, h2_s, c2_s,
):
    t = pl.program_id(1)

    TB, P, D = enc_ref.shape          # P = true pixel count
    A = enc_pre_ref.shape[-1]
    E = rwe_ref.shape[-1]
    H = h1_s.shape[-1]

    # ---- init_hidden_state was hoisted to the wrapper; just load it at t == 0 ----
    @pl.when(t == 0)
    def _init():
        st = init_ref[...]                                   # (TB, 4H) f32
        h1_s[...] = st[:, 0 * H:1 * H]
        c1_s[...] = st[:, 1 * H:2 * H]
        h2_s[...] = st[:, 2 * H:3 * H]
        c2_s[...] = st[:, 3 * H:4 * H]

    h1 = h1_s[...]; c1 = c1_s[...]; h2 = h2_s[...]; c2 = c2_s[...]   # f32
    enc = enc_ref[...]                                        # (TB, P, D)      bf16
    rwe = rwe_ref[...]                                        # (TB, I, E)      bf16
    enc_pre = enc_pre_ref[...]                                # (TB, P_OUT, A)  bf16

    # ---- image attention + sigmoid gate: fused (H, A+D) bf16 matmul on h2 ----
    h2p = jnp.dot(h2.astype(bf16), h2p_w[...], preferred_element_type=f32) + h2p_b[...]
    enc1 = h2p[:, :A]                                         # Attention.Linear1(h2)
    gate = jax.nn.sigmoid(h2p[:, A:])                         # sigmoid(image_beta(h2))
    pre = jnp.maximum(enc_pre + enc1[:, None, :], 0.0)        # relu, (TB, P_OUT, A) f32
    # full_att2_1: VPU multiply + lane reduce; padded pixel lanes masked to -1e30
    logits = (jnp.sum(pre * wf_ref[...].reshape(1, 1, A), axis=-1)
              + att_bf[...] + pixmask_ref[...])               # (TB, P_OUT)
    alpha = _softmax_last(logits)                             # padded lanes -> exactly 0
    awe = jnp.sum(alpha[:, :P, None] * enc, axis=1)           # (TB, D) f32 (VPU + reduce)
    awe = gate * awe

    # ---- graph weighting of related word embeddings (VPU mul + reductions) ----
    raw = jnp.sum(rwe * h1[:, None, :], axis=-1)              # (TB, I); requires E == H
    leaky = jnp.where(raw > 0, raw, 0.2 * raw)                # LeakyReLU(0.2)
    score = _softmax_last(leaky)
    rws = jnp.sum(score[:, :, None] * rwe, axis=1)            # (TB, E) f32

    # ---- LSTMCell decode_ds_step: input [triples_emb_t, rws] (concat-free) ----
    trip_t = trip_ref[t]                                      # (TB, E) bf16
    ds_w = ds_wih[...]
    g_ds = (jnp.dot(trip_t, ds_w[:E], preferred_element_type=f32)
            + jnp.dot(rws.astype(bf16), ds_w[E:], preferred_element_type=f32)
            + jnp.dot(h1.astype(bf16), ds_whh[...], preferred_element_type=f32)
            + ds_b[...])
    i1 = jax.nn.sigmoid(g_ds[:, 0:H])
    f1 = jax.nn.sigmoid(g_ds[:, H:2 * H])
    n1 = jnp.tanh(g_ds[:, 2 * H:3 * H])
    o1 = jax.nn.sigmoid(g_ds[:, 3 * H:4 * H])
    c1n = f1 * c1 + i1 * n1
    h1n = o1 * jnp.tanh(c1n)

    # ---- LSTMCell decode_step: input [captions_emb_t, h1_new, awe] (concat-free) ----
    cap_t = cap_ref[t]                                        # (TB, E) bf16
    cp_w = cp_wih[...]
    g_cp = (jnp.dot(cap_t, cp_w[:E], preferred_element_type=f32)
            + jnp.dot(h1n.astype(bf16), cp_w[E:E + H], preferred_element_type=f32)
            + jnp.dot(awe.astype(bf16), cp_w[E + H:], preferred_element_type=f32)
            + jnp.dot(h2.astype(bf16), cp_whh[...], preferred_element_type=f32)
            + cp_b[...])
    i2 = jax.nn.sigmoid(g_cp[:, 0:H])
    f2 = jax.nn.sigmoid(g_cp[:, H:2 * H])
    n2 = jnp.tanh(g_cp[:, 2 * H:3 * H])
    o2 = jax.nn.sigmoid(g_cp[:, 3 * H:4 * H])
    c2n = f2 * c2 + i2 * n2
    h2n = o2 * jnp.tanh(c2n)

    # carry state; vocab/triple heads + decode-length masking happen outside the loop
    h1_s[...] = h1n; c1_s[...] = c1n
    h2_s[...] = h2n; c2_s[...] = c2n
    out_h1[0] = h1n.astype(out_h1.dtype)          # bf16 writeback (halved vst traffic)
    out_h2[0] = h2n.astype(out_h2.dtype)
    out_alpha[0] = alpha                          # lane-dense (TB, P_OUT) full store


# --------------------------------------------------------------------------------------
# Prediction head: (M, K) @ (K, N) + b.  X kept fully VMEM-resident (single M tile) so
# the big vocab/triple weight streams from HBM exactly once; N tiled lane-dense (256-512
# wide for v6e/v7x 256-wide MXUs).  bf16 MXU operands, f32 accumulate.
# --------------------------------------------------------------------------------------
def _head_matmul_kernel(x_ref, w_ref, b_ref, o_ref):
    o_ref[...] = (jnp.dot(x_ref[...], w_ref[...], preferred_element_type=jnp.float32)
                  + b_ref[...]).astype(o_ref.dtype)


def _head_matmul(x, w, b, *, tile_n=512, x_resident_bytes=16 << 20, single_buffer=False):
    M, K = x.shape
    N = w.shape[1]
    tn = tile_n if N >= tile_n else _round_up(N, 128)
    n_pad = (-N) % tn
    if n_pad:
        w = jnp.pad(w, ((0, 0), (0, n_pad)))
        b = jnp.pad(b, ((0, 0), (0, n_pad)))
    N_p = N + n_pad

    if M * K * 2 <= x_resident_bytes:
        tm = _round_up(M, 8)                     # single M tile -> W streamed once
    else:
        tm = 512                                 # fallback for very large T*B
    m_pad = (-M) % tm
    if m_pad:
        x = jnp.pad(x, ((0, m_pad), (0, 0)))
    M_p = M + m_pad
    n_m = M_p // tm

    out = pl.pallas_call(
        _head_matmul_kernel,
        out_shape=jax.ShapeDtypeStruct((M_p, N_p), jnp.float32),
        grid=(n_m, N_p // tn),
        in_specs=[_spec((tm, K), lambda i, j: (i, 0), single_buffer and n_m == 1),
                  pl.BlockSpec((K, tn), lambda i, j: (0, j)),
                  pl.BlockSpec((1, tn), lambda i, j: (0, j))],
        out_specs=pl.BlockSpec((tm, tn), lambda i, j: (i, j)),
        compiler_params=pltpu.CompilerParams(
            dimension_semantics=("parallel", "parallel"),
            vmem_limit_bytes=_default_vmem_limit()),
    )(x.astype(bf16), w.astype(bf16), b.astype(f32))
    return out[:M, :N]


def init_params(key, vocab_size, triple_size, H, A, E, D):
    keys = iter(jax.random.split(key, 32))
    u = lambda shape: jax.random.uniform(next(keys), shape, f32, -0.1, 0.1)
    p = {}
    p["att_w1"] = u((H, A)); p["att_b1"] = u((1, A))
    p["att_w2"] = u((D, A)); p["att_b2"] = u((1, A))
    p["att_wf"] = u((A, 1)); p["att_bf"] = u((1, 1))
    # image_beta: init_weights() -> weight ~ U(-0.1, 0.1), bias = 0
    p["beta_w"] = u((H, D)); p["beta_b"] = jnp.zeros((1, D), f32)
    # fused LSTM biases = bias_ih + bias_hh of the PyTorch LSTMCell (equivalent)
    p["ds_wih"] = u((2 * E, 4 * H)); p["ds_whh"] = u((H, 4 * H)); p["ds_b"] = u((1, 4 * H))
    p["cp_wih"] = u((E + H + D, 4 * H)); p["cp_whh"] = u((H, 4 * H)); p["cp_b"] = u((1, 4 * H))
    p["ih1_w"] = u((E, H)); p["ih1_b"] = u((1, H))
    p["ic1_w"] = u((E, H)); p["ic1_b"] = u((1, H))
    p["ih2_w"] = u((D, H)); p["ih2_b"] = u((1, H))
    p["ic2_w"] = u((D, H)); p["ic2_b"] = u((1, H))
    p["tri_w"] = u((H, triple_size)); p["tri_b"] = u((1, triple_size))
    p["voc_w"] = u((H, vocab_size)); p["voc_b"] = u((1, vocab_size))
    p["emb"] = u((triple_size, E))              # triples_embedding table
    return p


def caption_generation_forward(params, encoder_out, encoded_triples, decode_lengths,
                               captions_embedding, related_words_embeddings,
                               max_tile_b=32):
    # max_tile_b: per-tile batch (multiple of 8). 32-64 keeps the MXU M-dim fed on
    # v5e/v6e; on v7x pick it so B_pad/max_tile_b >= 2 tiles (shards over both TCs).
    B = encoder_out.shape[0]
    D = encoder_out.shape[-1]
    E = captions_embedding.shape[-1]
    H = params["ih1_w"].shape[1]
    A = params["att_w1"].shape[1]
    V = params["voc_w"].shape[1]
    S = params["tri_w"].shape[1]
    T = int(max(decode_lengths))

    enc = encoder_out.reshape(B, -1, D).astype(f32)            # (B, P, D)
    P = enc.shape[1]
    rwe = related_words_embeddings.astype(f32)                 # (B, I, E)
    NI = rwe.shape[1]
    # torch.bmm(related_words_embeddings, h1.unsqueeze(-1)) requires embedd_dim == hidden
    assert rwe.shape[-1] == H and rwe.shape[-1] == E, \
        "related_words_embeddings last dim must equal lstm_hidden_dim (== embedd_dim)"

    # ---- batch padding / tiling (rows never interact; padded rows are sliced away) ----
    TILE_B = min(_round_up(B, 8), _round_up(max_tile_b, 8))
    B_pad = _round_up(B, TILE_B)
    NB = B_pad // TILE_B
    pb = B_pad - B
    if pb:
        enc = jnp.pad(enc, ((0, pb), (0, 0), (0, 0)))
        rwe = jnp.pad(rwe, ((0, pb), (0, 0), (0, 0)))

    # ---- hoisted init_hidden_state: one full-batch XLA matmul set, (B_pad, 4H) ----
    img_mean = jnp.mean(enc, axis=1)
    rwe_mean = jnp.mean(rwe, axis=1)
    init_state = jnp.concatenate(
        [rwe_mean @ params["ih1_w"] + params["ih1_b"],
         rwe_mean @ params["ic1_w"] + params["ic1_b"],
         img_mean @ params["ih2_w"] + params["ih2_b"],
         img_mean @ params["ic2_w"] + params["ic2_b"]], axis=1).astype(f32)

    # ---- hoisted time-invariant Attention.Linear2(encoder_out), padded lane-dense ----
    P_OUT = _round_up(P, 128)
    enc_pre = (enc.reshape(B_pad * P, D) @ params["att_w2"]
               + params["att_b2"]).reshape(B_pad, P, A)
    if P_OUT > P:
        enc_pre = jnp.pad(enc_pre, ((0, 0), (0, P_OUT - P), (0, 0)))
    # additive logit mask: padded pixels get -1e30 -> softmax weight exactly 0
    pixmask = jnp.where(jnp.arange(P_OUT)[None, :] < P, 0.0, -1e30).astype(f32)  # (1, P_OUT)

    # ---- sequence inputs (kept VMEM-resident per batch tile, indexed with t) ----
    trip_emb = params["emb"][encoded_triples].astype(f32)             # (B, Tmax, E) lookup (glue)
    trip_tm = jnp.transpose(trip_emb, (1, 0, 2))[:T]                  # (T, B, E)
    cap_tm = jnp.transpose(captions_embedding.astype(f32), (1, 0, 2))[:T]
    if pb:
        trip_tm = jnp.pad(trip_tm, ((0, 0), (0, pb), (0, 0)))
        cap_tm = jnp.pad(cap_tm, ((0, 0), (0, pb), (0, 0)))

    # ---- bf16 MXU operands (elementwise math stays f32 inside the kernel) ----
    enc_b = enc.astype(bf16)
    enc_pre_b = enc_pre.astype(bf16)
    rwe_b = rwe.astype(bf16)
    trip_b = trip_tm.astype(bf16)
    cap_b = cap_tm.astype(bf16)

    # ---- fused weight tensors (fewer, wider MXU pushes; fewer VMEM constants) ----
    h2p_w = jnp.concatenate([params["att_w1"], params["beta_w"]], axis=1).astype(bf16)  # (H, A+D)
    h2p_b = jnp.concatenate([params["att_b1"], params["beta_b"]], axis=1).astype(f32)
    wf_t = jnp.transpose(params["att_wf"]).astype(f32)                                  # (1, A)
    att_bf = params["att_bf"].astype(f32)
    ds_wih = params["ds_wih"].astype(bf16); ds_whh = params["ds_whh"].astype(bf16)
    ds_b = params["ds_b"].astype(f32)
    cp_wih = params["cp_wih"].astype(bf16); cp_whh = params["cp_whh"].astype(bf16)
    cp_b = params["cp_b"].astype(f32)
    weights = [h2p_w, h2p_b, wf_t, att_bf, pixmask,
               ds_wih, ds_whh, ds_b, cp_wih, cp_whh, cp_b]

    sb = _single_buffer_supported()

    def bt3(shape):    # batch-tiled, constant over t -> single-buffered
        return _spec(shape, lambda b, t: (b, 0, 0), sb)

    def seq3(shape):   # whole sequence resident, batch-tiled (indexed by t in-kernel)
        return _spec(shape, lambda b, t: (0, b, 0), sb)

    def wspec(x):      # full weight, constant index -> DMA'd once, single-buffered
        return _spec(x.shape, lambda b, t: (0,) * x.ndim, sb)

    def ospec(last):
        return pl.BlockSpec((1, TILE_B, last), lambda b, t: (t, b, 0))

    h1_seq, h2_seq, alpha_tm = pl.pallas_call(
        _recurrent_kernel,
        out_shape=(jax.ShapeDtypeStruct((T, B_pad, H), bf16),
                   jax.ShapeDtypeStruct((T, B_pad, H), bf16),
                   jax.ShapeDtypeStruct((T, B_pad, P_OUT), f32)),
        grid=(NB, T),
        in_specs=[bt3((TILE_B, P_OUT, A)), bt3((TILE_B, P, D)), bt3((TILE_B, NI, E)),
                  seq3((T, TILE_B, E)), seq3((T, TILE_B, E)),
                  _spec((TILE_B, 4 * H), lambda b, t: (b, 0), sb)]
                 + [wspec(w) for w in weights],
        out_specs=(ospec(H), ospec(H), ospec(P_OUT)),
        scratch_shapes=[pltpu.VMEM((TILE_B, H), f32) for _ in range(4)],
        compiler_params=pltpu.CompilerParams(
            dimension_semantics=("parallel", "arbitrary"),
            vmem_limit_bytes=_default_vmem_limit()),
    )(enc_pre_b, enc_b, rwe_b, trip_b, cap_b, init_state, *weights)

    # ---- prediction heads batched over all T*B rows (lane-dense tiled Pallas matmuls) ----
    M = T * B_pad
    preds_tm = _head_matmul(h2_seq.reshape(M, H), params["voc_w"], params["voc_b"],
                            single_buffer=sb).reshape(T, B_pad, V)[:, :B]     # (T, B, V)
    tris_tm = _head_matmul(h1_seq.reshape(M, H), params["tri_w"], params["tri_b"],
                           single_buffer=sb).reshape(T, B_pad, S)[:, :B]      # (T, B, S)
    alpha_tm = alpha_tm[:, :B, :P]

    # end score: original hard-codes preds[:, 7463] (= vocab_size-1) and
    # triple_preds[:, 5282] (= triple_size-1); synthetic sizes use the last column.
    # exp kept un-stabilised to match the PyTorch module.
    end_tm = jnp.exp(preds_tm[..., V - 1]) + jnp.exp(tris_tm[..., S - 1])     # (T, B)

    # decode-length masking reproduces the pack-by-batch_size_t prefix writes into
    # torch.zeros-initialised outputs.
    lens = jnp.asarray(decode_lengths, jnp.int32)
    mask = (jnp.arange(T)[:, None] < lens[None, :]).astype(f32)               # (T, B)

    caption_predictions = jnp.transpose(preds_tm * mask[:, :, None], (1, 0, 2))   # (B, T, V)
    ds_predictions = jnp.transpose(tris_tm * mask[:, :, None], (1, 0, 2))         # (B, T, S)
    end_score = jnp.transpose(end_tm * mask, (1, 0))                              # (B, T)
    alphas = jnp.transpose(alpha_tm * mask[:, :, None], (1, 0, 2))                # (B, T, P)
    return caption_predictions, ds_predictions, end_score, alphas


if __name__ == "__main__":
    # Small synthetic sizes consistent with the module's forward.
    B = 2                 # batch
    SPATIAL = 4           # 4x4 image feature map -> 16 pixels (14x14 in original)
    D = 64                # encoder_dim (2048 in original)
    H = 32                # lstm_hidden_dim (512 in original)
    A = 32                # attention_dim
    E = 32                # embedd_dim (== lstm_hidden_dim, as in the original 512/512)
    V = 128               # vocab_size (7464 in original)
    S = 128               # triple_size
    T = 8                 # max sequence length
    ITERS = 8             # iter_times (related words)

    root = jax.random.PRNGKey(0)
    kp, k1, k2, k3, k4 = jax.random.split(root, 5)
    params = init_params(kp, V, S, H, A, E, D)

    encoder_out = jax.random.normal(k1, (B, SPATIAL, SPATIAL, D), jnp.float32)
    encoded_triples = jax.random.randint(k2, (B, T), 0, S, jnp.int32)
    captions_embedding = jax.random.normal(k3, (B, T, E), jnp.float32)
    related_words_embeddings = jax.random.normal(k4, (B, ITERS, E), jnp.float32)
    decode_lengths = [8, 5]   # sorted descending, as assumed by the PyTorch module

    outs = caption_generation_forward(params, encoder_out, encoded_triples,
                                      decode_lengths, captions_embedding,
                                      related_words_embeddings)
    outs = jax.block_until_ready(outs)
    cap_p, ds_p, end_s, alphas = outs
    assert cap_p.shape == (B, T, V)
    assert ds_p.shape == (B, T, S)
    assert end_s.shape == (B, T)
    assert alphas.shape == (B, T, SPATIAL * SPATIAL)
    assert bool(jnp.all(jnp.isfinite(cap_p))) and bool(jnp.all(jnp.isfinite(alphas)))
    print("KERNEL_OK")
</pallas_src>

<mosaic_0001>
module attributes {stable_mosaic.version = 11 : i64} {
  func.func @_k(%arg0: i32, %arg1: memref<8x128xf32, #tpu.memory_space<vmem>>, %arg2: memref<8x128xf32, #tpu.memory_space<vmem>>, %arg3: memref<8x128xf32, #tpu.memory_space<vmem>>) attributes {dimension_semantics = [#tpu.dimension_semantics<arbitrary>], iteration_bounds = array<i64: 2>, scalar_prefetch = 0 : i64, scratch_operands = 0 : i64, tpu.core_type = #tpu.core_type<tc>, window_params = [{pipeline_mode = #tpu.pipeline_mode<synchronous>, transform_indices = @transform_0, window_bounds = array<i64: 8, 128>}, {pipeline_mode = #tpu.pipeline_mode<synchronous>, transform_indices = @transform_1, window_bounds = array<i64: 8, 128>}, {transform_indices = @transform_2, window_bounds = array<i64: 8, 128>}]} {
    %c0 = arith.constant 0 : index
    %c0_0 = arith.constant 0 : index
    %0 = vector.load %arg1[%c0, %c0_0] : memref<8x128xf32, #tpu.memory_space<vmem>>, vector<8x128xf32>
    %c0_1 = arith.constant 0 : index
    %c0_2 = arith.constant 0 : index
    %1 = vector.load %arg2[%c0_1, %c0_2] : memref<8x128xf32, #tpu.memory_space<vmem>>, vector<8x128xf32>
    %2 = arith.addf %0, %1 : vector<8x128xf32>
    %c0_3 = arith.constant 0 : index
    %c0_4 = arith.constant 0 : index
    %3 = vector.load %arg3[%c0_3, %c0_4] : memref<8x128xf32, #tpu.memory_space<vmem>>, vector<8x128xf32>
    tpu.vector_store %arg3[%c0_3, %c0_4], %2 {strides = array<i32>} : memref<8x128xf32, #tpu.memory_space<vmem>>, vector<8x128xf32>,
    return
  }
  func.func @transform_0(%arg0: i32) -> (i32, i32) {
    %c0_i32 = arith.constant 0 : i32
    %c0_i32_0 = arith.constant 0 : i32
    return %arg0, %c0_i32 : i32, i32
  }
  func.func @transform_1(%arg0: i32) -> (i32, i32) {
    %c0_i32 = arith.constant 0 : i32
    %c0_i32_0 = arith.constant 0 : i32
    %c0_i32_1 = arith.constant 0 : i32
    return %c0_i32, %c0_i32_0 : i32, i32
  }
  func.func @transform_2(%arg0: i32) -> (i32, i32) {
    %c0_i32 = arith.constant 0 : i32
    %c0_i32_0 = arith.constant 0 : i32
    return %arg0, %c0_i32 : i32, i32
  }
}

module attributes {stable_mosaic.version = 11 : i64} {
  func.func @_recurrent_kernel(%arg0: i32, %arg1: i32, %arg2: memref<8x128x32xbf16, #tpu.memory_space<vmem>>, %arg3: memref<8x16x64xbf16, #tpu.memory_space<vmem>>, %arg4: memref<8x8x32xbf16, #tpu.memory_space<vmem>>, %arg5: memref<8x8x32xbf16, #tpu.memory_space<vmem>>, %arg6: memref<8x8x32xbf16, #tpu.memory_space<vmem>>, %arg7: memref<8x128xf32, #tpu.memory_space<vmem>>, %arg8: memref<32x96xbf16, #tpu.memory_space<vmem>>, %arg9: memref<1x96xf32, #tpu.memory_space<vmem>>, %arg10: memref<1x32xf32, #tpu.memory_space<vmem>>, %arg11: memref<1x1xf32, #tpu.memory_space<vmem>>, %arg12: memref<1x128xf32, #tpu.memory_space<vmem>>, %arg13: memref<64x128xbf16, #tpu.memory_space<vmem>>, %arg14: memref<32x128xbf16, #tpu.memory_space<vmem>>, %arg15: memref<1x128xf32, #tpu.memory_space<vmem>>, %arg16: memref<128x128xbf16, #tpu.memory_space<vmem>>, %arg17: memref<32x128xbf16, #tpu.memory_space<vmem>>, %arg18: memref<1x128xf32, #tpu.memory_space<vmem>>, %arg19: memref<1x8x32xbf16, #tpu.memory_space<vmem>>, %arg20: memref<1x8x32xbf16, #tpu.memory_space<vmem>>, %arg21: memref<1x8x128xf32, #tpu.memory_space<vmem>>, %arg22: memref<8x32xf32, #tpu.memory_space<vmem>>, %arg23: memref<8x32xf32, #tpu.memory_space<vmem>>, %arg24: memref<8x32xf32, #tpu.memory_space<vmem>>, %arg25: memref<8x32xf32, #tpu.memory_space<vmem>>) attributes {dimension_semantics = [#tpu.dimension_semantics<parallel>, #tpu.dimension_semantics<arbitrary>], iteration_bounds = array<i64: 1, 8>, scalar_prefetch = 0 : i64, scratch_operands = 4 : i64, tpu.core_type = #tpu.core_type<tc>, window_params = [{transform_indices = @transform_0, window_bounds = array<i64: 8, 128, 32>}, {transform_indices = @transform_1, window_bounds = array<i64: 8, 16, 64>}, {transform_indices = @transform_2, window_bounds = array<i64: 8, 8, 32>}, {transform_indices = @transform_3, window_bounds = array<i64: 8, 8, 32>}, {transform_indices = @transform_4, window_bounds = array<i64: 8, 8, 32>}, {transform_indices = @transform_5, window_bounds = array<i64: 8, 128>}, {pipeline_mode = #tpu.pipeline_mode<synchronous>, transform_indices = @transform_6, window_bounds = array<i64: 32, 96>}, {pipeline_mode = #tpu.pipeline_mode<synchronous>, transform_indices = @transform_7, window_bounds = array<i64: 1, 96>}, {pipeline_mode = #tpu.pipeline_mode<synchronous>, transform_indices = @transform_8, window_bounds = array<i64: 1, 32>}, {pipeline_mode = #tpu.pipeline_mode<synchronous>, transform_indices = @transform_9, window_bounds = array<i64: 1, 1>}, {pipeline_mode = #tpu.pipeline_mode<synchronous>, transform_indices = @transform_10, window_bounds = array<i64: 1, 128>}, {pipeline_mode = #tpu.pipeline_mode<synchronous>, transform_indices = @transform_11, window_bounds = array<i64: 64, 128>}, {pipeline_mode = #tpu.pipeline_mode<synchronous>, transform_indices = @transform_12, window_bounds = array<i64: 32, 128>}, {pipeline_mode = #tpu.pipeline_mode<synchronous>, transform_indices = @transform_13, window_bounds = array<i64: 1, 128>}, {pipeline_mode = #tpu.pipeline_mode<synchronous>, transform_indices = @transform_14, window_bounds = array<i64: 128, 128>}, {pipeline_mode = #tpu.pipeline_mode<synchronous>, transform_indices = @transform_15, window_bounds = array<i64: 32, 128>}, {pipeline_mode = #tpu.pipeline_mode<synchronous>, transform_indices = @transform_16, window_bounds = array<i64: 1, 128>}, {transform_indices = @transform_17, window_bounds = array<i64: 1, 8, 32>}, {transform_indices = @transform_18, window_bounds = array<i64: 1, 8, 32>}, {transform_indices = @transform_19, window_bounds = array<i64: 1, 8, 128>}]} {
    %c0_i32 = arith.constant 0 : i32
    %0 = arith.cmpi eq, %arg1, %c0_i32 : i32
    %1 = arith.extui %0 : i1 to i32
    %c0_i32_0 = arith.constant 0 : i32
    %2 = arith.cmpi ne, %1, %c0_i32_0 : i32
    scf.if %2 {
      %c0_85 = arith.constant 0 : index
      %c0_86 = arith.constant 0 : index
      %183 = vector.load %arg7[%c0_85, %c0_86] : memref<8x128xf32, #tpu.memory_space<vmem>>, vector<8x128xf32>
      %184 = vector.extract_strided_slice %183 {offsets = [0, 0], sizes = [8, 32], strides = [1, 1]} : vector<8x128xf32> to vector<8x32xf32>
      %c0_87 = arith.constant 0 : index
      %c0_88 = arith.constant 0 : index
      %185 = vector.load %arg22[%c0_87, %c0_88] : memref<8x32xf32, #tpu.memory_space<vmem>>, vector<8x32xf32>
      tpu.vector_store %arg22[%c0_87, %c0_88], %184 {strides = array<i32>} : memref<8x32xf32, #tpu.memory_space<vmem>>, vector<8x32xf32>,
      %186 = vector.extract_strided_slice %183 {offsets = [0, 32], sizes = [8, 32], strides = [1, 1]} : vector<8x128xf32> to vector<8x32xf32>
      %c0_89 = arith.constant 0 : index
      %c0_90 = arith.constant 0 : index
      %187 = vector.load %arg23[%c0_89, %c0_90] : memref<8x32xf32, #tpu.memory_space<vmem>>, vector<8x32xf32>
      tpu.vector_store %arg23[%c0_89, %c0_90], %186 {strides = array<i32>} : memref<8x32xf32, #tpu.memory_space<vmem>>, vector<8x32xf32>,
      %188 = vector.extract_strided_slice %183 {offsets = [0, 64], sizes = [8, 32], strides = [1, 1]} : vector<8x128xf32> to vector<8x32xf32>
      %c0_91 = arith.constant 0 : index
      %c0_92 = arith.constant 0 : index
      %189 = vector.load %arg24[%c0_91, %c0_92] : memref<8x32xf32, #tpu.memory_space<vmem>>, vector<8x32xf32>
      tpu.vector_store %arg24[%c0_91, %c0_92], %188 {strides = array<i32>} : memref<8x32xf32, #tpu.memory_space<vmem>>, vector<8x32xf32>,
      %190 = vector.extract_strided_slice %183 {offsets = [0, 96], sizes = [8, 32], strides = [1, 1]} : vector<8x128xf32> to vector<8x32xf32>
      %c0_93 = arith.constant 0 : index
      %c0_94 = arith.constant 0 : index
      %191 = vector.load %arg25[%c0_93, %c0_94] : memref<8x32xf32, #tpu.memory_space<vmem>>, vector<8x32xf32>
      tpu.vector_store %arg25[%c0_93, %c0_94], %190 {strides = array<i32>} : memref<8x32xf32, #tpu.memory_space<vmem>>, vector<8x32xf32>,
    } else {
    }
    %c0 = arith.constant 0 : index
    %c0_1 = arith.constant 0 : index
    %3 = vector.load %arg22[%c0, %c0_1] : memref<8x32xf32, #tpu.memory_space<vmem>>, vector<8x32xf32>
    %c0_2 = arith.constant 0 : index
    %c0_3 = arith.constant 0 : index
    %4 = vector.load %arg23[%c0_2, %c0_3] : memref<8x32xf32, #tpu.memory_space<vmem>>, vector<8x32xf32>
    %c0_4 = arith.constant 0 : index
    %c0_5 = arith.constant 0 : index
    %5 = vector.load %arg24[%c0_4, %c0_5] : memref<8x32xf32, #tpu.memory_space<vmem>>, vector<8x32xf32>
    %c0_6 = arith.constant 0 : index
    %c0_7 = arith.constant 0 : index
    %6 = vector.load %arg25[%c0_6, %c0_7] : memref<8x32xf32, #tpu.memory_space<vmem>>, vector<8x32xf32>
    %c0_8 = arith.constant 0 : index
    %c0_9 = arith.constant 0 : index
    %c0_10 = arith.constant 0 : index
    %7 = vector.load %arg3[%c0_8, %c0_9, %c0_10] : memref<8x16x64xbf16, #tpu.memory_space<vmem>>, vector<8x16x64xbf16>
    %c0_11 = arith.constant 0 : index
    %c0_12 = arith.constant 0 : index
    %c0_13 = arith.constant 0 : index
    %8 = vector.load %arg4[%c0_11, %c0_12, %c0_13] : memref<8x8x32xbf16, #tpu.memory_space<vmem>>, vector<8x8x32xbf16>
    %c0_14 = arith.constant 0 : index
    %c0_15 = arith.constant 0 : index
    %c0_16 = arith.constant 0 : index
    %9 = vector.load %arg2[%c0_14, %c0_15, %c0_16] : memref<8x128x32xbf16, #tpu.memory_space<vmem>>, vector<8x128x32xbf16>
    %10 = arith.truncf %5 : vector<8x32xf32> to vector<8x32xbf16>
    %c0_17 = arith.constant 0 : index
    %c0_18 = arith.constant 0 : index
    %11 = vector.load %arg8[%c0_17, %c0_18] : memref<32x96xbf16, #tpu.memory_space<vmem>>, vector<32x96xbf16>
    %cst = arith.constant dense<0.000000e+00> : vector<8x96xf32>
    %12 = tpu.matmul %10, %11, %cst {dimension_numbers = #tpu.dot_dimension_numbers<[1], [0], [0], [1], [0, 0, 1, 1], [], []>} : vector<8x32xbf16>, vector<32x96xbf16>, vector<8x96xf32> -> vector<8x96xf32>
    %c0_19 = arith.constant 0 : index
    %c0_20 = arith.constant 0 : index
    %13 = vector.load %arg9[%c0_19, %c0_20] : memref<1x96xf32, #tpu.memory_space<vmem>>, vector<1x96xf32>
    %14 = vector.broadcast %13 : vector<1x96xf32> to vector<8x96xf32>
    %15 = arith.addf %12, %14 : vector<8x96xf32>
    %16 = vector.extract_strided_slice %15 {offsets = [0, 0], sizes = [8, 32], strides = [1, 1]} : vector<8x96xf32> to vector<8x32xf32>
    %17 = vector.extract_strided_slice %15 {offsets = [0, 32], sizes = [8, 64], strides = [1, 1]} : vector<8x96xf32> to vector<8x64xf32>
    %18 = arith.negf %17 : vector<8x64xf32>
    %19 = math.exp %18 : vector<8x64xf32>
    %cst_21 = arith.constant 1.000000e+00 : f32
    %20 = vector.broadcast %cst_21 : f32 to vector<8x64xf32>
    %21 = arith.addf %20, %19 : vector<8x64xf32>
    %22 = arith.divf %20, %21 : vector<8x64xf32>
    %23 = vector.shape_cast %16 : vector<8x32xf32> to vector<8x1x32xf32>
    %24 = arith.extf %9 : vector<8x128x32xbf16> to vector<8x128x32xf32>
    %25 = vector.broadcast %23 : vector<8x1x32xf32> to vector<8x128x32xf32>
    %26 = arith.addf %24, %25 : vector<8x128x32xf32>
    %cst_22 = arith.constant 0.000000e+00 : f32
    %27 = vector.broadcast %cst_22 : f32 to vector<8x128x32xf32>
    %28 = arith.maximumf %26, %27 : vector<8x128x32xf32>
    %c0_23 = arith.constant 0 : index
    %c0_24 = arith.constant 0 : index
    %29 = vector.load %arg10[%c0_23, %c0_24] : memref<1x32xf32, #tpu.memory_space<vmem>>, vector<1x32xf32>
    %30 = vector.shape_cast %29 : vector<1x32xf32> to vector<1x1x32xf32>
    %31 = vector.broadcast %30 : vector<1x1x32xf32> to vector<8x128x32xf32>
    %32 = arith.mulf %28, %31 : vector<8x128x32xf32>
    %cst_25 = arith.constant dense<0.000000e+00> : vector<8x128xf32>
    %33 = vector.multi_reduction <add>, %32, %cst_25 [2] : vector<8x128x32xf32> to vector<8x128xf32>
    %c0_26 = arith.constant 0 : index
    %c0_27 = arith.constant 0 : index
    %34 = vector.load %arg11[%c0_26, %c0_27] : memref<1x1xf32, #tpu.memory_space<vmem>>, vector<1x1xf32>
    %35 = vector.broadcast %34 : vector<1x1xf32> to vector<8x128xf32>
    %36 = arith.addf %33, %35 : vector<8x128xf32>
    %c0_28 = arith.constant 0 : index
    %c0_29 = arith.constant 0 : index
    %37 = vector.load %arg12[%c0_28, %c0_29] : memref<1x128xf32, #tpu.memory_space<vmem>>, vector<1x128xf32>
    %38 = vector.broadcast %37 : vector<1x128xf32> to vector<8x128xf32>
    %39 = arith.addf %36, %38 : vector<8x128xf32>
    %cst_30 = arith.constant dense<0xFF800000> : vector<8xf32>
    %40 = vector.multi_reduction <maximumf>, %39, %cst_30 [1] : vector<8x128xf32> to vector<8xf32>
    %41 = vector.shape_cast %40 : vector<8xf32> to vector<8x1xf32>
    %42 = vector.broadcast %41 : vector<8x1xf32> to vector<8x128xf32>
    %43 = arith.subf %39, %42 : vector<8x128xf32>
    %44 = math.exp %43 : vector<8x128xf32>
    %cst_31 = arith.constant dense<0.000000e+00> : vector<8xf32>
    %45 = vector.multi_reduction <add>, %44, %cst_31 [1] : vector<8x128xf32> to vector<8xf32>
    %46 = vector.shape_cast %45 : vector<8xf32> to vector<8x1xf32>
    %47 = vector.broadcast %46 : vector<8x1xf32> to vector<8x128xf32>
    %48 = arith.divf %44, %47 : vector<8x128xf32>
    %49 = vector.extract_strided_slice %48 {offsets = [0, 0], sizes = [8, 16], strides = [1, 1]} : vector<8x128xf32> to vector<8x16xf32>
    %50 = vector.shape_cast %49 : vector<8x16xf32> to vector<8x16x1xf32>
    %51 = arith.extf %7 : vector<8x16x64xbf16> to vector<8x16x64xf32>
    %52 = vector.broadcast %50 : vector<8x16x1xf32> to vector<8x16x64xf32>
    %53 = arith.mulf %52, %51 : vector<8x16x64xf32>
    %cst_32 = arith.constant dense<0.000000e+00> : vector<8x64xf32>
    %54 = vector.multi_reduction <add>, %53, %cst_32 [1] : vector<8x16x64xf32> to vector<8x64xf32>
    %55 = arith.mulf %22, %54 : vector<8x64xf32>
    %56 = vector.shape_cast %3 : vector<8x32xf32> to vector<8x1x32xf32>
    %57 = arith.extf %8 : vector<8x8x32xbf16> to vector<8x8x32xf32>
    %58 = vector.broadcast %56 : vector<8x1x32xf32> to vector<8x8x32xf32>
    %59 = arith.mulf %57, %58 : vector<8x8x32xf32>
    %cst_33 = arith.constant dense<0.000000e+00> : vector<8x8xf32>
    %60 = vector.multi_reduction <add>, %59, %cst_33 [2] : vector<8x8x32xf32> to vector<8x8xf32>
    %cst_34 = arith.constant 0.000000e+00 : f32
    %61 = vector.broadcast %cst_34 : f32 to vector<8x8xf32>
    %62 = arith.cmpf ogt, %60, %61 : vector<8x8xf32>
    %cst_35 = arith.constant 2.000000e-01 : f32
    %63 = vector.broadcast %cst_35 : f32 to vector<8x8xf32>
    %64 = arith.mulf %63, %60 : vector<8x8xf32>
    %65 = arith.select %62, %60, %64 : vector<8x8xi1>, vector<8x8xf32>
    %cst_36 = arith.constant dense<0xFF800000> : vector<8xf32>
    %66 = vector.multi_reduction <maximumf>, %65, %cst_36 [1] : vector<8x8xf32> to vector<8xf32>
    %67 = vector.shape_cast %66 : vector<8xf32> to vector<8x1xf32>
    %68 = vector.broadcast %67 : vector<8x1xf32> to vector<8x8xf32>
    %69 = arith.subf %65, %68 : vector<8x8xf32>
    %70 = math.exp %69 : vector<8x8xf32>
    %cst_37 = arith.constant dense<0.000000e+00> : vector<8xf32>
    %71 = vector.multi_reduction <add>, %70, %cst_37 [1] : vector<8x8xf32> to vector<8xf32>
    %72 = vector.shape_cast %71 : vector<8xf32> to vector<8x1xf32>
    %73 = vector.broadcast %72 : vector<8x1xf32> to vector<8x8xf32>
    %74 = arith.divf %70, %73 : vector<8x8xf32>
    %75 = vector.shape_cast %74 : vector<8x8xf32> to vector<8x8x1xf32>
    %76 = arith.extf %8 : vector<8x8x32xbf16> to vector<8x8x32xf32>
    %77 = vector.broadcast %75 : vector<8x8x1xf32> to vector<8x8x32xf32>
    %78 = arith.mulf %77, %76 : vector<8x8x32xf32>
    %cst_38 = arith.constant dense<0.000000e+00> : vector<8x32xf32>
    %79 = vector.multi_reduction <add>, %78, %cst_38 [1] : vector<8x8x32xf32> to vector<8x32xf32>
    %80 = arith.index_cast %arg1 : i32 to index
    %c0_39 = arith.constant 0 : index
    %c0_40 = arith.constant 0 : index
    %81 = vector.load %arg5[%80, %c0_39, %c0_40] : memref<8x8x32xbf16, #tpu.memory_space<vmem>>, vector<1x8x32xbf16>
    %82 = vector.shape_cast %81 : vector<1x8x32xbf16> to vector<8x32xbf16>
    %c0_41 = arith.constant 0 : index
    %c0_42 = arith.constant 0 : index
    %83 = vector.load %arg13[%c0_41, %c0_42] : memref<64x128xbf16, #tpu.memory_space<vmem>>, vector<64x128xbf16>
    %84 = vector.extract_strided_slice %83 {offsets = [0, 0], sizes = [32, 128], strides = [1, 1]} : vector<64x128xbf16> to vector<32x128xbf16>
    %cst_43 = arith.constant dense<0.000000e+00> : vector<8x128xf32>
    %85 = tpu.matmul %82, %84, %cst_43 {dimension_numbers = #tpu.dot_dimension_numbers<[1], [0], [0], [1], [0, 0, 1, 1], [], []>} : vector<8x32xbf16>, vector<32x128xbf16>, vector<8x128xf32> -> vector<8x128xf32>
    %86 = arith.truncf %79 : vector<8x32xf32> to vector<8x32xbf16>
    %87 = vector.extract_strided_slice %83 {offsets = [32, 0], sizes = [32, 128], strides = [1, 1]} : vector<64x128xbf16> to vector<32x128xbf16>
    %cst_44 = arith.constant dense<0.000000e+00> : vector<8x128xf32>
    %88 = tpu.matmul %86, %87, %cst_44 {dimension_numbers = #tpu.dot_dimension_numbers<[1], [0], [0], [1], [0, 0, 1, 1], [], []>} : vector<8x32xbf16>, vector<32x128xbf16>, vector<8x128xf32> -> vector<8x128xf32>
    %89 = arith.addf %85, %88 : vector<8x128xf32>
    %90 = arith.truncf %3 : vector<8x32xf32> to vector<8x32xbf16>
    %c0_45 = arith.constant 0 : index
    %c0_46 = arith.constant 0 : index
    %91 = vector.load %arg14[%c0_45, %c0_46] : memref<32x128xbf16, #tpu.memory_space<vmem>>, vector<32x128xbf16>
    %cst_47 = arith.constant dense<0.000000e+00> : vector<8x128xf32>
    %92 = tpu.matmul %90, %91, %cst_47 {dimension_numbers = #tpu.dot_dimension_numbers<[1], [0], [0], [1], [0, 0, 1, 1], [], []>} : vector<8x32xbf16>, vector<32x128xbf16>, vector<8x128xf32> -> vector<8x128xf32>
    %93 = arith.addf %89, %92 : vector<8x128xf32>
    %c0_48 = arith.constant 0 : index
    %c0_49 = arith.constant 0 : index
    %94 = vector.load %arg15[%c0_48, %c0_49] : memref<1x128xf32, #tpu.memory_space<vmem>>, vector<1x128xf32>
    %95 = vector.broadcast %94 : vector<1x128xf32> to vector<8x128xf32>
    %96 = arith.addf %93, %95 : vector<8x128xf32>
    %97 = vector.extract_strided_slice %96 {offsets = [0, 0], sizes = [8, 32], strides = [1, 1]} : vector<8x128xf32> to vector<8x32xf32>
    %98 = arith.negf %97 : vector<8x32xf32>
    %99 = math.exp %98 : vector<8x32xf32>
    %cst_50 = arith.constant 1.000000e+00 : f32
    %100 = vector.broadcast %cst_50 : f32 to vector<8x32xf32>
    %101 = arith.addf %100, %99 : vector<8x32xf32>
    %102 = arith.divf %100, %101 : vector<8x32xf32>
    %103 = vector.extract_strided_slice %96 {offsets = [0, 32], sizes = [8, 32], strides = [1, 1]} : vector<8x128xf32> to vector<8x32xf32>
    %104 = arith.negf %103 : vector<8x32xf32>
    %105 = math.exp %104 : vector<8x32xf32>
    %cst_51 = arith.constant 1.000000e+00 : f32
    %106 = vector.broadcast %cst_51 : f32 to vector<8x32xf32>
    %107 = arith.addf %106, %105 : vector<8x32xf32>
    %108 = arith.divf %106, %107 : vector<8x32xf32>
    %109 = vector.extract_strided_slice %96 {offsets = [0, 64], sizes = [8, 32], strides = [1, 1]} : vector<8x128xf32> to vector<8x32xf32>
    %110 = math.tanh %109 : vector<8x32xf32>
    %111 = vector.extract_strided_slice %96 {offsets = [0, 96], sizes = [8, 32], strides = [1, 1]} : vector<8x128xf32> to vector<8x32xf32>
    %112 = arith.negf %111 : vector<8x32xf32>
    %113 = math.exp %112 : vector<8x32xf32>
    %cst_52 = arith.constant 1.000000e+00 : f32
    %114 = vector.broadcast %cst_52 : f32 to vector<8x32xf32>
    %115 = arith.addf %114, %113 : vector<8x32xf32>
    %116 = arith.divf %114, %115 : vector<8x32xf32>
    %117 = arith.mulf %108, %4 : vector<8x32xf32>
    %118 = arith.mulf %102, %110 : vector<8x32xf32>
    %119 = arith.addf %117, %118 : vector<8x32xf32>
    %120 = math.tanh %119 : vector<8x32xf32>
    %121 = arith.mulf %116, %120 : vector<8x32xf32>
    %122 = arith.index_cast %arg1 : i32 to index
    %c0_53 = arith.constant 0 : index
    %c0_54 = arith.constant 0 : index
    %123 = vector.load %arg6[%122, %c0_53, %c0_54] : memref<8x8x32xbf16, #tpu.memory_space<vmem>>, vector<1x8x32xbf16>
    %124 = vector.shape_cast %123 : vector<1x8x32xbf16> to vector<8x32xbf16>
    %c0_55 = arith.constant 0 : index
    %c0_56 = arith.constant 0 : index
    %125 = vector.load %arg16[%c0_55, %c0_56] : memref<128x128xbf16, #tpu.memory_space<vmem>>, vector<128x128xbf16>
    %126 = vector.extract_strided_slice %125 {offsets = [0, 0], sizes = [32, 128], strides = [1, 1]} : vector<128x128xbf16> to vector<32x128xbf16>
    %cst_57 = arith.constant dense<0.000000e+00> : vector<8x128xf32>
    %127 = tpu.matmul %124, %126, %cst_57 {dimension_numbers = #tpu.dot_dimension_numbers<[1], [0], [0], [1], [0, 0, 1, 1], [], []>} : vector<8x32xbf16>, vector<32x128xbf16>, vector<8x128xf32> -> vector<8x128xf32>
    %128 = arith.truncf %121 : vector<8x32xf32> to vector<8x32xbf16>
    %129 = vector.extract_strided_slice %125 {offsets = [32, 0], sizes = [32, 128], strides = [1, 1]} : vector<128x128xbf16> to vector<32x128xbf16>
    %cst_58 = arith.constant dense<0.000000e+00> : vector<8x128xf32>
    %130 = tpu.matmul %128, %129, %cst_58 {dimension_numbers = #tpu.dot_dimension_numbers<[1], [0], [0], [1], [0, 0, 1, 1], [], []>} : vector<8x32xbf16>, vector<32x128xbf16>, vector<8x128xf32> -> vector<8x128xf32>
    %131 = arith.addf %127, %130 : vector<8x128xf32>
    %132 = arith.truncf %55 : vector<8x64xf32> to vector<8x64xbf16>
    %133 = vector.extract_strided_slice %125 {offsets = [64, 0], sizes = [64, 128], strides = [1, 1]} : vector<128x128xbf16> to vector<64x128xbf16>
    %cst_59 = arith.constant dense<0.000000e+00> : vector<8x128xf32>
    %134 = tpu.matmul %132, %133, %cst_59 {dimension_numbers = #tpu.dot_dimension_numbers<[1], [0], [0], [1], [0, 0, 1, 1], [], []>} : vector<8x64xbf16>, vector<64x128xbf16>, vector<8x128xf32> -> vector<8x128xf32>
    %135 = arith.addf %131, %134 : vector<8x128xf32>
    %136 = arith.truncf %5 : vector<8x32xf32> to vector<8x32xbf16>
    %c0_60 = arith.constant 0 : index
    %c0_61 = arith.constant 0 : index
    %137 = vector.load %arg17[%c0_60, %c0_61] : memref<32x128xbf16, #tpu.memory_space<vmem>>, vector<32x128xbf16>
    %cst_62 = arith.constant dense<0.000000e+00> : vector<8x128xf32>
    %138 = tpu.matmul %136, %137, %cst_62 {dimension_numbers = #tpu.dot_dimension_numbers<[1], [0], [0], [1], [0, 0, 1, 1], [], []>} : vector<8x32xbf16>, vector<32x128xbf16>, vector<8x128xf32> -> vector<8x128xf32>
    %139 = arith.addf %135, %138 : vector<8x128xf32>
    %c0_63 = arith.constant 0 : index
    %c0_64 = arith.constant 0 : index
    %140 = vector.load %arg18[%c0_63, %c0_64] : memref<1x128xf32, #tpu.memory_space<vmem>>, vector<1x128xf32>
    %141 = vector.broadcast %140 : vector<1x128xf32> to vector<8x128xf32>
    %142 = arith.addf %139, %141 : vector<8x128xf32>
    %143 = vector.extract_strided_slice %142 {offsets = [0, 0], sizes = [8, 32], strides = [1, 1]} : vector<8x128xf32> to vector<8x32xf32>
    %144 = arith.negf %143 : vector<8x32xf32>
    %145 = math.exp %144 : vector<8x32xf32>
    %cst_65 = arith.constant 1.000000e+00 : f32
    %146 = vector.broadcast %cst_65 : f32 to vector<8x32xf32>
    %147 = arith.addf %146, %145 : vector<8x32xf32>
    %148 = arith.divf %146, %147 : vector<8x32xf32>
    %149 = vector.extract_strided_slice %142 {offsets = [0, 32], sizes = [8, 32], strides = [1, 1]} : vector<8x128xf32> to vector<8x32xf32>
    %150 = arith.negf %149 : vector<8x32xf32>
    %151 = math.exp %150 : vector<8x32xf32>
    %cst_66 = arith.constant 1.000000e+00 : f32
    %152 = vector.broadcast %cst_66 : f32 to vector<8x32xf32>
    %153 = arith.addf %152, %151 : vector<8x32xf32>
    %154 = arith.divf %152, %153 : vector<8x32xf32>
    %155 = vector.extract_strided_slice %142 {offsets = [0, 64], sizes = [8, 32], strides = [1, 1]} : vector<8x128xf32> to vector<8x32xf32>
    %156 = math.tanh %155 : vector<8x32xf32>
    %157 = vector.extract_strided_slice %142 {offsets = [0, 96], sizes = [8, 32], strides = [1, 1]} : vector<8x128xf32> to vector<8x32xf32>
    %158 = arith.negf %157 : vector<8x32xf32>
    %159 = math.exp %158 : vector<8x32xf32>
    %cst_67 = arith.constant 1.000000e+00 : f32
    %160 = vector.broadcast %cst_67 : f32 to vector<8x32xf32>
    %161 = arith.addf %160, %159 : vector<8x32xf32>
    %162 = arith.divf %160, %161 : vector<8x32xf32>
    %163 = arith.mulf %154, %6 : vector<8x32xf32>
    %164 = arith.mulf %148, %156 : vector<8x32xf32>
    %165 = arith.addf %163, %164 : vector<8x32xf32>
    %166 = math.tanh %165 : vector<8x32xf32>
    %167 = arith.mulf %162, %166 : vector<8x32xf32>
    %c0_68 = arith.constant 0 : index
    %c0_69 = arith.constant 0 : index
    %168 = vector.load %arg22[%c0_68, %c0_69] : memref<8x32xf32, #tpu.memory_space<vmem>>, vector<8x32xf32>
    tpu.vector_store %arg22[%c0_68, %c0_69], %121 {strides = array<i32>} : memref<8x32xf32, #tpu.memory_space<vmem>>, vector<8x32xf32>,
    %c0_70 = arith.constant 0 : index
    %c0_71 = arith.constant 0 : index
    %169 = vector.load %arg23[%c0_70, %c0_71] : memref<8x32xf32, #tpu.memory_space<vmem>>, vector<8x32xf32>
    tpu.vector_store %arg23[%c0_70, %c0_71], %119 {strides = array<i32>} : memref<8x32xf32, #tpu.memory_space<vmem>>, vector<8x32xf32>,
    %c0_72 = arith.constant 0 : index
    %c0_73 = arith.constant 0 : index
    %170 = vector.load %arg24[%c0_72, %c0_73] : memref<8x32xf32, #tpu.memory_space<vmem>>, vector<8x32xf32>
    tpu.vector_store %arg24[%c0_72, %c0_73], %167 {strides = array<i32>} : memref<8x32xf32, #tpu.memory_space<vmem>>, vector<8x32xf32>,
    %c0_74 = arith.constant 0 : index
    %c0_75 = arith.constant 0 : index
    %171 = vector.load %arg25[%c0_74, %c0_75] : memref<8x32xf32, #tpu.memory_space<vmem>>, vector<8x32xf32>
    tpu.vector_store %arg25[%c0_74, %c0_75], %165 {strides = array<i32>} : memref<8x32xf32, #tpu.memory_space<vmem>>, vector<8x32xf32>,
    %172 = arith.truncf %121 : vector<8x32xf32> to vector<8x32xbf16>
    %c0_76 = arith.constant 0 : index
    %c0_77 = arith.constant 0 : index
    %c0_78 = arith.constant 0 : index
    %173 = vector.load %arg19[%c0_76, %c0_77, %c0_78] : memref<1x8x32xbf16, #tpu.memory_space<vmem>>, vector<1x8x32xbf16>
    %174 = vector.shape_cast %173 : vector<1x8x32xbf16> to vector<8x32xbf16>
    %175 = vector.shape_cast %172 : vector<8x32xbf16> to vector<1x8x32xbf16>
    tpu.vector_store %arg19[%c0_76, %c0_77, %c0_78], %175 {strides = array<i32>} : memref<1x8x32xbf16, #tpu.memory_space<vmem>>, vector<1x8x32xbf16>,
    %176 = arith.truncf %167 : vector<8x32xf32> to vector<8x32xbf16>
    %c0_79 = arith.constant 0 : index
    %c0_80 = arith.constant 0 : index
    %c0_81 = arith.constant 0 : index
    %177 = vector.load %arg20[%c0_79, %c0_80, %c0_81] : memref<1x8x32xbf16, #tpu.memory_space<vmem>>, vector<1x8x32xbf16>
    %178 = vector.shape_cast %177 : vector<1x8x32xbf16> to vector<8x32xbf16>
    %179 = vector.shape_cast %176 : vector<8x32xbf16> to vector<1x8x32xbf16>
    tpu.vector_store %arg20[%c0_79, %c0_80, %c0_81], %179 {strides = array<i32>} : memref<1x8x32xbf16, #tpu.memory_space<vmem>>, vector<1x8x32xbf16>,
    %c0_82 = arith.constant 0 : index
    %c0_83 = arith.constant 0 : index
    %c0_84 = arith.constant 0 : index
    %180 = vector.load %arg21[%c0_82, %c0_83, %c0_84] : memref<1x8x128xf32, #tpu.memory_space<vmem>>, vector<1x8x128xf32>
    %181 = vector.shape_cast %180 : vector<1x8x128xf32> to vector<8x128xf32>
    %182 = vector.shape_cast %48 : vector<8x128xf32> to vector<1x8x128xf32>
    tpu.vector_store %arg21[%c0_82, %c0_83, %c0_84], %182 {strides = array<i32>} : memref<1x8x128xf32, #tpu.memory_space<vmem>>, vector<1x8x128xf32>,
    return
  }
  func.func @transform_0(%arg0: i32, %arg1: i32) -> (i32, i32, i32) {
    %c0_i32 = arith.constant 0 : i32
    %c0_i32_0 = arith.constant 0 : i32
    %c0_i32_1 = arith.constant 0 : i32
    return %arg0, %c0_i32, %c0_i32_0 : i32, i32, i32
  }
  func.func @transform_1(%arg0: i32, %arg1: i32) -> (i32, i32, i32) {
    %c0_i32 = arith.constant 0 : i32
    %c0_i32_0 = arith.constant 0 : i32
    %c0_i32_1 = arith.constant 0 : i32
    return %arg0, %c0_i32, %c0_i32_0 : i32, i32, i32
  }
  func.func @transform_2(%arg0: i32, %arg1: i32) -> (i32, i32, i32) {
    %c0_i32 = arith.constant 0 : i32
    %c0_i32_0 = arith.constant 0 : i32
    %c0_i32_1 = arith.constant 0 : i32
    return %arg0, %c0_i32, %c0_i32_0 : i32, i32, i32
  }
  func.func @transform_3(%arg0: i32, %arg1: i32) -> (i32, i32, i32) {
    %c0_i32 = arith.constant 0 : i32
    %c0_i32_0 = arith.constant 0 : i32
    %c0_i32_1 = arith.constant 0 : i32
    return %c0_i32, %arg0, %c0_i32_0 : i32, i32, i32
  }
  func.func @transform_4(%arg0: i32, %arg1: i32) -> (i32, i32, i32) {
    %c0_i32 = arith.constant 0 : i32
    %c0_i32_0 = arith.constant 0 : i32
    %c0_i32_1 = arith.constant 0 : i32
    return %c0_i32, %arg0, %c0_i32_0 : i32, i32, i32
  }
  func.func @transform_5(%arg0: i32, %arg1: i32) -> (i32, i32) {
    %c0_i32 = arith.constant 0 : i32
    %c0_i32_0 = arith.constant 0 : i32
    return %arg0, %c0_i32 : i32, i32
  }
  func.func @transform_6(%arg0: i32, %arg1: i32) -> (i32, i32) {
    %c0_i32 = arith.constant 0 : i32
    %c0_i32_0 = arith.constant 0 : i32
    %c0_i32_1 = arith.constant 0 : i32
    return %c0_i32, %c0_i32_0 : i32, i32
  }
  func.func @transform_7(%arg0: i32, %arg1: i32) -> (i32, i32) {
    %c0_i32 = arith.constant 0 : i32
    %c0_i32_0 = arith.constant 0 : i32
    %c0_i32_1 = arith.constant 0 : i32
    return %c0_i32, %c0_i32_0 : i32, i32
  }
  func.func @transform_8(%arg0: i32, %arg1: i32) -> (i32, i32) {
    %c0_i32 = arith.constant 0 : i32
    %c0_i32_0 = arith.constant 0 : i32
    %c0_i32_1 = arith.constant 0 : i32
    return %c0_i32, %c0_i32_0 : i32, i32
  }
  func.func @transform_9(%arg0: i32, %arg1: i32) -> (i32, i32) {
    %c0_i32 = arith.constant 0 : i32
    %c0_i32_0 = arith.constant 0 : i32
    %c0_i32_1 = arith.constant 0 : i32
    return %c0_i32, %c0_i32_0 : i32, i32
  }
  func.func @transform_10(%arg0: i32, %arg1: i32) -> (i32, i32) {
    %c0_i32 = arith.constant 0 : i32
    %c0_i32_0 = arith.constant 0 : i32
    %c0_i32_1 = arith.constant 0 : i32
    return %c0_i32, %c0_i32_0 : i32, i32
  }
  func.func @transform_11(%arg0: i32, %arg1: i32) -> (i32, i32) {
    %c0_i32 = arith.constant 0 : i32
    %c0_i32_0 = arith.constant 0 : i32
    %c0_i32_1 = arith.constant 0 : i32
    return %c0_i32, %c0_i32_0 : i32, i32
  }
  func.func @transform_12(%arg0: i32, %arg1: i32) -> (i32, i32) {
    %c0_i32 = arith.constant 0 : i32
    %c0_i32_0 = arith.constant 0 : i32
    %c0_i32_1 = arith.constant 0 : i32
    return %c0_i32, %c0_i32_0 : i32, i32
  }
  func.func @transform_13(%arg0: i32, %arg1: i32) -> (i32, i32) {
    %c0_i32 = arith.constant 0 : i32
    %c0_i32_0 = arith.constant 0 : i32
    %c0_i32_1 = arith.constant 0 : i32
    return %c0_i32, %c0_i32_0 : i32, i32
  }
  func.func @transform_14(%arg0: i32, %arg1: i32) -> (i32, i32) {
    %c0_i32 = arith.constant 0 : i32
    %c0_i32_0 = arith.constant 0 : i32
    %c0_i32_1 = arith.constant 0 : i32
    return %c0_i32, %c0_i32_0 : i32, i32
  }
  func.func @transform_15(%arg0: i32, %arg1: i32) -> (i32, i32) {
    %c0_i32 = arith.constant 0 : i32
    %c0_i32_0 = arith.constant 0 : i32
    %c0_i32_1 = arith.constant 0 : i32
    return %c0_i32, %c0_i32_0 : i32, i32
  }
  func.func @transform_16(%arg0: i32, %arg1: i32) -> (i32, i32) {
    %c0_i32 = arith.constant 0 : i32
    %c0_i32_0 = arith.constant 0 : i32
    %c0_i32_1 = arith.constant 0 : i32
    return %c0_i32, %c0_i32_0 : i32, i32
  }
  func.func @transform_17(%arg0: i32, %arg1: i32) -> (i32, i32, i32) {
    %c0_i32 = arith.constant 0 : i32
    %c0_i32_0 = arith.constant 0 : i32
    return %arg1, %arg0, %c0_i32 : i32, i32, i32
  }
  func.func @transform_18(%arg0: i32, %arg1: i32) -> (i32, i32, i32) {
    %c0_i32 = arith.constant 0 : i32
    %c0_i32_0 = arith.constant 0 : i32
    return %arg1, %arg0, %c0_i32 : i32, i32, i32
  }
  func.func @transform_19(%arg0: i32, %arg1: i32) -> (i32, i32, i32) {
    %c0_i32 = arith.constant 0 : i32
    %c0_i32_0 = arith.constant 0 : i32
    return %arg1, %arg0, %c0_i32 : i32, i32, i32
  }
}

</mosaic_0001>

<bundles_post_ra>
// kernel: tpu_custom_call.1
= control target key start
LH: loop header
LB: loop body
LE: loop exit
PB: predicated region body
PF: predicated region fallthrough
CT: control target
= control target key end

     0   :  { %7 = vsyncpa [#allocation3], 0  ;;  %s603_s0 = inlined_call_operand.hbm [shape: f32[16,128], index: 0, kind: input, shape index: {}]   ;;  %s604_s1 = inlined_call_operand.hbm [shape: f32[8,128], index: 1, kind: input, shape index: {}]   ;;  %s605_s2 = inlined_call_operand.hbm [shape: f32[16,128], index: 2, kind: output, shape index: {}]  }
   0x1   :  { %8 = vsyncpa [#allocation6], 0 }
   0x2   :  { %9 = vsyncpa [#allocation4], 0 }
   0x3   :  { %11 = vsyncpa [#allocation4 + $0x1], 0  ;;  %s466_s9 = smov 0   ;;  %s468_s10 = smov 0  }
   0x4   :  { %s470_s11 = smov 0   ;;  %s472_s12 = smov 0  }
   0x5 LB: > { %s487_s13 = sadd.s32 4294967295, %s447_s12   ;;  %s250_s14 = sadd.s32 4294967294, %s447_s12   ;;  %s447_s12 = sphi %s472_s12, %s616_s12   ;;  %s443_s11 = sphi %s470_s11, %s615_s11   ;;  %s439_s10 = sphi %s468_s10, %s614_s10   ;;  %s435_s9 = sphi %s466_s9, %s613_s9  }
   0x6   : > { %s491_s15 = sadd.s32 1, %s447_s12   ;;  %s24_s16 = sadd.s32 1, %s443_s11 }
   0x7   : > { %s21_s17 = ssub.s32 %s447_s12, %s491_s15  ;;  %p37_p0 = scmp.ne.s32.totalorder %s439_s10, %s435_s9 }
   0x8   : > { %p22_p1 = scmp.eq.s32.totalorder %s21_s17, 0  ;;  %p38_p2 = scmp.eq.s32.totalorder %s487_s13, 0 }
   0x9   : > { %p81_p3 = scmp.ne.s32.totalorder %s443_s11, %s439_s10  ;;  %p82_p4 = scmp.eq.s32.totalorder %s487_s13, 1 }
   0xa   : > { %s503_s18 = scalar_select %p22_p1, %s443_s11, %s24_s16  }
   0xb   : > { %p507_p5 = por %p38_p2, %p37_p0  ;;  %p511_p6 = por %p82_p4, %p81_p3 }
   0xc   : > { %p88_p7 = scmp.eq.s32.totalorder %s250_s14, 1  ;;  %p251_p8 = scmp.ge.s32.totalorder %s447_s12, 1 }
   0xd   : > { %p95_p9 = scmp.lt.s32.totalorder %s447_s12, 3  ;;  %s252_s21 = sshll.u32 %s487_s13, 3 }
   0xe   : > { %p518_p10 = por %p88_p7, %p37_p0  ;;  %s107_s25 = scalar_lea.hbm %s603_s0, %s252_s21 }
   0xf   : > { %p527_p11 = pnand %p251_p8, %p95_p9  ;;  %s109_s27 = sshll.u32 %s107_s25, 4  ;;  %s110_s27 = int_to_ptr.hbm [resolvable:$true] %s109_s27 }
  0x10   : > { %s449_s28 = smov [#allocation2]   ;;  %s121_s5 = sshll.u32 %s604_s1, 4  ;;  %s122_s5 = int_to_ptr.hbm [resolvable:$true] %s121_s5 }
  0x11   : > { %p606_p12 = pneg %p527_p11  ;;  %s111_s29 = sshll.u32 %s449_s28, 4  ;;  %s112_s29 = int_to_ptr.vmem [resolvable:$true] %s111_s29 }
  0x12   : > { %s450_s6 = smov [#allocation5]   ;;  %s317_s8 = sshra.s32 %s110_s27, 4  ;;  %s318_s8 = int_to_ptr.hbm [resolvable:$true] %s317_s8 }
  0x13   : > { %p538_p13 = pnand %p606_p12, %p507_p5  ;;  %s123_s7 = sshll.u32 %s450_s6, 4  ;;  %s124_s7 = int_to_ptr.vmem [resolvable:$true] %s123_s7 }
  0x14   : > { %s319_s14 = scalar_lea.hbm %s318_s8, 8  ;;  %s324_s23 = scalar_lea.hbm %s603_s0, 16 }
  0x15   : > { %p320_p0 = scmp.ne.s32.totalorder %s318_s8, %s319_s14  ;;  %p321_p1 = pneg %p538_p13 }
  0x16   : > { %p325_p7 = scmp.lt.s32.totalorder %s318_s8, %s603_s0  ;;  %p326_p8 = scmp.lt.s32.totalorder %s324_s23, %s319_s14 }
  0x17   : > { %p322_p3 = pnand %p321_p1, %p320_p0 }
  0x18   : > { %p327_p9 = por %p326_p8, %p325_p7 }
  0x19   : > { %p323_p4 = pneg %p322_p3 }
  0x1b   : > { %p328_p12 = pnand %p327_p9, %p323_p4 }
  0x1d   : > { %331 = shalt.err (!%p328_p12)
}
  0x1e   : > { %272 = dma.hbm_to_vmem [thread:$0]  (!%p538_p13), %s110_s27, 128, %s112_s29, [#allocation3]  }
  0x1f   : > { %p612_p0 = pneg %p527_p11  ;;  %136 = sbr.rel (%p527_p11) target bundleno = 54 (0x36), region = 28 }
  0x21   : > { %p273_p1 = pnand %p612_p0, %p38_p2 }
  0x23   : > { %275 = dma.hbm_to_vmem [thread:$0]  (!%p273_p1), %s122_s5, 128, %s124_s7, [#allocation6]  }
  0x24   : > { %422 = dma.done.wait (%p507_p5), [#allocation3], 128  }
  0x25   : > { %424 = vsyncadd (%p507_p5), [#allocation3], 4294967168 }
  0x26   : > { %426 = dma.done.wait (%p38_p2), [#allocation6], 128  }
  0x27   : > { %428 = vsyncadd (%p38_p2), [#allocation6], 4294967168  ;;  %s156_s27 = sand.u32 1, %s439_s10   ;;  %s174_s30 = scalar_lea.hbm %s605_s2, %s252_s21  ;;  %v159_v0 = vld [vmem:[#allocation2] sm:$0xff]  ;;  %v160_v1 = vld [vmem:[#allocation5] sm:$0xff] }
  0x28   : > { %s256_s28 = sshll.u32 %s156_s27, 3  ;;  %s178_s19 = sshll.u32 %s174_s30, 4  ;;  %v161_v2 = vadd.f32 %v160_v1, %v159_v0  ;;  %s179_s19 = int_to_ptr.hbm [resolvable:$true] %s178_s19 }
  0x29   : > { %s158_s3 = scalar_lea.vmem [#allocation7], %s256_s28  ;;  %s164_s5 = scalar_lea.sflag [#allocation4], %s156_s27 }
  0x2a   : > { %s176_s4 = sshll.u32 %s158_s3, 4  ;;  %162 = vst [vmem:[%s158_s3] sm:$0xff] %v161_v2  ;;  %s391_s6 = sshra.s32 %s179_s19, 4  ;;  %s177_s4 = int_to_ptr.vmem [resolvable:$true] %s176_s4  ;;  %s392_s6 = int_to_ptr.hbm [resolvable:$true] %s391_s6 }
  0x2b   : > { %s393_s7 = scalar_lea.hbm %s392_s6, 8  ;;  %s397_s21 = scalar_lea.hbm %s605_s2, 16 }
  0x2c   : > { %p394_p2 = scmp.ne.s32.totalorder %s392_s6, %s393_s7  ;;  %p398_p12 = scmp.lt.s32.totalorder %s392_s6, %s605_s2 }
  0x2d   : > { %p399_p13 = scmp.lt.s32.totalorder %s397_s21, %s393_s7 }
  0x2e   : > { %p395_p5 = pnand %p394_p2, %p511_p6 }
  0x2f   : > { %p400_p3 = por %p399_p13, %p398_p12 }
  0x30   : > { %p396_p11 = pneg %p395_p5 }
  0x32   : > { %p401_p4 = pnand %p400_p3, %p396_p11 }
  0x34   : > { %404 = shalt.err (!%p401_p4)
}
  0x35   : > { %267 = dma.vmem_to_hbm [thread:$0]  (%p511_p6), %s177_s4, 128, %s179_s19, %s164_s5  }
  0x36 PF: > { %p282_p7 = scmp.ge.s32.totalorder %s447_s12, 2  ;;  %s190_s17 = sand.u32 1, %s435_s9  }
  0x37   : > { %s191_s23 = scalar_lea.sflag [#allocation4], %s190_s17 }
  0x38   : > { %p277_p8 = pnand %p282_p7, %p518_p10 }
  0x3a   : > { %p278_p9 = pneg %p277_p8 }
  0x3c   : > { %430 = dma.done.wait (%p278_p9), %s191_s23, 128  }
  0x3d   : > { %432 = vsyncadd (%p278_p9), %s191_s23, 4294967168  ;;  %p14_p0 = scmp.ge.s32.totalorder %s491_s15, 4   ;;  %s613_s9 = smov %s439_s10 }
  0x3e   : > { %s614_s10 = smov %s443_s11  ;;  %s615_s11 = smov %s503_s18 }
  0x3f   : > { %s616_s12 = smov %s491_s15  ;;  %16 = sbr.rel (!%p14_p0) target bundleno = 5 (0x5), region = 70 }
  0x44   :  { %197 = vsyncpa [#allocation3], 1 }
  0x45   :  { %199 = vsyncpa [#allocation3 + $0x1], 1 }
  0x46   :  { %200 = vsyncpa [#allocation6], 1 }
  0x47   :  { %201 = vsyncpa [#allocation4], 1 }
  0x48   :  { %203 = vsyncpa [#allocation4 + $0x1], 1 }

// kernel: tpu_custom_call.1
= control target key start
LH: loop header
LB: loop body
LE: loop exit
PB: predicated region body
PF: predicated region fallthrough
CT: control target
= control target key end

     0   :  { %s12885_s0 = inlined_call_operand.vmem [shape: bf16[8,128,32], index: 0, kind: input, shape index: {}]   ;;  %s12886_s1 = inlined_call_operand.vmem [shape: bf16[8,16,64], index: 1, kind: input, shape index: {}]   ;;  %s12887_s2 = inlined_call_operand.vmem [shape: bf16[8,8,32], index: 2, kind: input, shape index: {}]   ;;  %s12888_s3 = inlined_call_operand.vmem [shape: bf16[8,8,32], index: 3, kind: input, shape index: {}]   ;;  %s12889_s4 = inlined_call_operand.vmem [shape: bf16[8,8,32], index: 4, kind: input, shape index: {}]   ;;  %s12890_s5 = inlined_call_operand.vmem [shape: f32[8,128], index: 5, kind: input, shape index: {}]   ;;  %s12891_s6 = inlined_call_operand.vmem [shape: bf16[32,96], index: 6, kind: input, shape index: {}]   ;;  %s12892_s7 = inlined_call_operand.vmem [shape: f32[1,96], index: 7, kind: input, shape index: {}]   ;;  %s12893_s8 = inlined_call_operand.vmem [shape: f32[1,32], index: 8, kind: input, shape index: {}]   ;;  %s12894_s9 = inlined_call_operand.<no memory space> [shape: f32[1,1], index: 9, kind: input, shape index: {}]   ;;  %s12895_s10 = inlined_call_operand.vmem [shape: f32[1,128], index: 10, kind: input, shape index: {}]   ;;  %s12896_s11 = inlined_call_operand.vmem [shape: bf16[64,128], index: 11, kind: input, shape index: {}]   ;;  %s12897_s12 = inlined_call_operand.vmem [shape: bf16[32,128], index: 12, kind: input, shape index: {}]   ;;  %s12898_s13 = inlined_call_operand.vmem [shape: f32[1,128], index: 13, kind: input, shape index: {}]   ;;  %s12899_s14 = inlined_call_operand.vmem [shape: bf16[128,128], index: 14, kind: input, shape index: {}]   ;;  %s12900_s15 = inlined_call_operand.vmem [shape: bf16[32,128], index: 15, kind: input, shape index: {}]   ;;  %s12901_s16 = inlined_call_operand.vmem [shape: f32[1,128], index: 16, kind: input, shape index: {}]   ;;  %s12902_s17 = inlined_call_operand.hbm [shape: bf16[8,8,32], index: 17, kind: output, shape index: {0}]   ;;  %s12903_s18 = inlined_call_operand.hbm [shape: bf16[8,8,32], index: 18, kind: output, shape index: {1}]   ;;  %s12904_s19 = inlined_call_operand.hbm [shape: f32[8,8,128], index: 19, kind: output, shape index: {2}]  }
   0x1   :  { %13250 = sst [smem:[#allocation217_spill]] %s12885_s0  ;;  %v25_v0 = vstv %s12894_s9 }
   0x2   :  { %13251 = sst [smem:[#allocation218_spill]] %s12886_s1  ;;  %26 = vst [vmem:[#allocation6] sm:$0x1] %v25_v0 }
   0x3   :  { %13252 = sst [smem:[#allocation219_spill]] %s12887_s2 }
   0x4   :  { %13253 = sst [smem:[#allocation220_spill]] %s12888_s3 }
   0x5   :  { %13254 = sst [smem:[#allocation221_spill]] %s12889_s4 }
   0x6   :  { %13255 = sst [smem:[#allocation222_spill]] %s12890_s5 }
   0x7   :  { %13256 = sst [smem:[#allocation223_spill]] %s12891_s6 }
   0x8   :  { %13257 = sst [smem:[#allocation224_spill]] %s12892_s7 }
   0x9   :  { %13258 = sst [smem:[#allocation225_spill]] %s12893_s8 }
   0xa   :  { %13259 = sst [smem:[#allocation226_spill]] %s12895_s10 }
   0xb   :  { %13260 = sst [smem:[#allocation227_spill]] %s12896_s11 }
   0xc   :  { %13261 = sst [smem:[#allocation228_spill]] %s12897_s12 }
   0xd   :  { %27 = vsyncpa [#allocation8], 0 }
   0xe   :  { %29 = vsyncpa [#allocation8 + $0x1], 0 }
   0xf   :  { %30 = vsyncpa [#allocation10], 0 }
  0x10   :  { %32 = vsyncpa [#allocation10 + $0x1], 0  ;;  %s7733_s20 = smov 0   ;;  %s7735_s21 = smov 0  }
  0x11   :  { %s7737_s1 = smov 0   ;;  %s7739_s22 = smov 0  }
  0x12   :  { %s7741_s2 = smov 0   ;;  %s7743_s23 = smov 0  }
  0x13 LB: > { %13262 = sst [smem:[#allocation14_spill]] %s7605_s21  ;;  %s12908_s9 = sadd.s32 4294967295, %s7621_s23   ;;  %s7621_s23 = sphi %s7743_s23, %s38_s23   ;;  %s7617_s2 = sphi %s7741_s2, %s14413_s2   ;;  %s7613_s22 = sphi %s7739_s22, %s14412_s22   ;;  %s7609_s1 = sphi %s7737_s1, %s14411_s1   ;;  %s7605_s21 = sphi %s7735_s21, %s14410_s21   ;;  %s7601_s20 = sphi %s7733_s20, %s14409_s20  }
  0x14   : > { %13263 = sst [smem:[#allocation15_spill]] %s7609_s1  ;;  %s12909_s24 = sadd.s32 4294967294, %s7621_s23  }
  0x15   : > { %13264 = sst [smem:[#allocation16_spill]] %s7617_s2  ;;  %s47_s25 = sadd.s32 1, %s7617_s2 }
  0x16   : > { %s446_s3 = sadd.s32 1, %s7609_s1  ;;  %p48_p0 = scmp.ge.s32.totalorder %s47_s25, 8 }
  0x17   : > { %p456_p1 = scmp.ne.s32.totalorder %s7609_s1, %s7605_s21  ;;  %p457_p2 = scmp.eq.s32.totalorder %s12908_s9, 7 }
  0x18   : > { %p462_p3 = scmp.ne.s32.totalorder %s7605_s21, %s7601_s20  ;;  %s14415_s25 = smov (%p48_p0, %s47_s25), 0 }
  0x19   : > { %13265 = sst [smem:[#allocation17_spill]] %s14415_s25  ;;  %p7775_p4 = por %p457_p2, %p456_p1 }
  0x1a   : > { %p463_p5 = scmp.eq.s32.totalorder %s12909_s24, 7  ;;  %s441_s27 = ssub.s32 %s7617_s2, %s14415_s25 }
  0x1b   : > { %p6566_p6 = scmp.ge.s32.totalorder %s7621_s23, 1  ;;  %p444_p7 = scmp.eq.s32.totalorder %s441_s27, 0 }
  0x1c   : > { %p7784_p8 = por %p463_p5, %p462_p3  ;;  %p620_p9 = scmp.lt.s32.totalorder %s7621_s23, 9 }
  0x1d   : > { %s7790_s29 = scalar_select %p444_p7, %s7609_s1, %s446_s3  }
  0x1e   : > { %p621_p10 = pnand %p6566_p6, %p620_p9 }
  0x1f   : > { %13268 = sst [smem:[#allocation18_spill]] %s7790_s29 }
  0x20   : > { %624 = sbr.rel (%p621_p10) target bundleno = 3873 (0xf21), region = 88 }
  0x25   : > { %s7793_s0 = sand.u32 1, %s7605_s21   ;;  %p6570_p11 = scmp.ne.s32.totalorder %s7613_s22, 0 }
  0x26   : > { %s6567_s30 = sshll.u32 %s7793_s0, 2  ;;  %s6569_s9 = sshll.u32 %s7793_s0, 3 }
  0x27   : > { %s7797_s24 = scalar_lea.vmem [#allocation7], %s6567_s30  ;;  %s7799_s25 = scalar_lea.vmem [#allocation9], %s6567_s30 }
  0x28   : > { %s7801_s27 = scalar_lea.vmem [#allocation11], %s6569_s9  ;;  %746 = sbr.rel (%p6570_p11) target bundleno = 172 (0xac), region = 92 }
  0x29   : > { %s13269_s5 = sld [smem:[#allocation222_spill]] (!%p6570_p11)  ;;  %s7623_s29 = smov (!%p6570_p11), 96  }
  0x2a   : > { %s7624_s1 = smov (!%p6570_p11), 32   ;;  %s7625_s21 = smov (!%p6570_p11), 64  }
  0x2d   : > { %vm748_vm0 = vcmask 261120  }
  0x2f   : > { %v747_v1 = vld [vmem:[%s13269_s5] sm:$0xff] }
  0x30   : > { %751 = vrot.lane.b32.xlu0 %v747_v1, %s7623_s29  ;;  %759 = vrot.lane.b32.xlu1 %v747_v1, %s7624_s1  ;;  %749 = vst.msk [vmem:[#allocation2] sm:$0xff] %vm748_vm0, %v747_v1 }
  0x38   : > { %755 = vrot.lane.b32.xlu0 %v747_v1, %s7625_s21 }
  0xa2   : > { %v752_v2 = vpop.permute.xlu0 %751  ;;  %v760_v3 = vpop.permute.xlu1 %759 }
  0xa3   : > { %754 = vst.msk [vmem:[#allocation3] sm:$0xff] %vm748_vm0, %v752_v2 }
  0xa4   : > { %762 = vst.msk [vmem:[#allocation5] sm:$0xff] %vm748_vm0, %v760_v3 }
  0xaa   : > { %v756_v4 = vpop.permute.xlu0 %755 }
  0xab   : > { %758 = vst.msk [vmem:[#allocation4] sm:$0xff] %vm748_vm0, %v756_v4 }
  0xac PF: > { %s13270_s6 = sld [smem:[#allocation223_spill]]  ;;  %vm13049_vm1 = vcmask 261120   ;;  %vm2795_vm2 = vcmask 130112   ;;  %vm2799_vm3 = vcmask 195712   ;;  %vm2803_vm4 = vcmask 261312   ;;  %s13244_s1 = smov 32  }
  0xad   : > { %s13272_s7 = sld [smem:[#allocation224_spill]]  ;;  %vm2807_vm5 = vcmask 326912   ;;  %vm13050_vm6 = vcmask 392512   ;;  %vm2815_vm7 = vcmask 458112   ;;  %vm13213_vm8 = vcmask 523712   ;;  %s12105_s2 = sshll.u32 %s7613_s22, 2 }
  0xae   : > { %s13273_s30 = sld [smem:[#allocation217_spill]]  ;;  %vm13210_vm9 = vcmask 589312   ;;  %vm13055_vm10 = vcmask 654912   ;;  %vm13052_vm11 = vcmask 720512   ;;  %vm13054_vm12 = vcmask 786112   ;;  %s6307_s9 = scalar_lea.hbm %s12902_s17, %s12105_s2 }
  0xaf   : > { %s13275_s8 = sld [smem:[#allocation225_spill]]  ;;  %vm13209_vm13 = vcmask 851712   ;;  %vm13208_vm14 = vcmask 917312   ;;  %vm13207_vm15 = vcmask 982912   ;;  %vm13206_vm0 = vcmask 1048512  }
  0xb0   : > { %s13314_s10 = sld [smem:[#allocation226_spill]] }
  0xb1   : > { %s14042_s5 = sld [smem:[#allocation219_spill]] }
  0xb2   : > { %v6665_v5 = vld [vmem:[%s13270_s6 + $0x8] sm:$0xff]  ;;  %v6664_v6 = vld [vmem:[%s13270_s6] sm:$0xff]  ;;  %v765_v7 = vld [vmem:[#allocation4] sm:$0xff]  ;;  %s14145_s29 = sld [smem:[#allocation218_spill]]  ;;  %s13247_s6 = smov 96  }
  0xb3   : > { %950 = vmatpush.bf16.msra.mxu0 %v6665_v5  ;;  %v7813_v8 = vpack.c.bf16 %v765_v7, %v765_v7  ;;  %v7151_v9 = vld [vmem:[%s13272_s7] ss:$0 sm:$0xff]  ;;  %s14183_s11 = sld [smem:[#allocation227_spill]] }
  0xb4   : > { %v6997_v10 = vld [vmem:[%s13273_s30 + $0x10] sm:$0xff]   ;;  %v6996_v12 = vld [vmem:[%s13273_s30 + $0x8] sm:$0xff]   ;;  %v6731_v13 = vld [vmem:[%s13273_s30] sm:$0xff]   ;;  %s14184_s12 = sld [smem:[#allocation228_spill]] }
  0xb5   : > { %13271 = vst [vmem:[#allocation19_spill] sm:$0xff] %v7813_v8  ;;  %v6740_v15 = vunpack.c.l.bf16 %v6997_v10  ;;  %v6736_v16 = vunpack.c.l.bf16 %v6996_v12  ;;  %v6732_v17 = vunpack.c.l.bf16 %v6731_v13  ;;  %v6741_v19 = vunpack.c.h.bf16 %v6997_v10  ;;  %v7838_v23 = vld [vmem:[%s13275_s8] ss:$0 sm:$0xff]  ;;  %v6998_v34 = vld [vmem:[%s13273_s30 + $0x18] sm:$0xff]   ;;  %v7000_v49 = vld [vmem:[%s13273_s30 + $0x28] sm:$0xff]   ;;  %s14187_s3 = sld [smem:[#allocation220_spill]] }
  0xb6   : > { %v6737_v20 = vunpack.c.h.bf16 %v6996_v12  ;;  %v6733_v21 = vunpack.c.h.bf16 %v6731_v13  ;;  %v6999_v29 = vld [vmem:[%s13273_s30 + $0x20] sm:$0xff]   ;;  %v6745_v41 = vunpack.c.h.bf16 %v6998_v34  ;;  %v6744_v42 = vunpack.c.l.bf16 %v6998_v34  ;;  %v7002_v1 = vld [vmem:[%s13273_s30 + $0x38] sm:$0xff]   ;;  %s14246_s4 = sld [smem:[#allocation221_spill]] }
  0xb7   : > { %951 = vmatpush.bf16.msra.mxu0 %v6664_v6  ;;  %v6748_v38 = vunpack.c.l.bf16 %v6999_v29  ;;  %v6753_v54 = vunpack.c.h.bf16 %v7000_v49  ;;  %v6752_v57 = vunpack.c.l.bf16 %v7000_v49  ;;  %v6749_v58 = vunpack.c.h.bf16 %v6999_v29  ;;  %v7001_v6 = vld [vmem:[%s13273_s30 + $0x30] sm:$0xff]  }
  0xb8   : > { %v6760_v7 = vunpack.c.l.bf16 %v7002_v1  ;;  %v6756_v12 = vunpack.c.l.bf16 %v7001_v6 }
  0xba   : > { %6579 = vmatmul.msk.bf16.vlgmr.msra.gmra.mxu0 %vm13049_vm1, %v7813_v8 }
  0xbb   : > { %s5169_s21 = scalar_lea.vmem %s14187_s3, %s12105_s2 }
  0xbc   : > { %s5348_s3 = scalar_lea.vmem %s14246_s4, %s12105_s2 }
 0x137   : > { %v953_v11 = vpop.f32.mrf.mxu0 }
 0x138   : > { %v7829_v14 = vadd.f32 %v7151_v9, %v953_v11  ;;  %v6757_v11 = vunpack.c.h.bf16 %v7001_v6 }
 0x13a   : > { %13274 = vst [vmem:[#allocation20_spill] sm:$0xff] %v7829_v14  ;;  %v7832_v18 = vperm.slane %v7829_v14, 0 }
 0x13c   : > { %v1132_v22 = vadd.f32 %v6740_v15, %v7832_v18  ;;  %v1130_v24 = vadd.f32 %v6736_v16, %v7832_v18  ;;  %v1128_v25 = vadd.f32 %v6732_v17, %v7832_v18  ;;  %v1133_v28 = vadd.f32 %v6741_v19, %v7832_v18 }
 0x13d   : > { %v1131_v32 = vadd.f32 %v6737_v20, %v7832_v18  ;;  %v1129_v33 = vadd.f32 %v6733_v21, %v7832_v18  ;;  %v1136_v48 = vadd.f32 %v6748_v38, %v7832_v18  ;;  %v1135_v52 = vadd.f32 %v6745_v41, %v7832_v18 }
 0x13e   : > { %v1260_v27 = vmax.f32 %v1132_v22, 0.0  ;;  %v1258_v30 = vmax.f32 %v1130_v24, 0.0  ;;  %v1256_v31 = vmax.f32 %v1128_v25, 0.0  ;;  %v1261_v40 = vmax.f32 %v1133_v28, 0.0  ;;  %v7003_v22 = vld [vmem:[%s13273_s30 + $0x40] sm:$0xff]  }
 0x13f   : > { %v955_v26 = vpop.f32.mrf.mxu0  ;;  %v1259_v45 = vmax.f32 %v1131_v32, 0.0  ;;  %v1257_v46 = vmax.f32 %v1129_v33, 0.0  ;;  %v1134_v53 = vadd.f32 %v6744_v42, %v7832_v18  ;;  %v1264_v56 = vmax.f32 %v1136_v48, 0.0 }
 0x140   : > { %v1392_v35 = vmul.f32 %v7838_v23, %v1260_v27  ;;  %v1390_v36 = vmul.f32 %v7838_v23, %v1258_v30  ;;  %v1388_v37 = vmul.f32 %v7838_v23, %v1256_v31  ;;  %v1393_v47 = vmul.f32 %v7838_v23, %v1261_v40  ;;  %v7004_v40 = vld [vmem:[%s13273_s30 + $0x48] sm:$0xff]  }
 0x141   : > { %v1391_v50 = vmul.f32 %v7838_v23, %v1259_v45  ;;  %v1389_v51 = vmul.f32 %v7838_v23, %v1257_v46  ;;  %v1263_v61 = vmax.f32 %v1135_v52, 0.0  ;;  %v1262_v62 = vmax.f32 %v1134_v53, 0.0  ;;  %v7005_v45 = vld [vmem:[%s13273_s30 + $0x50] sm:$0xff]  }
 0x142   : > { %v1528_v39 = vsel %vm13049_vm1, %v1392_v35, 0.0  ;;  %v1522_v43 = vsel %vm13049_vm1, %v1390_v36, 0.0  ;;  %v1516_v44 = vsel %vm13049_vm1, %v1388_v37, 0.0  ;;  %v1531_v55 = vsel %vm13049_vm1, %v1393_v47, 0.0 }
 0x143   : > { %1529 = vadd.xlane.f32.xlu2 %v1528_v39  ;;  %1523 = vadd.xlane.f32.xlu1 %v1522_v43  ;;  %v1525_v59 = vsel %vm13049_vm1, %v1391_v50, 0.0  ;;  %v1519_v60 = vsel %vm13049_vm1, %v1389_v51, 0.0  ;;  %v1396_v63 = vmul.f32 %v7838_v23, %v1264_v56  ;;  %v1139_v0 = vadd.f32 %v6753_v54, %v7832_v18 }
 0x144   : > { %1517 = vadd.xlane.f32.xlu0 %v1516_v44  ;;  %v1395_v2 = vmul.f32 %v7838_v23, %v1263_v61  ;;  %v1394_v3 = vmul.f32 %v7838_v23, %v1262_v62  ;;  %v1138_v4 = vadd.f32 %v6752_v57, %v7832_v18  ;;  %v1137_v5 = vadd.f32 %v6749_v58, %v7832_v18 }
 0x145   : > { %v1540_v9 = vsel %vm13049_vm1, %v1396_v63, 0.0  ;;  %v1267_v10 = vmax.f32 %v1139_v0, 0.0  ;;  %v977_v19 = vrot.slane %v7829_v14, 1  ;;  %v1142_v21 = vadd.f32 %v6760_v7, %v7832_v18 }
 0x146   : > { %v1537_v13 = vsel %vm13049_vm1, %v1395_v2, 0.0  ;;  %v1534_v15 = vsel %vm13049_vm1, %v1394_v3, 0.0  ;;  %v1266_v16 = vmax.f32 %v1138_v4, 0.0  ;;  %v1265_v17 = vmax.f32 %v1137_v5, 0.0 }
 0x147   : > { %v1399_v20 = vmul.f32 %v7838_v23, %v1267_v10  ;;  %v1141_v26 = vadd.f32 %v6757_v11, %v7832_v18  ;;  %v1140_v27 = vadd.f32 %v6756_v12, %v7832_v18  ;;  %v6761_v28 = vunpack.c.h.bf16 %v7002_v1 }
 0x148   : > { %v1398_v24 = vmul.f32 %v7838_v23, %v1266_v16  ;;  %v1397_v25 = vmul.f32 %v7838_v23, %v1265_v17  ;;  %v6765_v29 = vunpack.c.h.bf16 %v7003_v22  ;;  %v7894_v30 = vperm.slane %v977_v19, 0 }
 0x149   : > { %v1549_v31 = vsel %vm13049_vm1, %v1399_v20, 0.0  ;;  %v1270_v32 = vmax.f32 %v1142_v21, 0.0  ;;  %v6764_v33 = vunpack.c.l.bf16 %v7003_v22  ;;  %v1269_v36 = vmax.f32 %v1141_v26, 0.0 }
 0x14a   : > { %v1546_v34 = vsel %vm13049_vm1, %v1398_v24, 0.0  ;;  %v1543_v35 = vsel %vm13049_vm1, %v1397_v25, 0.0  ;;  %v1268_v37 = vmax.f32 %v1140_v27, 0.0  ;;  %v1145_v39 = vadd.f32 %v6765_v29, %v7894_v30 }
 0x14b   : > { %1532 = vadd.xlane.f32.xlu2 %v1531_v55  ;;  %1526 = vadd.xlane.f32.xlu1 %v1525_v59  ;;  %v1402_v38 = vmul.f32 %v7838_v23, %v1270_v32  ;;  %v1401_v41 = vmul.f32 %v7838_v23, %v1269_v36  ;;  %v1143_v43 = vadd.f32 %v6761_v28, %v7832_v18  ;;  %v6768_v46 = vunpack.c.l.bf16 %v7004_v40 }
 0x14c   : > { %1520 = vadd.xlane.f32.xlu0 %v1519_v60  ;;  %v1400_v42 = vmul.f32 %v7838_v23, %v1268_v37  ;;  %v1144_v44 = vadd.f32 %v6764_v33, %v7894_v30  ;;  %v1273_v48 = vmax.f32 %v1145_v39, 0.0  ;;  %v6772_v49 = vunpack.c.l.bf16 %v7005_v45  ;;  %v7006_v60 = vld [vmem:[%s13273_s30 + $0x58] sm:$0xff]  }
 0x14d   : > { %v1558_v47 = vsel %vm13049_vm1, %v1402_v38, 0.0  ;;  %v6769_v50 = vunpack.c.h.bf16 %v7004_v40  ;;  %v1555_v51 = vsel %vm13049_vm1, %v1401_v41, 0.0  ;;  %v1271_v53 = vmax.f32 %v1143_v43, 0.0 }
 0x14e   : > { %v1552_v52 = vsel %vm13049_vm1, %v1400_v42, 0.0  ;;  %v1272_v54 = vmax.f32 %v1144_v44, 0.0  ;;  %v1405_v18 = vmul.f32 %v7838_v23, %v1273_v48  ;;  %v1148_v55 = vadd.f32 %v6772_v49, %v7894_v30  ;;  %v7010_v48 = vld [vmem:[%s13273_s30 + $0x78] sm:$0xff]   ;;  %v7011_v49 = vld [vmem:[%s13273_s30 + $0x80] sm:$0xff]  }
 0x14f   : > { %v1403_v56 = vmul.f32 %v7838_v23, %v1271_v53  ;;  %v1146_v58 = vadd.f32 %v6768_v46, %v7894_v30  ;;  %v1147_v59 = vadd.f32 %v6769_v50, %v7894_v30  ;;  %v6773_v61 = vunpack.c.h.bf16 %v7005_v45 }
 0x150   : > { %v1404_v57 = vmul.f32 %v7838_v23, %v1272_v54  ;;  %v1567_v62 = vsel %vm13049_vm1, %v1405_v18, 0.0  ;;  %v1276_v63 = vmax.f32 %v1148_v55, 0.0  ;;  %v6777_v0 = vunpack.c.h.bf16 %v7006_v60 }
 0x151   : > { %v6776_v1 = vunpack.c.l.bf16 %v7006_v60  ;;  %v1561_v2 = vsel %vm13049_vm1, %v1403_v56, 0.0  ;;  %v1274_v4 = vmax.f32 %v1146_v58, 0.0  ;;  %v1275_v5 = vmax.f32 %v1147_v59, 0.0 }
 0x152   : > { %v1564_v3 = vsel %vm13049_vm1, %v1404_v57, 0.0  ;;  %v1408_v6 = vmul.f32 %v7838_v23, %v1276_v63  ;;  %v1151_v7 = vadd.f32 %v6777_v0, %v7894_v30  ;;  %v1149_v12 = vadd.f32 %v6773_v61, %v7894_v30 }
 0x153   : > { %1541 = vadd.xlane.f32.xlu2 %v1540_v9  ;;  %1538 = vadd.xlane.f32.xlu1 %v1537_v13  ;;  %v7007_v9 = vld [vmem:[%s13273_s30 + $0x60] sm:$0xff]   ;;  %v1406_v10 = vmul.f32 %v7838_v23, %v1274_v4  ;;  %v1407_v11 = vmul.f32 %v7838_v23, %v1275_v5  ;;  %v1150_v13 = vadd.f32 %v6776_v1, %v7894_v30  ;;  %v978_v44 = vrot.slane %v7829_v14, 2  ;;  %v7012_v4 = vld [vmem:[%s13273_s30 + $0x88] sm:$0xff]  }
 0x154   : > { %1535 = vadd.xlane.f32.xlu0 %v1534_v15  ;;  %v7008_v15 = vld [vmem:[%s13273_s30 + $0x68] sm:$0xff]   ;;  %v6780_v16 = vunpack.c.l.bf16 %v7007_v9  ;;  %v1576_v17 = vsel %vm13049_vm1, %v1408_v6, 0.0  ;;  %v1279_v19 = vmax.f32 %v1151_v7, 0.0  ;;  %v6781_v21 = vunpack.c.h.bf16 %v7007_v9 }
 0x155   : > { %v6784_v20 = vunpack.c.l.bf16 %v7008_v15  ;;  %v1570_v22 = vsel %vm13049_vm1, %v1406_v10, 0.0  ;;  %v1573_v24 = vsel %vm13049_vm1, %v1407_v11, 0.0  ;;  %v1277_v25 = vmax.f32 %v1149_v12, 0.0 }
 0x156   : > { %v1278_v26 = vmax.f32 %v1150_v13, 0.0  ;;  %v1411_v27 = vmul.f32 %v7838_v23, %v1279_v19  ;;  %v1152_v32 = vadd.f32 %v6780_v16, %v7894_v30  ;;  %v1153_v33 = vadd.f32 %v6781_v21, %v7894_v30 }
 0x157   : > { %v1154_v28 = vadd.f32 %v6784_v20, %v7894_v30  ;;  %v1409_v29 = vmul.f32 %v7838_v23, %v1277_v25  ;;  %v6792_v53 = vunpack.c.l.bf16 %v7010_v48  ;;  %v6796_v54 = vunpack.c.l.bf16 %v7011_v49 }
 0x158   : > { %v1585_v36 = vsel %vm13049_vm1, %v1411_v27, 0.0  ;;  %v1280_v42 = vmax.f32 %v1152_v32, 0.0  ;;  %v1281_v43 = vmax.f32 %v1153_v33, 0.0  ;;  %v7966_v18 = vperm.slane %v978_v44, 0 }
 0x159   : > { %v1282_v37 = vmax.f32 %v1154_v28, 0.0  ;;  %v1579_v40 = vsel %vm13049_vm1, %v1409_v29, 0.0  ;;  %v6793_v61 = vunpack.c.h.bf16 %v7010_v48  ;;  %v6801_v10 = vunpack.c.h.bf16 %v7012_v4 }
 0x15a   : > { %v1412_v50 = vmul.f32 %v7838_v23, %v1280_v42  ;;  %v1160_v1 = vadd.f32 %v6796_v54, %v7966_v18  ;;  %v6797_v13 = vunpack.c.h.bf16 %v7011_v49 }
 0x15b   : > { %1550 = vadd.xlane.f32.xlu2 %v1549_v31  ;;  %1547 = vadd.xlane.f32.xlu1 %v1546_v34  ;;  %v1410_v31 = vmul.f32 %v7838_v23, %v1278_v26  ;;  %v7009_v34 = vld [vmem:[%s13273_s30 + $0x70] sm:$0xff]   ;;  %v1414_v45 = vmul.f32 %v7838_v23, %v1282_v37 }
 0x15c   : > { %1544 = vadd.xlane.f32.xlu0 %v1543_v35  ;;  %v6785_v35 = vunpack.c.h.bf16 %v7008_v15  ;;  %v6789_v38 = vunpack.c.h.bf16 %v7009_v34  ;;  %v6788_v39 = vunpack.c.l.bf16 %v7009_v34  ;;  %v1588_v58 = vsel %vm13049_vm1, %v1412_v50, 0.0 }
 0x15d   : > { %v1582_v41 = vsel %vm13049_vm1, %v1410_v31, 0.0  ;;  %v1594_v55 = vsel %vm13049_vm1, %v1414_v45, 0.0  ;;  %v1288_v9 = vmax.f32 %v1160_v1, 0.0  ;;  %v6800_v15 = vunpack.c.l.bf16 %v7012_v4 }
 0x15e   : > { %v1155_v46 = vadd.f32 %v6785_v35, %v7894_v30  ;;  %v1161_v20 = vadd.f32 %v6797_v13, %v7966_v18 }
 0x15f   : > { %v1420_v16 = vmul.f32 %v7838_v23, %v1288_v9  ;;  %v1162_v21 = vadd.f32 %v6800_v15, %v7966_v18 }
 0x160   : > { %v1283_v56 = vmax.f32 %v1155_v46, 0.0  ;;  %v1289_v32 = vmax.f32 %v1161_v20, 0.0 }
 0x161   : > { %v1612_v26 = vsel %vm13049_vm1, %v1420_v16, 0.0  ;;  %v1290_v33 = vmax.f32 %v1162_v21, 0.0 }
 0x162   : > { %v1415_v63 = vmul.f32 %v7838_v23, %v1283_v56 }
 0x163   : > { %1559 = vadd.xlane.f32.xlu2 %v1558_v47  ;;  %1556 = vadd.xlane.f32.xlu1 %v1555_v51  ;;  %v1157_v47 = vadd.f32 %v6789_v38, %v7894_v30  ;;  %v1413_v51 = vmul.f32 %v7838_v23, %v1281_v43  ;;  %v1421_v38 = vmul.f32 %v7838_v23, %v1289_v32  ;;  %v7019_v32 = vld [vmem:[%s13273_s30 + $0xc0] sm:$0xff]  }
 0x164   : > { %1553 = vadd.xlane.f32.xlu0 %v1552_v52  ;;  %v1156_v52 = vadd.f32 %v6788_v39, %v7894_v30  ;;  %v1597_v6 = vsel %vm13049_vm1, %v1415_v63, 0.0  ;;  %v1422_v39 = vmul.f32 %v7838_v23, %v1290_v33 }
 0x165   : > { %v1285_v57 = vmax.f32 %v1157_v47, 0.0  ;;  %v1591_v59 = vsel %vm13049_vm1, %v1413_v51, 0.0  ;;  %v1615_v47 = vsel %vm13049_vm1, %v1421_v38, 0.0 }
 0x166   : > { %v1284_v60 = vmax.f32 %v1156_v52, 0.0  ;;  %v1618_v48 = vsel %vm13049_vm1, %v1422_v39, 0.0 }
 0x167   : > { %v1417_v0 = vmul.f32 %v7838_v23, %v1285_v57  ;;  %v7017_v57 = vld [vmem:[%s13273_s30 + $0xb0] sm:$0xff]  }
 0x168   : > { %v6820_v63 = vunpack.c.l.bf16 %v7017_v57 }
 0x169   : > { %v1603_v7 = vsel %vm13049_vm1, %v1417_v0, 0.0 }
 0x16b   : > { %1568 = vadd.xlane.f32.xlu2 %v1567_v62  ;;  %1565 = vadd.xlane.f32.xlu1 %v1564_v3  ;;  %v1158_v62 = vadd.f32 %v6792_v53, %v7894_v30  ;;  %v1159_v3 = vadd.f32 %v6793_v61, %v7894_v30 }
 0x16c   : > { %1562 = vadd.xlane.f32.xlu0 %v1561_v2  ;;  %v1416_v2 = vmul.f32 %v7838_v23, %v1284_v60 }
 0x16d   : > { %v1286_v5 = vmax.f32 %v1158_v62, 0.0  ;;  %v1287_v12 = vmax.f32 %v1159_v3, 0.0 }
 0x16e   : > { %v1600_v11 = vsel %vm13049_vm1, %v1416_v2, 0.0 }
 0x16f   : > { %v1418_v30 = vmul.f32 %v7838_v23, %v1286_v5  ;;  %v1419_v19 = vmul.f32 %v7838_v23, %v1287_v12  ;;  %v1172_v5 = vadd.f32 %v6820_v63, %v7966_v18  ;;  %v6821_v12 = vunpack.c.h.bf16 %v7017_v57 }
 0x171   : > { %v1606_v25 = vsel %vm13049_vm1, %v1418_v30, 0.0  ;;  %v1609_v31 = vsel %vm13049_vm1, %v1419_v19, 0.0  ;;  %v1300_v15 = vmax.f32 %v1172_v5, 0.0 }
 0x173   : > { %1577 = vadd.xlane.f32.xlu2 %v1576_v17  ;;  %1574 = vadd.xlane.f32.xlu1 %v1573_v24  ;;  %v1163_v17 = vadd.f32 %v6801_v10, %v7966_v18  ;;  %v7014_v24 = vld [vmem:[%s13273_s30 + $0x98] sm:$0xff]  }
 0x174   : > { %1571 = vadd.xlane.f32.xlu0 %v1570_v22  ;;  %v7013_v22 = vld [vmem:[%s13273_s30 + $0x90] sm:$0xff]   ;;  %v6808_v29 = vunpack.c.l.bf16 %v7014_v24  ;;  %v6809_v42 = vunpack.c.h.bf16 %v7014_v24  ;;  %v1173_v24 = vadd.f32 %v6821_v12, %v7966_v18 }
 0x175   : > { %v1291_v27 = vmax.f32 %v1163_v17, 0.0  ;;  %v6804_v28 = vunpack.c.l.bf16 %v7013_v22  ;;  %v6805_v34 = vunpack.c.h.bf16 %v7013_v22  ;;  %v979_v22 = vrot.slane %v7829_v14, 3 }
 0x176   : > { %v1166_v37 = vadd.f32 %v6808_v29, %v7966_v18  ;;  %v1167_v51 = vadd.f32 %v6809_v42, %v7966_v18 }
 0x177   : > { %v1423_v35 = vmul.f32 %v7838_v23, %v1291_v27  ;;  %v8050_v33 = vperm.slane %v979_v22, 0 }
 0x178   : > { %v1294_v45 = vmax.f32 %v1166_v37, 0.0 }
 0x179   : > { %v1621_v43 = vsel %vm13049_vm1, %v1423_v35, 0.0 }
 0x17a   : > { %v1426_v53 = vmul.f32 %v7838_v23, %v1294_v45 }
 0x17b   : > { %1586 = vadd.xlane.f32.xlu2 %v1585_v36  ;;  %1583 = vadd.xlane.f32.xlu1 %v1582_v41  ;;  %v1164_v36 = vadd.f32 %v6804_v28, %v7966_v18  ;;  %v7015_v41 = vld [vmem:[%s13273_s30 + $0xa0] sm:$0xff]  }
 0x17c   : > { %1580 = vadd.xlane.f32.xlu0 %v1579_v40  ;;  %v1165_v40 = vadd.f32 %v6805_v34, %v7966_v18  ;;  %v6813_v46 = vunpack.c.h.bf16 %v7015_v41  ;;  %v6812_v50 = vunpack.c.l.bf16 %v7015_v41  ;;  %v1630_v61 = vsel %vm13049_vm1, %v1426_v53, 0.0 }
 0x17d   : > { %v1292_v44 = vmax.f32 %v1164_v36, 0.0  ;;  %v1301_v34 = vmax.f32 %v1173_v24, 0.0  ;;  %v6829_v41 = vunpack.c.h.bf16 %v7019_v32 }
 0x17e   : > { %v1293_v49 = vmax.f32 %v1165_v40, 0.0  ;;  %v1169_v54 = vadd.f32 %v6813_v46, %v7966_v18  ;;  %v1168_v56 = vadd.f32 %v6812_v50, %v7966_v18  ;;  %v6828_v40 = vunpack.c.l.bf16 %v7019_v32 }
 0x17f   : > { %v1424_v52 = vmul.f32 %v7838_v23, %v1292_v44  ;;  %v1433_v42 = vmul.f32 %v7838_v23, %v1301_v34  ;;  %v1177_v50 = vadd.f32 %v6829_v41, %v8050_v33 }
 0x180   : > { %v1297_v62 = vmax.f32 %v1169_v54, 0.0  ;;  %v1296_v1 = vmax.f32 %v1168_v56, 0.0 }
 0x181   : > { %v1624_v60 = vsel %vm13049_vm1, %v1424_v52, 0.0  ;;  %v1651_v52 = vsel %vm13049_vm1, %v1433_v42, 0.0 }
 0x182   : > { %v1429_v4 = vmul.f32 %v7838_v23, %v1297_v62 }
 0x183   : > { %1595 = vadd.xlane.f32.xlu2 %v1594_v55  ;;  %1592 = vadd.xlane.f32.xlu1 %v1591_v59  ;;  %v1425_v55 = vmul.f32 %v7838_v23, %v1293_v49  ;;  %v1295_v59 = vmax.f32 %v1167_v51, 0.0  ;;  %v1176_v49 = vadd.f32 %v6828_v40, %v8050_v33  ;;  %v7021_v51 = vld [vmem:[%s13273_s30 + $0xd0] sm:$0xff]  }
 0x184   : > { %1589 = vadd.xlane.f32.xlu0 %v1588_v58  ;;  %v7016_v58 = vld [vmem:[%s13273_s30 + $0xa8] sm:$0xff]   ;;  %v1639_v13 = vsel %vm13049_vm1, %v1429_v4, 0.0  ;;  %v6837_v56 = vunpack.c.h.bf16 %v7021_v51 }
 0x185   : > { %v1627_v0 = vsel %vm13049_vm1, %v1425_v55, 0.0  ;;  %v6816_v2 = vunpack.c.l.bf16 %v7016_v58  ;;  %v6817_v3 = vunpack.c.h.bf16 %v7016_v58  ;;  %v1304_v58 = vmax.f32 %v1176_v49, 0.0 }
 0x187   : > { %v1170_v9 = vadd.f32 %v6816_v2, %v7966_v18  ;;  %v1171_v10 = vadd.f32 %v6817_v3, %v7966_v18  ;;  %v1436_v4 = vmul.f32 %v7838_v23, %v1304_v58 }
 0x189   : > { %v1298_v20 = vmax.f32 %v1170_v9, 0.0  ;;  %v1299_v21 = vmax.f32 %v1171_v10, 0.0 }
 0x18b   : > { %1604 = vadd.xlane.f32.xlu2 %v1603_v7  ;;  %1601 = vadd.xlane.f32.xlu1 %v1600_v11  ;;  %v1428_v7 = vmul.f32 %v7838_v23, %v1296_v1  ;;  %v7018_v11 = vld [vmem:[%s13273_s30 + $0xb8] sm:$0xff]   ;;  %v1430_v28 = vmul.f32 %v7838_v23, %v1298_v20  ;;  %v1431_v29 = vmul.f32 %v7838_v23, %v1299_v21 }
 0x18c   : > { %1598 = vadd.xlane.f32.xlu0 %v1597_v6  ;;  %v1427_v6 = vmul.f32 %v7838_v23, %v1295_v59  ;;  %v6825_v30 = vunpack.c.h.bf16 %v7018_v11  ;;  %v6824_v16 = vunpack.c.l.bf16 %v7018_v11  ;;  %v1305_v59 = vmax.f32 %v1177_v50, 0.0  ;;  %v7022_v1 = vld [vmem:[%s13273_s30 + $0xd8] sm:$0xff]  }
 0x18d   : > { %v1636_v19 = vsel %vm13049_vm1, %v1428_v7, 0.0  ;;  %v1642_v38 = vsel %vm13049_vm1, %v1430_v28, 0.0  ;;  %v1645_v39 = vsel %vm13049_vm1, %v1431_v29, 0.0  ;;  %v7023_v7 = vld [vmem:[%s13273_s30 + $0xe0] sm:$0xff]   ;;  %v6840_v9 = vunpack.c.l.bf16 %v7022_v1  ;;  %v7024_v29 = vld [vmem:[%s13273_s30 + $0xe8] sm:$0xff]  }
 0x18e   : > { %v1633_v17 = vsel %vm13049_vm1, %v1427_v6, 0.0  ;;  %v1174_v27 = vadd.f32 %v6824_v16, %v7966_v18  ;;  %v1437_v5 = vmul.f32 %v7838_v23, %v1305_v59 }
 0x190   : > { %v1302_v37 = vmax.f32 %v1174_v27, 0.0 }
 0x193   : > { %1613 = vadd.xlane.f32.xlu2 %v1612_v26  ;;  %1610 = vadd.xlane.f32.xlu1 %v1609_v31  ;;  %v1175_v26 = vadd.f32 %v6825_v30, %v7966_v18  ;;  %v7020_v31 = vld [vmem:[%s13273_s30 + $0xc8] sm:$0xff]   ;;  %v1663_v30 = vsel %vm13049_vm1, %v1437_v5, 0.0 }
 0x194   : > { %1607 = vadd.xlane.f32.xlu0 %v1606_v25  ;;  %v1432_v25 = vmul.f32 %v7838_v23, %v1300_v15  ;;  %v6832_v18 = vunpack.c.l.bf16 %v7020_v31  ;;  %v6833_v55 = vunpack.c.h.bf16 %v7020_v31  ;;  %v1660_v15 = vsel %vm13049_vm1, %v1436_v4, 0.0 }
 0x195   : > { %v1303_v36 = vmax.f32 %v1175_v26, 0.0 }
 0x196   : > { %v1648_v35 = vsel %vm13049_vm1, %v1432_v25, 0.0  ;;  %v1178_v45 = vadd.f32 %v6832_v18, %v8050_v33  ;;  %v1179_v63 = vadd.f32 %v6833_v55, %v8050_v33 }
 0x197   : > { %v1435_v44 = vmul.f32 %v7838_v23, %v1303_v36  ;;  %v6849_v36 = vunpack.c.h.bf16 %v7024_v29 }
 0x198   : > { %v1306_v54 = vmax.f32 %v1178_v45, 0.0  ;;  %v1307_v11 = vmax.f32 %v1179_v63, 0.0 }
 0x199   : > { %v1657_v53 = vsel %vm13049_vm1, %v1435_v44, 0.0  ;;  %v1187_v44 = vadd.f32 %v6849_v36, %v8050_v33 }
 0x19a   : > { %v1438_v62 = vmul.f32 %v7838_v23, %v1306_v54  ;;  %v1439_v21 = vmul.f32 %v7838_v23, %v1307_v11 }
 0x19b   : > { %1622 = vadd.xlane.f32.xlu2 %v1621_v43  ;;  %1619 = vadd.xlane.f32.xlu1 %v1618_v48  ;;  %v1434_v48 = vmul.f32 %v7838_v23, %v1302_v37 }
 0x19c   : > { %1616 = vadd.xlane.f32.xlu0 %v1615_v47  ;;  %v1666_v10 = vsel %vm13049_vm1, %v1438_v62, 0.0  ;;  %v1669_v32 = vsel %vm13049_vm1, %v1439_v21, 0.0 }
 0x19d   : > { %v1654_v57 = vsel %vm13049_vm1, %v1434_v48, 0.0 }
 0x1a3   : > { %1631 = vadd.xlane.f32.xlu2 %v1630_v61  ;;  %1628 = vadd.xlane.f32.xlu1 %v1627_v0  ;;  %v1181_v0 = vadd.f32 %v6837_v56, %v8050_v33  ;;  %v1315_v56 = vmax.f32 %v1187_v44, 0.0 }
 0x1a4   : > { %1625 = vadd.xlane.f32.xlu0 %v1624_v60  ;;  %v6836_v60 = vunpack.c.l.bf16 %v7021_v51 }
 0x1a5   : > { %v1309_v12 = vmax.f32 %v1181_v0, 0.0  ;;  %v980_v0 = vrot.slane %v7829_v14, 4  ;;  %v1447_v4 = vmul.f32 %v7838_v23, %v1315_v56 }
 0x1a6   : > { %v1180_v6 = vadd.f32 %v6836_v60, %v8050_v33 }
 0x1a7   : > { %v1441_v22 = vmul.f32 %v7838_v23, %v1309_v12 }
 0x1a8   : > { %v1308_v16 = vmax.f32 %v1180_v6, 0.0 }
 0x1a9   : > { %v1675_v34 = vsel %vm13049_vm1, %v1441_v22, 0.0 }
 0x1aa   : > { %v1440_v27 = vmul.f32 %v7838_v23, %v1308_v16  ;;  %v1693_v16 = vsel %vm13049_vm1, %v1447_v4, 0.0  ;;  %v7030_v4 = vld [vmem:[%s13273_s30 + $0x118] sm:$0xff]  }
 0x1ab   : > { %1640 = vadd.xlane.f32.xlu2 %v1639_v13  ;;  %1637 = vadd.xlane.f32.xlu1 %v1636_v19  ;;  %v6844_v13 = vunpack.c.l.bf16 %v7023_v7  ;;  %v1182_v19 = vadd.f32 %v6840_v9, %v8050_v33 }
 0x1ac   : > { %1634 = vadd.xlane.f32.xlu0 %v1633_v17  ;;  %v6841_v17 = vunpack.c.h.bf16 %v7022_v1  ;;  %v1672_v37 = vsel %vm13049_vm1, %v1440_v27, 0.0 }
 0x1ad   : > { %v1184_v24 = vadd.f32 %v6844_v13, %v8050_v33  ;;  %v1310_v31 = vmax.f32 %v1182_v19, 0.0  ;;  %v7027_v13 = vld [vmem:[%s13273_s30 + $0x100] sm:$0xff]  }
 0x1ae   : > { %v1183_v28 = vadd.f32 %v6841_v17, %v8050_v33  ;;  %v6861_v21 = vunpack.c.h.bf16 %v7027_v13 }
 0x1af   : > { %v1442_v40 = vmul.f32 %v7838_v23, %v1310_v31 }
 0x1b0   : > { %v1311_v18 = vmax.f32 %v1183_v28, 0.0  ;;  %v6860_v28 = vunpack.c.l.bf16 %v7027_v13 }
 0x1b1   : > { %v1678_v54 = vsel %vm13049_vm1, %v1442_v40, 0.0 }
 0x1b2   : > { %v1443_v49 = vmul.f32 %v7838_v23, %v1311_v18 }
 0x1b3   : > { %1649 = vadd.xlane.f32.xlu2 %v1648_v35  ;;  %1646 = vadd.xlane.f32.xlu1 %v1645_v39  ;;  %v1312_v35 = vmax.f32 %v1184_v24, 0.0  ;;  %v6848_v39 = vunpack.c.l.bf16 %v7024_v29 }
 0x1b4   : > { %1643 = vadd.xlane.f32.xlu0 %v1642_v38  ;;  %v6845_v38 = vunpack.c.h.bf16 %v7023_v7  ;;  %v1681_v59 = vsel %vm13049_vm1, %v1443_v49, 0.0 }
 0x1b5   : > { %v1444_v42 = vmul.f32 %v7838_v23, %v1312_v35  ;;  %v1186_v51 = vadd.f32 %v6848_v39, %v8050_v33  ;;  %v7028_v39 = vld [vmem:[%s13273_s30 + $0x108] sm:$0xff]  }
 0x1b6   : > { %v8056_v43 = vpop.xlane.xlu2 %1529  ;;  %v8060_v46 = vpop.xlane.xlu1 %1523  ;;  %v1185_v50 = vadd.f32 %v6845_v38, %v8050_v33 }
 0x1b7   : > { %v8062_v47 = vpop.xlane.xlu0 %1517  ;;  %v1684_v55 = vsel %vm13049_vm1, %v1444_v42, 0.0  ;;  %v1314_v62 = vmax.f32 %v1186_v51, 0.0 }
 0x1b8   : > { %v1313_v60 = vmax.f32 %v1185_v50, 0.0 }
 0x1b9   : > { %v1446_v11 = vmul.f32 %v7838_v23, %v1314_v62 }
 0x1bb   : > { %1658 = vadd.xlane.f32.xlu2 %v1657_v53  ;;  %1655 = vadd.xlane.f32.xlu1 %v1654_v57  ;;  %v7026_v53 = vld [vmem:[%s13273_s30 + $0xf8] sm:$0xff]   ;;  %v1690_v24 = vsel %vm13049_vm1, %v1446_v11, 0.0 }
 0x1bc   : > { %1652 = vadd.xlane.f32.xlu0 %v1651_v52  ;;  %v7025_v52 = vld [vmem:[%s13273_s30 + $0xf0] sm:$0xff]   ;;  %v6856_v58 = vunpack.c.l.bf16 %v7026_v53 }
 0x1bd   : > { %v6852_v57 = vunpack.c.l.bf16 %v7025_v52  ;;  %v6853_v63 = vunpack.c.h.bf16 %v7025_v52 }
 0x1be   : > { %v8073_v61 = vpop.xlane.xlu2 %1532  ;;  %v8081_v2 = vpop.xlane.xlu1 %1526  ;;  %v1190_v6 = vadd.f32 %v6856_v58, %v8050_v33 }
 0x1bf   : > { %v8083_v3 = vpop.xlane.xlu0 %1520  ;;  %v1188_v5 = vadd.f32 %v6852_v57, %v8050_v33  ;;  %v1189_v12 = vadd.f32 %v6853_v63, %v8050_v33 }
 0x1c0   : > { %v1318_v19 = vmax.f32 %v1190_v6, 0.0 }
 0x1c1   : > { %v1316_v17 = vmax.f32 %v1188_v5, 0.0  ;;  %v1317_v27 = vmax.f32 %v1189_v12, 0.0  ;;  %v6873_v12 = vunpack.c.h.bf16 %v7030_v4 }
 0x1c3   : > { %1667 = vadd.xlane.f32.xlu2 %v1666_v10  ;;  %1664 = vadd.xlane.f32.xlu1 %v1663_v30  ;;  %v1445_v10 = vmul.f32 %v7838_v23, %v1313_v60  ;;  %v6857_v30 = vunpack.c.h.bf16 %v7026_v53  ;;  %v1449_v18 = vmul.f32 %v7838_v23, %v1317_v27  ;;  %v6864_v53 = vunpack.c.l.bf16 %v7028_v39 }
 0x1c4   : > { %1661 = vadd.xlane.f32.xlu0 %v1660_v15  ;;  %v8149_v15 = vperm.slane %v980_v0, 0 }
 0x1c5   : > { %v1687_v22 = vsel %vm13049_vm1, %v1445_v10, 0.0  ;;  %v1191_v29 = vadd.f32 %v6857_v30, %v8050_v33  ;;  %v7029_v33 = vld [vmem:[%s13273_s30 + $0x110] sm:$0xff]   ;;  %v1699_v51 = vsel %vm13049_vm1, %v1449_v18, 0.0  ;;  %v7032_v18 = vld [vmem:[%s13273_s30 + $0x128] sm:$0xff]  }
 0x1c6   : > { %v8095_v20 = vpop.xlane.xlu2 %1541  ;;  %v8100_v25 = vpop.xlane.xlu1 %1538  ;;  %v1193_v35 = vadd.f32 %v6861_v21, %v8149_v15  ;;  %v1192_v38 = vadd.f32 %v6860_v28, %v8149_v15  ;;  %v6868_v50 = vunpack.c.l.bf16 %v7029_v33  ;;  %v1194_v63 = vadd.f32 %v6864_v53, %v8149_v15 }
 0x1c7   : > { %v8102_v26 = vpop.xlane.xlu0 %1535  ;;  %v1319_v40 = vmax.f32 %v1191_v29, 0.0  ;;  %v6869_v5 = vunpack.c.h.bf16 %v7029_v33 }
 0x1c8   : > { %v1321_v49 = vmax.f32 %v1193_v35, 0.0  ;;  %v1320_v52 = vmax.f32 %v1192_v38, 0.0  ;;  %v1196_v58 = vadd.f32 %v6868_v50, %v8149_v15  ;;  %v1322_v30 = vmax.f32 %v1194_v63, 0.0  ;;  %v7031_v35 = vld [vmem:[%s13273_s30 + $0x120] sm:$0xff]  }
 0x1c9   : > { %v1451_v56 = vmul.f32 %v7838_v23, %v1319_v40  ;;  %v6876_v40 = vunpack.c.l.bf16 %v7031_v35 }
 0x1ca   : > { %v1453_v57 = vmul.f32 %v7838_v23, %v1321_v49  ;;  %v1452_v62 = vmul.f32 %v7838_v23, %v1320_v52  ;;  %v1324_v11 = vmax.f32 %v1196_v58, 0.0  ;;  %v1454_v29 = vmul.f32 %v7838_v23, %v1322_v30 }
 0x1cb   : > { %1676 = vadd.xlane.f32.xlu2 %v1675_v34  ;;  %1673 = vadd.xlane.f32.xlu1 %v1672_v37  ;;  %v1450_v34 = vmul.f32 %v7838_v23, %v1318_v19  ;;  %v1705_v6 = vsel %vm13049_vm1, %v1451_v56, 0.0  ;;  %v1197_v19 = vadd.f32 %v6869_v5, %v8149_v15  ;;  %v1200_v63 = vadd.f32 %v6876_v40, %v8149_v15  ;;  %v7035_v40 = vld [vmem:[%s13273_s30 + $0x140] sm:$0xff]  }
 0x1cc   : > { %1670 = vadd.xlane.f32.xlu0 %v1669_v32  ;;  %v1448_v32 = vmul.f32 %v7838_v23, %v1316_v17  ;;  %v1711_v10 = vsel %vm13049_vm1, %v1453_v57, 0.0  ;;  %v1708_v13 = vsel %vm13049_vm1, %v1452_v62, 0.0  ;;  %v6872_v17 = vunpack.c.l.bf16 %v7030_v4  ;;  %v7033_v4 = vld [vmem:[%s13273_s30 + $0x130] sm:$0xff]  }
 0x1cd   : > { %v1702_v44 = vsel %vm13049_vm1, %v1450_v34, 0.0  ;;  %v1325_v38 = vmax.f32 %v1197_v19, 0.0  ;;  %v1328_v30 = vmax.f32 %v1200_v63, 0.0 }
 0x1ce   : > { %v8113_v41 = vpop.xlane.xlu2 %1550  ;;  %v8117_v45 = vpop.xlane.xlu1 %1547  ;;  %v1696_v42 = vsel %vm13049_vm1, %v1448_v32, 0.0  ;;  %v1198_v34 = vadd.f32 %v6872_v17, %v8149_v15  ;;  %v981_v17 = vrot.slane %v7829_v14, 5 }
 0x1cf   : > { %v8119_v48 = vpop.xlane.xlu0 %1544  ;;  %v1457_v52 = vmul.f32 %v7838_v23, %v1325_v38 }
 0x1d0   : > { %v1326_v50 = vmax.f32 %v1198_v34, 0.0  ;;  %v7034_v34 = vld [vmem:[%s13273_s30 + $0x138] sm:$0xff]  }
 0x1d1   : > { %v1723_v5 = vsel %vm13049_vm1, %v1457_v52, 0.0  ;;  %v6892_v52 = vunpack.c.l.bf16 %v7035_v40  ;;  %v6889_v63 = vunpack.c.h.bf16 %v7034_v34 }
 0x1d2   : > { %v1458_v62 = vmul.f32 %v7838_v23, %v1326_v50 }
 0x1d3   : > { %1685 = vadd.xlane.f32.xlu2 %v1684_v55  ;;  %1682 = vadd.xlane.f32.xlu1 %v1681_v59 }
 0x1d4   : > { %1679 = vadd.xlane.f32.xlu0 %v1678_v54  ;;  %v6865_v54 = vunpack.c.h.bf16 %v7028_v39 }
 0x1d6   : > { %v8134_v1 = vpop.xlane.xlu2 %1559  ;;  %v8139_v7 = vpop.xlane.xlu1 %1556  ;;  %v1195_v0 = vadd.f32 %v6865_v54, %v8149_v15 }
 0x1d7   : > { %v8141_v9 = vpop.xlane.xlu0 %1553 }
 0x1db   : > { %1694 = vadd.xlane.f32.xlu2 %v1693_v16  ;;  %1691 = vadd.xlane.f32.xlu1 %v1690_v24  ;;  %v1323_v16 = vmax.f32 %v1195_v0, 0.0  ;;  %v1199_v24 = vadd.f32 %v6873_v12, %v8149_v15  ;;  %v6885_v12 = vunpack.c.h.bf16 %v7033_v4 }
 0x1dc   : > { %1688 = vadd.xlane.f32.xlu0 %v1687_v22  ;;  %v1456_v22 = vmul.f32 %v7838_v23, %v1324_v11  ;;  %v6881_v11 = vunpack.c.h.bf16 %v7032_v18 }
 0x1dd   : > { %v1455_v32 = vmul.f32 %v7838_v23, %v1323_v16  ;;  %v1327_v39 = vmax.f32 %v1199_v24, 0.0  ;;  %v6884_v16 = vunpack.c.l.bf16 %v7033_v4 }
 0x1de   : > { %v8155_v31 = vpop.xlane.xlu2 %1568  ;;  %v8162_v37 = vpop.xlane.xlu1 %1565  ;;  %v1720_v33 = vsel %vm13049_vm1, %v1456_v22, 0.0  ;;  %v8238_v22 = vld [vmem:[%s13275_s8] ss:$0 sm:$0xff]  ;;  %s14189_s8 = smov 32  }
 0x1df   : > { %v8160_v36 = vpop.xlane.xlu0 %1562  ;;  %v1717_v49 = vsel %vm13049_vm1, %v1455_v32, 0.0  ;;  %v1459_v54 = vmul.f32 %v7838_v23, %v1327_v39  ;;  %v1205_v32 = vadd.f32 %v6885_v12, %v8149_v15  ;;  %v1460_v38 = vmul.f32 %v8238_v22, %v1328_v30 }
 0x1e0   : > { %v1204_v39 = vadd.f32 %v6884_v16, %v8149_v15  ;;  %v1207_v30 = vadd.f32 %v6889_v63, %v8149_v15  ;;  %v7038_v63 = vld [vmem:[%s13273_s30 + $0x158] sm:$0xff]  }
 0x1e3   : > { %1703 = vadd.xlane.f32.xlu2 %v1702_v44  ;;  %1700 = vadd.xlane.f32.xlu1 %v1699_v51  ;;  %v1714_v44 = vsel %vm13049_vm1, %v1454_v29, 0.0  ;;  %v6877_v51 = vunpack.c.h.bf16 %v7031_v35  ;;  %v1203_v29 = vadd.f32 %v6881_v11, %v8149_v15 }
 0x1e4   : > { %1697 = vadd.xlane.f32.xlu0 %v1696_v42  ;;  %v6880_v42 = vunpack.c.l.bf16 %v7032_v18 }
 0x1e5   : > { %v1201_v0 = vadd.f32 %v6877_v51, %v8149_v15  ;;  %v1331_v50 = vmax.f32 %v1203_v29, 0.0  ;;  %v1333_v51 = vmax.f32 %v1205_v32, 0.0 }
 0x1e6   : > { %v8175_v55 = vpop.xlane.xlu2 %1577  ;;  %v8182_v60 = vpop.xlane.xlu1 %1574  ;;  %v1202_v56 = vadd.f32 %v6880_v42, %v8149_v15  ;;  %v8256_v42 = vperm.slane %v981_v17, 0 }
 0x1e7   : > { %v8180_v59 = vpop.xlane.xlu0 %1571  ;;  %v1329_v23 = vmax.f32 %v1201_v0, 0.0 }
 0x1eb   : > { %1712 = vadd.xlane.f32.xlu2 %v1711_v10  ;;  %1709 = vadd.xlane.f32.xlu1 %v1708_v13  ;;  %v1330_v10 = vmax.f32 %v1202_v56, 0.0  ;;  %v1726_v13 = vsel %vm13049_vm1, %v1458_v62, 0.0  ;;  %v1332_v62 = vmax.f32 %v1204_v39, 0.0 }
 0x1ec   : > { %1706 = vadd.xlane.f32.xlu0 %v1705_v6  ;;  %v1729_v6 = vsel %vm13049_vm1, %v1459_v54, 0.0  ;;  %v1732_v54 = vsel %vm13049_vm1, %v1460_v38, 0.0  ;;  %v1335_v38 = vmax.f32 %v1207_v30, 0.0 }
 0x1ed   : > { %v1462_v24 = vmul.f32 %v8238_v22, %v1330_v10  ;;  %v1208_v10 = vadd.f32 %v6892_v52, %v8256_v42 }
 0x1ee   : > { %v8194_v21 = vpop.xlane.xlu2 %1586  ;;  %v8200_v28 = vpop.xlane.xlu1 %1583 }
 0x1ef   : > { %v8198_v27 = vpop.xlane.xlu0 %1580  ;;  %v1336_v29 = vmax.f32 %v1208_v10, 0.0 }
 0x1f3   : > { %1721 = vadd.xlane.f32.xlu2 %v1720_v33  ;;  %1718 = vadd.xlane.f32.xlu1 %v1717_v49  ;;  %v1461_v33 = vmul.f32 %v8238_v22, %v1329_v23  ;;  %v1738_v49 = vsel %vm13049_vm1, %v1462_v24, 0.0  ;;  %v7036_v23 = vld [vmem:[%s13273_s30 + $0x148] sm:$0xff]  }
 0x1f4   : > { %1715 = vadd.xlane.f32.xlu0 %v1714_v44  ;;  %v6888_v44 = vunpack.c.l.bf16 %v7034_v34  ;;  %v6897_v32 = vunpack.c.h.bf16 %v7036_v23  ;;  %v6896_v39 = vunpack.c.l.bf16 %v7036_v23 }
 0x1f5   : > { %v1735_v56 = vsel %vm13049_vm1, %v1461_v33, 0.0  ;;  %v6893_v33 = vunpack.c.h.bf16 %v7035_v40 }
 0x1f6   : > { %v8215_v53 = vpop.xlane.xlu2 %1595  ;;  %v8221_v58 = vpop.xlane.xlu1 %1592  ;;  %v1206_v0 = vadd.f32 %v6888_v44, %v8149_v15  ;;  %v1210_v40 = vadd.f32 %v6896_v39, %v8256_v42 }
 0x1f7   : > { %v8219_v57 = vpop.xlane.xlu0 %1589 }
 0x1f8   : > { %v1334_v16 = vmax.f32 %v1206_v0, 0.0 }
 0x1fa   : > { %v1466_v15 = vmul.f32 %v8238_v22, %v1334_v16  ;;  %v1338_v16 = vmax.f32 %v1210_v40, 0.0 }
 0x1fb   : > { %1730 = vadd.xlane.f32.xlu2 %v1729_v6  ;;  %1727 = vadd.xlane.f32.xlu1 %v1726_v13  ;;  %v1465_v6 = vmul.f32 %v8238_v22, %v1333_v51  ;;  %v1464_v13 = vmul.f32 %v8238_v22, %v1332_v62  ;;  %v7037_v62 = vld [vmem:[%s13273_s30 + $0x150] sm:$0xff]  }
 0x1fc   : > { %1724 = vadd.xlane.f32.xlu0 %v1723_v5  ;;  %v1463_v5 = vmul.f32 %v8238_v22, %v1331_v50  ;;  %v1211_v50 = vadd.f32 %v6897_v32, %v8256_v42  ;;  %v1750_v0 = vsel %vm13049_vm1, %v1466_v15, 0.0  ;;  %v6900_v10 = vunpack.c.l.bf16 %v7037_v62 }
 0x1fd   : > { %v1747_v24 = vsel %vm13049_vm1, %v1465_v6, 0.0  ;;  %v1744_v34 = vsel %vm13049_vm1, %v1464_v13, 0.0  ;;  %v6904_v13 = vunpack.c.l.bf16 %v7038_v63  ;;  %v1470_v15 = vmul.f32 %v8238_v22, %v1338_v16 }
 0x1fe   : > { %v8233_v19 = vpop.xlane.xlu2 %1604  ;;  %v8248_v18 = vpop.xlane.xlu1 %1601  ;;  %v1741_v17 = vsel %vm13049_vm1, %v1463_v5, 0.0  ;;  %v1339_v6 = vmax.f32 %v1211_v50, 0.0  ;;  %v1212_v32 = vadd.f32 %v6900_v10, %v8256_v42  ;;  %v7039_v50 = vld [vmem:[%s13273_s30 + $0x160] sm:$0xff]  }
 0x1ff   : > { %v8246_v35 = vpop.xlane.xlu0 %1598 }
 0x200   : > { %v1340_v40 = vmax.f32 %v1212_v32, 0.0 }
 0x203   : > { %1739 = vadd.xlane.f32.xlu2 %v1738_v49  ;;  %1736 = vadd.xlane.f32.xlu1 %v1735_v56  ;;  %v1468_v49 = vmul.f32 %v8238_v22, %v1336_v29  ;;  %v1209_v56 = vadd.f32 %v6893_v33, %v8256_v42  ;;  %v1471_v29 = vmul.f32 %v8238_v22, %v1339_v6  ;;  %v1762_v6 = vsel %vm13049_vm1, %v1470_v15, 0.0  ;;  %v7041_v15 = vld [vmem:[%s13273_s30 + $0x170] sm:$0xff]  }
 0x204   : > { %1733 = vadd.xlane.f32.xlu0 %v1732_v54  ;;  %v1467_v54 = vmul.f32 %v8238_v22, %v1335_v38 }
 0x205   : > { %v1756_v5 = vsel %vm13049_vm1, %v1468_v49, 0.0  ;;  %v1337_v23 = vmax.f32 %v1209_v56, 0.0  ;;  %v1765_v56 = vsel %vm13049_vm1, %v1471_v29, 0.0 }
 0x206   : > { %v8262_v4 = vpop.xlane.xlu2 %1613  ;;  %v8269_v12 = vpop.xlane.xlu1 %1610  ;;  %v1753_v30 = vsel %vm13049_vm1, %v1467_v54, 0.0  ;;  %v6905_v54 = vunpack.c.h.bf16 %v7038_v63  ;;  %v1472_v63 = vmul.f32 %v8238_v22, %v1340_v40 }
 0x207   : > { %v8267_v11 = vpop.xlane.xlu0 %1607  ;;  %v1469_v39 = vmul.f32 %v8238_v22, %v1337_v23 }
 0x20b   : > { %1748 = vadd.xlane.f32.xlu2 %v1747_v24  ;;  %1745 = vadd.xlane.f32.xlu1 %v1744_v34  ;;  %v1214_v34 = vadd.f32 %v6904_v13, %v8256_v42  ;;  %v6908_v13 = vunpack.c.l.bf16 %v7039_v50 }
 0x20c   : > { %1742 = vadd.xlane.f32.xlu0 %v1741_v17  ;;  %v6901_v17 = vunpack.c.h.bf16 %v7037_v62 }
 0x20d   : > { %v1342_v62 = vmax.f32 %v1214_v34, 0.0 }
 0x20e   : > { %v8280_v44 = vpop.xlane.xlu2 %1622  ;;  %v8286_v52 = vpop.xlane.xlu1 %1619  ;;  %v1213_v49 = vadd.f32 %v6901_v17, %v8256_v42 }
 0x20f   : > { %v8284_v51 = vpop.xlane.xlu0 %1616  ;;  %v1474_v16 = vmul.f32 %v8238_v22, %v1342_v62  ;;  %v6916_v62 = vunpack.c.l.bf16 %v7041_v15 }
 0x210   : > { %v1341_v10 = vmax.f32 %v1213_v49, 0.0  ;;  %v7040_v49 = vld [vmem:[%s13273_s30 + $0x168] sm:$0xff]  }
 0x212   : > { %v1473_v34 = vmul.f32 %v8238_v22, %v1341_v10  ;;  %v6913_v10 = vunpack.c.h.bf16 %v7040_v49 }
 0x213   : > { %1757 = vadd.xlane.f32.xlu2 %v1756_v5  ;;  %1754 = vadd.xlane.f32.xlu1 %v1753_v30  ;;  %v1759_v5 = vsel %vm13049_vm1, %v1469_v39, 0.0  ;;  %v1215_v30 = vadd.f32 %v6905_v54, %v8256_v42  ;;  %v1216_v39 = vadd.f32 %v6908_v13, %v8256_v42  ;;  %v1768_v54 = vsel %vm13049_vm1, %v1472_v63, 0.0 }
 0x214   : > { %1751 = vadd.xlane.f32.xlu0 %v1750_v0  ;;  %v6909_v0 = vunpack.c.h.bf16 %v7039_v50  ;;  %v1220_v63 = vadd.f32 %v6916_v62, %v8256_v42 }
 0x215   : > { %v1343_v50 = vmax.f32 %v1215_v30, 0.0 }
 0x216   : > { %v8300_v24 = vpop.xlane.xlu2 %1631  ;;  %v8307_v33 = vpop.xlane.xlu1 %1628  ;;  %v1217_v17 = vadd.f32 %v6909_v0, %v8256_v42  ;;  %v1771_v0 = vsel %vm13049_vm1, %v1473_v34, 0.0 }
 0x217   : > { %13276 = vst [vmem:[#allocation21_spill] sm:$0xff] %v8300_v24  ;;  %v8305_v38 = vpop.xlane.xlu0 %1625  ;;  %v1475_v8 = vmul.f32 %v8238_v22, %v1343_v50 }
 0x218   : > { %v1345_v40 = vmax.f32 %v1217_v17, 0.0 }
 0x219   : > { %v1777_v50 = vsel %vm13049_vm1, %v1475_v8, 0.0 }
 0x21a   : > { %v1477_v30 = vmul.f32 %v8238_v22, %v1345_v40  ;;  %v1348_v40 = vmax.f32 %v1220_v63, 0.0 }
 0x21b   : > { %1766 = vadd.xlane.f32.xlu2 %v1765_v56  ;;  %1763 = vadd.xlane.f32.xlu1 %v1762_v6  ;;  %v1774_v56 = vsel %vm13049_vm1, %v1474_v16, 0.0  ;;  %v6912_v6 = vunpack.c.l.bf16 %v7040_v49  ;;  %v7042_v49 = vld [vmem:[%s13273_s30 + $0x178] sm:$0xff]  }
 0x21c   : > { %1760 = vadd.xlane.f32.xlu0 %v1759_v5  ;;  %v1344_v5 = vmax.f32 %v1216_v39, 0.0  ;;  %v1219_v39 = vadd.f32 %v6913_v10, %v8256_v42  ;;  %v6921_v62 = vunpack.c.h.bf16 %v7042_v49  ;;  %v1480_v8 = vmul.f32 %v8238_v22, %v1348_v40 }
 0x21d   : > { %v1218_v34 = vadd.f32 %v6912_v6, %v8256_v42  ;;  %v982_v6 = vrot.slane %v7829_v14, 6 }
 0x21e   : > { %v8319_v23 = vpop.xlane.xlu2 %1640  ;;  %v8326_v32 = vpop.xlane.xlu1 %1637  ;;  %v1476_v17 = vmul.f32 %v8238_v22, %v1344_v5  ;;  %v1347_v5 = vmax.f32 %v1219_v39, 0.0  ;;  %v1792_v40 = vsel %vm13049_vm1, %v1480_v8, 0.0 }
 0x21f   : > { %13277 = vst [vmem:[#allocation22_spill] sm:$0xff] %v8319_v23  ;;  %v8324_v29 = vpop.xlane.xlu0 %1634 }
 0x223   : > { %1775 = vadd.xlane.f32.xlu2 %v1774_v56  ;;  %1772 = vadd.xlane.f32.xlu1 %v1771_v0  ;;  %v1783_v56 = vsel %vm13049_vm1, %v1477_v30, 0.0  ;;  %v1780_v0 = vsel %vm13049_vm1, %v1476_v17, 0.0 }
 0x224   : > { %1769 = vadd.xlane.f32.xlu0 %v1768_v54  ;;  %v6917_v54 = vunpack.c.h.bf16 %v7041_v15  ;;  %v1223_v15 = vadd.f32 %v6921_v62, %v8256_v42 }
 0x226   : > { %v8339_v13 = vpop.xlane.xlu2 %1649  ;;  %v8346_v16 = vpop.xlane.xlu1 %1646  ;;  %v1221_v10 = vadd.f32 %v6917_v54, %v8256_v42  ;;  %v7044_v54 = vld [vmem:[%s13273_s30 + $0x188] sm:$0xff]   ;;  %v1351_v62 = vmax.f32 %v1223_v15, 0.0 }
 0x227   : > { %13278 = vst [vmem:[#allocation23_spill] sm:$0xff] %v8339_v13  ;;  %v8344_v23 = vpop.xlane.xlu0 %1643  ;;  %v1346_v13 = vmax.f32 %v1218_v34, 0.0  ;;  %v1479_v34 = vmul.f32 %v8238_v22, %v1347_v5 }
 0x228   : > { %13279 = vst [vmem:[#allocation24_spill] sm:$0xff] %v8344_v23  ;;  %v6920_v23 = vunpack.c.l.bf16 %v7042_v49  ;;  %v7043_v49 = vld [vmem:[%s13273_s30 + $0x180] sm:$0xff]  }
 0x229   : > { %v1478_v17 = vmul.f32 %v8238_v22, %v1346_v13  ;;  %v6928_v13 = vunpack.c.l.bf16 %v7044_v54 }
 0x22a   : > { %v1222_v39 = vadd.f32 %v6920_v23, %v8256_v42  ;;  %v1789_v42 = vsel %vm13049_vm1, %v1479_v34, 0.0 }
 0x22b   : > { %1784 = vadd.xlane.f32.xlu2 %v1783_v56  ;;  %1781 = vadd.xlane.f32.xlu1 %v1780_v0  ;;  %v1349_v56 = vmax.f32 %v1221_v10, 0.0  ;;  %v6924_v0 = vunpack.c.l.bf16 %v7043_v49  ;;  %v1786_v5 = vsel %vm13049_vm1, %v1478_v17, 0.0 }
 0x22c   : > { %1778 = vadd.xlane.f32.xlu0 %v1777_v50  ;;  %v8376_v50 = vperm.slane %v982_v6, 0  ;;  %v1350_v23 = vmax.f32 %v1222_v39, 0.0  ;;  %v1483_v6 = vmul.f32 %v8238_v22, %v1351_v62 }
 0x22e   : > { %v8359_v24 = vpop.xlane.xlu2 %1658  ;;  %v8365_v63 = vpop.xlane.xlu1 %1655  ;;  %v1226_v10 = vadd.f32 %v6928_v13, %v8376_v50  ;;  %v1482_v17 = vmul.f32 %v8238_v22, %v1350_v23  ;;  %v1224_v34 = vadd.f32 %v6924_v0, %v8376_v50  ;;  %v6929_v13 = vunpack.c.h.bf16 %v7044_v54  ;;  %v7046_v54 = vld [vmem:[%s13273_s30 + $0x198] sm:$0xff]  }
 0x22f   : > { %13280 = vst [vmem:[#allocation25_spill] sm:$0xff] %v8359_v24  ;;  %v8363_v30 = vpop.xlane.xlu0 %1652  ;;  %v6925_v24 = vunpack.c.h.bf16 %v7043_v49  ;;  %v7045_v49 = vld [vmem:[%s13273_s30 + $0x190] sm:$0xff]  }
 0x230   : > { %13281 = vst [vmem:[#allocation26_spill] sm:$0xff] %v8363_v30  ;;  %v1481_v30 = vmul.f32 %v8238_v22, %v1349_v56  ;;  %v1354_v62 = vmax.f32 %v1226_v10, 0.0 }
 0x231   : > { %13282 = vst [vmem:[#allocation27_spill] sm:$0xff] %v8365_v63  ;;  %v1225_v39 = vadd.f32 %v6925_v24, %v8376_v50 }
 0x232   : > { %v1795_v56 = vsel %vm13049_vm1, %v1481_v30, 0.0  ;;  %v1486_v0 = vmul.f32 %v8238_v22, %v1354_v62 }
 0x233   : > { %1793 = vadd.xlane.f32.xlu2 %v1792_v40  ;;  %1790 = vadd.xlane.f32.xlu1 %v1789_v42  ;;  %v1801_v40 = vsel %vm13049_vm1, %v1483_v6, 0.0  ;;  %v1798_v42 = vsel %vm13049_vm1, %v1482_v17, 0.0  ;;  %v1353_v23 = vmax.f32 %v1225_v39, 0.0 }
 0x234   : > { %1787 = vadd.xlane.f32.xlu0 %v1786_v5  ;;  %v6933_v5 = vunpack.c.h.bf16 %v7045_v49 }
 0x236   : > { %v8382_v63 = vpop.xlane.xlu2 %1667  ;;  %v8388_v15 = vpop.xlane.xlu1 %1664  ;;  %v1229_v30 = vadd.f32 %v6933_v5, %v8376_v50 }
 0x237   : > { %13283 = vst [vmem:[#allocation28_spill] sm:$0xff] %v8382_v63  ;;  %v8386_v8 = vpop.xlane.xlu0 %1661  ;;  %v1352_v63 = vmax.f32 %v1224_v34, 0.0  ;;  %v1485_v34 = vmul.f32 %v8238_v22, %v1353_v23 }
 0x238   : > { %13284 = vst [vmem:[#allocation29_spill] sm:$0xff] %v8386_v8  ;;  %v6932_v8 = vunpack.c.l.bf16 %v7045_v49  ;;  %v7047_v49 = vld [vmem:[%s13273_s30 + $0x1a0] sm:$0xff]  }
 0x239   : > { %13285 = vst [vmem:[#allocation30_spill] sm:$0xff] %v8388_v15  ;;  %v1227_v15 = vadd.f32 %v6929_v13, %v8376_v50  ;;  %v1484_v17 = vmul.f32 %v8238_v22, %v1352_v63  ;;  %v1357_v13 = vmax.f32 %v1229_v30, 0.0  ;;  %v6940_v5 = vunpack.c.l.bf16 %v7047_v49 }
 0x23a   : > { %v1228_v39 = vadd.f32 %v6932_v8, %v8376_v50 }
 0x23b   : > { %1802 = vadd.xlane.f32.xlu2 %v1801_v40  ;;  %1799 = vadd.xlane.f32.xlu1 %v1798_v42  ;;  %v1810_v40 = vsel %vm13049_vm1, %v1486_v0, 0.0  ;;  %v1355_v62 = vmax.f32 %v1227_v15, 0.0  ;;  %v1804_v42 = vsel %vm13049_vm1, %v1484_v17, 0.0  ;;  %v1489_v0 = vmul.f32 %v8238_v22, %v1357_v13 }
 0x23c   : > { %1796 = vadd.xlane.f32.xlu0 %v1795_v56  ;;  %v6936_v56 = vunpack.c.l.bf16 %v7046_v54  ;;  %v1356_v63 = vmax.f32 %v1228_v39, 0.0  ;;  %v1232_v15 = vadd.f32 %v6940_v5, %v8376_v50 }
 0x23e   : > { %v8399_v24 = vpop.xlane.xlu2 %1676  ;;  %v8409_v10 = vpop.xlane.xlu1 %1673  ;;  %v1230_v8 = vadd.f32 %v6936_v56, %v8376_v50 }
 0x23f   : > { %13286 = vst [vmem:[#allocation31_spill] sm:$0xff] %v8399_v24  ;;  %v8407_v6 = vpop.xlane.xlu0 %1670  ;;  %v1807_v24 = vsel %vm13049_vm1, %v1485_v34, 0.0  ;;  %v1488_v34 = vmul.f32 %v8238_v22, %v1356_v63 }
 0x240   : > { %13287 = vst [vmem:[#allocation32_spill] sm:$0xff] %v8407_v6  ;;  %v6937_v6 = vunpack.c.h.bf16 %v7046_v54  ;;  %v1358_v39 = vmax.f32 %v1230_v8, 0.0 }
 0x241   : > { %13288 = vst [vmem:[#allocation33_spill] sm:$0xff] %v8409_v10  ;;  %v1487_v10 = vmul.f32 %v8238_v22, %v1355_v62  ;;  %v1360_v62 = vmax.f32 %v1232_v15, 0.0  ;;  %v1816_v5 = vsel %vm13049_vm1, %v1488_v34, 0.0 }
 0x242   : > { %v1231_v54 = vadd.f32 %v6937_v6, %v8376_v50  ;;  %v1490_v6 = vmul.f32 %v8238_v22, %v1358_v39 }
 0x243   : > { %1811 = vadd.xlane.f32.xlu2 %v1810_v40  ;;  %1808 = vadd.xlane.f32.xlu1 %v1807_v24  ;;  %v7048_v24 = vld [vmem:[%s13273_s30 + $0x1a8] sm:$0xff]   ;;  %v1813_v56 = vsel %vm13049_vm1, %v1487_v10, 0.0  ;;  %v1819_v40 = vsel %vm13049_vm1, %v1489_v0, 0.0  ;;  %v1492_v8 = vmul.f32 %v8238_v22, %v1360_v62 }
 0x244   : > { %1805 = vadd.xlane.f32.xlu0 %v1804_v42  ;;  %v6945_v13 = vunpack.c.h.bf16 %v7048_v24  ;;  %v1359_v42 = vmax.f32 %v1231_v54, 0.0  ;;  %v7049_v54 = vld [vmem:[%s13273_s30 + $0x1b0] sm:$0xff]   ;;  %v1822_v39 = vsel %vm13049_vm1, %v1490_v6, 0.0 }
 0x245   : > { %v6948_v62 = vunpack.c.l.bf16 %v7049_v54 }
 0x246   : > { %v8421_v23 = vpop.xlane.xlu2 %1685  ;;  %v8428_v17 = vpop.xlane.xlu1 %1682  ;;  %v1235_v10 = vadd.f32 %v6945_v13, %v8376_v50  ;;  %v1491_v15 = vmul.f32 %v8238_v22, %v1359_v42  ;;  %v6949_v42 = vunpack.c.h.bf16 %v7049_v54  ;;  %v7051_v54 = vld [vmem:[%s13273_s30 + $0x1c0] sm:$0xff]  }
 0x247   : > { %13289 = vst [vmem:[#allocation34_spill] sm:$0xff] %v8421_v23  ;;  %v8426_v30 = vpop.xlane.xlu0 %1679  ;;  %v6941_v23 = vunpack.c.h.bf16 %v7047_v49  ;;  %v1236_v6 = vadd.f32 %v6948_v62, %v8376_v50 }
 0x248   : > { %13290 = vst [vmem:[#allocation35_spill] sm:$0xff] %v8426_v30  ;;  %v6944_v30 = vunpack.c.l.bf16 %v7048_v24  ;;  %v7050_v24 = vld [vmem:[%s13273_s30 + $0x1b8] sm:$0xff]  }
 0x249   : > { %13291 = vst [vmem:[#allocation36_spill] sm:$0xff] %v8428_v17  ;;  %v1233_v34 = vadd.f32 %v6941_v23, %v8376_v50  ;;  %v6952_v13 = vunpack.c.l.bf16 %v7050_v24  ;;  %v1825_v23 = vsel %vm13049_vm1, %v1491_v15, 0.0 }
 0x24a   : > { %v1234_v49 = vadd.f32 %v6944_v30, %v8376_v50 }
 0x24b   : > { %1820 = vadd.xlane.f32.xlu2 %v1819_v40  ;;  %1817 = vadd.xlane.f32.xlu1 %v1816_v5  ;;  %v1363_v40 = vmax.f32 %v1235_v10, 0.0  ;;  %v1361_v5 = vmax.f32 %v1233_v34, 0.0 }
 0x24c   : > { %1814 = vadd.xlane.f32.xlu0 %v1813_v56  ;;  %v1828_v56 = vsel %vm13049_vm1, %v1492_v8, 0.0  ;;  %v1362_v30 = vmax.f32 %v1234_v49, 0.0  ;;  %v1238_v8 = vadd.f32 %v6952_v13, %v8376_v50  ;;  %v1237_v49 = vadd.f32 %v6949_v42, %v8376_v50 }
 0x24d   : > { %v1493_v15 = vmul.f32 %v8238_v22, %v1361_v5  ;;  %v1364_v13 = vmax.f32 %v1236_v6, 0.0 }
 0x24e   : > { %v8439_v63 = vpop.xlane.xlu2 %1694  ;;  %v8445_v0 = vpop.xlane.xlu1 %1691  ;;  %v1494_v34 = vmul.f32 %v8238_v22, %v1362_v30  ;;  %v1365_v30 = vmax.f32 %v1237_v49, 0.0 }
 0x24f   : > { %13292 = vst [vmem:[#allocation37_spill] sm:$0xff] %v8439_v63  ;;  %v8443_v17 = vpop.xlane.xlu0 %1688  ;;  %v983_v63 = vrot.slane %v7829_v14, 7  ;;  %v6957_v14 = vunpack.c.h.bf16 %v7051_v54 }
 0x250   : > { %13293 = vst [vmem:[#allocation38_spill] sm:$0xff] %v8443_v17  ;;  %v1834_v5 = vsel %vm13049_vm1, %v1494_v34, 0.0 }
 0x251   : > { %13294 = vst [vmem:[#allocation39_spill] sm:$0xff] %v8445_v0  ;;  %v1495_v0 = vmul.f32 %v8238_v22, %v1363_v40  ;;  %v6953_v40 = vunpack.c.h.bf16 %v7050_v24 }
 0x253   : > { %1829 = vadd.xlane.f32.xlu2 %v1828_v56  ;;  %1826 = vadd.xlane.f32.xlu1 %v1825_v23  ;;  %v1837_v62 = vsel %vm13049_vm1, %v1495_v0, 0.0  ;;  %v1366_v23 = vmax.f32 %v1238_v8, 0.0  ;;  %v1239_v42 = vadd.f32 %v6953_v40, %v8376_v50  ;;  %v7053_v50 = vld [vmem:[%s13273_s30 + $0x1d0] sm:$0xff]  }
 0x254   : > { %1823 = vadd.xlane.f32.xlu0 %v1822_v39  ;;  %v8475_v39 = vperm.slane %v983_v63, 0  ;;  %v1496_v63 = vmul.f32 %v8238_v22, %v1364_v13 }
 0x255   : > { %v1498_v0 = vmul.f32 %v8238_v22, %v1366_v23  ;;  %v1367_v49 = vmax.f32 %v1239_v42, 0.0 }
 0x256   : > { %v8460_v17 = vpop.xlane.xlu2 %1703  ;;  %v8467_v56 = vpop.xlane.xlu1 %1700  ;;  %v1241_v24 = vadd.f32 %v6957_v14, %v8475_v39 }
 0x257   : > { %13295 = vst [vmem:[#allocation40_spill] sm:$0xff] %v8460_v17  ;;  %v8465_v10 = vpop.xlane.xlu0 %1697  ;;  %v1831_v17 = vsel %vm13049_vm1, %v1493_v15, 0.0  ;;  %v1497_v15 = vmul.f32 %v8238_v22, %v1365_v30  ;;  %v1846_v14 = vsel %vm13049_vm1, %v1498_v0, 0.0  ;;  %v7054_v0 = vld [vmem:[%s13273_s30 + $0x1d8] sm:$0xff]  }
 0x258   : > { %13296 = vst [vmem:[#allocation41_spill] sm:$0xff] %v8465_v10  ;;  %v6956_v10 = vunpack.c.l.bf16 %v7051_v54  ;;  %v1840_v54 = vsel %vm13049_vm1, %v1496_v63, 0.0  ;;  %v1369_v40 = vmax.f32 %v1241_v24, 0.0 }
 0x259   : > { %13297 = vst [vmem:[#allocation42_spill] sm:$0xff] %v8467_v56  ;;  %v1843_v13 = vsel %vm13049_vm1, %v1497_v15, 0.0 }
 0x25a   : > { %v1240_v34 = vadd.f32 %v6956_v10, %v8475_v39  ;;  %v1501_v42 = vmul.f32 %v8238_v22, %v1369_v40 }
 0x25b   : > { %1838 = vadd.xlane.f32.xlu2 %v1837_v62  ;;  %1835 = vadd.xlane.f32.xlu1 %v1834_v5  ;;  %v6964_v62 = vunpack.c.l.bf16 %v7053_v50 }
 0x25c   : > { %1832 = vadd.xlane.f32.xlu0 %v1831_v17  ;;  %v7052_v17 = vld [vmem:[%s13273_s30 + $0x1c8] sm:$0xff]   ;;  %v1368_v23 = vmax.f32 %v1240_v34, 0.0  ;;  %v1855_v40 = vsel %vm13049_vm1, %v1501_v42, 0.0 }
 0x25d   : > { %v6960_v10 = vunpack.c.l.bf16 %v7052_v17  ;;  %v6961_v5 = vunpack.c.h.bf16 %v7052_v17  ;;  %v1244_v63 = vadd.f32 %v6964_v62, %v8475_v39 }
 0x25e   : > { %v8481_v56 = vpop.xlane.xlu2 %1712  ;;  %v8488_v8 = vpop.xlane.xlu1 %1709  ;;  %v1500_v34 = vmul.f32 %v8238_v22, %v1368_v23 }
 0x25f   : > { %13298 = vst [vmem:[#allocation43_spill] sm:$0xff] %v8481_v56  ;;  %v8486_v6 = vpop.xlane.xlu0 %1706  ;;  %v1499_v56 = vmul.f32 %v8238_v22, %v1367_v49  ;;  %v1242_v17 = vadd.f32 %v6960_v10, %v8475_v39  ;;  %v1372_v62 = vmax.f32 %v1244_v63, 0.0 }
 0x260   : > { %13299 = vst [vmem:[#allocation44_spill] sm:$0xff] %v8486_v6 }
 0x261   : > { %13300 = vst [vmem:[#allocation45_spill] sm:$0xff] %v8488_v8  ;;  %v1849_v49 = vsel %vm13049_vm1, %v1499_v56, 0.0  ;;  %v1370_v6 = vmax.f32 %v1242_v17, 0.0  ;;  %v6968_v8 = vunpack.c.l.bf16 %v7054_v0 }
 0x263   : > { %1847 = vadd.xlane.f32.xlu2 %v1846_v14  ;;  %1844 = vadd.xlane.f32.xlu1 %v1843_v13  ;;  %v6969_v14 = vunpack.c.h.bf16 %v7054_v0  ;;  %v6965_v13 = vunpack.c.h.bf16 %v7053_v50  ;;  %v1502_v50 = vmul.f32 %v8238_v22, %v1370_v6  ;;  %v1246_v0 = vadd.f32 %v6968_v8, %v8475_v39 }
 0x264   : > { %1841 = vadd.xlane.f32.xlu0 %v1840_v54  ;;  %v1243_v54 = vadd.f32 %v6961_v5, %v8475_v39  ;;  %v1504_v5 = vmul.f32 %v8238_v22, %v1372_v62 }
 0x265   : > { %v1247_v23 = vadd.f32 %v6969_v14, %v8475_v39  ;;  %v1245_v56 = vadd.f32 %v6965_v13, %v8475_v39  ;;  %v1858_v6 = vsel %vm13049_vm1, %v1502_v50, 0.0  ;;  %v1374_v8 = vmax.f32 %v1246_v0, 0.0 }
 0x266   : > { %v8501_v30 = vpop.xlane.xlu2 %1721  ;;  %v8511_v15 = vpop.xlane.xlu1 %1718 }
 0x267   : > { %13301 = vst [vmem:[#allocation46_spill] sm:$0xff] %v8501_v30  ;;  %v8509_v24 = vpop.xlane.xlu0 %1715  ;;  %v1852_v30 = vsel %vm13049_vm1, %v1500_v34, 0.0  ;;  %v7056_v34 = vld [vmem:[%s13273_s30 + $0x1e8] sm:$0xff]   ;;  %v1375_v17 = vmax.f32 %v1247_v23, 0.0  ;;  %v1373_v14 = vmax.f32 %v1245_v56, 0.0 }
 0x268   : > { %13302 = vst [vmem:[#allocation47_spill] sm:$0xff] %v8509_v24  ;;  %v1371_v24 = vmax.f32 %v1243_v54, 0.0  ;;  %v1864_v54 = vsel %vm13049_vm1, %v1504_v5, 0.0 }
 0x269   : > { %13303 = vst [vmem:[#allocation48_spill] sm:$0xff] %v8511_v15  ;;  %v1507_v13 = vmul.f32 %v8238_v22, %v1375_v17  ;;  %v1505_v50 = vmul.f32 %v8238_v22, %v1373_v14 }
 0x26a   : > { %v1503_v63 = vmul.f32 %v8238_v22, %v1371_v24 }
 0x26b   : > { %1856 = vadd.xlane.f32.xlu2 %v1855_v40  ;;  %1853 = vadd.xlane.f32.xlu1 %v1852_v30  ;;  %v7055_v30 = vld [vmem:[%s13273_s30 + $0x1e0] sm:$0xff]   ;;  %v6976_v40 = vunpack.c.l.bf16 %v7056_v34  ;;  %v1873_v17 = vsel %vm13049_vm1, %v1507_v13, 0.0 }
 0x26c   : > { %1850 = vadd.xlane.f32.xlu0 %v1849_v49  ;;  %v6972_v49 = vunpack.c.l.bf16 %v7055_v30  ;;  %v1861_v24 = vsel %vm13049_vm1, %v1503_v63, 0.0  ;;  %v6973_v62 = vunpack.c.h.bf16 %v7055_v30  ;;  %v1506_v63 = vmul.f32 %v8238_v22, %v1374_v8  ;;  %v7057_v30 = vld [vmem:[%s13273_s30 + $0x1f0] sm:$0xff]  }
 0x26d   : > { %v1250_v5 = vadd.f32 %v6976_v40, %v8475_v39  ;;  %v6981_v40 = vunpack.c.h.bf16 %v7057_v30 }
 0x26e   : > { %v8520_v10 = vpop.xlane.xlu2 %1730  ;;  %v8526_v42 = vpop.xlane.xlu1 %1727  ;;  %v1248_v23 = vadd.f32 %v6972_v49, %v8475_v39  ;;  %v1249_v0 = vadd.f32 %v6973_v62, %v8475_v39 }
 0x26f   : > { %13304 = vst [vmem:[#allocation49_spill] sm:$0xff] %v8520_v10  ;;  %v8524_v15 = vpop.xlane.xlu0 %1724  ;;  %v1378_v49 = vmax.f32 %v1250_v5, 0.0 }
 0x270   : > { %13305 = vst [vmem:[#allocation50_spill] sm:$0xff] %v8524_v15  ;;  %v1377_v14 = vmax.f32 %v1249_v0, 0.0  ;;  %v12916_v0 = vlaneseq }
 0x273   : > { %1865 = vadd.xlane.f32.xlu2 %v1864_v54  ;;  %1862 = vadd.xlane.f32.xlu1 %v1861_v24  ;;  %v1376_v54 = vmax.f32 %v1248_v23, 0.0  ;;  %v1867_v24 = vsel %vm13049_vm1, %v1505_v50, 0.0  ;;  %v7058_v23 = vld [vmem:[%s13273_s30 + $0x1f8] sm:$0xff]  }
 0x274   : > { %1859 = vadd.xlane.f32.xlu0 %v1858_v6  ;;  %v6977_v6 = vunpack.c.h.bf16 %v7056_v34  ;;  %v1253_v34 = vadd.f32 %v6981_v40, %v8475_v39 }
 0x275   : > { %v1508_v62 = vmul.f32 %v8238_v22, %v1376_v54  ;;  %v8575_v54 = vshrl.u32 %v12916_v0, 7 }
 0x276   : > { %v8541_v10 = vpop.xlane.xlu2 %1739  ;;  %v8547_v15 = vpop.xlane.xlu1 %1736  ;;  %v1251_v13 = vadd.f32 %v6977_v6, %v8475_v39  ;;  %v1381_v40 = vmax.f32 %v1253_v34, 0.0 }
 0x277   : > { %13306 = vst [vmem:[#allocation51_spill] sm:$0xff] %v8541_v10  ;;  %v8545_v56 = vpop.xlane.xlu0 %1733  ;;  %v1870_v10 = vsel %vm13049_vm1, %v1506_v63, 0.0  ;;  %7132 = vset.pattern.permute.xlu0 %v8575_v54 }
 0x278   : > { %13307 = vst [vmem:[#allocation52_spill] sm:$0xff] %v8545_v56  ;;  %v6980_v56 = vunpack.c.l.bf16 %v7057_v30  ;;  %v12917_v30 = vmov 0  }
 0x279   : > { %13308 = vst [vmem:[#allocation53_spill] sm:$0xff] %v8547_v15  ;;  %v1510_v15 = vmul.f32 %v8238_v22, %v1378_v49  ;;  %7131 = vset.pattern.permute.xlu2 %v12917_v30  ;;  %v1876_v49 = vsel %vm13049_vm1, %v1508_v62, 0.0  ;;  %v1513_v62 = vmul.f32 %v8238_v22, %v1381_v40 }
 0x27a   : > { %v1252_v63 = vadd.f32 %v6980_v56, %v8475_v39  ;;  %v2046_v56 = vadd.s32 8, %v8575_v54 }
 0x27b   : > { %1874 = vadd.xlane.f32.xlu2 %v1873_v17  ;;  %1871 = vadd.xlane.f32.xlu1 %v1870_v10  ;;  %v1509_v10 = vmul.f32 %v8238_v22, %v1377_v14  ;;  %v6984_v17 = vunpack.c.l.bf16 %v7058_v23  ;;  %v1882_v6 = vsel %vm13049_vm1, %v1510_v15, 0.0  ;;  %v1379_v14 = vmax.f32 %v1251_v13, 0.0 }
 0x27c   : > { %1868 = vadd.xlane.f32.xlu0 %v1867_v24  ;;  %v6985_v24 = vunpack.c.h.bf16 %v7058_v23  ;;  %7133 = vset.pattern.permute.xlu1 %v2046_v56 }
 0x27d   : > { %v1511_v34 = vmul.f32 %v8238_v22, %v1379_v14  ;;  %v1254_v23 = vadd.f32 %v6984_v17, %v8475_v39 }
 0x27e   : > { %v8558_v8 = vpop.xlane.xlu2 %1748  ;;  %v8569_v50 = vpop.xlane.xlu1 %1745 }
 0x27f   : > { %13309 = vst [vmem:[#allocation54_spill] sm:$0xff] %v8558_v8  ;;  %v8567_v5 = vpop.xlane.xlu0 %1742  ;;  %v1879_v8 = vsel %vm13049_vm1, %v1509_v10, 0.0  ;;  %v1255_v10 = vadd.f32 %v6985_v24, %v8475_v39 }
 0x280   : > { %13310 = vst [vmem:[#allocation55_spill] sm:$0xff] %v8567_v5  ;;  %v1380_v5 = vmax.f32 %v1252_v63, 0.0  ;;  %v1891_v63 = vsel %vm13049_vm1, %v1513_v62, 0.0 }
 0x281   : > { %v1383_v40 = vmax.f32 %v1255_v10, 0.0 }
 0x282   : > { %v1512_v13 = vmul.f32 %v8238_v22, %v1380_v5 }
 0x283   : > { %1883 = vadd.xlane.f32.xlu2 %v1882_v6  ;;  %1880 = vadd.xlane.f32.xlu1 %v1879_v8  ;;  %v1885_v8 = vsel %vm13049_vm1, %v1511_v34, 0.0  ;;  %v1382_v6 = vmax.f32 %v1254_v23, 0.0  ;;  %v1515_v39 = vmul.f32 %v8238_v22, %v1383_v40 }
 0x284   : > { %1877 = vadd.xlane.f32.xlu0 %v1876_v49  ;;  %v1888_v49 = vsel %vm13049_vm1, %v1512_v13, 0.0 }
 0x285   : > { %v1514_v17 = vmul.f32 %v8238_v22, %v1382_v6  ;;  %v1897_v62 = vsel %vm13049_vm1, %v1515_v39, 0.0  ;;  %v8621_v22 = vld [vmem:[%s13314_s10] ss:$0 sm:$0xff]  ;;  %v2052_v39 = vadd.s32 16, %v8575_v54  ;;  %s14303_s10 = smov 64  }
 0x286   : > { %v8582_v0 = vpop.xlane.xlu2 %1757  ;;  %v8587_v15 = vpop.xlane.xlu1 %1754 }
 0x287   : > { %v8585_v30 = vpop.xlane.xlu0 %1751  ;;  %v1894_v24 = vsel %vm13049_vm1, %v1514_v17, 0.0  ;;  %vm13051_vm1 = vcmask 1041409  }
 0x28b   : > { %1892 = vadd.xlane.f32.xlu2 %v1891_v63  ;;  %1889 = vadd.xlane.f32.xlu1 %v1888_v49  ;;  %v7153_v49 = vld [vmem:[#allocation6] ss:$0 sm:$0xff] }
 0x28c   : > { %1886 = vadd.xlane.f32.xlu0 %v1885_v8 }
 0x28e   : > { %v8596_v56 = vpop.xlane.xlu2 %1766  ;;  %v8600_v5 = vpop.xlane.xlu1 %1763 }
 0x28f   : > { %v8598_v14 = vpop.xlane.xlu0 %1760 }
 0x293   : > { %1898 = vadd.xlane.f32.xlu1 %v1897_v62 }
 0x294   : > { %1895 = vadd.xlane.f32.xlu0 %v1894_v24  ;;  %v2082_v24 = vadd.s32 56, %v8575_v54 }
 0x296   : > { %v8606_v34 = vpop.xlane.xlu2 %1775  ;;  %v8610_v23 = vpop.xlane.xlu1 %1772 }
 0x297   : > { %13311 = vst [vmem:[#allocation56_spill] sm:$0xff] %v8606_v34  ;;  %v8608_v13 = vpop.xlane.xlu0 %1769 }
 0x29e   : > { %v8612_v10 = vpop.xlane.xlu2 %1784  ;;  %v8616_v8 = vpop.xlane.xlu1 %1781 }
 0x29f   : > { %13312 = vst [vmem:[#allocation57_spill] sm:$0xff] %v8612_v10  ;;  %v8614_v63 = vpop.xlane.xlu0 %1778 }
 0x2a0   : > { %13313 = vst [vmem:[#allocation58_spill] sm:$0xff] %v8614_v63  ;;  %v2058_v63 = vadd.s32 24, %v8575_v54 }
 0x2a3   : > { %1904 = vperm.xlu2 %7131, %v7153_v49  }
 0x2a6   : > { %v8623_v6 = vpop.xlane.xlu2 %1793  ;;  %v8627_v17 = vpop.xlane.xlu1 %1790 }
 0x2a7   : > { %13315 = vst [vmem:[#allocation59_spill] sm:$0xff] %v8623_v6  ;;  %v8625_v40 = vpop.xlane.xlu0 %1787  ;;  %v2064_v6 = vadd.s32 32, %v8575_v54 }
 0x2a8   : > { %13316 = vst [vmem:[#allocation60_spill] sm:$0xff] %v8625_v40  ;;  %2042 = vperm.xlu0 %7132, %v8621_v22  }
 0x2a9   : > { %13317 = vst [vmem:[#allocation61_spill] sm:$0xff] %v8627_v17 }
 0x2ab   : > { %7134 = vset.pattern.permute.xlu2 %v2052_v39 }
 0x2ac   : > { %2048 = vperm.xlu1 %7133, %v8621_v22  }
 0x2ae   : > { %v8633_v62 = vpop.xlane.xlu2 %1802  ;;  %v8637_v10 = vpop.xlane.xlu1 %1799 }
 0x2af   : > { %13318 = vst [vmem:[#allocation62_spill] sm:$0xff] %v8633_v62  ;;  %v8635_v49 = vpop.xlane.xlu0 %1796  ;;  %v2112_v62 = vadd.s32 96, %v8575_v54 }
 0x2b0   : > { %13319 = vst [vmem:[#allocation63_spill] sm:$0xff] %v8635_v49  ;;  %7139 = vset.pattern.permute.xlu0 %v2082_v24 }
 0x2b1   : > { %13320 = vst [vmem:[#allocation64_spill] sm:$0xff] %v8637_v10  ;;  %v2070_v10 = vadd.s32 40, %v8575_v54 }
 0x2b3   : > { %2054 = vperm.xlu2 %7134, %v8621_v22  }
 0x2b4   : > { %7136 = vset.pattern.permute.xlu1 %v2064_v6 }
 0x2b6   : > { %v8641_v40 = vpop.xlane.xlu2 %1811  ;;  %v8645_v39 = vpop.xlane.xlu1 %1808 }
 0x2b7   : > { %13321 = vst [vmem:[#allocation65_spill] sm:$0xff] %v8641_v40  ;;  %v8643_v34 = vpop.xlane.xlu0 %1805  ;;  %v2076_v40 = vadd.s32 48, %v8575_v54 }
 0x2b8   : > { %13322 = vst [vmem:[#allocation66_spill] sm:$0xff] %v8643_v34  ;;  %2084 = vperm.xlu0 %7139, %v8621_v22  }
 0x2b9   : > { %13323 = vst [vmem:[#allocation67_spill] sm:$0xff] %v8645_v39 }
 0x2bb   : > { %7135 = vset.pattern.permute.xlu2 %v2058_v63 }
 0x2bc   : > { %2066 = vperm.xlu1 %7136, %v8621_v22  }
 0x2be   : > { %v8651_v24 = vpop.xlane.xlu2 %1820  ;;  %v8655_v6 = vpop.xlane.xlu1 %1817 }
 0x2bf   : > { %13324 = vst [vmem:[#allocation68_spill] sm:$0xff] %v8651_v24  ;;  %v8653_v49 = vpop.xlane.xlu0 %1814 }
 0x2c0   : > { %13325 = vst [vmem:[#allocation69_spill] sm:$0xff] %v8653_v49  ;;  %7144 = vset.pattern.permute.xlu0 %v2112_v62  ;;  %v13332_v49 = vmov 0  }
 0x2c1   : > { %13326 = vst [vmem:[#allocation70_spill] sm:$0xff] %v8655_v6 }
 0x2c3   : > { %2060 = vperm.xlu2 %7135, %v8621_v22  }
 0x2c4   : > { %7138 = vset.pattern.permute.xlu1 %v2076_v40 }
 0x2c6   : > { %v8659_v34 = vpop.xlane.xlu2 %1829  ;;  %v8663_v63 = vpop.xlane.xlu1 %1826 }
 0x2c7   : > { %13327 = vst [vmem:[#allocation71_spill] sm:$0xff] %v8659_v34  ;;  %v8661_v39 = vpop.xlane.xlu0 %1823  ;;  %v2094_v34 = vadd.s32 72, %v8575_v54 }
 0x2c8   : > { %13328 = vst [vmem:[#allocation72_spill] sm:$0xff] %v8661_v39  ;;  %2114 = vperm.xlu0 %7144, %v8621_v22  }
 0x2c9   : > { %13329 = vst [vmem:[#allocation73_spill] sm:$0xff] %v8663_v63 }
 0x2cb   : > { %7137 = vset.pattern.permute.xlu2 %v2070_v10  ;;  %v2088_v10 = vadd.s32 64, %v8575_v54 }
 0x2cc   : > { %2078 = vperm.xlu1 %7138, %v8621_v22  }
 0x2ce   : > { %v8668_v24 = vpop.xlane.xlu2 %1838  ;;  %v8673_v40 = vpop.xlane.xlu1 %1835 }
 0x2cf   : > { %13330 = vst [vmem:[#allocation74_spill] sm:$0xff] %v8668_v24  ;;  %v8670_v62 = vpop.xlane.xlu0 %1832 }
 0x2d0   : > { %13331 = vst [vmem:[#allocation75_spill] sm:$0xff] %v8670_v62  ;;  %7149 = vset.pattern.permute.xlu0 %v13332_v49 }
 0x2d1   : > { %13333 = vst [vmem:[#allocation76_spill] sm:$0xff] %v8673_v40  ;;  %v2106_v40 = vadd.s32 88, %v8575_v54 }
 0x2d3   : > { %2072 = vperm.xlu2 %7137, %v8621_v22  }
 0x2d4   : > { %7141 = vset.pattern.permute.xlu1 %v2094_v34 }
 0x2d6   : > { %v8677_v39 = vpop.xlane.xlu2 %1847  ;;  %v8682_v6 = vpop.xlane.xlu1 %1844 }
 0x2d7   : > { %13334 = vst [vmem:[#allocation77_spill] sm:$0xff] %v8677_v39  ;;  %v8679_v63 = vpop.xlane.xlu0 %1841 }
 0x2d8   : > { %13335 = vst [vmem:[#allocation78_spill] sm:$0xff] %v8679_v63  ;;  %v2100_v63 = vadd.s32 80, %v8575_v54 }
 0x2d9   : > { %13336 = vst [vmem:[#allocation79_spill] sm:$0xff] %v8682_v6 }
 0x2db   : > { %7140 = vset.pattern.permute.xlu2 %v2088_v10 }
 0x2dc   : > { %2096 = vperm.xlu1 %7141, %v8621_v22  }
 0x2de   : > { %v8685_v24 = vpop.xlane.xlu2 %1856  ;;  %v8691_v34 = vpop.xlane.xlu1 %1853 }
 0x2df   : > { %13337 = vst [vmem:[#allocation80_spill] sm:$0xff] %v8685_v24  ;;  %v8687_v62 = vpop.xlane.xlu0 %1850 }
 0x2e0   : > { %13338 = vst [vmem:[#allocation81_spill] sm:$0xff] %v8687_v62  ;;  %v2124_v62 = vadd.s32 112, %v8575_v54 }
 0x2e1   : > { %13339 = vst [vmem:[#allocation82_spill] sm:$0xff] %v8691_v34 }
 0x2e3   : > { %2090 = vperm.xlu2 %7140, %v8621_v22  }
 0x2e4   : > { %7143 = vset.pattern.permute.xlu1 %v2106_v40  ;;  %v2118_v40 = vadd.s32 104, %v8575_v54 }
 0x2e6   : > { %v8693_v39 = vpop.xlane.xlu2 %1865  ;;  %v8699_v10 = vpop.xlane.xlu1 %1862 }
 0x2e7   : > { %13340 = vst [vmem:[#allocation83_spill] sm:$0xff] %v8693_v39  ;;  %v8696_v17 = vpop.xlane.xlu0 %1859 }
 0x2e8   : > { %13341 = vst [vmem:[#allocation84_spill] sm:$0xff] %v8696_v17 }
 0x2eb   : > { %7142 = vset.pattern.permute.xlu2 %v2100_v63 }
 0x2ec   : > { %2108 = vperm.xlu1 %7143, %v8621_v22  }
 0x2ee   : > { %v8701_v24 = vpop.xlane.xlu2 %1874  ;;  %v8708_v39 = vpop.xlane.xlu1 %1871 }
 0x2ef   : > { %13342 = vst [vmem:[#allocation85_spill] sm:$0xff] %v8701_v24  ;;  %v8705_v6 = vpop.xlane.xlu0 %1868 }
 0x2f0   : > { %13343 = vst [vmem:[#allocation86_spill] sm:$0xff] %v8705_v6 }
 0x2f1   : > { %13344 = vst [vmem:[#allocation87_spill] sm:$0xff] %v8708_v39 }
 0x2f3   : > { %2102 = vperm.xlu2 %7142, %v8621_v22  }
 0x2f4   : > { %7146 = vset.pattern.permute.xlu1 %v2124_v62  ;;  %v2130_v62 = vadd.s32 120, %v8575_v54 }
 0x2f6   : > { %v8710_v34 = vpop.xlane.xlu2 %1883  ;;  %v8715_v17 = vpop.xlane.xlu1 %1880 }
 0x2f7   : > { %13345 = vst [vmem:[#allocation88_spill] sm:$0xff] %v8710_v34  ;;  %v8713_v63 = vpop.xlane.xlu0 %1877 }
 0x2f8   : > { %13346 = vst [vmem:[#allocation89_spill] sm:$0xff] %v8713_v63 }
 0x2f9   : > { %13347 = vst [vmem:[#allocation90_spill] sm:$0xff] %v8715_v17 }
 0x2fb   : > { %7145 = vset.pattern.permute.xlu2 %v2118_v40 }
 0x2fc   : > { %2126 = vperm.xlu1 %7146, %v8621_v22  }
 0x2fe   : > { %v8717_v24 = vpop.xlane.xlu2 %1892  ;;  %v8724_v39 = vpop.xlane.xlu1 %1889 }
 0x2ff   : > { %13348 = vst [vmem:[#allocation91_spill] sm:$0xff] %v8717_v24  ;;  %v8722_v6 = vpop.xlane.xlu0 %1886 }
 0x300   : > { %13349 = vst [vmem:[#allocation92_spill] sm:$0xff] %v8722_v6 }
 0x303   : > { %2120 = vperm.xlu2 %7145, %v8621_v22  }
 0x304   : > { %7148 = vset.pattern.permute.xlu1 %v13332_v49 }
 0x306   : > { %v8726_v40 = vpop.permute.xlu2 %1904  ;;  %v8731_v63 = vpop.xlane.xlu1 %1898 }
 0x307   : > { %v8728_v34 = vpop.xlane.xlu0 %1895  ;;  %13351 = vst [vmem:[#allocation94_spill] sm:$0xff] %v8731_v63  ;;  %v1909_v17 = vadd.f32 %v8726_v40, %v8060_v46  ;;  %v1907_v54 = vadd.f32 %v8726_v40, %v8062_v47  ;;  %v1908_v46 = vadd.f32 %v8726_v40, %v8083_v3  ;;  %v1912_v3 = vadd.f32 %v8726_v40, %v8073_v61 }
 0x308   : > { %13350 = vst [vmem:[#allocation93_spill] sm:$0xff] %v8728_v34  ;;  %v1914_v61 = vadd.f32 %v8726_v40, %v8100_v25 }
 0x30b   : > { %7147 = vset.pattern.permute.xlu2 %v2130_v62 }
 0x30e   : > { %v8733_v24 = vpop.permute.xlu2 %2054 }
 0x30f   : > { %v8742_v62 = vadd.f32 %v8733_v24, %v1909_v17  ;;  %v1910_v17 = vadd.f32 %v8726_v40, %v8081_v2 }
 0x311   : > { %13352 = vst [vmem:[#allocation95_spill] sm:$0xff] %v8742_v62 }
 0x313   : > { %2132 = vperm.xlu2 %7147, %v8621_v22  }
 0x31a   : > { %v8739_v6 = vpop.permute.xlu0 %2042 }
 0x31b   : > { %7150 = vset.pattern.permute.xlu2 %v13332_v49  ;;  %v8746_v34 = vadd.f32 %v8739_v6, %v1907_v54 }
 0x31c   : > { %2413 = vperm.xlu2 %7150, %v8742_v62  }
 0x31d   : > { %13353 = vst [vmem:[#allocation96_spill] sm:$0xff] %v8746_v34  ;;  %2407 = vperm.xlu1 %7148, %v8746_v34   ;;  %v8754_v47 = vpop.permute.xlu2 %2060 }
 0x31e   : > { %v8752_v22 = vpop.permute.xlu1 %2048  ;;  %v8763_v49 = vadd.f32 %v8754_v47, %v1910_v17 }
 0x31f   : > { %v8757_v63 = vadd.f32 %v8752_v22, %v1908_v46  ;;  %v1911_v46 = vadd.f32 %v8726_v40, %v8056_v43  ;;  %v1915_v43 = vadd.f32 %v8726_v40, %v8095_v20  ;;  %v1917_v20 = vadd.f32 %v8726_v40, %v8117_v45 }
 0x320   : > { %13355 = vst [vmem:[#allocation98_spill] sm:$0xff] %v8763_v49  ;;  %v1919_v45 = vadd.f32 %v8726_v40, %v8141_v9 }
 0x321   : > { %13354 = vst [vmem:[#allocation97_spill] sm:$0xff] %v8757_v63  ;;  %2410 = vperm.xlu0 %7149, %v8757_v63  }
 0x325   : > { %2416 = vperm.xlu1 %7148, %v8763_v49  }
 0x32a   : > { %v8782_v17 = vpop.permute.xlu0 %2084 }
 0x32d   : > { %v8768_v54 = vpop.permute.xlu2 %2072 }
 0x32e   : > { %v8771_v62 = vadd.f32 %v8768_v54, %v1912_v3  ;;  %v8775_v34 = vpop.permute.xlu1 %2066  ;;  %v8787_v3 = vadd.f32 %v8782_v17, %v1914_v61 }
 0x32f   : > { %v8779_v2 = vadd.f32 %v8775_v34, %v1911_v46 }
 0x330   : > { %13356 = vst [vmem:[#allocation99_spill] sm:$0xff] %v8771_v62  ;;  %2422 = vperm.xlu1 %7148, %v8771_v62  }
 0x331   : > { %13357 = vst [vmem:[#allocation100_spill] sm:$0xff] %v8779_v2  ;;  %2419 = vperm.xlu2 %7150, %v8779_v2   ;;  %v1913_v2 = vadd.f32 %v8726_v40, %v8102_v26  ;;  %v1916_v26 = vadd.f32 %v8726_v40, %v8119_v48  ;;  %v1920_v48 = vadd.f32 %v8726_v40, %v8139_v7 }
 0x332   : > { %13358 = vst [vmem:[#allocation101_spill] sm:$0xff] %v8787_v3  ;;  %v1923_v7 = vadd.f32 %v8726_v40, %v8162_v37  ;;  %v1921_v37 = vadd.f32 %v8726_v40, %v8134_v1 }
 0x339   : > { %2428 = vperm.xlu2 %7150, %v8787_v3  }
 0x33d   : > { %v8792_v49 = vpop.permute.xlu2 %2090 }
 0x33e   : > { %v8795_v46 = vadd.f32 %v8792_v49, %v1915_v43  ;;  %v8799_v62 = vpop.permute.xlu1 %2078 }
 0x33f   : > { %v8803_v25 = vadd.f32 %v8799_v62, %v1913_v2 }
 0x340   : > { %13359 = vst [vmem:[#allocation102_spill] sm:$0xff] %v8795_v46  ;;  %2431 = vperm.xlu1 %7148, %v8795_v46   ;;  %v8822_v46 = vpop.permute.xlu0 %2114 }
 0x341   : > { %13360 = vst [vmem:[#allocation103_spill] sm:$0xff] %v8803_v25  ;;  %2425 = vperm.xlu0 %7149, %v8803_v25  }
 0x34d   : > { %v8808_v61 = vpop.permute.xlu2 %2102 }
 0x34e   : > { %v8811_v43 = vadd.f32 %v8808_v61, %v1917_v20  ;;  %v8815_v3 = vpop.permute.xlu1 %2096  ;;  %v8827_v20 = vadd.f32 %v8822_v46, %v1919_v45  ;;  %v8849_v45 = vadd.f32 %v8739_v6, %v1923_v7 }
 0x34f   : > { %v8819_v2 = vadd.f32 %v8815_v3, %v1916_v26 }
 0x350   : > { %13361 = vst [vmem:[#allocation104_spill] sm:$0xff] %v8811_v43  ;;  %2437 = vperm.xlu2 %7150, %v8811_v43   ;;  %v13448_v43 = vld [vmem:[#allocation47_spill] sm:$0xff] }
 0x351   : > { %13362 = vst [vmem:[#allocation105_spill] sm:$0xff] %v8819_v2  ;;  %2434 = vperm.xlu0 %7149, %v8819_v2   ;;  %v1918_v2 = vadd.f32 %v8726_v40, %v8113_v41  ;;  %v1926_v41 = vadd.f32 %v8726_v40, %v8182_v60 }
 0x352   : > { %13363 = vst [vmem:[#allocation106_spill] sm:$0xff] %v8827_v20 }
 0x353   : > { %13366 = vst [vmem:[#allocation109_spill] sm:$0xff] %v8849_v45 }
 0x359   : > { %2443 = vperm.xlu0 %7149, %v8827_v20  }
 0x35d   : > { %v8832_v25 = vpop.permute.xlu2 %2120 }
 0x35e   : > { %v8835_v26 = vadd.f32 %v8832_v25, %v1920_v48  ;;  %v8839_v63 = vpop.permute.xlu1 %2108  ;;  %v1922_v48 = vadd.f32 %v8726_v40, %v8160_v36  ;;  %v1929_v36 = vadd.f32 %v8726_v40, %v8200_v28  ;;  %v1928_v28 = vadd.f32 %v8726_v40, %v8198_v27 }
 0x35f   : > { %v8843_v9 = vadd.f32 %v8839_v63, %v1918_v2  ;;  %v8859_v2 = vadd.f32 %v8754_v47, %v1926_v41  ;;  %v1925_v41 = vadd.f32 %v8726_v40, %v8180_v59  ;;  %v1932_v59 = vadd.f32 %v8726_v40, %v8221_v58 }
 0x360   : > { %13364 = vst [vmem:[#allocation107_spill] sm:$0xff] %v8835_v26  ;;  %2446 = vperm.xlu2 %7150, %v8835_v26   ;;  %v1935_v27 = vadd.f32 %v8726_v40, %v8248_v18  ;;  %v1931_v58 = vadd.f32 %v8726_v40, %v8219_v57  ;;  %v1938_v57 = vadd.f32 %v8726_v40, %v8269_v12 }
 0x361   : > { %13365 = vst [vmem:[#allocation108_spill] sm:$0xff] %v8843_v9  ;;  %2440 = vperm.xlu1 %7148, %v8843_v9   ;;  %v8882_v1 = vadd.f32 %v8733_v24, %v1925_v41  ;;  %v1927_v41 = vadd.f32 %v8726_v40, %v8175_v55  ;;  %v1934_v18 = vadd.f32 %v8726_v40, %v8246_v35 }
 0x362   : > { %13367 = vst [vmem:[#allocation110_spill] sm:$0xff] %v8859_v2  ;;  %v8918_v55 = vadd.f32 %v8792_v49, %v1931_v58  ;;  %v1933_v58 = vadd.f32 %v8726_v40, %v8215_v53  ;;  %v1941_v35 = vadd.f32 %v8726_v40, %v8286_v52  ;;  %v1937_v12 = vadd.f32 %v8726_v40, %v8267_v11 }
 0x363   : > { %13371 = vst [vmem:[#allocation114_spill] sm:$0xff] %v8882_v1  ;;  %v1944_v11 = vadd.f32 %v8726_v40, %v8307_v33 }
 0x364   : > { %13377 = vst [vmem:[#allocation120_spill] sm:$0xff] %v8918_v55 }
 0x368   : > { %2455 = vperm.xlu2 %7150, %v8849_v45  }
 0x36d   : > { %v8856_v26 = vpop.permute.xlu2 %2132 }
 0x36e   : > { %v8862_v9 = vadd.f32 %v8856_v26, %v1922_v48  ;;  %v8866_v7 = vpop.permute.xlu1 %2126  ;;  %v8879_v48 = vadd.f32 %v8799_v62, %v1929_v36  ;;  %v8897_v36 = vadd.f32 %v8815_v3, %v1932_v59  ;;  %v8915_v59 = vadd.f32 %v8822_v46, %v1935_v27 }
 0x36f   : > { %v8871_v60 = vadd.f32 %v8866_v7, %v1921_v37  ;;  %v8933_v27 = vadd.f32 %v8856_v26, %v1938_v57  ;;  %v8951_v57 = vadd.f32 %v8733_v24, %v1941_v35  ;;  %v8954_v53 = vadd.f32 %v8866_v7, %v1937_v12 }
 0x370   : > { %13368 = vst [vmem:[#allocation111_spill] sm:$0xff] %v8862_v9  ;;  %2464 = vperm.xlu2 %7150, %v8859_v2   ;;  %2452 = vperm.xlu0 %7149, %v8862_v9   ;;  %v1924_v2 = vadd.f32 %v8726_v40, %v8155_v31  ;;  %v8900_v31 = vadd.f32 %v8768_v54, %v1928_v28  ;;  %v13421_v9 = vld [vmem:[#allocation35_spill] sm:$0xff] }
 0x371   : > { %13369 = vst [vmem:[#allocation112_spill] sm:$0xff] %v8871_v60  ;;  %2449 = vperm.xlu1 %7148, %v8871_v60   ;;  %v1930_v28 = vadd.f32 %v8726_v40, %v8194_v21  ;;  %v8936_v21 = vadd.f32 %v8839_v63, %v1934_v18  ;;  %v1936_v18 = vadd.f32 %v8726_v40, %v8233_v19  ;;  %v13427_v60 = vld [vmem:[#allocation38_spill] sm:$0xff] }
 0x372   : > { %13370 = vst [vmem:[#allocation113_spill] sm:$0xff] %v8879_v48  ;;  %v8889_v37 = vadd.f32 %v8752_v22, %v1924_v2  ;;  %v8907_v2 = vadd.f32 %v8775_v34, %v1927_v41  ;;  %v8971_v35 = vadd.f32 %v8768_v54, %v1944_v11  ;;  %v1939_v12 = vadd.f32 %v8726_v40, %v8262_v4 }
 0x373   : > { %13373 = vst [vmem:[#allocation116_spill] sm:$0xff] %v8897_v36  ;;  %v8925_v41 = vadd.f32 %v8782_v17, %v1930_v28  ;;  %v8943_v28 = vadd.f32 %v8808_v61, %v1933_v58  ;;  %v8963_v52 = vadd.f32 %v8832_v25, %v1936_v18  ;;  %v1940_v58 = vadd.f32 %v8726_v40, %v8284_v51 }
 0x374   : > { %13372 = vst [vmem:[#allocation115_spill] sm:$0xff] %v8889_v37  ;;  %v8983_v33 = vadd.f32 %v8739_v6, %v1939_v12  ;;  %v1947_v51 = vadd.f32 %v8726_v40, %v8326_v32  ;;  %v1943_v18 = vadd.f32 %v8726_v40, %v8305_v38  ;;  %v1950_v38 = vadd.f32 %v8726_v40, %v8346_v16 }
 0x375   : > { %13374 = vst [vmem:[#allocation117_spill] sm:$0xff] %v8900_v31  ;;  %v8974_v19 = vadd.f32 %v8752_v22, %v1940_v58  ;;  %v1942_v58 = vadd.f32 %v8726_v40, %v8280_v44 }
 0x376   : > { %13375 = vst [vmem:[#allocation118_spill] sm:$0xff] %v8907_v2  ;;  %v8991_v11 = vadd.f32 %v8792_v49, %v1947_v51  ;;  %v8994_v4 = vadd.f32 %v8775_v34, %v1943_v18  ;;  %v1946_v51 = vadd.f32 %v8726_v40, %v8324_v29  ;;  %v9011_v18 = vadd.f32 %v8839_v63, %v1950_v38  ;;  %v13395_v29 = vld [vmem:[#allocation27_spill] sm:$0xff] }
 0x377   : > { %13376 = vst [vmem:[#allocation119_spill] sm:$0xff] %v8915_v59  ;;  %v9001_v12 = vadd.f32 %v8754_v47, %v1942_v58  ;;  %v1953_v38 = vadd.f32 %v8726_v40, %v13395_v29 }
 0x378   : > { %2473 = vperm.xlu2 %7150, %v8879_v48   ;;  %2461 = vperm.xlu0 %7149, %v8882_v1   ;;  %13378 = vst [vmem:[#allocation121_spill] sm:$0xff] %v8925_v41  ;;  %v9014_v44 = vadd.f32 %v8782_v17, %v1946_v51 }
 0x379   : > { %2458 = vperm.xlu1 %7148, %v8889_v37   ;;  %13379 = vst [vmem:[#allocation122_spill] sm:$0xff] %v8933_v27 }
 0x37a   : > { %13380 = vst [vmem:[#allocation123_spill] sm:$0xff] %v8936_v21 }
 0x37b   : > { %13381 = vst [vmem:[#allocation124_spill] sm:$0xff] %v8943_v28 }
 0x37c   : > { %13382 = vst [vmem:[#allocation125_spill] sm:$0xff] %v8951_v57 }
 0x37d   : > { %13383 = vst [vmem:[#allocation126_spill] sm:$0xff] %v8954_v53 }
 0x37e   : > { %13384 = vst [vmem:[#allocation127_spill] sm:$0xff] %v8963_v52 }
 0x37f   : > { %13385 = vst [vmem:[#allocation128_spill] sm:$0xff] %v8971_v35 }
 0x380   : > { %2482 = vperm.xlu2 %7150, %v8897_v36   ;;  %2470 = vperm.xlu0 %7149, %v8900_v31   ;;  %13386 = vst [vmem:[#allocation129_spill] sm:$0xff] %v8974_v19  ;;  %v13409_v36 = vld [vmem:[#allocation29_spill] sm:$0xff] }
 0x381   : > { %2467 = vperm.xlu1 %7148, %v8907_v2   ;;  %13387 = vst [vmem:[#allocation130_spill] sm:$0xff] %v8983_v33  ;;  %v13443_v2 = vld [vmem:[#allocation44_spill] sm:$0xff] }
 0x382   : > { %13388 = vst [vmem:[#allocation131_spill] sm:$0xff] %v8991_v11 }
 0x383   : > { %13389 = vst [vmem:[#allocation132_spill] sm:$0xff] %v8994_v4 }
 0x384   : > { %13390 = vst [vmem:[#allocation133_spill] sm:$0xff] %v9001_v12 }
 0x385   : > { %13391 = vst [vmem:[#allocation134_spill] sm:$0xff] %v9011_v18 }
 0x386   : > { %13392 = vst [vmem:[#allocation135_spill] sm:$0xff] %v9014_v44 }
 0x388   : > { %2491 = vperm.xlu2 %7150, %v8915_v59   ;;  %2479 = vperm.xlu0 %7149, %v8918_v55  }
 0x389   : > { %2476 = vperm.xlu1 %7148, %v8925_v41  }
 0x38f   : > { %v9043_v29 = vpop.permute.xlu1 %2407 }
 0x390   : > { %2500 = vperm.xlu2 %7150, %v8933_v27   ;;  %2488 = vperm.xlu0 %7149, %v8936_v21   ;;  %v8958_v27 = vpop.permute.xlu2 %2413 }
 0x391   : > { %2485 = vperm.xlu1 %7148, %v8943_v28  }
 0x393   : > { %v9060_v59 = vpop.permute.xlu0 %2410 }
 0x398   : > { %2509 = vperm.xlu2 %7150, %v8951_v57   ;;  %2497 = vperm.xlu0 %7149, %v8954_v53   ;;  %v8978_v57 = vpop.permute.xlu2 %2419  ;;  %v13403_v53 = vld [vmem:[#allocation26_spill] sm:$0xff] }
 0x399   : > { %2494 = vperm.xlu1 %7148, %v8963_v52   ;;  %v1952_v21 = vadd.f32 %v8726_v40, %v13403_v53  ;;  %v13436_v52 = vld [vmem:[#allocation41_spill] sm:$0xff] }
 0x3a0   : > { %2518 = vperm.xlu2 %7150, %v8971_v35   ;;  %2506 = vperm.xlu0 %7149, %v8974_v19   ;;  %v9003_v32 = vpop.permute.xlu2 %2428  ;;  %v13396_v35 = vld [vmem:[#allocation24_spill] sm:$0xff]  ;;  %v9031_v19 = vadd.f32 %v8866_v7, %v1953_v38  ;;  %v13402_v38 = vld [vmem:[#allocation30_spill] sm:$0xff] }
 0x3a1   : > { %2503 = vperm.xlu1 %7148, %v8983_v33   ;;  %v1949_v51 = vadd.f32 %v8726_v40, %v13396_v35 }
 0x3a2   : > { %13397 = vst [vmem:[#allocation27_spill] sm:$0xff] %v9031_v19 }
 0x3a8   : > { %2527 = vperm.xlu2 %7150, %v8991_v11   ;;  %2515 = vperm.xlu0 %7149, %v8994_v4   ;;  %v13393_v11 = vld [vmem:[#allocation21_spill] sm:$0xff] }
 0x3a9   : > { %2512 = vperm.xlu1 %7148, %v9001_v12   ;;  %v1945_v58 = vadd.f32 %v8726_v40, %v13393_v11  ;;  %v9034_v11 = vadd.f32 %v8808_v61, %v1949_v51  ;;  %v1956_v51 = vadd.f32 %v8726_v40, %v13402_v38 }
 0x3aa   : > { %v9023_v16 = vpop.permute.xlu2 %2437 }
 0x3ab   : > { %v9021_v4 = vadd.f32 %v8799_v62, %v1945_v58  ;;  %13398 = vst [vmem:[#allocation24_spill] sm:$0xff] %v9034_v11 }
 0x3ad   : > { %13394 = vst [vmem:[#allocation21_spill] sm:$0xff] %v9021_v4 }
 0x3b0   : > { %2536 = vperm.xlu2 %7150, %v9011_v18   ;;  %2524 = vperm.xlu0 %7149, %v9014_v44   ;;  %v13399_v18 = vld [vmem:[#allocation22_spill] sm:$0xff] }
 0x3b1   : > { %2521 = vperm.xlu1 %7148, %v9021_v4   ;;  %v1948_v58 = vadd.f32 %v8726_v40, %v13399_v18  ;;  %v9053_v18 = vadd.f32 %v8752_v22, %v1956_v51  ;;  %v9070_v51 = vpop.permute.xlu1 %2416 }
 0x3b3   : > { %v9041_v44 = vadd.f32 %v8815_v3, %v1948_v58  ;;  %13404 = vst [vmem:[#allocation30_spill] sm:$0xff] %v9053_v18  ;;  %v13406_v58 = vld [vmem:[#allocation23_spill] sm:$0xff] }
 0x3b5   : > { %13400 = vst [vmem:[#allocation22_spill] sm:$0xff] %v9041_v44 }
 0x3b8   : > { %2545 = vperm.xlu2 %7150, %v9031_v19   ;;  %2533 = vperm.xlu0 %7149, %v9034_v11   ;;  %v9056_v19 = vadd.f32 %v8832_v25, %v1952_v21  ;;  %v1951_v11 = vadd.f32 %v8726_v40, %v13406_v58  ;;  %v13408_v21 = vld [vmem:[#allocation33_spill] sm:$0xff]  ;;  %v1955_v58 = vadd.f32 %v8726_v40, %v13409_v36 }
 0x3b9   : > { %2530 = vperm.xlu1 %7148, %v9041_v44   ;;  %v1959_v55 = vadd.f32 %v8726_v40, %v13408_v21  ;;  %v13415_v44 = vld [vmem:[#allocation32_spill] sm:$0xff] }
 0x3ba   : > { %v9046_v35 = vpop.permute.xlu2 %2446  ;;  %13405 = vst [vmem:[#allocation26_spill] sm:$0xff] %v9056_v19  ;;  %v9065_v38 = vadd.f32 %v8822_v46, %v1951_v11  ;;  %v13412_v11 = vld [vmem:[#allocation25_spill] sm:$0xff] }
 0x3bb   : > { %13401 = vst [vmem:[#allocation136_spill] sm:$0xff] %v9046_v35  ;;  %v9077_v31 = vadd.f32 %v8775_v34, %v1959_v55  ;;  %v9094_v55 = vpop.permute.xlu1 %2422  ;;  %v13461_v35 = vld [vmem:[#allocation52_spill] sm:$0xff] }
 0x3bc   : > { %13407 = vst [vmem:[#allocation23_spill] sm:$0xff] %v9065_v38 }
 0x3bd   : > { %13410 = vst [vmem:[#allocation33_spill] sm:$0xff] %v9077_v31 }
 0x3c0   : > { %2554 = vperm.xlu2 %7150, %v9053_v18   ;;  %2542 = vperm.xlu0 %7149, %v9056_v19   ;;  %v9080_v18 = vadd.f32 %v8739_v6, %v1955_v58  ;;  %v1954_v19 = vadd.f32 %v8726_v40, %v13412_v11  ;;  %v13414_v58 = vld [vmem:[#allocation36_spill] sm:$0xff]  ;;  %v1958_v11 = vadd.f32 %v8726_v40, %v13415_v44 }
 0x3c1   : > { %2539 = vperm.xlu1 %7148, %v9065_v38   ;;  %v9084_v38 = vpop.permute.xlu0 %2425  ;;  %v1962_v48 = vadd.f32 %v8726_v40, %v13414_v58 }
 0x3c2   : > { %v9068_v53 = vpop.permute.xlu2 %2455  ;;  %13411 = vst [vmem:[#allocation29_spill] sm:$0xff] %v9080_v18  ;;  %v9089_v21 = vadd.f32 %v8856_v26, %v1954_v19  ;;  %v13418_v19 = vld [vmem:[#allocation28_spill] sm:$0xff] }
 0x3c3   : > { %v9101_v1 = vadd.f32 %v8782_v17, %v1962_v48  ;;  %v9118_v48 = vpop.permute.xlu1 %2431 }
 0x3c4   : > { %13413 = vst [vmem:[#allocation25_spill] sm:$0xff] %v9089_v21 }
 0x3c5   : > { %13416 = vst [vmem:[#allocation36_spill] sm:$0xff] %v9101_v1 }
 0x3c8   : > { %2563 = vperm.xlu2 %7150, %v9077_v31   ;;  %2551 = vperm.xlu0 %7149, %v9080_v18   ;;  %v9104_v31 = vadd.f32 %v8754_v47, %v1958_v11  ;;  %v1957_v18 = vadd.f32 %v8726_v40, %v13418_v19  ;;  %v13420_v11 = vld [vmem:[#allocation39_spill] sm:$0xff]  ;;  %v1961_v19 = vadd.f32 %v8726_v40, %v13421_v9 }
 0x3c9   : > { %2548 = vperm.xlu1 %7148, %v9089_v21   ;;  %v9108_v21 = vpop.permute.xlu0 %2434  ;;  %v1965_v4 = vadd.f32 %v8726_v40, %v13420_v11 }
 0x3ca   : > { %v9092_v36 = vpop.permute.xlu2 %2464  ;;  %13417 = vst [vmem:[#allocation32_spill] sm:$0xff] %v9104_v31  ;;  %v9113_v58 = vadd.f32 %v8733_v24, %v1957_v18  ;;  %v13424_v18 = vld [vmem:[#allocation31_spill] sm:$0xff] }
 0x3cb   : > { %v9125_v45 = vadd.f32 %v8808_v61, %v1965_v4 }
 0x3cc   : > { %13419 = vst [vmem:[#allocation28_spill] sm:$0xff] %v9113_v58 }
 0x3cd   : > { %13422 = vst [vmem:[#allocation39_spill] sm:$0xff] %v9125_v45 }
 0x3d0   : > { %2572 = vperm.xlu2 %7150, %v9101_v1   ;;  %2560 = vperm.xlu0 %7149, %v9104_v31   ;;  %v9128_v1 = vadd.f32 %v8799_v62, %v1961_v19  ;;  %v1960_v31 = vadd.f32 %v8726_v40, %v13424_v18  ;;  %v13426_v19 = vld [vmem:[#allocation42_spill] sm:$0xff]  ;;  %v1964_v18 = vadd.f32 %v8726_v40, %v13427_v60 }
 0x3d1   : > { %2557 = vperm.xlu1 %7148, %v9113_v58   ;;  %v9137_v11 = vpop.permute.xlu0 %2443  ;;  %v1968_v12 = vadd.f32 %v8726_v40, %v13426_v19 }
 0x3d2   : > { %v9116_v44 = vpop.permute.xlu2 %2473  ;;  %13423 = vst [vmem:[#allocation35_spill] sm:$0xff] %v9128_v1  ;;  %v9135_v58 = vadd.f32 %v8768_v54, %v1960_v31  ;;  %v9152_v31 = vadd.f32 %v8815_v3, %v1964_v18  ;;  %v13435_v18 = vld [vmem:[#allocation45_spill] sm:$0xff] }
 0x3d3   : > { %v9142_v4 = vpop.permute.xlu1 %2440  ;;  %v1971_v20 = vadd.f32 %v8726_v40, %v13435_v18 }
 0x3d4   : > { %13425 = vst [vmem:[#allocation31_spill] sm:$0xff] %v9135_v58 }
 0x3d5   : > { %13429 = vst [vmem:[#allocation38_spill] sm:$0xff] %v9152_v31 }
 0x3d8   : > { %2581 = vperm.xlu2 %7150, %v9125_v45   ;;  %2569 = vperm.xlu0 %7149, %v9128_v1   ;;  %v9149_v45 = vadd.f32 %v8832_v25, %v1968_v12  ;;  %v13430_v1 = vld [vmem:[#allocation34_spill] sm:$0xff] }
 0x3d9   : > { %2566 = vperm.xlu1 %7148, %v9135_v58   ;;  %v1963_v33 = vadd.f32 %v8726_v40, %v13430_v1  ;;  %v1967_v1 = vadd.f32 %v8726_v40, %v13436_v52 }
 0x3da   : > { %v9140_v9 = vpop.permute.xlu2 %2482  ;;  %13428 = vst [vmem:[#allocation42_spill] sm:$0xff] %v9149_v45 }
 0x3db   : > { %v9159_v58 = vadd.f32 %v8792_v49, %v1963_v33  ;;  %v9176_v33 = vadd.f32 %v8822_v46, %v1967_v1  ;;  %v13442_v1 = vld [vmem:[#allocation48_spill] sm:$0xff] }
 0x3dc   : > { %v1974_v41 = vadd.f32 %v8726_v40, %v13442_v1 }
 0x3dd   : > { %13431 = vst [vmem:[#allocation34_spill] sm:$0xff] %v9159_v58 }
 0x3de   : > { %13438 = vst [vmem:[#allocation41_spill] sm:$0xff] %v9176_v33 }
 0x3e0   : > { %2590 = vperm.xlu2 %7150, %v9149_v45   ;;  %2578 = vperm.xlu0 %7149, %v9152_v31   ;;  %v9173_v45 = vadd.f32 %v8739_v6, %v1971_v20  ;;  %v13439_v31 = vld [vmem:[#allocation37_spill] sm:$0xff] }
 0x3e1   : > { %2575 = vperm.xlu1 %7148, %v9159_v58   ;;  %v1966_v58 = vadd.f32 %v8726_v40, %v13439_v31  ;;  %v1970_v31 = vadd.f32 %v8726_v40, %v13443_v2 }
 0x3e2   : > { %v9162_v19 = vpop.permute.xlu2 %2491  ;;  %v9164_v60 = vpop.permute.xlu0 %2452  ;;  %13437 = vst [vmem:[#allocation45_spill] sm:$0xff] %v9173_v45 }
 0x3e3   : > { %13432 = vst [vmem:[#allocation137_spill] sm:$0xff] %v9162_v19  ;;  %v9166_v12 = vpop.permute.xlu1 %2449  ;;  %v9183_v28 = vadd.f32 %v8839_v63, %v1966_v58  ;;  %v9200_v58 = vadd.f32 %v8856_v26, %v1970_v31  ;;  %v1977_v31 = vadd.f32 %v8726_v40, %v8526_v42  ;;  %v13454_v19 = vld [vmem:[#allocation50_spill] sm:$0xff] }
 0x3e4   : > { %13433 = vst [vmem:[#allocation138_spill] sm:$0xff] %v9164_v60 }
 0x3e5   : > { %13434 = vst [vmem:[#allocation139_spill] sm:$0xff] %v9166_v12 }
 0x3e6   : > { %13440 = vst [vmem:[#allocation37_spill] sm:$0xff] %v9183_v28 }
 0x3e7   : > { %13445 = vst [vmem:[#allocation44_spill] sm:$0xff] %v9200_v58 }
 0x3e8   : > { %2599 = vperm.xlu2 %7150, %v9173_v45   ;;  %2587 = vperm.xlu0 %7149, %v9176_v33   ;;  %v9197_v45 = vadd.f32 %v8754_v47, %v1974_v41  ;;  %v13446_v33 = vld [vmem:[#allocation40_spill] sm:$0xff] }
 0x3e9   : > { %2584 = vperm.xlu1 %7148, %v9183_v28   ;;  %v1969_v28 = vadd.f32 %v8726_v40, %v13446_v33  ;;  %v1973_v33 = vadd.f32 %v8726_v40, %v13448_v43 }
 0x3ea   : > { %v9186_v18 = vpop.permute.xlu2 %2500  ;;  %v9188_v52 = vpop.permute.xlu0 %2461  ;;  %13444 = vst [vmem:[#allocation48_spill] sm:$0xff] %v9197_v45 }
 0x3eb   : > { %13441 = vst [vmem:[#allocation140_spill] sm:$0xff] %v9186_v18  ;;  %v9190_v20 = vpop.permute.xlu1 %2458  ;;  %v9207_v37 = vadd.f32 %v8866_v7, %v1969_v28  ;;  %v9224_v28 = vadd.f32 %v8733_v24, %v1973_v33  ;;  %v13453_v33 = vld [vmem:[#allocation53_spill] sm:$0xff] }
 0x3ec   : > { %v1980_v60 = vadd.f32 %v8726_v40, %v13453_v33 }
 0x3ed   : > { %13447 = vst [vmem:[#allocation40_spill] sm:$0xff] %v9207_v37 }
 0x3ee   : > { %13450 = vst [vmem:[#allocation141_spill] sm:$0xff] %v9224_v28 }
 0x3f0   : > { %2608 = vperm.xlu2 %7150, %v9197_v45   ;;  %2596 = vperm.xlu0 %7149, %v9200_v58   ;;  %v9221_v45 = vadd.f32 %v8799_v62, %v1977_v31  ;;  %v13451_v58 = vld [vmem:[#allocation43_spill] sm:$0xff] }
 0x3f1   : > { %2593 = vperm.xlu1 %7148, %v9207_v37   ;;  %v1972_v37 = vadd.f32 %v8726_v40, %v13451_v58  ;;  %v1976_v58 = vadd.f32 %v8726_v40, %v13454_v19 }
 0x3f2   : > { %v9210_v1 = vpop.permute.xlu2 %2509  ;;  %v9212_v2 = vpop.permute.xlu0 %2470  ;;  %13449 = vst [vmem:[#allocation47_spill] sm:$0xff] %v9221_v45 }
 0x3f3   : > { %v9214_v41 = vpop.permute.xlu1 %2467  ;;  %v9231_v18 = vadd.f32 %v8752_v22, %v1972_v37  ;;  %v9248_v37 = vadd.f32 %v8768_v54, %v1976_v58  ;;  %v1983_v58 = vadd.f32 %v8726_v40, %v8569_v50 }
 0x3f5   : > { %13452 = vst [vmem:[#allocation43_spill] sm:$0xff] %v9231_v18 }
 0x3f6   : > { %13456 = vst [vmem:[#allocation50_spill] sm:$0xff] %v9248_v37 }
 0x3f8   : > { %2617 = vperm.xlu2 %7150, %v9221_v45   ;;  %2605 = vperm.xlu0 %7149, %v9224_v28   ;;  %v9245_v45 = vadd.f32 %v8815_v3, %v1980_v60  ;;  %v13457_v28 = vld [vmem:[#allocation46_spill] sm:$0xff] }
 0x3f9   : > { %2602 = vperm.xlu1 %7148, %v9231_v18   ;;  %v1975_v18 = vadd.f32 %v8726_v40, %v13457_v28  ;;  %v1979_v28 = vadd.f32 %v8726_v40, %v13461_v35 }
 0x3fa   : > { %v9234_v42 = vpop.permute.xlu2 %2518  ;;  %v9236_v43 = vpop.permute.xlu0 %2479  ;;  %13455 = vst [vmem:[#allocation53_spill] sm:$0xff] %v9245_v45 }
 0x3fb   : > { %v9238_v31 = vpop.permute.xlu1 %2476  ;;  %v9255_v12 = vadd.f32 %v8775_v34, %v1975_v18  ;;  %v9272_v18 = vadd.f32 %v8792_v49, %v1979_v28  ;;  %v1986_v28 = vadd.f32 %v8726_v40, %v8587_v15 }
 0x3fd   : > { %13458 = vst [vmem:[#allocation46_spill] sm:$0xff] %v9255_v12 }
 0x3fe   : > { %13463 = vst [vmem:[#allocation144_spill] sm:$0xff] %v9272_v18 }
 0x400   : > { %2626 = vperm.xlu2 %7150, %v9245_v45   ;;  %2614 = vperm.xlu0 %7149, %v9248_v37   ;;  %v9269_v45 = vadd.f32 %v8822_v46, %v1983_v58  ;;  %v13464_v37 = vld [vmem:[#allocation49_spill] sm:$0xff] }
 0x401   : > { %2611 = vperm.xlu1 %7148, %v9255_v12   ;;  %v1978_v12 = vadd.f32 %v8726_v40, %v13464_v37 }
 0x402   : > { %v9258_v33 = vpop.permute.xlu2 %2527  ;;  %v9260_v19 = vpop.permute.xlu0 %2488  ;;  %13462 = vst [vmem:[#allocation52_spill] sm:$0xff] %v9269_v45 }
 0x403   : > { %13459 = vst [vmem:[#allocation142_spill] sm:$0xff] %v9258_v33  ;;  %v9262_v60 = vpop.permute.xlu1 %2485  ;;  %v9279_v33 = vadd.f32 %v8782_v17, %v1978_v12 }
 0x404   : > { %13460 = vst [vmem:[#allocation143_spill] sm:$0xff] %v9260_v19  ;;  %v13468_v19 = vld [vmem:[#allocation55_spill] sm:$0xff] }
 0x405   : > { %13465 = vst [vmem:[#allocation49_spill] sm:$0xff] %v9279_v33  ;;  %v1982_v37 = vadd.f32 %v8726_v40, %v13468_v19 }
 0x407   : > { %v9296_v12 = vadd.f32 %v8839_v63, %v1982_v37  ;;  %v1989_v37 = vadd.f32 %v8726_v40, %v8600_v5 }
 0x408   : > { %2635 = vperm.xlu2 %7150, %v9269_v45   ;;  %2623 = vperm.xlu0 %7149, %v9272_v18   ;;  %v9293_v45 = vadd.f32 %v8856_v26, %v1986_v28  ;;  %v13471_v18 = vld [vmem:[#allocation51_spill] sm:$0xff] }
 0x409   : > { %2620 = vperm.xlu1 %7148, %v9279_v33   ;;  %13470 = vst [vmem:[#allocation147_spill] sm:$0xff] %v9296_v12  ;;  %v1981_v33 = vadd.f32 %v8726_v40, %v13471_v18  ;;  %v1985_v18 = vadd.f32 %v8726_v40, %v8585_v30 }
 0x40a   : > { %v9282_v50 = vpop.permute.xlu2 %2536  ;;  %v9284_v35 = vpop.permute.xlu0 %2497  ;;  %13469 = vst [vmem:[#allocation55_spill] sm:$0xff] %v9293_v45 }
 0x40b   : > { %13466 = vst [vmem:[#allocation145_spill] sm:$0xff] %v9282_v50  ;;  %v9286_v58 = vpop.permute.xlu1 %2494  ;;  %v9303_v50 = vadd.f32 %v8808_v61, %v1981_v33  ;;  %v9320_v33 = vadd.f32 %v8866_v7, %v1985_v18  ;;  %v1992_v18 = vadd.f32 %v8726_v40, %v8610_v23 }
 0x40c   : > { %13467 = vst [vmem:[#allocation146_spill] sm:$0xff] %v9284_v35  ;;  %v13489_v35 = vld [vmem:[#allocation58_spill] sm:$0xff] }
 0x40d   : > { %13472 = vst [vmem:[#allocation51_spill] sm:$0xff] %v9303_v50 }
 0x40e   : > { %13475 = vst [vmem:[#allocation150_spill] sm:$0xff] %v9320_v33 }
 0x410   : > { %2644 = vperm.xlu2 %7150, %v9293_v45   ;;  %2632 = vperm.xlu0 %7149, %v9296_v12   ;;  %v9317_v45 = vadd.f32 %v8733_v24, %v1989_v37  ;;  %v13476_v12 = vld [vmem:[#allocation54_spill] sm:$0xff] }
 0x411   : > { %2629 = vperm.xlu1 %7148, %v9303_v50   ;;  %v1984_v50 = vadd.f32 %v8726_v40, %v13476_v12  ;;  %v1988_v12 = vadd.f32 %v8726_v40, %v8598_v14 }
 0x412   : > { %v9306_v15 = vpop.permute.xlu2 %2545  ;;  %v9308_v19 = vpop.permute.xlu0 %2506  ;;  %13474 = vst [vmem:[#allocation149_spill] sm:$0xff] %v9317_v45 }
 0x413   : > { %13473 = vst [vmem:[#allocation148_spill] sm:$0xff] %v9306_v15  ;;  %v9310_v28 = vpop.permute.xlu1 %2503  ;;  %v9327_v15 = vadd.f32 %v8832_v25, %v1984_v50  ;;  %v9344_v50 = vadd.f32 %v8752_v22, %v1988_v12  ;;  %v1995_v12 = vadd.f32 %v8726_v40, %v8616_v8 }
 0x415   : > { %13477 = vst [vmem:[#allocation54_spill] sm:$0xff] %v9327_v15 }
 0x416   : > { %13480 = vst [vmem:[#allocation153_spill] sm:$0xff] %v9344_v50 }
 0x418   : > { %2653 = vperm.xlu2 %7150, %v9317_v45   ;;  %2641 = vperm.xlu0 %7149, %v9320_v33   ;;  %v9341_v45 = vadd.f32 %v8768_v54, %v1992_v18  ;;  %v1987_v33 = vadd.f32 %v8726_v40, %v8582_v0  ;;  %v1991_v0 = vadd.f32 %v8726_v40, %v8608_v13 }
 0x419   : > { %2638 = vperm.xlu1 %7148, %v9327_v15  }
 0x41a   : > { %v9330_v5 = vpop.permute.xlu2 %2554  ;;  %v9332_v30 = vpop.permute.xlu0 %2515  ;;  %13479 = vst [vmem:[#allocation152_spill] sm:$0xff] %v9341_v45  ;;  %v9351_v15 = vadd.f32 %v8739_v6, %v1987_v33  ;;  %v9368_v33 = vadd.f32 %v8775_v34, %v1991_v0  ;;  %v13488_v0 = vld [vmem:[#allocation61_spill] sm:$0xff] }
 0x41b   : > { %13478 = vst [vmem:[#allocation151_spill] sm:$0xff] %v9330_v5  ;;  %v9334_v37 = vpop.permute.xlu1 %2512  ;;  %v13498_v5 = vld [vmem:[#allocation60_spill] sm:$0xff] }
 0x41c   : > { %13481 = vst [vmem:[#allocation154_spill] sm:$0xff] %v9351_v15 }
 0x41d   : > { %13484 = vst [vmem:[#allocation157_spill] sm:$0xff] %v9368_v33 }
 0x420   : > { %2662 = vperm.xlu2 %7150, %v9341_v45   ;;  %2650 = vperm.xlu0 %7149, %v9344_v50   ;;  %v9365_v45 = vadd.f32 %v8792_v49, %v1995_v12  ;;  %v1990_v50 = vadd.f32 %v8726_v40, %v8596_v56  ;;  %v1994_v56 = vadd.f32 %v8726_v40, %v13489_v35 }
 0x421   : > { %2647 = vperm.xlu1 %7148, %v9351_v15  }
 0x422   : > { %v9354_v23 = vpop.permute.xlu2 %2563  ;;  %v9356_v14 = vpop.permute.xlu0 %2524  ;;  %13483 = vst [vmem:[#allocation156_spill] sm:$0xff] %v9365_v45  ;;  %v9375_v15 = vadd.f32 %v8754_v47, %v1990_v50  ;;  %v9392_v50 = vadd.f32 %v8782_v17, %v1994_v56  ;;  %v13497_v56 = vld [vmem:[#allocation64_spill] sm:$0xff] }
 0x423   : > { %13482 = vst [vmem:[#allocation155_spill] sm:$0xff] %v9354_v23  ;;  %v9358_v18 = vpop.permute.xlu1 %2521  ;;  %v1998_v23 = vadd.f32 %v8726_v40, %v13488_v0 }
 0x424   : > { %13485 = vst [vmem:[#allocation158_spill] sm:$0xff] %v9375_v15 }
 0x425   : > { %13491 = vst [vmem:[#allocation58_spill] sm:$0xff] %v9392_v50 }
 0x428   : > { %2671 = vperm.xlu2 %7150, %v9365_v45   ;;  %2659 = vperm.xlu0 %7149, %v9368_v33   ;;  %v9389_v45 = vadd.f32 %v8839_v63, %v1998_v23  ;;  %v13492_v33 = vld [vmem:[#allocation56_spill] sm:$0xff] }
 0x429   : > { %2656 = vperm.xlu1 %7148, %v9375_v15   ;;  %v1993_v15 = vadd.f32 %v8726_v40, %v13492_v33  ;;  %v1997_v33 = vadd.f32 %v8726_v40, %v13498_v5 }
 0x42a   : > { %v9378_v8 = vpop.permute.xlu2 %2572  ;;  %v9380_v13 = vpop.permute.xlu0 %2533  ;;  %13490 = vst [vmem:[#allocation61_spill] sm:$0xff] %v9389_v45 }
 0x42b   : > { %13486 = vst [vmem:[#allocation159_spill] sm:$0xff] %v9378_v8  ;;  %v9382_v12 = vpop.permute.xlu1 %2530  ;;  %v9399_v8 = vadd.f32 %v8799_v62, %v1993_v15  ;;  %v9416_v15 = vadd.f32 %v8808_v61, %v1997_v33  ;;  %v13506_v33 = vld [vmem:[#allocation67_spill] sm:$0xff] }
 0x42c   : > { %13487 = vst [vmem:[#allocation160_spill] sm:$0xff] %v9380_v13  ;;  %v2001_v13 = vadd.f32 %v8726_v40, %v13497_v56 }
 0x42d   : > { %13493 = vst [vmem:[#allocation56_spill] sm:$0xff] %v9399_v8 }
 0x42e   : > { %13500 = vst [vmem:[#allocation60_spill] sm:$0xff] %v9416_v15 }
 0x430   : > { %2680 = vperm.xlu2 %7150, %v9389_v45   ;;  %2668 = vperm.xlu0 %7149, %v9392_v50   ;;  %v9413_v45 = vadd.f32 %v8866_v7, %v2001_v13  ;;  %v13501_v50 = vld [vmem:[#allocation57_spill] sm:$0xff] }
 0x431   : > { %2665 = vperm.xlu1 %7148, %v9399_v8   ;;  %v1996_v8 = vadd.f32 %v8726_v40, %v13501_v50 }
 0x432   : > { %v9402_v0 = vpop.permute.xlu2 %2581  ;;  %v9404_v35 = vpop.permute.xlu0 %2542  ;;  %13499 = vst [vmem:[#allocation64_spill] sm:$0xff] %v9413_v45 }
 0x433   : > { %13494 = vst [vmem:[#allocation161_spill] sm:$0xff] %v9402_v0  ;;  %v9406_v23 = vpop.permute.xlu1 %2539  ;;  %v9423_v0 = vadd.f32 %v8815_v3, %v1996_v8 }
 0x434   : > { %13495 = vst [vmem:[#allocation162_spill] sm:$0xff] %v9404_v35  ;;  %v2004_v35 = vadd.f32 %v8726_v40, %v13506_v33 }
 0x435   : > { %13496 = vst [vmem:[#allocation163_spill] sm:$0xff] %v9406_v23  ;;  %v13507_v23 = vld [vmem:[#allocation63_spill] sm:$0xff] }
 0x436   : > { %13502 = vst [vmem:[#allocation57_spill] sm:$0xff] %v9423_v0  ;;  %v2000_v50 = vadd.f32 %v8726_v40, %v13507_v23 }
 0x438   : > { %2689 = vperm.xlu2 %7150, %v9413_v45   ;;  %2677 = vperm.xlu0 %7149, %v9416_v15   ;;  %v9437_v45 = vadd.f32 %v8752_v22, %v2004_v35  ;;  %v9440_v8 = vadd.f32 %v8832_v25, %v2000_v50  ;;  %v13510_v15 = vld [vmem:[#allocation59_spill] sm:$0xff]  ;;  %v13515_v50 = vld [vmem:[#allocation70_spill] sm:$0xff] }
 0x439   : > { %2674 = vperm.xlu1 %7148, %v9423_v0   ;;  %v1999_v0 = vadd.f32 %v8726_v40, %v13510_v15 }
 0x43a   : > { %v9426_v56 = vpop.permute.xlu2 %2590  ;;  %v9428_v5 = vpop.permute.xlu0 %2551  ;;  %13508 = vst [vmem:[#allocation67_spill] sm:$0xff] %v9437_v45 }
 0x43b   : > { %13503 = vst [vmem:[#allocation164_spill] sm:$0xff] %v9426_v56  ;;  %v9430_v13 = vpop.permute.xlu1 %2548  ;;  %v2007_v56 = vadd.f32 %v8726_v40, %v13515_v50 }
 0x43c   : > { %13504 = vst [vmem:[#allocation165_spill] sm:$0xff] %v9428_v5  ;;  %v13516_v5 = vld [vmem:[#allocation66_spill] sm:$0xff] }
 0x43d   : > { %13505 = vst [vmem:[#allocation166_spill] sm:$0xff] %v9430_v13  ;;  %v9447_v13 = vadd.f32 %v8822_v46, %v1999_v0  ;;  %v2003_v15 = vadd.f32 %v8726_v40, %v13516_v5 }
 0x43e   : > { %13509 = vst [vmem:[#allocation63_spill] sm:$0xff] %v9440_v8 }
 0x43f   : > { %13511 = vst [vmem:[#allocation59_spill] sm:$0xff] %v9447_v13  ;;  %v9464_v0 = vadd.f32 %v8739_v6, %v2003_v15  ;;  %v13524_v15 = vld [vmem:[#allocation73_spill] sm:$0xff] }
 0x440   : > { %2698 = vperm.xlu2 %7150, %v9437_v45   ;;  %2686 = vperm.xlu0 %7149, %v9440_v8   ;;  %v9461_v45 = vadd.f32 %v8775_v34, %v2007_v56  ;;  %v13519_v8 = vld [vmem:[#allocation62_spill] sm:$0xff] }
 0x441   : > { %2683 = vperm.xlu1 %7148, %v9447_v13   ;;  %13518 = vst [vmem:[#allocation66_spill] sm:$0xff] %v9464_v0  ;;  %v2002_v13 = vadd.f32 %v8726_v40, %v13519_v8 }
 0x442   : > { %v9450_v33 = vpop.permute.xlu2 %2599  ;;  %v9452_v23 = vpop.permute.xlu0 %2560  ;;  %13517 = vst [vmem:[#allocation70_spill] sm:$0xff] %v9461_v45 }
 0x443   : > { %13512 = vst [vmem:[#allocation167_spill] sm:$0xff] %v9450_v33  ;;  %v9454_v35 = vpop.permute.xlu1 %2557  ;;  %v2010_v33 = vadd.f32 %v8726_v40, %v13524_v15 }
 0x444   : > { %13513 = vst [vmem:[#allocation168_spill] sm:$0xff] %v9452_v23  ;;  %v9471_v23 = vadd.f32 %v8856_v26, %v2002_v13 }
 0x445   : > { %13514 = vst [vmem:[#allocation169_spill] sm:$0xff] %v9454_v35  ;;  %v13525_v35 = vld [vmem:[#allocation69_spill] sm:$0xff] }
 0x446   : > { %13520 = vst [vmem:[#allocation62_spill] sm:$0xff] %v9471_v23  ;;  %v2006_v8 = vadd.f32 %v8726_v40, %v13525_v35 }
 0x448   : > { %2707 = vperm.xlu2 %7150, %v9461_v45   ;;  %2695 = vperm.xlu0 %7149, %v9464_v0   ;;  %v9485_v45 = vadd.f32 %v8782_v17, %v2010_v33  ;;  %v9488_v13 = vadd.f32 %v8754_v47, %v2006_v8  ;;  %v13528_v0 = vld [vmem:[#allocation65_spill] sm:$0xff]  ;;  %v13533_v8 = vld [vmem:[#allocation76_spill] sm:$0xff] }
 0x449   : > { %2692 = vperm.xlu1 %7148, %v9471_v23   ;;  %v2005_v23 = vadd.f32 %v8726_v40, %v13528_v0 }
 0x44a   : > { %v9474_v50 = vpop.permute.xlu2 %2608  ;;  %v9476_v5 = vpop.permute.xlu0 %2569  ;;  %13526 = vst [vmem:[#allocation73_spill] sm:$0xff] %v9485_v45 }
 0x44b   : > { %13521 = vst [vmem:[#allocation170_spill] sm:$0xff] %v9474_v50  ;;  %v9478_v56 = vpop.permute.xlu1 %2566  ;;  %v2013_v50 = vadd.f32 %v8726_v40, %v13533_v8 }
 0x44c   : > { %13522 = vst [vmem:[#allocation171_spill] sm:$0xff] %v9476_v5  ;;  %v9495_v5 = vadd.f32 %v8733_v24, %v2005_v23 }
 0x44d   : > { %13523 = vst [vmem:[#allocation172_spill] sm:$0xff] %v9478_v56  ;;  %v13534_v56 = vld [vmem:[#allocation72_spill] sm:$0xff] }
 0x44e   : > { %13527 = vst [vmem:[#allocation69_spill] sm:$0xff] %v9488_v13  ;;  %v2009_v0 = vadd.f32 %v8726_v40, %v13534_v56 }
 0x44f   : > { %13529 = vst [vmem:[#allocation65_spill] sm:$0xff] %v9495_v5 }
 0x450   : > { %2716 = vperm.xlu2 %7150, %v9485_v45   ;;  %2704 = vperm.xlu0 %7149, %v9488_v13   ;;  %v9509_v45 = vadd.f32 %v8808_v61, %v2013_v50  ;;  %v9512_v23 = vadd.f32 %v8799_v62, %v2009_v0  ;;  %v13537_v13 = vld [vmem:[#allocation68_spill] sm:$0xff]  ;;  %v13542_v0 = vld [vmem:[#allocation79_spill] sm:$0xff] }
 0x451   : > { %2701 = vperm.xlu1 %7148, %v9495_v5   ;;  %v2008_v5 = vadd.f32 %v8726_v40, %v13537_v13 }
 0x452   : > { %v9498_v15 = vpop.permute.xlu2 %2617  ;;  %v9500_v35 = vpop.permute.xlu0 %2578  ;;  %13535 = vst [vmem:[#allocation76_spill] sm:$0xff] %v9509_v45 }
 0x453   : > { %13530 = vst [vmem:[#allocation173_spill] sm:$0xff] %v9498_v15  ;;  %v9502_v33 = vpop.permute.xlu1 %2575  ;;  %v2016_v15 = vadd.f32 %v8726_v40, %v13542_v0 }
 0x454   : > { %13531 = vst [vmem:[#allocation174_spill] sm:$0xff] %v9500_v35  ;;  %v9519_v35 = vadd.f32 %v8768_v54, %v2008_v5 }
 0x455   : > { %13532 = vst [vmem:[#allocation175_spill] sm:$0xff] %v9502_v33  ;;  %v13543_v33 = vld [vmem:[#allocation75_spill] sm:$0xff] }
 0x456   : > { %13536 = vst [vmem:[#allocation72_spill] sm:$0xff] %v9512_v23  ;;  %v2012_v13 = vadd.f32 %v8726_v40, %v13543_v33 }
 0x457   : > { %13538 = vst [vmem:[#allocation68_spill] sm:$0xff] %v9519_v35 }
 0x458   : > { %2725 = vperm.xlu2 %7150, %v9509_v45   ;;  %2713 = vperm.xlu0 %7149, %v9512_v23   ;;  %v9533_v45 = vadd.f32 %v8832_v25, %v2016_v15  ;;  %v9536_v5 = vadd.f32 %v8815_v3, %v2012_v13  ;;  %v13546_v23 = vld [vmem:[#allocation71_spill] sm:$0xff]  ;;  %v13551_v13 = vld [vmem:[#allocation82_spill] sm:$0xff] }
 0x459   : > { %2710 = vperm.xlu1 %7148, %v9519_v35   ;;  %v2011_v35 = vadd.f32 %v8726_v40, %v13546_v23 }
 0x45a   : > { %v9522_v8 = vpop.permute.xlu2 %2626  ;;  %v9524_v56 = vpop.permute.xlu0 %2587  ;;  %13544 = vst [vmem:[#allocation79_spill] sm:$0xff] %v9533_v45 }
 0x45b   : > { %13539 = vst [vmem:[#allocation176_spill] sm:$0xff] %v9522_v8  ;;  %v9526_v50 = vpop.permute.xlu1 %2584  ;;  %v2019_v8 = vadd.f32 %v8726_v40, %v13551_v13 }
 0x45c   : > { %13540 = vst [vmem:[#allocation177_spill] sm:$0xff] %v9524_v56  ;;  %v9543_v56 = vadd.f32 %v8792_v49, %v2011_v35 }
 0x45d   : > { %13541 = vst [vmem:[#allocation178_spill] sm:$0xff] %v9526_v50  ;;  %v13552_v50 = vld [vmem:[#allocation78_spill] sm:$0xff] }
 0x45e   : > { %13545 = vst [vmem:[#allocation75_spill] sm:$0xff] %v9536_v5  ;;  %v2015_v23 = vadd.f32 %v8726_v40, %v13552_v50 }
 0x45f   : > { %13547 = vst [vmem:[#allocation71_spill] sm:$0xff] %v9543_v56 }
 0x460   : > { %2734 = vperm.xlu2 %7150, %v9533_v45   ;;  %2722 = vperm.xlu0 %7149, %v9536_v5   ;;  %v9557_v45 = vadd.f32 %v8739_v6, %v2019_v8  ;;  %v9560_v35 = vadd.f32 %v8822_v46, %v2015_v23  ;;  %v13555_v5 = vld [vmem:[#allocation74_spill] sm:$0xff]  ;;  %v2022_v8 = vadd.f32 %v8726_v40, %v8699_v10  ;;  %v13558_v23 = vld [vmem:[#allocation81_spill] sm:$0xff] }
 0x461   : > { %2719 = vperm.xlu1 %7148, %v9543_v56   ;;  %v2014_v56 = vadd.f32 %v8726_v40, %v13555_v5  ;;  %v2018_v5 = vadd.f32 %v8726_v40, %v13558_v23 }
 0x462   : > { %v9546_v0 = vpop.permute.xlu2 %2635  ;;  %v9548_v33 = vpop.permute.xlu0 %2596  ;;  %13553 = vst [vmem:[#allocation82_spill] sm:$0xff] %v9557_v45 }
 0x463   : > { %13548 = vst [vmem:[#allocation179_spill] sm:$0xff] %v9546_v0  ;;  %v9550_v15 = vpop.permute.xlu1 %2593 }
 0x464   : > { %13549 = vst [vmem:[#allocation180_spill] sm:$0xff] %v9548_v33  ;;  %v9567_v33 = vadd.f32 %v8839_v63, %v2014_v56  ;;  %v9584_v56 = vadd.f32 %v8856_v26, %v2018_v5  ;;  %v13564_v5 = vld [vmem:[#allocation84_spill] sm:$0xff] }
 0x465   : > { %13550 = vst [vmem:[#allocation181_spill] sm:$0xff] %v9550_v15  ;;  %v2021_v15 = vadd.f32 %v8726_v40, %v13564_v5 }
 0x466   : > { %13554 = vst [vmem:[#allocation78_spill] sm:$0xff] %v9560_v35 }
 0x467   : > { %13556 = vst [vmem:[#allocation74_spill] sm:$0xff] %v9567_v33 }
 0x468   : > { %2743 = vperm.xlu2 %7150, %v9557_v45   ;;  %2731 = vperm.xlu0 %7149, %v9560_v35   ;;  %v9581_v45 = vadd.f32 %v8754_v47, %v2022_v8  ;;  %13560 = vst [vmem:[#allocation183_spill] sm:$0xff] %v9584_v56  ;;  %v13561_v35 = vld [vmem:[#allocation77_spill] sm:$0xff]  ;;  %v13563_v47 = vld [vmem:[#allocation87_spill] sm:$0xff] }
 0x469   : > { %2728 = vperm.xlu1 %7148, %v9567_v33   ;;  %v2017_v33 = vadd.f32 %v8726_v40, %v13561_v35  ;;  %v2025_v8 = vadd.f32 %v8726_v40, %v13563_v47 }
 0x46a   : > { %v9570_v13 = vpop.permute.xlu0 %2605  ;;  %v9572_v50 = vpop.permute.xlu2 %2644  ;;  %13559 = vst [vmem:[#allocation81_spill] sm:$0xff] %v9581_v45 }
 0x46b   : > { %13557 = vst [vmem:[#allocation182_spill] sm:$0xff] %v9572_v50  ;;  %v9574_v6 = vpop.permute.xlu1 %2602  ;;  %v9591_v50 = vadd.f32 %v8866_v7, %v2017_v33  ;;  %v9608_v33 = vadd.f32 %v8733_v24, %v2021_v15  ;;  %v13570_v15 = vld [vmem:[#allocation86_spill] sm:$0xff] }
 0x46d   : > { %13562 = vst [vmem:[#allocation77_spill] sm:$0xff] %v9591_v50 }
 0x46e   : > { %13566 = vst [vmem:[#allocation84_spill] sm:$0xff] %v9608_v33 }
 0x470   : > { %2752 = vperm.xlu2 %7150, %v9581_v45   ;;  %2740 = vperm.xlu0 %7149, %v9584_v56   ;;  %v9605_v45 = vadd.f32 %v8799_v62, %v2025_v8  ;;  %v13567_v56 = vld [vmem:[#allocation80_spill] sm:$0xff]  ;;  %v13569_v62 = vld [vmem:[#allocation90_spill] sm:$0xff]  ;;  %v2024_v8 = vadd.f32 %v8726_v40, %v13570_v15 }
 0x471   : > { %2737 = vperm.xlu1 %7148, %v9591_v50   ;;  %v2020_v50 = vadd.f32 %v8726_v40, %v13567_v56  ;;  %v2028_v24 = vadd.f32 %v8726_v40, %v13569_v62 }
 0x472   : > { %v9594_v10 = vpop.permute.xlu0 %2614  ;;  %v9602_v35 = vpop.permute.xlu2 %2653  ;;  %13565 = vst [vmem:[#allocation87_spill] sm:$0xff] %v9605_v45 }
 0x473   : > { %v9596_v23 = vpop.permute.xlu1 %2611  ;;  %v9615_v47 = vadd.f32 %v8752_v22, %v2020_v50  ;;  %v9627_v56 = vadd.f32 %v8815_v3, %v2028_v24  ;;  %v13573_v22 = vld [vmem:[#allocation83_spill] sm:$0xff]  ;;  %v13577_v24 = vld [vmem:[#allocation89_spill] sm:$0xff] }
 0x474   : > { %v2023_v50 = vadd.f32 %v8726_v40, %v13573_v22 }
 0x475   : > { %13568 = vst [vmem:[#allocation80_spill] sm:$0xff] %v9615_v47 }
 0x476   : > { %13571 = vst [vmem:[#allocation90_spill] sm:$0xff] %v9627_v56  ;;  %v9639_v62 = vadd.f32 %v8775_v34, %v2023_v50  ;;  %v13580_v34 = vld [vmem:[#allocation85_spill] sm:$0xff] }
 0x477   : > { %v2026_v50 = vadd.f32 %v8726_v40, %v13580_v34 }
 0x478   : > { %2761 = vperm.xlu2 %7150, %v9605_v45   ;;  %2749 = vperm.xlu0 %7149, %v9608_v33   ;;  %v9630_v45 = vadd.f32 %v8768_v54, %v2024_v8  ;;  %13574 = vst [vmem:[#allocation83_spill] sm:$0xff] %v9639_v62  ;;  %v2031_v54 = vadd.f32 %v8726_v40, %v8724_v39 }
 0x479   : > { %2746 = vperm.xlu1 %7148, %v9615_v47   ;;  %v2027_v8 = vadd.f32 %v8726_v40, %v13577_v24 }
 0x47a   : > { %v9618_v5 = vpop.permute.xlu0 %2623  ;;  %13572 = vst [vmem:[#allocation86_spill] sm:$0xff] %v9630_v45  ;;  %v9634_v33 = vpop.permute.xlu2 %2662  ;;  %v9651_v22 = vadd.f32 %v8822_v46, %v2031_v54  ;;  %v13584_v46 = vld [vmem:[#allocation94_spill] sm:$0xff] }
 0x47b   : > { %v9620_v0 = vpop.permute.xlu1 %2620 }
 0x47c   : > { %13578 = vst [vmem:[#allocation89_spill] sm:$0xff] %v9651_v22 }
 0x480   : > { %2770 = vperm.xlu2 %7150, %v9627_v56   ;;  %2758 = vperm.xlu0 %7149, %v9630_v45   ;;  %v9654_v56 = vadd.f32 %v8792_v49, %v2027_v8  ;;  %v9661_v45 = vadd.f32 %v8782_v17, %v2026_v50  ;;  %v2034_v49 = vadd.f32 %v8726_v40, %v13584_v46  ;;  %v13586_v8 = vld [vmem:[#allocation92_spill] sm:$0xff] }
 0x481   : > { %2755 = vperm.xlu1 %7148, %v9639_v62   ;;  %v2030_v34 = vadd.f32 %v8726_v40, %v13586_v8  ;;  %v13589_v50 = vld [vmem:[#allocation88_spill] sm:$0xff]  ;;  %v13602_v62 = vlaneseq }
 0x482   : > { %v9642_v15 = vpop.permute.xlu0 %2632  ;;  %13579 = vst [vmem:[#allocation186_spill] sm:$0xff] %v9654_v56  ;;  %v9663_v39 = vpop.permute.xlu2 %2671 }
 0x483   : > { %13575 = vst [vmem:[#allocation184_spill] sm:$0xff] %v9642_v15  ;;  %v9644_v3 = vpop.permute.xlu1 %2629  ;;  %v9678_v17 = vadd.f32 %v8839_v63, %v2030_v34  ;;  %v13592_v63 = vld [vmem:[#allocation93_spill] sm:$0xff]  ;;  %v9731_v47 = vand.u32 127, %v13602_v62 }
 0x484   : > { %13576 = vst [vmem:[#allocation185_spill] sm:$0xff] %v9644_v3 }
 0x485   : > { %13581 = vst [vmem:[#allocation85_spill] sm:$0xff] %v9661_v45  ;;  %v2792_v62 = vperm.slane %v9043_v29, %v9731_v47  ;;  %v2853_v15 = vperm.slane %v9068_v53, %v9731_v47  ;;  %v9765_v29 = vadd.s32 4294967264, %v9731_v47  ;;  %v9770_v53 = vadd.s32 4294967256, %v9731_v47 }
 0x486   : > { %13582 = vst [vmem:[#allocation187_spill] sm:$0xff] %v9663_v39  ;;  %v9786_v3 = vadd.s32 4294967240, %v9731_v47 }
 0x487   : > { %13588 = vst [vmem:[#allocation189_spill] sm:$0xff] %v9678_v17 }
 0x488   : > { %2779 = vperm.xlu2 %7150, %v9651_v22   ;;  %2767 = vperm.xlu0 %7149, %v9654_v56   ;;  %v9675_v22 = vadd.f32 %v8856_v26, %v2034_v49  ;;  %v2029_v56 = vadd.f32 %v8726_v40, %v13589_v50  ;;  %v2033_v49 = vadd.f32 %v8726_v40, %v13592_v63  ;;  %v13594_v50 = vld [vmem:[#allocation91_spill] sm:$0xff] }
 0x489   : > { %2764 = vperm.xlu1 %7148, %v9661_v45   ;;  %13606 = vst [vmem:[#allocation200_spill] sm:$0xff] %v9786_v3 }
 0x48a   : > { %v9666_v24 = vpop.permute.xlu0 %2641  ;;  %13587 = vst [vmem:[#allocation92_spill] sm:$0xff] %v9675_v22  ;;  %v9685_v46 = vadd.f32 %v8808_v61, %v2029_v56  ;;  %v9690_v8 = vpop.permute.xlu2 %2680  ;;  %v9697_v34 = vadd.f32 %v8866_v7, %v2033_v49 }
 0x48b   : > { %13583 = vst [vmem:[#allocation188_spill] sm:$0xff] %v9666_v24  ;;  %v9670_v54 = vpop.permute.xlu1 %2638 }
 0x48c   : > { %13585 = vst [vmem:[#allocation94_spill] sm:$0xff] %v9670_v54  ;;  %v9738_v54 = vadd.s32 4294967288, %v9731_v47 }
 0x48d   : > { %13590 = vst [vmem:[#allocation88_spill] sm:$0xff] %v9685_v46 }
 0x48e   : > { %13591 = vst [vmem:[#allocation190_spill] sm:$0xff] %v9690_v8  ;;  %v2794_v8 = vperm.slane %v9060_v59, %v9738_v54 }
 0x48f   : > { %13593 = vst [vmem:[#allocation93_spill] sm:$0xff] %v9697_v34 }
 0x490   : > { %2788 = vperm.xlu2 %7150, %v9675_v22   ;;  %2776 = vperm.xlu0 %7149, %v9678_v17   ;;  %v2032_v22 = vadd.f32 %v8726_v40, %v13594_v50  ;;  %v2796_v59 = vsel %vm2795_vm2, %v2794_v8, %v2792_v62 }
 0x491   : > { %2773 = vperm.xlu1 %7148, %v9685_v46  }
 0x492   : > { %v9688_v45 = vpop.permute.xlu0 %2650  ;;  %v9703_v61 = vadd.f32 %v8832_v25, %v2032_v22  ;;  %v9710_v46 = vpop.permute.xlu2 %2689 }
 0x493   : > { %v9692_v26 = vpop.permute.xlu1 %2647  ;;  %13596 = vst [vmem:[#allocation191_spill] sm:$0xff] %v9710_v46 }
 0x494   : > { %13595 = vst [vmem:[#allocation91_spill] sm:$0xff] %v9703_v61 }
 0x498   : > { %2785 = vperm.xlu0 %7149, %v9697_v34  }
 0x499   : > { %2782 = vperm.xlu1 %7148, %v9703_v61  }
 0x49a   : > { %v9706_v56 = vpop.permute.xlu0 %2659  ;;  %v9716_v49 = vpop.permute.xlu2 %2698 }
 0x49b   : > { %v9708_v17 = vpop.permute.xlu1 %2656 }
 0x4a2   : > { %v9712_v63 = vpop.permute.xlu0 %2668  ;;  %v9722_v25 = vpop.permute.xlu2 %2707 }
 0x4a3   : > { %13597 = vst [vmem:[#allocation192_spill] sm:$0xff] %v9712_v63  ;;  %v9714_v7 = vpop.permute.xlu1 %2665 }
 0x4aa   : > { %v9718_v40 = vpop.permute.xlu0 %2677  ;;  %v9733_v46 = vpop.permute.xlu2 %2716 }
 0x4ab   : > { %13598 = vst [vmem:[#allocation193_spill] sm:$0xff] %v9718_v40  ;;  %v9720_v50 = vpop.permute.xlu1 %2674  ;;  %v9743_v40 = vadd.s32 4294967280, %v9731_v47 }
 0x4ac   : > { %13599 = vst [vmem:[#allocation194_spill] sm:$0xff] %v9720_v50 }
 0x4ad   : > { %13603 = vst [vmem:[#allocation197_spill] sm:$0xff] %v9733_v46  ;;  %v2798_v50 = vperm.slane %v8958_v27, %v9743_v40  ;;  %v2856_v8 = vperm.slane %v9188_v52, %v9743_v40  ;;  %v9776_v27 = vadd.s32 4294967248, %v9731_v47 }
 0x4af   : > { %v2800_v62 = vsel %vm2799_vm3, %v2798_v50, %v2796_v59  ;;  %v2810_v50 = vperm.slane %v9094_v55, %v9770_v53  ;;  %v2806_v59 = vperm.slane %v8978_v57, %v9765_v29  ;;  %v2884_v55 = vperm.slane %v9310_v28, %v9731_v47 }
 0x4b0   : > { %v2862_v57 = vperm.slane %v9212_v2, %v9770_v53 }
 0x4b2   : > { %v9724_v22 = vpop.permute.xlu0 %2686  ;;  %v9762_v46 = vpop.permute.xlu2 %2725 }
 0x4b3   : > { %13600 = vst [vmem:[#allocation195_spill] sm:$0xff] %v9724_v22  ;;  %v9726_v34 = vpop.permute.xlu1 %2683  ;;  %v2854_v22 = vperm.slane %v9190_v20, %v9738_v54 }
 0x4b4   : > { %13601 = vst [vmem:[#allocation196_spill] sm:$0xff] %v9726_v34 }
 0x4b5   : > { %v2855_v20 = vsel %vm2795_vm2, %v2854_v22, %v2853_v15  ;;  %13605 = vst [vmem:[#allocation199_spill] sm:$0xff] %v9762_v46  ;;  %v2860_v22 = vperm.slane %v9214_v41, %v9765_v29  ;;  %v2814_v41 = vperm.slane %v9084_v38, %v9776_v27 }
 0x4b6   : > { %v2857_v15 = vsel %vm2799_vm3, %v2856_v8, %v2855_v20 }
 0x4ba   : > { %v9728_v61 = vpop.permute.xlu0 %2695  ;;  %v9820_v2 = vpop.permute.xlu2 %2734 }
 0x4bb   : > { %v9735_v24 = vpop.permute.xlu1 %2692  ;;  %13610 = vst [vmem:[#allocation204_spill] sm:$0xff] %v9820_v2  ;;  %v13634_v2 = vld [vmem:[#allocation155_spill] sm:$0xff] }
 0x4bc   : > { %13604 = vst [vmem:[#allocation198_spill] sm:$0xff] %v9735_v24  ;;  %v9752_v24 = vadd.s32 4294967272, %v9731_v47 }
 0x4be   : > { %v2802_v63 = vperm.slane %v9070_v51, %v9752_v24  ;;  %v2858_v51 = vperm.slane %v9092_v36, %v9752_v24 }
 0x4c0   : > { %v2804_v52 = vsel %vm2803_vm4, %v2802_v63, %v2800_v62  ;;  %v2859_v36 = vsel %vm2803_vm4, %v2858_v51, %v2857_v15  ;;  %v2885_v63 = vperm.slane %v9308_v19, %v9738_v54  ;;  %v9808_v15 = vadd.s32 4294967216, %v9731_v47 }
 0x4c1   : > { %v2861_v8 = vsel %vm2807_vm5, %v2860_v22, %v2859_v36  ;;  %v2808_v62 = vsel %vm2807_vm5, %v2806_v59, %v2804_v52  ;;  %v9811_v51 = vadd.s32 4294967232, %v9731_v47  ;;  %v9814_v22 = vadd.s32 4294967224, %v9731_v47 }
 0x4c2   : > { %v9747_v34 = vpop.permute.xlu0 %2704  ;;  %v2812_v38 = vsel %vm13050_vm6, %v2810_v50, %v2808_v62  ;;  %13607 = vst [vmem:[#allocation201_spill] sm:$0xff] %v9808_v15  ;;  %v2863_v28 = vsel %vm13050_vm6, %v2862_v57, %v2861_v8  ;;  %v2866_v52 = vperm.slane %v9238_v31, %v9786_v3  ;;  %v2818_v50 = vperm.slane %v9003_v32, %v9786_v3 }
 0x4c3   : > { %v9756_v39 = vpop.permute.xlu1 %2701  ;;  %13608 = vst [vmem:[#allocation202_spill] sm:$0xff] %v9811_v51  ;;  %v2816_v19 = vsel %vm2815_vm7, %v2814_v41, %v2812_v38  ;;  %v2864_v59 = vperm.slane %v9116_v44, %v9776_v27  ;;  %v2886_v36 = vsel %vm2795_vm2, %v2885_v63, %v2884_v55  ;;  %v2889_v62 = vperm.slane %v9334_v37, %v9752_v24 }
 0x4c4   : > { %13609 = vst [vmem:[#allocation203_spill] sm:$0xff] %v9814_v22  ;;  %v2887_v41 = vperm.slane %v9210_v1, %v9743_v40  ;;  %v2820_v31 = vsel %vm13213_vm8, %v2818_v50, %v2816_v19  ;;  %v2826_v57 = vperm.slane %v9108_v21, %v9814_v22  ;;  %v9837_v32 = vadd.s32 4294967208, %v9731_v47 }
 0x4c5   : > { %v2865_v44 = vsel %vm2815_vm7, %v2864_v59, %v2863_v28  ;;  %v2822_v63 = vperm.slane %v9118_v48, %v9811_v51  ;;  %v2830_v38 = vperm.slane %v9023_v16, %v9808_v15  ;;  %v2868_v21 = vperm.slane %v9236_v43, %v9811_v51 }
 0x4c6   : > { %13611 = vst [vmem:[#allocation205_spill] sm:$0xff] %v9837_v32  ;;  %v2867_v37 = vsel %vm13213_vm8, %v2866_v52, %v2865_v44  ;;  %v2888_v1 = vsel %vm2799_vm3, %v2887_v41, %v2886_v36  ;;  %v9853_v50 = vadd.s32 4294967200, %v9731_v47  ;;  %v2891_v48 = vperm.slane %v9332_v30, %v9765_v29  ;;  %v9878_v44 = vpop.permute.xlu2 %2743 }
 0x4c7   : > { %v2890_v19 = vsel %vm2803_vm4, %v2889_v62, %v2888_v1  ;;  %v2824_v28 = vsel %vm13210_vm9, %v2822_v63, %v2820_v31  ;;  %v2834_v59 = vperm.slane %v9142_v4, %v9837_v32  ;;  %v2869_v16 = vsel %vm13210_vm9, %v2868_v21, %v2867_v37  ;;  %v13615_v1 = vld [vmem:[#allocation143_spill] sm:$0xff] }
 0x4c8   : > { %13612 = vst [vmem:[#allocation206_spill] sm:$0xff] %v9853_v50  ;;  %v2828_v52 = vsel %vm13055_vm10, %v2826_v57, %v2824_v28  ;;  %v2872_v43 = vperm.slane %v9262_v60, %v9808_v15  ;;  %v2870_v36 = vperm.slane %v9140_v9, %v9814_v22  ;;  %v2892_v62 = vsel %vm2807_vm5, %v2891_v48, %v2890_v19  ;;  %v13616_v28 = vld [vmem:[#allocation136_spill] sm:$0xff] }
 0x4c9   : > { %v2895_v41 = vperm.slane %v9358_v18, %v9776_v27  ;;  %v9869_v30 = vadd.s32 4294967192, %v9731_v47  ;;  %v2893_v4 = vperm.slane %v9234_v42, %v9770_v53  ;;  %v2832_v31 = vsel %vm13052_vm11, %v2830_v38, %v2828_v52 }
 0x4ca   : > { %v9783_v46 = vpop.permute.xlu0 %2713  ;;  %v9875_v57 = vadd.s32 4294967184, %v9731_v47  ;;  %v2871_v60 = vsel %vm13055_vm10, %v2870_v36, %v2869_v16  ;;  %v2836_v18 = vsel %vm13054_vm12, %v2834_v59, %v2832_v31  ;;  %v2838_v42 = vperm.slane %v9137_v11, %v9853_v50  ;;  %v13618_v11 = vld [vmem:[#allocation139_spill] sm:$0xff]  ;;  %v13619_v31 = vld [vmem:[#allocation165_spill] sm:$0xff] }
 0x4cb   : > { %v9796_v20 = vpop.permute.xlu1 %2710  ;;  %13613 = vst [vmem:[#allocation207_spill] sm:$0xff] %v9869_v30  ;;  %v2873_v63 = vsel %vm13052_vm11, %v2872_v43, %v2871_v60  ;;  %v2894_v37 = vsel %vm13050_vm6, %v2893_v4, %v2892_v62  ;;  %v2874_v38 = vperm.slane %v13615_v1, %v9837_v32  ;;  %v2842_v48 = vperm.slane %v13616_v28, %v9869_v30  ;;  %v13622_v1 = vld [vmem:[#allocation169_spill] sm:$0xff] }
 0x4cc   : > { %13614 = vst [vmem:[#allocation208_spill] sm:$0xff] %v9875_v57  ;;  %v2896_v21 = vsel %vm2815_vm7, %v2895_v41, %v2894_v37  ;;  %v9895_v52 = vadd.s32 4294967176, %v9731_v47  ;;  %v2897_v59 = vperm.slane %v9356_v14, %v9786_v3  ;;  %v2840_v16 = vsel %vm13209_vm13, %v2838_v42, %v2836_v18  ;;  %v13620_v14 = vld [vmem:[#allocation137_spill] sm:$0xff]  ;;  %v13621_v37 = vld [vmem:[#allocation142_spill] sm:$0xff] }
 0x4cd   : > { %v2846_v43 = vperm.slane %v13618_v11, %v9875_v57  ;;  %v2875_v36 = vsel %vm13054_vm12, %v2874_v38, %v2873_v63  ;;  %v2878_v62 = vperm.slane %v9286_v58, %v9869_v30  ;;  %v2901_v4 = vperm.slane %v9382_v12, %v9814_v22  ;;  %v13623_v58 = vld [vmem:[#allocation151_spill] sm:$0xff]  ;;  %v13624_v12 = vld [vmem:[#allocation138_spill] sm:$0xff] }
 0x4ce   : > { %13617 = vst [vmem:[#allocation143_spill] sm:$0xff] %v9895_v52  ;;  %v2898_v41 = vsel %vm13213_vm8, %v2897_v59, %v2896_v21  ;;  %v2915_v60 = vperm.slane %v13619_v31, %v9731_v47  ;;  %v2876_v18 = vperm.slane %v13620_v14, %v9853_v50  ;;  %v2899_v42 = vperm.slane %v13621_v37, %v9811_v51 }
 0x4cf   : > { %v2918_v63 = vperm.slane %v13622_v1, %v9743_v40  ;;  %v2844_v38 = vsel %vm13208_vm14, %v2842_v48, %v2840_v16  ;;  %v2916_v21 = vperm.slane %v13623_v58, %v9738_v54  ;;  %v2850_v28 = vperm.slane %v13624_v12, %v9895_v52  ;;  %v13626_v58 = vld [vmem:[#allocation146_spill] sm:$0xff] }
 0x4d0   : > { %v2848_v59 = vsel %vm13207_vm15, %v2846_v43, %v2844_v38  ;;  %v2877_v11 = vsel %vm13209_vm13, %v2876_v18, %v2875_v36  ;;  %v2900_v31 = vsel %vm13210_vm9, %v2899_v42, %v2898_v41  ;;  %v2947_v16 = vperm.slane %v9574_v6, %v9738_v54  ;;  %v13627_v43 = vld [vmem:[#allocation160_spill] sm:$0xff]  ;;  %v9936_v41 = vpop.permute.xlu2 %2752 }
 0x4d1   : > { %v2879_v37 = vsel %vm13208_vm14, %v2878_v62, %v2877_v11  ;;  %v2902_v1 = vsel %vm13055_vm10, %v2901_v4, %v2900_v31  ;;  %v2917_v48 = vsel %vm2795_vm2, %v2916_v21, %v2915_v60  ;;  %v2880_v12 = vperm.slane %v13626_v58, %v9875_v57  ;;  %v13628_v4 = vld [vmem:[#allocation167_spill] sm:$0xff]  ;;  %v13629_v6 = vld [vmem:[#allocation168_spill] sm:$0xff]  ;;  %v13631_v31 = vld [vmem:[#allocation145_spill] sm:$0xff] }
 0x4d2   : > { %v9831_v8 = vpop.permute.xlu0 %2722  ;;  %v2903_v38 = vperm.slane %v13627_v43, %v9808_v15  ;;  %v2919_v36 = vsel %vm2799_vm3, %v2918_v63, %v2917_v48  ;;  %v9941_v62 = vsel %vm13206_vm0, %v2850_v28, %v2848_v59  ;;  %v2946_v60 = vperm.slane %v13628_v4, %v9731_v47  ;;  %v13630_v21 = vld [vmem:[#allocation140_spill] sm:$0xff]  ;;  %v13632_v43 = vld [vmem:[#allocation163_spill] sm:$0xff] }
 0x4d3   : > { %v9844_v55 = vpop.permute.xlu1 %2719  ;;  %v2920_v42 = vperm.slane %v13629_v6, %v9752_v24  ;;  %v2882_v11 = vperm.slane %v13630_v21, %v9895_v52  ;;  %v2905_v58 = vperm.slane %v13631_v31, %v9837_v32  ;;  %v2881_v63 = vsel %vm13207_vm15, %v2880_v12, %v2879_v37  ;;  %v13633_v4 = vld [vmem:[#allocation172_spill] sm:$0xff] }
 0x4d4   : > { %v2904_v48 = vsel %vm13052_vm11, %v2903_v38, %v2902_v1  ;;  %v2907_v28 = vperm.slane %v13632_v43, %v9853_v50  ;;  %v2948_v6 = vsel %vm2795_vm2, %v2947_v16, %v2946_v60  ;;  %v2922_v21 = vperm.slane %v13634_v2, %v9765_v29  ;;  %v13635_v38 = vld [vmem:[#allocation148_spill] sm:$0xff]  ;;  %v13636_v16 = vld [vmem:[#allocation162_spill] sm:$0xff] }
 0x4d5   : > { %v2921_v59 = vsel %vm2803_vm4, %v2920_v42, %v2919_v36  ;;  %v2949_v31 = vperm.slane %v9570_v13, %v9743_v40  ;;  %v2978_v37 = vperm.slane %v9688_v45, %v9738_v54  ;;  %v2977_v1 = vperm.slane %v9692_v26, %v9731_v47  ;;  %v13637_v43 = vld [vmem:[#allocation170_spill] sm:$0xff] }
 0x4d6   : > { %v9968_v12 = vsel %vm13206_vm0, %v2882_v11, %v2881_v63  ;;  %v2911_v36 = vperm.slane %v13635_v38, %v9875_v57  ;;  %v2909_v60 = vperm.slane %v13636_v16, %v9869_v30  ;;  %v2906_v2 = vsel %vm13054_vm12, %v2905_v58, %v2904_v48  ;;  %v13638_v48 = vld [vmem:[#allocation171_spill] sm:$0xff] }
 0x4d7   : > { %v2923_v42 = vsel %vm2807_vm5, %v2922_v21, %v2921_v59  ;;  %v2950_v13 = vsel %vm2799_vm3, %v2949_v31, %v2948_v6  ;;  %v2953_v45 = vperm.slane %v9596_v23, %v9765_v29  ;;  %v3008_v26 = vperm.slane %v9728_v61, %v9731_v47  ;;  %v13639_v21 = vld [vmem:[#allocation159_spill] sm:$0xff] }
 0x4d8   : > { %v2908_v63 = vsel %vm13209_vm13, %v2907_v28, %v2906_v2  ;;  %v3011_v58 = vperm.slane %v9756_v39, %v9743_v40  ;;  %v2926_v59 = vperm.slane %v13638_v48, %v9776_v27  ;;  %v2979_v6 = vsel %vm2795_vm2, %v2978_v37, %v2977_v1 }
 0x4d9   : > { %v3009_v23 = vperm.slane %v9716_v49, %v9738_v54  ;;  %v2982_v61 = vperm.slane %v9708_v17, %v9752_v24  ;;  %v2928_v31 = vperm.slane %v13639_v21, %v9786_v3  ;;  %v2980_v39 = vperm.slane %v9602_v35, %v9743_v40 }
 0x4da   : > { %v9880_v9 = vpop.permute.xlu0 %2731  ;;  %v10002_v37 = vsel %vm13208_vm14, %v2909_v60, %v2908_v63  ;;  %v2955_v48 = vperm.slane %v9594_v10, %v9770_v53  ;;  %v13641_v60 = vld [vmem:[#allocation164_spill] sm:$0xff]  ;;  %v2959_v10 = vperm.slane %v9620_v0, %v9786_v3  ;;  %v3015_v0 = vperm.slane %v9722_v25, %v9765_v29 }
 0x4db   : > { %v9890_v19 = vpop.permute.xlu1 %2728  ;;  %v3010_v17 = vsel %vm2795_vm2, %v3009_v23, %v3008_v26  ;;  %v2981_v21 = vsel %vm2799_vm3, %v2980_v39, %v2979_v6  ;;  %v2940_v63 = vperm.slane %v13641_v60, %v9869_v30  ;;  %v3013_v26 = vperm.slane %v9747_v34, %v9752_v24  ;;  %v13643_v23 = vld [vmem:[#allocation173_spill] sm:$0xff] }
 0x4dc   : > { %v3012_v35 = vsel %vm2799_vm3, %v3011_v58, %v3010_v17  ;;  %v2984_v58 = vperm.slane %v9706_v56, %v9765_v29  ;;  %v3039_v6 = vperm.slane %v9878_v44, %v9731_v47  ;;  %v3017_v34 = vperm.slane %v9796_v20, %v9770_v53 }
 0x4dd   : > { %v2988_v56 = vperm.slane %v9714_v7, %v9776_v27  ;;  %v2961_v25 = vperm.slane %v9618_v5, %v9811_v51  ;;  %v3019_v5 = vperm.slane %v9783_v46, %v9776_v27  ;;  %v3023_v46 = vperm.slane %v9844_v55, %v9811_v51 }
 0x4e2   : > { %v9924_v14 = vpop.permute.xlu0 %2740 }
 0x4e3   : > { %13625 = vst [vmem:[#allocation136_spill] sm:$0xff] %v9924_v14  ;;  %v9938_v18 = vpop.permute.xlu1 %2737  ;;  %v2924_v14 = vperm.slane %v13633_v4, %v9770_v53  ;;  %v2951_v4 = vperm.slane %v13637_v43, %v9752_v24  ;;  %v10007_v43 = vpop.permute.xlu2 %2761 }
 0x4e5   : > { %v2925_v16 = vsel %vm13050_vm6, %v2924_v14, %v2923_v42  ;;  %v13640_v14 = vld [vmem:[#allocation161_spill] sm:$0xff]  ;;  %v2952_v42 = vsel %vm2803_vm4, %v2951_v4, %v2950_v13  ;;  %v13642_v4 = vld [vmem:[#allocation175_spill] sm:$0xff] }
 0x4e6   : > { %v2934_v2 = vperm.slane %v13640_v14, %v9808_v15  ;;  %v2927_v49 = vsel %vm2815_vm7, %v2926_v59, %v2925_v16  ;;  %v2954_v1 = vsel %vm2807_vm5, %v2953_v45, %v2952_v42  ;;  %v2930_v16 = vperm.slane %v13642_v4, %v9811_v51 }
 0x4e7   : > { %v2983_v45 = vsel %vm2803_vm4, %v2982_v61, %v2981_v21  ;;  %v2956_v59 = vsel %vm13050_vm6, %v2955_v48, %v2954_v1  ;;  %v2929_v14 = vsel %vm13213_vm8, %v2928_v31, %v2927_v49  ;;  %v3014_v61 = vsel %vm2803_vm4, %v3013_v26, %v3012_v35  ;;  %v13644_v48 = vld [vmem:[#allocation174_spill] sm:$0xff] }
 0x4e8   : > { %v2985_v42 = vsel %vm2807_vm5, %v2984_v58, %v2983_v45  ;;  %v2931_v1 = vsel %vm13210_vm9, %v2930_v16, %v2929_v14  ;;  %v2986_v31 = vperm.slane %v9634_v33, %v9770_v53  ;;  %v2932_v21 = vperm.slane %v13644_v48, %v9814_v22 }
 0x4e9   : > { %v3016_v35 = vsel %vm2807_vm5, %v3015_v0, %v3014_v61  ;;  %v3044_v26 = vperm.slane %v9936_v41, %v9752_v24 }
 0x4ea   : > { %v2750_v11 = vpop.permute.xlu0 %2749  ;;  %v3018_v4 = vsel %vm13050_vm6, %v3017_v34, %v3016_v35  ;;  %v13648_v34 = vld [vmem:[#allocation176_spill] sm:$0xff]  ;;  %v13652_v35 = vld [vmem:[#allocation177_spill] sm:$0xff] }
 0x4eb   : > { %v2747_v28 = vpop.permute.xlu1 %2746  ;;  %v3042_v20 = vperm.slane %v2750_v11, %v9743_v40  ;;  %v2933_v11 = vsel %vm13055_vm10, %v2932_v21, %v2931_v1  ;;  %v10068_v61 = vpop.permute.xlu2 %2770  ;;  %v2963_v41 = vperm.slane %v13648_v34, %v9814_v22  ;;  %v13651_v21 = vld [vmem:[#allocation187_spill] sm:$0xff] }
 0x4ec   : > { %v3040_v13 = vperm.slane %v2747_v28, %v9738_v54  ;;  %v2957_v28 = vperm.slane %v13643_v23, %v9776_v27  ;;  %v2935_v48 = vsel %vm13052_vm11, %v2934_v2, %v2933_v11  ;;  %v13655_v34 = vld [vmem:[#allocation179_spill] sm:$0xff] }
 0x4ee   : > { %v3041_v44 = vsel %vm2795_vm2, %v3040_v13, %v3039_v6  ;;  %v2958_v49 = vsel %vm2815_vm7, %v2957_v28, %v2956_v59  ;;  %v2987_v13 = vsel %vm13050_vm6, %v2986_v31, %v2985_v42  ;;  %v13645_v59 = vld [vmem:[#allocation178_spill] sm:$0xff]  ;;  %v13646_v6 = vld [vmem:[#allocation185_spill] sm:$0xff]  ;;  %v13647_v28 = vld [vmem:[#allocation192_spill] sm:$0xff]  ;;  %v3020_v42 = vsel %vm2815_vm7, %v3019_v5, %v3018_v4 }
 0x4ef   : > { %v2960_v7 = vsel %vm13213_vm8, %v2959_v10, %v2958_v49  ;;  %v3043_v33 = vsel %vm2799_vm3, %v3042_v20, %v3041_v44  ;;  %v2989_v45 = vsel %vm2815_vm7, %v2988_v56, %v2987_v13  ;;  %v2936_v10 = vperm.slane %v13645_v59, %v9837_v32  ;;  %v13649_v44 = vld [vmem:[#allocation197_spill] sm:$0xff]  ;;  %v13650_v31 = vld [vmem:[#allocation194_spill] sm:$0xff] }
 0x4f0   : > { %v2962_v58 = vsel %vm13210_vm9, %v2961_v25, %v2960_v7  ;;  %v2965_v23 = vperm.slane %v13646_v6, %v9808_v15  ;;  %v2990_v14 = vperm.slane %v13647_v28, %v9786_v3  ;;  %v3045_v0 = vsel %vm2803_vm4, %v3044_v26, %v3043_v33 }
 0x4f1   : > { %v3021_v1 = vperm.slane %v13649_v44, %v9786_v3  ;;  %v2994_v49 = vperm.slane %v13650_v31, %v9814_v22  ;;  %v2992_v25 = vperm.slane %v13651_v21, %v9811_v51  ;;  %v2964_v55 = vsel %vm13055_vm10, %v2963_v41, %v2962_v58  ;;  %v13659_v21 = vld [vmem:[#allocation181_spill] sm:$0xff] }
 0x4f2   : > { %v2759_v39 = vpop.permute.xlu0 %2758  ;;  %v2991_v56 = vsel %vm13213_vm8, %v2990_v14, %v2989_v45  ;;  %v2938_v13 = vperm.slane %v13652_v35, %v9853_v50  ;;  %v2937_v4 = vsel %vm13054_vm12, %v2936_v10, %v2935_v48  ;;  %v2966_v33 = vsel %vm13052_vm11, %v2965_v23, %v2964_v55  ;;  %v13654_v23 = vld [vmem:[#allocation166_spill] sm:$0xff] }
 0x4f3   : > { %v2756_v17 = vpop.permute.xlu1 %2755  ;;  %v3048_v7 = vperm.slane %v2759_v39, %v9770_v53  ;;  %v3022_v45 = vsel %vm13213_vm8, %v3021_v1, %v3020_v42  ;;  %v2993_v26 = vsel %vm13210_vm9, %v2992_v25, %v2991_v56  ;;  %v13653_v39 = vld [vmem:[#allocation184_spill] sm:$0xff]  ;;  %v3050_v10 = vperm.slane %v10007_v43, %v9776_v27  ;;  %v13656_v42 = vld [vmem:[#allocation193_spill] sm:$0xff]  ;;  %v13657_v1 = vld [vmem:[#allocation199_spill] sm:$0xff] }
 0x4f4   : > { %v3046_v16 = vperm.slane %v2756_v17, %v9765_v29  ;;  %v3024_v2 = vsel %vm13210_vm9, %v3023_v46, %v3022_v45  ;;  %v2967_v59 = vperm.slane %v13653_v39, %v9837_v32  ;;  %v2995_v58 = vsel %vm13055_vm10, %v2994_v49, %v2993_v26  ;;  %v13658_v49 = vld [vmem:[#allocation196_spill] sm:$0xff]  ;;  %v13660_v55 = vld [vmem:[#allocation190_spill] sm:$0xff] }
 0x4f5   : > { %v3025_v6 = vperm.slane %v9831_v8, %v9814_v22  ;;  %v2913_v28 = vperm.slane %v13654_v23, %v9895_v52  ;;  %v2939_v14 = vsel %vm13209_vm13, %v2938_v13, %v2937_v4  ;;  %v2969_v41 = vperm.slane %v13655_v34, %v9853_v50  ;;  %v2780_v13 = vpop.permute.xlu2 %2779  ;;  %v13664_v34 = vld [vmem:[#allocation180_spill] sm:$0xff] }
 0x4f6   : > { %v3047_v20 = vsel %vm2807_vm5, %v3046_v16, %v3045_v0  ;;  %v2996_v46 = vperm.slane %v13656_v42, %v9808_v15  ;;  %v2968_v0 = vsel %vm13054_vm12, %v2967_v59, %v2966_v33  ;;  %v3029_v43 = vperm.slane %v9890_v19, %v9837_v32  ;;  %v13661_v19 = vld [vmem:[#allocation94_spill] sm:$0xff]  ;;  %v13665_v42 = vld [vmem:[#allocation204_spill] sm:$0xff] }
 0x4f7   : > { %v3049_v11 = vsel %vm13050_vm6, %v3048_v7, %v3047_v20  ;;  %vm13053_vm6 = vcmask 1042434   ;;  %v3026_v56 = vsel %vm13055_vm10, %v3025_v6, %v3024_v2  ;;  %v3027_v31 = vperm.slane %v13657_v1, %v9808_v15  ;;  %v13663_v6 = vld [vmem:[#allocation188_spill] sm:$0xff] }
 0x4f8   : > { %v3051_v8 = vsel %vm2815_vm7, %v3050_v10, %v3049_v11  ;;  %v2997_v44 = vsel %vm13052_vm11, %v2996_v46, %v2995_v58  ;;  %v3000_v20 = vperm.slane %v13658_v49, %v9853_v50  ;;  %v2942_v25 = vperm.slane %v13659_v21, %v9875_v57  ;;  %v13662_v58 = vld [vmem:[#allocation195_spill] sm:$0xff]  ;;  %v13668_v49 = vld [vmem:[#allocation182_spill] sm:$0xff] }
 0x4f9   : > { %v2998_v7 = vperm.slane %v13660_v55, %v9837_v32  ;;  %v2971_v35 = vperm.slane %v13661_v19, %v9869_v30  ;;  %v2912_v45 = vsel %vm13207_vm15, %v2911_v36, %v10002_v37  ;;  %v2941_v26 = vsel %vm13208_vm14, %v2940_v63, %v2939_v14 }
 0x4fa   : > { %v2768_v17 = vpop.permute.xlu0 %2767  ;;  %v3028_v2 = vsel %vm13052_vm11, %v3027_v31, %v3026_v56  ;;  %v2914_v63 = vsel %vm13206_vm0, %v2913_v28, %v2912_v45  ;;  %v2943_v39 = vsel %vm13207_vm15, %v2942_v25, %v2941_v26  ;;  %v3002_v10 = vperm.slane %v13662_v58, %v9869_v30 }
 0x4fb   : > { %v2765_v16 = vpop.permute.xlu1 %2764  ;;  %v3054_v4 = vperm.slane %v2768_v17, %v9811_v51  ;;  %v2970_v17 = vsel %vm13209_vm13, %v2969_v41, %v2968_v0  ;;  %v2999_v11 = vsel %vm13054_vm12, %v2998_v7, %v2997_v44  ;;  %v2973_v23 = vperm.slane %v13663_v6, %v9875_v57  ;;  %v13667_v44 = vld [vmem:[#allocation198_spill] sm:$0xff] }
 0x4fc   : > { %v3052_v5 = vperm.slane %v2765_v16, %v9786_v3  ;;  %v3071_v16 = vsel %vm13051_vm1, %v9968_v12, %v9941_v62  ;;  %v3001_v37 = vsel %vm13209_vm13, %v3000_v20, %v2999_v11  ;;  %v3056_v62 = vperm.slane %v10068_v61, %v9814_v22 }
 0x4fd   : > { %v3031_v12 = vperm.slane %v9880_v9, %v9853_v50  ;;  %v2972_v59 = vsel %vm13208_vm14, %v2971_v35, %v2970_v17  ;;  %v3035_v61 = vperm.slane %v9938_v18, %v9875_v57  ;;  %v2944_v28 = vperm.slane %v13664_v34, %v9895_v52  ;;  %v2789_v45 = vpop.permute.xlu2 %2788  ;;  %v13672_v34 = vld [vmem:[#allocation96_spill] sm:$0xff] }
 0x4fe   : > { %v3053_v48 = vsel %vm13213_vm8, %v3052_v5, %v3051_v8  ;;  %v3030_v5 = vsel %vm13054_vm12, %v3029_v43, %v3028_v2  ;;  %v3003_v41 = vsel %vm13208_vm14, %v3002_v10, %v3001_v37  ;;  %v3033_v46 = vperm.slane %v13665_v42, %v9869_v30  ;;  %v13666_v43 = vld [vmem:[#allocation191_spill] sm:$0xff] }
 0x4ff   : > { %v3055_v38 = vsel %vm13210_vm9, %v3054_v4, %v3053_v48  ;;  %v3032_v14 = vsel %vm13209_vm13, %v3031_v12, %v3030_v5  ;;  %v2974_v56 = vsel %vm13207_vm15, %v2973_v23, %v2972_v59  ;;  %v3004_v8 = vperm.slane %v13666_v43, %v9875_v57  ;;  %v13669_v4 = vld [vmem:[#allocation136_spill] sm:$0xff]  ;;  %v13674_v43 = vld [vmem:[#allocation98_spill] sm:$0xff] }
 0x500   : > { %v3057_v9 = vsel %vm13055_vm10, %v3056_v62, %v3055_v38  ;;  %v3006_v18 = vperm.slane %v13667_v44, %v9895_v52  ;;  %v2945_v31 = vsel %vm13206_vm0, %v2944_v28, %v2943_v39  ;;  %v2975_v20 = vperm.slane %v13668_v49, %v9895_v52  ;;  %v13670_v23 = vld [vmem:[#allocation104_spill] sm:$0xff]  ;;  %v13675_v44 = vld [vmem:[#allocation95_spill] sm:$0xff] }
 0x501   : > { %v3034_v48 = vsel %vm13208_vm14, %v3033_v46, %v3032_v14  ;;  %vm13202_vm1 = vcmask 1043459   ;;  %v3073_v21 = vsel %vm13053_vm6, %v2914_v63, %v3071_v16  ;;  %v3005_v25 = vsel %vm13207_vm15, %v3004_v8, %v3003_v41 }
 0x502   : > { %v2777_v33 = vpop.permute.xlu0 %2776  ;;  %v3036_v55 = vsel %vm13207_vm15, %v3035_v61, %v3034_v48  ;;  %v3062_v35 = vperm.slane %v2780_v13, %v9853_v50  ;;  %v2976_v2 = vsel %vm13206_vm0, %v2975_v20, %v2974_v56  ;;  %v3007_v17 = vsel %vm13206_vm0, %v3006_v18, %v3005_v25  ;;  %v13671_v61 = vld [vmem:[#allocation97_spill] sm:$0xff]  ;;  %v13679_v25 = vld [vmem:[#allocation118_spill] sm:$0xff] }
 0x503   : > { %v2774_v36 = vpop.permute.xlu1 %2773  ;;  %v3060_v1 = vperm.slane %v2777_v33, %v9837_v32  ;;  %v3037_v33 = vperm.slane %v13669_v4, %v9895_v52  ;;  %v3075_v11 = vsel %vm13202_vm1, %v2945_v31, %v3073_v21  ;;  %vm13200_vm6 = vcmask 1045509  }
 0x504   : > { %v3058_v60 = vperm.slane %v2774_v36, %v9808_v15  ;;  %v3068_v36 = vperm.slane %v2789_v45, %v9895_v52  ;;  %vm13198_vm10 = vcmask 1047559  }
 0x505   : > { %v3038_v13 = vsel %vm13206_vm0, %v3037_v33, %v3036_v55 }
 0x506   : > { %v3059_v0 = vsel %vm13052_vm11, %v3058_v60, %v3057_v9  ;;  %vm13201_vm11 = vcmask 1044484  }
 0x507   : > { %v3061_v7 = vsel %vm13054_vm12, %v3060_v1, %v3059_v0  ;;  %vm13199_vm12 = vcmask 1046534   ;;  %v3077_v62 = vsel %vm13201_vm11, %v2976_v2, %v3075_v11  ;;  %v13673_v0 = vld [vmem:[#allocation115_spill] sm:$0xff]  ;;  %v13685_v11 = vld [vmem:[#allocation121_spill] sm:$0xff]  ;;  %vm14005_vm11 = vcmask 392512  }
 0x508   : > { %v3063_v38 = vsel %vm13209_vm13, %v3062_v35, %v3061_v7  ;;  %v3079_v60 = vsel %vm13200_vm6, %v3007_v17, %v3077_v62  ;;  %v13680_v7 = vld [vmem:[#allocation99_spill] sm:$0xff]  ;;  %v13681_v35 = vld [vmem:[#allocation100_spill] sm:$0xff] }
 0x509   : > { %v3081_v39 = vsel %vm13199_vm12, %v3038_v13, %v3079_v60 }
 0x50a   : > { %v2786_v19 = vpop.permute.xlu0 %2785 }
 0x50b   : > { %v2783_v26 = vpop.permute.xlu1 %2782  ;;  %v3066_v5 = vperm.slane %v2786_v19, %v9875_v57 }
 0x50c   : > { %v3064_v16 = vperm.slane %v2783_v26, %v9869_v30 }
 0x50e   : > { %v3065_v37 = vsel %vm13208_vm14, %v3064_v16, %v3063_v38  ;;  %v13686_v38 = vld [vmem:[#allocation101_spill] sm:$0xff] }
 0x50f   : > { %v3067_v12 = vsel %vm13207_vm15, %v3066_v5, %v3065_v37 }
 0x510   : > { %v3069_v63 = vsel %vm13206_vm0, %v3068_v36, %v3067_v12  ;;  %v13687_v36 = vld [vmem:[#allocation103_spill] sm:$0xff] }
 0x511   : > { %v3083_v59 = vsel %vm13198_vm10, %v3069_v63, %v3081_v39  ;;  %vm13985_vm10 = vcmask 392512  }
 0x512   : > { %3085 = vmax.xlane.f32.xlu1 %v3083_v59  ;;  %vm13986_vm12 = vmmov %vm13985_vm10 }
 0x585   : > { %v10200_v58 = vpop.xlane.xlu1 %3085 }
 0x586   : > { %v10203_v10 = vperm.slane %v10200_v58, 0  ;;  %v10206_v6 = vperm.slane %v10200_v58, 1 }
 0x588   : > { %v3114_v14 = vsub.f32 %v13670_v23, %v10203_v10  ;;  %v3105_v9 = vsub.f32 %v13671_v61, %v10203_v10  ;;  %v3104_v28 = vsub.f32 %v13672_v34, %v10203_v10  ;;  %v3121_v56 = vsub.f32 %v13673_v0, %v10206_v6  ;;  %v13691_v23 = vld [vmem:[#allocation124_spill] sm:$0xff]  ;;  %v13692_v61 = vld [vmem:[#allocation105_spill] sm:$0xff]  ;;  %v13693_v34 = vld [vmem:[#allocation102_spill] sm:$0xff] }
 0x589   : > { %v3107_v8 = vsub.f32 %v13674_v43, %v10203_v10  ;;  %v3106_v18 = vsub.f32 %v13675_v44, %v10203_v10  ;;  %v3124_v55 = vsub.f32 %v13679_v25, %v10206_v6  ;;  %v3109_v19 = vsub.f32 %v13680_v7, %v10203_v10 }
 0x58a   : > { %v3252_v41 = vmul.f32 1.442695, %v3114_v14  ;;  %v3234_v42 = vmul.f32 1.442695, %v3105_v9  ;;  %v3232_v46 = vmul.f32 1.442695, %v3104_v28  ;;  %v3108_v4 = vsub.f32 %v13681_v35, %v10203_v10 }
 0x58b   : > { %v3266_v1 = vmul.f32 1.442695, %v3121_v56  ;;  %v3238_v31 = vmul.f32 1.442695, %v3107_v8  ;;  %v3236_v20 = vmul.f32 1.442695, %v3106_v18  ;;  %v3127_v5 = vsub.f32 %v13685_v11, %v10206_v6 }
 0x58c   : > { %7157 = vpow2.f32 %v3252_v41  ;;  %v3272_v33 = vmul.f32 1.442695, %v3124_v55  ;;  %v3242_v45 = vmul.f32 1.442695, %v3109_v19  ;;  %v3240_v2 = vmul.f32 1.442695, %v3108_v4 }
 0x58d   : > { %7159 = vpow2.f32 %v3234_v42  ;;  %v3111_v13 = vsub.f32 %v13686_v38, %v10203_v10  ;;  %v3110_v37 = vsub.f32 %v13687_v36, %v10203_v10  ;;  %v3278_v62 = vmul.f32 1.442695, %v3127_v5  ;;  %v13697_v8 = vld [vmem:[#allocation127_spill] sm:$0xff]  ;;  %v13698_v18 = vld [vmem:[#allocation106_spill] sm:$0xff]  ;;  %v13704_v11 = vld [vmem:[#allocation112_spill] sm:$0xff] }
 0x58e   : > { %7161 = vpow2.f32 %v3232_v46  ;;  %v3130_v14 = vsub.f32 %v13691_v23, %v10206_v6  ;;  %v3113_v9 = vsub.f32 %v13692_v61, %v10203_v10  ;;  %v3112_v28 = vsub.f32 %v13693_v34, %v10203_v10  ;;  %v13705_v38 = vld [vmem:[#allocation107_spill] sm:$0xff] }
 0x58f   : > { %7163 = vpow2.f32 %v3266_v1  ;;  %v3246_v12 = vmul.f32 1.442695, %v3111_v13  ;;  %v3244_v63 = vmul.f32 1.442695, %v3110_v37  ;;  %v3133_v44 = vsub.f32 %v13697_v8, %v10206_v6 }
 0x590   : > { %7165 = vpow2.f32 %v3238_v31  ;;  %v3284_v41 = vmul.f32 1.442695, %v3130_v14  ;;  %v3250_v42 = vmul.f32 1.442695, %v3113_v9  ;;  %v3248_v0 = vmul.f32 1.442695, %v3112_v28 }
 0x591   : > { %7167 = vpow2.f32 %v3236_v20  ;;  %v3116_v1 = vsub.f32 %v13698_v18, %v10203_v10  ;;  %v13699_v31 = vld [vmem:[#allocation108_spill] sm:$0xff]  ;;  %v10281_v25 = vperm.slane %v10200_v58, 2  ;;  %v3290_v55 = vmul.f32 1.442695, %v3133_v44  ;;  %v13709_v14 = vld [vmem:[#allocation133_spill] sm:$0xff]  ;;  %v13711_v28 = vld [vmem:[#allocation111_spill] sm:$0xff] }
 0x592   : > { %v10220_v49 = vpop.eup %7157  ;;  %7169 = vpow2.f32 %v3272_v33  ;;  %v3115_v20 = vsub.f32 %v13699_v31, %v10203_v10  ;;  %v3118_v5 = vsub.f32 %v13704_v11, %v10203_v10  ;;  %v3117_v13 = vsub.f32 %v13705_v38, %v10203_v10  ;;  %v13710_v9 = vld [vmem:[#allocation109_spill] sm:$0xff] }
 0x593   : > { %13676 = vst [vmem:[#allocation139_spill] sm:$0xff] %v10220_v49  ;;  %v10222_v48 = vpop.eup %7159  ;;  %3647 = vperm.xlu1 %7148, %v10220_v49   ;;  %7171 = vpow2.f32 %v3242_v45  ;;  %v3256_v7 = vmul.f32 1.442695, %v3116_v1  ;;  %v13703_v45 = vld [vmem:[#allocation130_spill] sm:$0xff]  ;;  %v3139_v61 = vsub.f32 %v13709_v14, %v10281_v25  ;;  %v3120_v34 = vsub.f32 %v13710_v9, %v10206_v6  ;;  %v13715_v31 = vld [vmem:[#allocation21_spill] sm:$0xff] }
 0x594   : > { %13677 = vst [vmem:[#allocation165_spill] sm:$0xff] %v10222_v48  ;;  %v10225_v21 = vpop.eup %7161  ;;  %3620 = vperm.xlu2 %7150, %v10222_v48   ;;  %7173 = vpow2.f32 %v3240_v2  ;;  %v3254_v35 = vmul.f32 1.442695, %v3115_v20  ;;  %v3136_v2 = vsub.f32 %v13703_v45, %v10281_v25  ;;  %v3260_v37 = vmul.f32 1.442695, %v3118_v5 }
 0x595   : > { %13678 = vst [vmem:[#allocation137_spill] sm:$0xff] %v10225_v21  ;;  %3617 = vperm.xlu0 %7149, %v10225_v21   ;;  %v10235_v26 = vpop.eup %7163  ;;  %7175 = vpow2.f32 %v3278_v62  ;;  %v3142_v20 = vsub.f32 %v13715_v31, %v10281_v25  ;;  %v13727_v31 = vld [vmem:[#allocation23_spill] sm:$0xff] }
 0x596   : > { %13682 = vst [vmem:[#allocation142_spill] sm:$0xff] %v10235_v26  ;;  %v10237_v17 = vpop.eup %7165  ;;  %7177 = vpow2.f32 %v3246_v12  ;;  %v3296_v36 = vmul.f32 1.442695, %v3136_v2  ;;  %v3258_v12 = vmul.f32 1.442695, %v3117_v13 }
 0x597   : > { %13683 = vst [vmem:[#allocation169_spill] sm:$0xff] %v10237_v17  ;;  %v10240_v16 = vpop.eup %7167  ;;  %7179 = vpow2.f32 %v3244_v63  ;;  %v3308_v45 = vmul.f32 1.442695, %v3142_v20  ;;  %v3148_v20 = vsub.f32 %v13727_v31, %v10281_v25  ;;  %v10374_v31 = vperm.slane %v10200_v58, 3 }
 0x598   : > { %13684 = vst [vmem:[#allocation151_spill] sm:$0xff] %v10240_v16  ;;  %v10250_v60 = vpop.eup %7169  ;;  %7181 = vpow2.f32 %v3284_v41  ;;  %v3119_v41 = vsub.f32 %v13711_v28, %v10203_v10  ;;  %v13716_v10 = vld [vmem:[#allocation110_spill] sm:$0xff] }
 0x599   : > { %13688 = vst [vmem:[#allocation138_spill] sm:$0xff] %v10250_v60  ;;  %v10252_v39 = vpop.eup %7171  ;;  %7183 = vpow2.f32 %v3250_v42  ;;  %v3302_v42 = vmul.f32 1.442695, %v3139_v61  ;;  %v13723_v61 = vld [vmem:[#allocation117_spill] sm:$0xff] }
 0x59a   : > { %13689 = vst [vmem:[#allocation146_spill] sm:$0xff] %v10252_v39  ;;  %v10255_v59 = vpop.eup %7173  ;;  %7185 = vpow2.f32 %v3248_v0  ;;  %v3264_v0 = vmul.f32 1.442695, %v3120_v34  ;;  %v3262_v44 = vmul.f32 1.442695, %v3119_v41  ;;  %v3125_v9 = vsub.f32 %v13723_v61, %v10206_v6 }
 0x59b   : > { %3668 = vperm.xlu1 %7148, %v10235_v26   ;;  %13690 = vst [vmem:[#allocation160_spill] sm:$0xff] %v10255_v59  ;;  %v10265_v46 = vpop.eup %7175  ;;  %7187 = vpow2.f32 %v3290_v55  ;;  %v3123_v55 = vsub.f32 %v13716_v10, %v10206_v6  ;;  %v13728_v10 = vld [vmem:[#allocation116_spill] sm:$0xff] }
 0x59c   : > { %3626 = vperm.xlu2 %7150, %v10237_v17   ;;  %13694 = vst [vmem:[#allocation167_spill] sm:$0xff] %v10265_v46  ;;  %v10267_v56 = vpop.eup %7177  ;;  %7189 = vpow2.f32 %v3256_v7  ;;  %v13717_v7 = vld [vmem:[#allocation114_spill] sm:$0xff] }
 0x59d   : > { %3623 = vperm.xlu0 %7149, %v10240_v16   ;;  %13695 = vst [vmem:[#allocation168_spill] sm:$0xff] %v10267_v56  ;;  %v10270_v43 = vpop.eup %7179  ;;  %7191 = vpow2.f32 %v3254_v35  ;;  %v3122_v35 = vsub.f32 %v13717_v7, %v10206_v6  ;;  %v3270_v2 = vmul.f32 1.442695, %v3123_v55  ;;  %v3129_v55 = vsub.f32 %v13728_v10, %v10206_v6  ;;  %v13729_v7 = vld [vmem:[#allocation120_spill] sm:$0xff] }
 0x59e   : > { %13696 = vst [vmem:[#allocation140_spill] sm:$0xff] %v10270_v43  ;;  %v10283_v19 = vpop.eup %7181  ;;  %7193 = vpow2.f32 %v3296_v36  ;;  %v13721_v36 = vld [vmem:[#allocation22_spill] sm:$0xff]  ;;  %v13785_v16 = vld [vmem:[#allocation32_spill] sm:$0xff] }
 0x59f   : > { %13700 = vst [vmem:[#allocation145_spill] sm:$0xff] %v10283_v19  ;;  %v10285_v4 = vpop.eup %7183  ;;  %7195 = vpow2.f32 %v3260_v37  ;;  %v3268_v5 = vmul.f32 1.442695, %v3122_v35  ;;  %v3145_v37 = vsub.f32 %v13721_v36, %v10281_v25  ;;  %v3128_v35 = vsub.f32 %v13729_v7, %v10206_v6 }
 0x5a0   : > { %13701 = vst [vmem:[#allocation163_spill] sm:$0xff] %v10285_v4  ;;  %v10288_v33 = vpop.eup %7185  ;;  %7197 = vpow2.f32 %v3258_v12  ;;  %v13722_v12 = vld [vmem:[#allocation113_spill] sm:$0xff] }
 0x5a1   : > { %13702 = vst [vmem:[#allocation172_spill] sm:$0xff] %v10288_v33  ;;  %v10298_v62 = vpop.eup %7187  ;;  %7199 = vpow2.f32 %v3302_v42  ;;  %v3126_v14 = vsub.f32 %v13722_v12, %v10206_v6  ;;  %v3314_v34 = vmul.f32 1.442695, %v3145_v37  ;;  %v3274_v42 = vmul.f32 1.442695, %v3125_v9  ;;  %v13734_v9 = vld [vmem:[#allocation119_spill] sm:$0xff] }
 0x5a2   : > { %13706 = vst [vmem:[#allocation155_spill] sm:$0xff] %v10298_v62  ;;  %v10300_v63 = vpop.eup %7189  ;;  %7201 = vpow2.f32 %v3264_v0  ;;  %v3280_v36 = vmul.f32 1.442695, %v3128_v35 }
 0x5a3   : > { %3677 = vperm.xlu1 %7148, %v10250_v60   ;;  %13707 = vst [vmem:[#allocation148_spill] sm:$0xff] %v10300_v63  ;;  %v10303_v23 = vpop.eup %7191  ;;  %7203 = vpow2.f32 %v3262_v44  ;;  %v3276_v28 = vmul.f32 1.442695, %v3126_v14  ;;  %v13733_v14 = vld [vmem:[#allocation25_spill] sm:$0xff] }
 0x5a4   : > { %3632 = vperm.xlu2 %7150, %v10252_v39   ;;  %13708 = vst [vmem:[#allocation162_spill] sm:$0xff] %v10303_v23  ;;  %v10313_v8 = vpop.eup %7193  ;;  %7205 = vpow2.f32 %v3308_v45  ;;  %v3320_v45 = vmul.f32 1.442695, %v3148_v20  ;;  %v3151_v61 = vsub.f32 %v13733_v14, %v10281_v25  ;;  %v13740_v14 = vld [vmem:[#allocation122_spill] sm:$0xff] }
 0x5a5   : > { %3629 = vperm.xlu0 %7149, %v10255_v59   ;;  %13712 = vst [vmem:[#allocation170_spill] sm:$0xff] %v10313_v8  ;;  %v10315_v18 = vpop.eup %7195  ;;  %7207 = vpow2.f32 %v3270_v2  ;;  %v3282_v2 = vmul.f32 1.442695, %v3129_v55 }
 0x5a6   : > { %13713 = vst [vmem:[#allocation171_spill] sm:$0xff] %v10315_v18  ;;  %v10318_v1 = vpop.eup %7197  ;;  %7209 = vpow2.f32 %v3268_v5  ;;  %v3326_v20 = vmul.f32 1.442695, %v3151_v61  ;;  %v3135_v61 = vsub.f32 %v13740_v14, %v10206_v6  ;;  %v13747_v14 = vld [vmem:[#allocation129_spill] sm:$0xff] }
 0x5a7   : > { %13714 = vst [vmem:[#allocation159_spill] sm:$0xff] %v10318_v1  ;;  %v10328_v11 = vpop.eup %7199  ;;  %7211 = vpow2.f32 %v3314_v34  ;;  %v3132_v34 = vsub.f32 %v13734_v9, %v10206_v6  ;;  %v13741_v9 = vld [vmem:[#allocation126_spill] sm:$0xff] }
 0x5a8   : > { %13718 = vst [vmem:[#allocation161_spill] sm:$0xff] %v10328_v11  ;;  %v10330_v38 = vpop.eup %7201  ;;  %7213 = vpow2.f32 %v3276_v28  ;;  %v13735_v28 = vld [vmem:[#allocation123_spill] sm:$0xff] }
 0x5a9   : > { %13719 = vst [vmem:[#allocation164_spill] sm:$0xff] %v10330_v38  ;;  %v10333_v13 = vpop.eup %7203  ;;  %7215 = vpow2.f32 %v3274_v42  ;;  %v3131_v42 = vsub.f32 %v13735_v28, %v10206_v6  ;;  %v3288_v10 = vmul.f32 1.442695, %v3132_v34  ;;  %v3134_v34 = vsub.f32 %v13741_v9, %v10206_v6  ;;  %v13746_v6 = vld [vmem:[#allocation125_spill] sm:$0xff] }
 0x5aa   : > { %13720 = vst [vmem:[#allocation175_spill] sm:$0xff] %v10333_v13  ;;  %v10343_v41 = vpop.eup %7205  ;;  %7217 = vpow2.f32 %v3320_v45 }
 0x5ab   : > { %3686 = vperm.xlu1 %7148, %v10265_v46   ;;  %13724 = vst [vmem:[#allocation173_spill] sm:$0xff] %v10343_v41  ;;  %v10345_v0 = vpop.eup %7207  ;;  %7219 = vpow2.f32 %v3282_v2  ;;  %v3286_v7 = vmul.f32 1.442695, %v3131_v42  ;;  %v13739_v2 = vld [vmem:[#allocation28_spill] sm:$0xff]  ;;  %v3294_v42 = vmul.f32 1.442695, %v3135_v61  ;;  %v3137_v61 = vsub.f32 %v13747_v14, %v10281_v25 }
 0x5ac   : > { %3638 = vperm.xlu2 %7150, %v10267_v56   ;;  %13725 = vst [vmem:[#allocation174_spill] sm:$0xff] %v10345_v0  ;;  %v10348_v44 = vpop.eup %7209  ;;  %7221 = vpow2.f32 %v3280_v36  ;;  %v3154_v36 = vsub.f32 %v13739_v2, %v10374_v31  ;;  %v3138_v2 = vsub.f32 %v13746_v6, %v10281_v25  ;;  %v13753_v14 = vld [vmem:[#allocation132_spill] sm:$0xff] }
 0x5ad   : > { %3635 = vperm.xlu0 %7149, %v10270_v43   ;;  %13726 = vst [vmem:[#allocation178_spill] sm:$0xff] %v10348_v44  ;;  %v10358_v5 = vpop.eup %7211  ;;  %7223 = vpow2.f32 %v3326_v20 }
 0x5ae   : > { %13730 = vst [vmem:[#allocation185_spill] sm:$0xff] %v10358_v5  ;;  %v10360_v37 = vpop.eup %7213  ;;  %7225 = vpow2.f32 %v3288_v10  ;;  %v3332_v28 = vmul.f32 1.442695, %v3154_v36  ;;  %v13745_v10 = vld [vmem:[#allocation31_spill] sm:$0xff] }
 0x5af   : > { %13731 = vst [vmem:[#allocation192_spill] sm:$0xff] %v10360_v37  ;;  %v10363_v12 = vpop.eup %7215  ;;  %7227 = vpow2.f32 %v3286_v7  ;;  %v3157_v7 = vsub.f32 %v13745_v10, %v10374_v31 }
 0x5b0   : > { %13732 = vst [vmem:[#allocation176_spill] sm:$0xff] %v10363_v12  ;;  %v10376_v55 = vpop.eup %7217  ;;  %7229 = vpow2.f32 %v3332_v28  ;;  %v3298_v28 = vmul.f32 1.442695, %v3137_v61  ;;  %v3140_v61 = vsub.f32 %v13753_v14, %v10281_v25  ;;  %v13759_v14 = vld [vmem:[#allocation135_spill] sm:$0xff] }
 0x5b1   : > { %13736 = vst [vmem:[#allocation197_spill] sm:$0xff] %v10376_v55  ;;  %v10378_v35 = vpop.eup %7219  ;;  %7231 = vpow2.f32 %v3294_v42  ;;  %v3338_v9 = vmul.f32 1.442695, %v3157_v7  ;;  %v13751_v42 = vld [vmem:[#allocation34_spill] sm:$0xff]  ;;  %v13752_v7 = vld [vmem:[#allocation128_spill] sm:$0xff] }
 0x5b2   : > { %13737 = vst [vmem:[#allocation194_spill] sm:$0xff] %v10378_v35  ;;  %v10381_v45 = vpop.eup %7221  ;;  %v3141_v6 = vsub.f32 %v13752_v7, %v10281_v25 }
 0x5b3   : > { %3695 = vperm.xlu1 %7148, %v10283_v19   ;;  %13738 = vst [vmem:[#allocation187_spill] sm:$0xff] %v10381_v45  ;;  %v3292_v19 = vmul.f32 1.442695, %v3134_v34  ;;  %v3300_v34 = vmul.f32 1.442695, %v3138_v2 }
 0x5b4   : > { %3644 = vperm.xlu2 %7150, %v10285_v4  }
 0x5b5   : > { %3641 = vperm.xlu0 %7149, %v10288_v33   ;;  %7233 = vpow2.f32 %v3292_v19  ;;  %v3160_v19 = vsub.f32 %v13751_v42, %v10374_v31 }
 0x5b6   : > { %7235 = vpow2.f32 %v3338_v9  ;;  %v3304_v9 = vmul.f32 1.442695, %v3140_v61  ;;  %v3143_v61 = vsub.f32 %v13759_v14, %v10281_v25 }
 0x5b7   : > { %7237 = vpow2.f32 %v3300_v34  ;;  %v13757_v34 = vld [vmem:[#allocation37_spill] sm:$0xff] }
 0x5b8   : > { %7239 = vpow2.f32 %v3298_v28  ;;  %v3163_v28 = vsub.f32 %v13757_v34, %v10374_v31 }
 0x5bb   : > { %3704 = vperm.xlu1 %7148, %v10298_v62   ;;  %v10391_v62 = vpop.eup %7223 }
 0x5bc   : > { %3653 = vperm.xlu2 %7150, %v10300_v63   ;;  %13742 = vst [vmem:[#allocation177_spill] sm:$0xff] %v10391_v62  ;;  %v10393_v46 = vpop.eup %7225 }
 0x5bd   : > { %3650 = vperm.xlu0 %7149, %v10303_v23   ;;  %13743 = vst [vmem:[#allocation184_spill] sm:$0xff] %v10393_v46  ;;  %v10396_v20 = vpop.eup %7227 }
 0x5be   : > { %13744 = vst [vmem:[#allocation166_spill] sm:$0xff] %v10396_v20  ;;  %v10408_v60 = vpop.eup %7229 }
 0x5bf   : > { %13748 = vst [vmem:[#allocation179_spill] sm:$0xff] %v10408_v60 }
 0x5c3   : > { %3713 = vperm.xlu1 %7148, %v10313_v8  }
 0x5c4   : > { %3659 = vperm.xlu2 %7150, %v10315_v18  }
 0x5c5   : > { %3656 = vperm.xlu0 %7149, %v10318_v1  }
 0x5cb   : > { %3722 = vperm.xlu1 %7148, %v10328_v11  }
 0x5cc   : > { %3665 = vperm.xlu2 %7150, %v10330_v38  }
 0x5cd   : > { %3662 = vperm.xlu0 %7149, %v10333_v13   ;;  %v3306_v13 = vmul.f32 1.442695, %v3141_v6 }
 0x5d3   : > { %3731 = vperm.xlu1 %7148, %v10343_v41  }
 0x5d4   : > { %3674 = vperm.xlu2 %7150, %v10345_v0  }
 0x5d5   : > { %3671 = vperm.xlu0 %7149, %v10348_v44  }
 0x5db   : > { %3740 = vperm.xlu1 %7148, %v10358_v5  }
 0x5dc   : > { %3683 = vperm.xlu2 %7150, %v10360_v37  }
 0x5dd   : > { %3680 = vperm.xlu0 %7149, %v10363_v12  }
 0x5e3   : > { %3749 = vperm.xlu1 %7148, %v10376_v55  }
 0x5e4   : > { %3692 = vperm.xlu2 %7150, %v10378_v35  }
 0x5e5   : > { %3689 = vperm.xlu0 %7149, %v10381_v45  }
 0x5eb   : > { %3758 = vperm.xlu1 %7148, %v10391_v62   ;;  %v3155_v62 = vsub.f32 %v13785_v16, %v10374_v31 }
 0x5ec   : > { %3701 = vperm.xlu2 %7150, %v10393_v46   ;;  %v10410_v46 = vpop.eup %7231 }
 0x5ed   : > { %3698 = vperm.xlu0 %7149, %v10396_v20   ;;  %13749 = vst [vmem:[#allocation193_spill] sm:$0xff] %v10410_v46  ;;  %v10413_v10 = vpop.eup %7233 }
 0x5ee   : > { %v10404_v36 = vpop.permute.xlu2 %3620  ;;  %13750 = vst [vmem:[#allocation199_spill] sm:$0xff] %v10413_v10  ;;  %v10425_v35 = vpop.eup %7235 }
 0x5ef   : > { %13754 = vst [vmem:[#allocation196_spill] sm:$0xff] %v10425_v35 }
 0x5f3   : > { %3767 = vperm.xlu1 %7148, %v10408_v60   ;;  %v3344_v60 = vmul.f32 1.442695, %v3160_v19  ;;  %v13758_v19 = vld [vmem:[#allocation131_spill] sm:$0xff] }
 0x5f4   : > { %3710 = vperm.xlu2 %7150, %v10410_v46   ;;  %v10427_v46 = vpop.eup %7237  ;;  %v3144_v7 = vsub.f32 %v13758_v19, %v10281_v25 }
 0x5f5   : > { %3707 = vperm.xlu0 %7149, %v10413_v10   ;;  %13755 = vst [vmem:[#allocation181_spill] sm:$0xff] %v10427_v46  ;;  %v10430_v42 = vpop.eup %7239  ;;  %7241 = vpow2.f32 %v3344_v60  ;;  %v3310_v60 = vmul.f32 1.442695, %v3143_v61  ;;  %v13765_v61 = vld [vmem:[#allocation24_spill] sm:$0xff] }
 0x5f6   : > { %v10421_v2 = vpop.permute.xlu2 %3626  ;;  %13756 = vst [vmem:[#allocation190_spill] sm:$0xff] %v10430_v42  ;;  %7243 = vpow2.f32 %v3306_v13  ;;  %v3312_v63 = vmul.f32 1.442695, %v3144_v7  ;;  %v13763_v13 = vld [vmem:[#allocation40_spill] sm:$0xff] }
 0x5f7   : > { %7245 = vpow2.f32 %v3304_v9  ;;  %v3166_v9 = vsub.f32 %v13763_v13, %v10374_v31 }
 0x5f9   : > { %v3356_v13 = vmul.f32 1.442695, %v3166_v9  ;;  %v13770_v9 = vld [vmem:[#allocation27_spill] sm:$0xff] }
 0x5fb   : > { %3776 = vperm.xlu1 %7148, %v10425_v35   ;;  %v3350_v35 = vmul.f32 1.442695, %v3163_v28  ;;  %v10442_v37 = vpop.eup %7241  ;;  %v13764_v28 = vld [vmem:[#allocation134_spill] sm:$0xff] }
 0x5fc   : > { %3719 = vperm.xlu2 %7150, %v10427_v46   ;;  %13760 = vst [vmem:[#allocation94_spill] sm:$0xff] %v10442_v37  ;;  %v10444_v46 = vpop.eup %7243  ;;  %v3147_v7 = vsub.f32 %v13764_v28, %v10281_v25 }
 0x5fd   : > { %3716 = vperm.xlu0 %7149, %v10430_v42   ;;  %13761 = vst [vmem:[#allocation195_spill] sm:$0xff] %v10444_v46  ;;  %v10447_v34 = vpop.eup %7245  ;;  %7247 = vpow2.f32 %v3350_v35  ;;  %v10464_v35 = vperm.slane %v10200_v58, 4 }
 0x5fe   : > { %v10438_v6 = vpop.permute.xlu2 %3632  ;;  %13762 = vst [vmem:[#allocation188_spill] sm:$0xff] %v10447_v34  ;;  %7249 = vpow2.f32 %v3312_v63 }
 0x5ff   : > { %7251 = vpow2.f32 %v3310_v60  ;;  %v13769_v60 = vld [vmem:[#allocation43_spill] sm:$0xff] }
 0x600   : > { %7253 = vpow2.f32 %v3356_v13 }
 0x603   : > { %3785 = vperm.xlu1 %7148, %v10442_v37   ;;  %v3146_v37 = vsub.f32 %v13765_v61, %v10281_v25  ;;  %v3169_v61 = vsub.f32 %v13769_v60, %v10464_v35 }
 0x604   : > { %3728 = vperm.xlu2 %7150, %v10444_v46   ;;  %v3318_v46 = vmul.f32 1.442695, %v3147_v7 }
 0x605   : > { %3725 = vperm.xlu0 %7149, %v10447_v34   ;;  %v10453_v19 = vpop.permute.xlu1 %3647  ;;  %v10466_v34 = vpop.eup %7247  ;;  %v3316_v0 = vmul.f32 1.442695, %v3146_v37  ;;  %v3150_v37 = vsub.f32 %v13770_v9, %v10281_v25  ;;  %v3362_v13 = vmul.f32 1.442695, %v3169_v61 }
 0x606   : > { %v10457_v14 = vpop.permute.xlu2 %3638  ;;  %13766 = vst [vmem:[#allocation180_spill] sm:$0xff] %v10466_v34  ;;  %v10468_v63 = vpop.eup %7249  ;;  %7255 = vpow2.f32 %v3318_v46 }
 0x607   : > { %v10461_v4 = vpop.permute.xlu0 %3617  ;;  %13767 = vst [vmem:[#allocation204_spill] sm:$0xff] %v10468_v63  ;;  %v10471_v28 = vpop.eup %7251  ;;  %7257 = vpow2.f32 %v3316_v0  ;;  %v13775_v0 = vld [vmem:[#allocation46_spill] sm:$0xff] }
 0x608   : > { %13768 = vst [vmem:[#allocation191_spill] sm:$0xff] %v10471_v28  ;;  %v10487_v23 = vpop.eup %7253  ;;  %7259 = vpow2.f32 %v3362_v13  ;;  %v3172_v9 = vsub.f32 %v13775_v0, %v10464_v35 }
 0x609   : > { %13772 = vst [vmem:[#allocation198_spill] sm:$0xff] %v10487_v23 }
 0x60a   : > { %v3368_v13 = vmul.f32 1.442695, %v3172_v9  ;;  %v13783_v9 = vld [vmem:[#allocation33_spill] sm:$0xff] }
 0x60b   : > { %3794 = vperm.xlu1 %7148, %v10466_v34   ;;  %v13771_v34 = vld [vmem:[#allocation26_spill] sm:$0xff] }
 0x60c   : > { %3737 = vperm.xlu2 %7150, %v10468_v63   ;;  %v3149_v18 = vsub.f32 %v13771_v34, %v10281_v25  ;;  %v3324_v63 = vmul.f32 1.442695, %v3150_v37  ;;  %v13776_v34 = vld [vmem:[#allocation30_spill] sm:$0xff]  ;;  %v13778_v37 = vld [vmem:[#allocation29_spill] sm:$0xff] }
 0x60d   : > { %3734 = vperm.xlu0 %7149, %v10471_v28   ;;  %v10477_v43 = vpop.permute.xlu1 %3668  ;;  %v10489_v28 = vpop.eup %7255 }
 0x60e   : > { %v10481_v7 = vpop.permute.xlu2 %3644  ;;  %v3322_v60 = vmul.f32 1.442695, %v3149_v18  ;;  %13773 = vst [vmem:[#allocation182_spill] sm:$0xff] %v10489_v28  ;;  %v10492_v46 = vpop.eup %7257  ;;  %7261 = vpow2.f32 %v3324_v63  ;;  %v3153_v18 = vsub.f32 %v13776_v34, %v10374_v31 }
 0x60f   : > { %v10485_v17 = vpop.permute.xlu0 %3623  ;;  %13774 = vst [vmem:[#allocation136_spill] sm:$0xff] %v10492_v46  ;;  %v10508_v39 = vpop.eup %7259 }
 0x610   : > { %7263 = vpow2.f32 %v3322_v60  ;;  %13779 = vst [vmem:[#allocation97_spill] sm:$0xff] %v10508_v39  ;;  %v13782_v60 = vld [vmem:[#allocation49_spill] sm:$0xff] }
 0x611   : > { %7265 = vpow2.f32 %v3368_v13  ;;  %v3175_v34 = vsub.f32 %v13782_v60, %v10464_v35  ;;  %v3334_v60 = vmul.f32 1.442695, %v3155_v62 }
 0x613   : > { %3803 = vperm.xlu1 %7148, %v10487_v23   ;;  %v3152_v23 = vsub.f32 %v13778_v37, %v10374_v31  ;;  %v3374_v13 = vmul.f32 1.442695, %v3175_v34  ;;  %v13791_v34 = vld [vmem:[#allocation36_spill] sm:$0xff] }
 0x614   : > { %3746 = vperm.xlu2 %7150, %v10489_v28   ;;  %v3330_v28 = vmul.f32 1.442695, %v3153_v18  ;;  %v3159_v62 = vsub.f32 %v13791_v34, %v10374_v31 }
 0x615   : > { %3743 = vperm.xlu0 %7149, %v10492_v46   ;;  %v10498_v25 = vpop.permute.xlu1 %3677  ;;  %v3328_v0 = vmul.f32 1.442695, %v3152_v23  ;;  %v10510_v46 = vpop.eup %7261  ;;  %v3156_v23 = vsub.f32 %v13783_v9, %v10374_v31 }
 0x616   : > { %v10502_v61 = vpop.permute.xlu2 %3653  ;;  %13780 = vst [vmem:[#allocation96_spill] sm:$0xff] %v10510_v46  ;;  %v10513_v63 = vpop.eup %7263  ;;  %7267 = vpow2.f32 %v3330_v28  ;;  %v3342_v10 = vmul.f32 1.442695, %v3159_v62 }
 0x617   : > { %13777 = vst [vmem:[#allocation104_spill] sm:$0xff] %v10502_v61  ;;  %v10506_v33 = vpop.permute.xlu0 %3629  ;;  %7269 = vpow2.f32 %v3328_v0  ;;  %v10529_v5 = vpop.eup %7265  ;;  %v13789_v0 = vld [vmem:[#allocation51_spill] sm:$0xff] }
 0x618   : > { %13781 = vst [vmem:[#allocation115_spill] sm:$0xff] %v10513_v63  ;;  %7271 = vpow2.f32 %v3374_v13  ;;  %v3178_v9 = vsub.f32 %v13789_v0, %v10464_v35 }
 0x619   : > { %13786 = vst [vmem:[#allocation95_spill] sm:$0xff] %v10529_v5 }
 0x61a   : > { %v3380_v13 = vmul.f32 1.442695, %v3178_v9  ;;  %v13798_v9 = vld [vmem:[#allocation39_spill] sm:$0xff] }
 0x61b   : > { %3812 = vperm.xlu1 %7148, %v10508_v39  }
 0x61c   : > { %3755 = vperm.xlu2 %7150, %v10510_v46   ;;  %v3336_v46 = vmul.f32 1.442695, %v3156_v23 }
 0x61d   : > { %3752 = vperm.xlu0 %7149, %v10513_v63   ;;  %v10519_v37 = vpop.permute.xlu1 %3686  ;;  %v10531_v63 = vpop.eup %7267 }
 0x61e   : > { %v10523_v18 = vpop.permute.xlu2 %3659  ;;  %13787 = vst [vmem:[#allocation118_spill] sm:$0xff] %v10531_v63  ;;  %v10534_v28 = vpop.eup %7269  ;;  %7273 = vpow2.f32 %v3336_v46 }
 0x61f   : > { %13784 = vst [vmem:[#allocation98_spill] sm:$0xff] %v10523_v18  ;;  %v10527_v55 = vpop.permute.xlu0 %3635  ;;  %7275 = vpow2.f32 %v3334_v60  ;;  %v10550_v20 = vpop.eup %7271  ;;  %v13796_v60 = vld [vmem:[#allocation54_spill] sm:$0xff] }
 0x620   : > { %13788 = vst [vmem:[#allocation99_spill] sm:$0xff] %v10534_v28  ;;  %7277 = vpow2.f32 %v3380_v13  ;;  %v3181_v34 = vsub.f32 %v13796_v60, %v10464_v35  ;;  %v10572_v13 = vperm.slane %v10200_v58, 5 }
 0x621   : > { %13793 = vst [vmem:[#allocation121_spill] sm:$0xff] %v10550_v20  ;;  %7279 = vpow2.f32 %v3342_v10 }
 0x622   : > { %v3386_v60 = vmul.f32 1.442695, %v3181_v34  ;;  %v13804_v34 = vld [vmem:[#allocation42_spill] sm:$0xff] }
 0x623   : > { %3821 = vperm.xlu1 %7148, %v10529_v5   ;;  %v13792_v5 = vld [vmem:[#allocation35_spill] sm:$0xff] }
 0x624   : > { %3764 = vperm.xlu2 %7150, %v10531_v63   ;;  %v3158_v41 = vsub.f32 %v13792_v5, %v10374_v31  ;;  %v10552_v45 = vpop.eup %7273 }
 0x625   : > { %3761 = vperm.xlu0 %7149, %v10534_v28   ;;  %v10540_v16 = vpop.permute.xlu1 %3695  ;;  %13794 = vst [vmem:[#allocation101_spill] sm:$0xff] %v10552_v45  ;;  %v10555_v46 = vpop.eup %7275 }
 0x626   : > { %13790 = vst [vmem:[#allocation100_spill] sm:$0xff] %v10540_v16  ;;  %v10544_v23 = vpop.permute.xlu2 %3665  ;;  %v3340_v0 = vmul.f32 1.442695, %v3158_v41  ;;  %v3162_v41 = vsub.f32 %v13798_v9, %v10374_v31 }
 0x627   : > { %v10548_v11 = vpop.permute.xlu0 %3641  ;;  %13795 = vst [vmem:[#allocation103_spill] sm:$0xff] %v10555_v46 }
 0x628   : > { %7281 = vpow2.f32 %v3340_v0 }
 0x629   : > { %7283 = vpow2.f32 %v3386_v60 }
 0x62b   : > { %3830 = vperm.xlu1 %7148, %v10550_v20   ;;  %v13799_v20 = vld [vmem:[#allocation38_spill] sm:$0xff] }
 0x62c   : > { %3773 = vperm.xlu2 %7150, %v10552_v45   ;;  %v3161_v12 = vsub.f32 %v13799_v20, %v10374_v31  ;;  %v3348_v45 = vmul.f32 1.442695, %v3162_v41  ;;  %v13803_v20 = vld [vmem:[#allocation154_spill] sm:$0xff] }
 0x62d   : > { %3770 = vperm.xlu0 %7149, %v10555_v46   ;;  %v10561_v5 = vpop.permute.xlu1 %3704  ;;  %v10574_v46 = vpop.eup %7277  ;;  %v3184_v0 = vsub.f32 %v13803_v20, %v10572_v13 }
 0x62e   : > { %13797 = vst [vmem:[#allocation124_spill] sm:$0xff] %v10561_v5  ;;  %v10565_v62 = vpop.permute.xlu2 %3674  ;;  %v3346_v1 = vmul.f32 1.442695, %v3161_v12  ;;  %v10576_v10 = vpop.eup %7279  ;;  %7285 = vpow2.f32 %v3348_v45  ;;  %v3165_v12 = vsub.f32 %v13804_v34, %v10374_v31 }
 0x62f   : > { %v10569_v44 = vpop.permute.xlu0 %3650  ;;  %13800 = vst [vmem:[#allocation105_spill] sm:$0xff] %v10574_v46  ;;  %v10579_v9 = vpop.eup %7281  ;;  %v3392_v60 = vmul.f32 1.442695, %v3184_v0  ;;  %v13811_v0 = vld [vmem:[#allocation45_spill] sm:$0xff] }
 0x630   : > { %13801 = vst [vmem:[#allocation102_spill] sm:$0xff] %v10576_v10  ;;  %7287 = vpow2.f32 %v3346_v1  ;;  %v10595_v28 = vpop.eup %7283  ;;  %v13810_v1 = vld [vmem:[#allocation158_spill] sm:$0xff] }
 0x631   : > { %13802 = vst [vmem:[#allocation127_spill] sm:$0xff] %v10579_v9  ;;  %7289 = vpow2.f32 %v3392_v60  ;;  %v3187_v34 = vsub.f32 %v13810_v1, %v10572_v13 }
 0x632   : > { %13807 = vst [vmem:[#allocation108_spill] sm:$0xff] %v10595_v28 }
 0x633   : > { %3839 = vperm.xlu1 %7148, %v10574_v46   ;;  %v13805_v46 = vld [vmem:[#allocation41_spill] sm:$0xff]  ;;  %v3398_v60 = vmul.f32 1.442695, %v3187_v34 }
 0x634   : > { %3782 = vperm.xlu2 %7150, %v10576_v10   ;;  %v3164_v56 = vsub.f32 %v13805_v46, %v10374_v31  ;;  %v3354_v10 = vmul.f32 1.442695, %v3165_v12 }
 0x635   : > { %3779 = vperm.xlu0 %7149, %v10579_v9   ;;  %v10585_v49 = vpop.permute.xlu1 %3713  ;;  %v10597_v9 = vpop.eup %7285 }
 0x636   : > { %v10589_v41 = vpop.permute.xlu2 %3683  ;;  %v3352_v20 = vmul.f32 1.442695, %v3164_v56  ;;  %13808 = vst [vmem:[#allocation130_spill] sm:$0xff] %v10597_v9  ;;  %v10600_v45 = vpop.eup %7287  ;;  %7291 = vpow2.f32 %v3354_v10  ;;  %v3168_v56 = vsub.f32 %v13811_v0, %v10464_v35 }
 0x637   : > { %v10593_v59 = vpop.permute.xlu0 %3656  ;;  %13809 = vst [vmem:[#allocation112_spill] sm:$0xff] %v10600_v45  ;;  %v10616_v39 = vpop.eup %7289 }
 0x638   : > { %13806 = vst [vmem:[#allocation106_spill] sm:$0xff] %v10593_v59  ;;  %7293 = vpow2.f32 %v3352_v20  ;;  %v13817_v20 = vld [vmem:[#allocation56_spill] sm:$0xff] }
 0x639   : > { %13814 = vst [vmem:[#allocation133_spill] sm:$0xff] %v10616_v39  ;;  %7295 = vpow2.f32 %v3398_v60  ;;  %v3190_v0 = vsub.f32 %v13817_v20, %v10572_v13 }
 0x63b   : > { %3848 = vperm.xlu1 %7148, %v10595_v28   ;;  %v13812_v28 = vld [vmem:[#allocation44_spill] sm:$0xff]  ;;  %v3404_v60 = vmul.f32 1.442695, %v3190_v0  ;;  %v13826_v0 = vld [vmem:[#allocation47_spill] sm:$0xff] }
 0x63c   : > { %3791 = vperm.xlu2 %7150, %v10597_v9   ;;  %v3167_v8 = vsub.f32 %v13812_v28, %v10374_v31  ;;  %v3360_v9 = vmul.f32 1.442695, %v3168_v56  ;;  %v13818_v28 = vld [vmem:[#allocation48_spill] sm:$0xff]  ;;  %v13820_v56 = vld [vmem:[#allocation141_spill] sm:$0xff] }
 0x63d   : > { %3788 = vperm.xlu0 %7149, %v10600_v45   ;;  %v10606_v46 = vpop.permute.xlu1 %3722  ;;  %v10618_v45 = vpop.eup %7291  ;;  %v3170_v21 = vsub.f32 %v13820_v56, %v10464_v35 }
 0x63e   : > { %v10610_v12 = vpop.permute.xlu2 %3692  ;;  %v3358_v1 = vmul.f32 1.442695, %v3167_v8  ;;  %13815 = vst [vmem:[#allocation109_spill] sm:$0xff] %v10618_v45  ;;  %v10621_v10 = vpop.eup %7293  ;;  %7297 = vpow2.f32 %v3360_v9  ;;  %v3171_v8 = vsub.f32 %v13818_v28, %v10464_v35 }
 0x63f   : > { %v10614_v38 = vpop.permute.xlu0 %3662  ;;  %13816 = vst [vmem:[#allocation111_spill] sm:$0xff] %v10621_v10  ;;  %v10637_v42 = vpop.eup %7295  ;;  %v3364_v20 = vmul.f32 1.442695, %v3170_v21  ;;  %v3174_v21 = vsub.f32 %v13826_v0, %v10464_v35 }
 0x640   : > { %13813 = vst [vmem:[#allocation107_spill] sm:$0xff] %v10614_v38  ;;  %7299 = vpow2.f32 %v3358_v1  ;;  %v13824_v1 = vld [vmem:[#allocation57_spill] sm:$0xff] }
 0x641   : > { %13821 = vst [vmem:[#allocation110_spill] sm:$0xff] %v10637_v42  ;;  %7301 = vpow2.f32 %v3404_v60  ;;  %v3193_v28 = vsub.f32 %v13824_v1, %v10572_v13 }
 0x643   : > { %3857 = vperm.xlu1 %7148, %v10616_v39   ;;  %v3410_v60 = vmul.f32 1.442695, %v3193_v28 }
 0x644   : > { %3800 = vperm.xlu2 %7150, %v10618_v45   ;;  %v3366_v45 = vmul.f32 1.442695, %v3171_v8 }
 0x645   : > { %3797 = vperm.xlu0 %7149, %v10621_v10   ;;  %v10627_v31 = vpop.permute.xlu1 %3731  ;;  %v10639_v10 = vpop.eup %7297 }
 0x646   : > { %v10631_v34 = vpop.permute.xlu2 %3701  ;;  %13822 = vst [vmem:[#allocation114_spill] sm:$0xff] %v10639_v10  ;;  %v10642_v9 = vpop.eup %7299  ;;  %7303 = vpow2.f32 %v3366_v45 }
 0x647   : > { %13819 = vst [vmem:[#allocation21_spill] sm:$0xff] %v10631_v34  ;;  %v10635_v63 = vpop.permute.xlu0 %3671  ;;  %7305 = vpow2.f32 %v3364_v20  ;;  %v10658_v48 = vpop.eup %7301  ;;  %v13832_v20 = vld [vmem:[#allocation59_spill] sm:$0xff] }
 0x648   : > { %13823 = vst [vmem:[#allocation22_spill] sm:$0xff] %v10642_v9  ;;  %7307 = vpow2.f32 %v3410_v60  ;;  %v3196_v0 = vsub.f32 %v13832_v20, %v10572_v13 }
 0x649   : > { %13829 = vst [vmem:[#allocation23_spill] sm:$0xff] %v10658_v48 }
 0x64a   : > { %v3416_v60 = vmul.f32 1.442695, %v3196_v0 }
 0x64b   : > { %3866 = vperm.xlu1 %7148, %v10637_v42   ;;  %v13828_v42 = vld [vmem:[#allocation50_spill] sm:$0xff] }
 0x64c   : > { %3809 = vperm.xlu2 %7150, %v10639_v10   ;;  %v3173_v26 = vsub.f32 %v13828_v42, %v10464_v35  ;;  %v3372_v10 = vmul.f32 1.442695, %v3174_v21  ;;  %v13833_v42 = vld [vmem:[#allocation53_spill] sm:$0xff] }
 0x64d   : > { %3806 = vperm.xlu0 %7149, %v10642_v9   ;;  %v10648_v56 = vpop.permute.xlu1 %3740  ;;  %v10660_v9 = vpop.eup %7303  ;;  %v3177_v28 = vsub.f32 %v13833_v42, %v10464_v35 }
 0x64e   : > { %13825 = vst [vmem:[#allocation113_spill] sm:$0xff] %v10648_v56  ;;  %v10652_v8 = vpop.permute.xlu2 %3710  ;;  %v3370_v1 = vmul.f32 1.442695, %v3173_v26  ;;  %v10663_v45 = vpop.eup %7305  ;;  %7309 = vpow2.f32 %v3372_v10 }
 0x64f   : > { %13827 = vst [vmem:[#allocation117_spill] sm:$0xff] %v10652_v8  ;;  %v10656_v39 = vpop.permute.xlu0 %3680  ;;  %v10679_v52 = vpop.eup %7307 }
 0x650   : > { %13830 = vst [vmem:[#allocation116_spill] sm:$0xff] %v10660_v9  ;;  %7311 = vpow2.f32 %v3370_v1  ;;  %v13839_v1 = vld [vmem:[#allocation62_spill] sm:$0xff] }
 0x651   : > { %13831 = vst [vmem:[#allocation120_spill] sm:$0xff] %v10663_v45  ;;  %7313 = vpow2.f32 %v3416_v60  ;;  %v3199_v42 = vsub.f32 %v13839_v1, %v10572_v13 }
 0x652   : > { %13836 = vst [vmem:[#allocation119_spill] sm:$0xff] %v10679_v52 }
 0x653   : > { %3875 = vperm.xlu1 %7148, %v10658_v48   ;;  %v13835_v48 = vld [vmem:[#allocation144_spill] sm:$0xff]  ;;  %v3422_v1 = vmul.f32 1.442695, %v3199_v42  ;;  %v13848_v42 = vld [vmem:[#allocation55_spill] sm:$0xff] }
 0x654   : > { %3818 = vperm.xlu2 %7150, %v10660_v9   ;;  %v3176_v38 = vsub.f32 %v13835_v48, %v10464_v35  ;;  %v3378_v9 = vmul.f32 1.442695, %v3177_v28  ;;  %v13840_v48 = vld [vmem:[#allocation52_spill] sm:$0xff] }
 0x655   : > { %3815 = vperm.xlu0 %7149, %v10663_v45   ;;  %v10671_v21 = vpop.permute.xlu1 %3749  ;;  %v10681_v45 = vpop.eup %7309  ;;  %v3180_v0 = vsub.f32 %v13840_v48, %v10464_v35  ;;  %v13847_v48 = vld [vmem:[#allocation65_spill] sm:$0xff] }
 0x656   : > { %13834 = vst [vmem:[#allocation25_spill] sm:$0xff] %v10671_v21  ;;  %v10673_v26 = vpop.permute.xlu2 %3719  ;;  %v3376_v20 = vmul.f32 1.442695, %v3176_v38  ;;  %v10684_v10 = vpop.eup %7311  ;;  %7315 = vpow2.f32 %v3378_v9  ;;  %v13841_v38 = vld [vmem:[#allocation147_spill] sm:$0xff] }
 0x657   : > { %v10677_v8 = vpop.permute.xlu0 %3689  ;;  %13837 = vst [vmem:[#allocation123_spill] sm:$0xff] %v10681_v45  ;;  %v3384_v5 = vmul.f32 1.442695, %v3180_v0  ;;  %v3183_v0 = vsub.f32 %v13848_v42, %v10464_v35 }
 0x658   : > { %13838 = vst [vmem:[#allocation28_spill] sm:$0xff] %v10684_v10  ;;  %7317 = vpow2.f32 %v3376_v20 }
 0x659   : > { %7319 = vpow2.f32 %v3422_v1 }
 0x65a   : > { %7321 = vpow2.f32 %v3384_v5 }
 0x65b   : > { %3884 = vperm.xlu1 %7148, %v10679_v52   ;;  %v3179_v52 = vsub.f32 %v13841_v38, %v10464_v35 }
 0x65c   : > { %3827 = vperm.xlu2 %7150, %v10681_v45   ;;  %v10699_v45 = vperm.slane %v10200_v58, 6 }
 0x65d   : > { %3824 = vperm.xlu0 %7149, %v10684_v10   ;;  %v10701_v60 = vpop.permute.xlu1 %3758  ;;  %v10703_v10 = vpop.eup %7313  ;;  %v3382_v9 = vmul.f32 1.442695, %v3179_v52  ;;  %v13850_v52 = vld [vmem:[#allocation150_spill] sm:$0xff] }
 0x65e   : > { %v10692_v28 = vpop.permute.xlu2 %3728  ;;  %13843 = vst [vmem:[#allocation126_spill] sm:$0xff] %v10701_v60  ;;  %v10705_v18 = vpop.eup %7315  ;;  %v3202_v38 = vsub.f32 %v13847_v48, %v10699_v45 }
 0x65f   : > { %v10696_v21 = vpop.permute.xlu0 %3698  ;;  %13844 = vst [vmem:[#allocation31_spill] sm:$0xff] %v10703_v10  ;;  %v10708_v20 = vpop.eup %7317  ;;  %7323 = vpow2.f32 %v3382_v9 }
 0x660   : > { %13842 = vst [vmem:[#allocation122_spill] sm:$0xff] %v10696_v21  ;;  %v3428_v34 = vmul.f32 1.442695, %v3202_v38  ;;  %v10722_v1 = vpop.eup %7319  ;;  %v13856_v38 = vld [vmem:[#allocation149_spill] sm:$0xff] }
 0x661   : > { %13845 = vst [vmem:[#allocation125_spill] sm:$0xff] %v10705_v18  ;;  %v3186_v42 = vsub.f32 %v13856_v38, %v10572_v13 }
 0x662   : > { %13846 = vst [vmem:[#allocation129_spill] sm:$0xff] %v10708_v20  ;;  %7325 = vpow2.f32 %v3428_v34 }
 0x663   : > { %3893 = vperm.xlu1 %7148, %v10703_v10   ;;  %v3182_v10 = vsub.f32 %v13850_v52, %v10464_v35  ;;  %13852 = vst [vmem:[#allocation132_spill] sm:$0xff] %v10722_v1  ;;  %v13855_v35 = vld [vmem:[#allocation68_spill] sm:$0xff] }
 0x664   : > { %3836 = vperm.xlu2 %7150, %v10705_v18   ;;  %v3390_v18 = vmul.f32 1.442695, %v3183_v0  ;;  %v3205_v9 = vsub.f32 %v13855_v35, %v10699_v45 }
 0x665   : > { %3833 = vperm.xlu0 %7149, %v10708_v20   ;;  %v10724_v61 = vpop.permute.xlu1 %3767  ;;  %v3388_v48 = vmul.f32 1.442695, %v3182_v10  ;;  %v10726_v20 = vpop.eup %7321  ;;  %v13858_v10 = vld [vmem:[#allocation153_spill] sm:$0xff] }
 0x666   : > { %v10716_v60 = vpop.permute.xlu2 %3737  ;;  %13853 = vst [vmem:[#allocation37_spill] sm:$0xff] %v10726_v20  ;;  %v10729_v5 = vpop.eup %7323  ;;  %7327 = vpow2.f32 %v3390_v18  ;;  %v3185_v52 = vsub.f32 %v13858_v10, %v10572_v13 }
 0x667   : > { %13849 = vst [vmem:[#allocation34_spill] sm:$0xff] %v10716_v60  ;;  %v10720_v57 = vpop.permute.xlu0 %3707  ;;  %7329 = vpow2.f32 %v3388_v48  ;;  %v13863_v48 = vld [vmem:[#allocation71_spill] sm:$0xff] }
 0x668   : > { %13851 = vst [vmem:[#allocation128_spill] sm:$0xff] %v10720_v57  ;;  %v3434_v57 = vmul.f32 1.442695, %v3205_v9  ;;  %v10743_v34 = vpop.eup %7325  ;;  %v3394_v50 = vmul.f32 1.442695, %v3185_v52  ;;  %v3208_v10 = vsub.f32 %v13863_v48, %v10699_v45  ;;  %v13864_v9 = vld [vmem:[#allocation152_spill] sm:$0xff] }
 0x669   : > { %13854 = vst [vmem:[#allocation131_spill] sm:$0xff] %v10729_v5 }
 0x66a   : > { %13859 = vst [vmem:[#allocation40_spill] sm:$0xff] %v10743_v34  ;;  %7331 = vpow2.f32 %v3434_v57  ;;  %v3440_v56 = vmul.f32 1.442695, %v3208_v10 }
 0x66b   : > { %3902 = vperm.xlu1 %7148, %v10722_v1  }
 0x66c   : > { %3845 = vperm.xlu2 %7150, %v10726_v20   ;;  %v3396_v20 = vmul.f32 1.442695, %v3186_v42  ;;  %v10745_v35 = vpop.eup %7327  ;;  %v3189_v42 = vsub.f32 %v13864_v9, %v10572_v13 }
 0x66d   : > { %3842 = vperm.xlu0 %7149, %v10729_v5   ;;  %13860 = vst [vmem:[#allocation134_spill] sm:$0xff] %v10745_v35  ;;  %v10748_v18 = vpop.eup %7329  ;;  %v10750_v38 = vpop.permute.xlu1 %3776 }
 0x66e   : > { %v10737_v0 = vpop.permute.xlu2 %3746  ;;  %13861 = vst [vmem:[#allocation24_spill] sm:$0xff] %v10748_v18  ;;  %7333 = vpow2.f32 %v3396_v20 }
 0x66f   : > { %13857 = vst [vmem:[#allocation135_spill] sm:$0xff] %v10737_v0  ;;  %v10741_v1 = vpop.permute.xlu0 %3716  ;;  %7335 = vpow2.f32 %v3394_v50  ;;  %v13870_v50 = vld [vmem:[#allocation74_spill] sm:$0xff] }
 0x670   : > { %13862 = vst [vmem:[#allocation43_spill] sm:$0xff] %v10750_v38  ;;  %v10764_v57 = vpop.eup %7331  ;;  %7337 = vpow2.f32 %v3440_v56  ;;  %v3211_v9 = vsub.f32 %v13870_v50, %v10699_v45 }
 0x671   : > { %13867 = vst [vmem:[#allocation26_spill] sm:$0xff] %v10764_v57 }
 0x672   : > { %v3446_v56 = vmul.f32 1.442695, %v3211_v9 }
 0x673   : > { %3911 = vperm.xlu1 %7148, %v10743_v34   ;;  %v13866_v34 = vld [vmem:[#allocation157_spill] sm:$0xff] }
 0x674   : > { %3854 = vperm.xlu2 %7150, %v10745_v35   ;;  %v3188_v5 = vsub.f32 %v13866_v34, %v10572_v13  ;;  %v3402_v35 = vmul.f32 1.442695, %v3189_v42  ;;  %v10766_v48 = vpop.eup %7333  ;;  %v13871_v34 = vld [vmem:[#allocation156_spill] sm:$0xff] }
 0x675   : > { %3851 = vperm.xlu0 %7149, %v10748_v18   ;;  %13868 = vst [vmem:[#allocation46_spill] sm:$0xff] %v10766_v48  ;;  %v10769_v20 = vpop.eup %7335  ;;  %v3192_v10 = vsub.f32 %v13871_v34, %v10572_v13  ;;  %v10777_v42 = vpop.permute.xlu1 %3785 }
 0x676   : > { %v10758_v52 = vpop.permute.xlu2 %3755  ;;  %v3400_v59 = vmul.f32 1.442695, %v3188_v5  ;;  %13869 = vst [vmem:[#allocation30_spill] sm:$0xff] %v10769_v20  ;;  %7339 = vpow2.f32 %v3402_v35  ;;  %v10785_v30 = vpop.eup %7337 }
 0x677   : > { %13865 = vst [vmem:[#allocation27_spill] sm:$0xff] %v10758_v52  ;;  %v10762_v0 = vpop.permute.xlu0 %3725 }
 0x678   : > { %13872 = vst [vmem:[#allocation29_spill] sm:$0xff] %v10777_v42  ;;  %7341 = vpow2.f32 %v3400_v59  ;;  %v13877_v59 = vld [vmem:[#allocation77_spill] sm:$0xff] }
 0x679   : > { %13874 = vst [vmem:[#allocation49_spill] sm:$0xff] %v10785_v30  ;;  %7343 = vpow2.f32 %v3446_v56  ;;  %v3214_v34 = vsub.f32 %v13877_v59, %v10699_v45 }
 0x67b   : > { %3920 = vperm.xlu1 %7148, %v10764_v57   ;;  %v13873_v57 = vld [vmem:[#allocation58_spill] sm:$0xff]  ;;  %v3452_v59 = vmul.f32 1.442695, %v3214_v34  ;;  %v13886_v34 = vld [vmem:[#allocation64_spill] sm:$0xff] }
 0x67c   : > { %3863 = vperm.xlu2 %7150, %v10766_v48   ;;  %v3191_v18 = vsub.f32 %v13873_v57, %v10572_v13  ;;  %v3408_v48 = vmul.f32 1.442695, %v3192_v10  ;;  %v13878_v57 = vld [vmem:[#allocation61_spill] sm:$0xff] }
 0x67d   : > { %3860 = vperm.xlu0 %7149, %v10769_v20   ;;  %v10787_v20 = vpop.eup %7339  ;;  %v3195_v9 = vsub.f32 %v13878_v57, %v10572_v13  ;;  %v10807_v56 = vpop.permute.xlu1 %3794  ;;  %v13885_v57 = vld [vmem:[#allocation80_spill] sm:$0xff] }
 0x67e   : > { %v10779_v5 = vpop.permute.xlu2 %3764  ;;  %v3406_v50 = vmul.f32 1.442695, %v3191_v18  ;;  %13875 = vst [vmem:[#allocation33_spill] sm:$0xff] %v10787_v20  ;;  %v10790_v35 = vpop.eup %7341  ;;  %7345 = vpow2.f32 %v3408_v48  ;;  %v13879_v18 = vld [vmem:[#allocation60_spill] sm:$0xff] }
 0x67f   : > { %v10783_v52 = vpop.permute.xlu0 %3734  ;;  %13876 = vst [vmem:[#allocation32_spill] sm:$0xff] %v10790_v35  ;;  %v3414_v38 = vmul.f32 1.442695, %v3195_v9  ;;  %v3198_v9 = vsub.f32 %v13886_v34, %v10572_v13 }
 0x680   : > { %7347 = vpow2.f32 %v3406_v50  ;;  %13881 = vst [vmem:[#allocation36_spill] sm:$0xff] %v10807_v56 }
 0x681   : > { %7349 = vpow2.f32 %v3452_v59 }
 0x682   : > { %7351 = vpow2.f32 %v3414_v38 }
 0x683   : > { %3929 = vperm.xlu1 %7148, %v10785_v30   ;;  %v3194_v30 = vsub.f32 %v13879_v18, %v10572_v13 }
 0x684   : > { %3872 = vperm.xlu2 %7150, %v10787_v20   ;;  %v10805_v20 = vperm.slane %v10200_v58, 7 }
 0x685   : > { %3869 = vperm.xlu0 %7149, %v10790_v35   ;;  %v10809_v35 = vpop.eup %7343  ;;  %v3412_v48 = vmul.f32 1.442695, %v3194_v30  ;;  %v13888_v30 = vld [vmem:[#allocation63_spill] sm:$0xff]  ;;  %v10830_v60 = vpop.permute.xlu1 %3803 }
 0x686   : > { %v10798_v10 = vpop.permute.xlu2 %3773  ;;  %13882 = vst [vmem:[#allocation35_spill] sm:$0xff] %v10809_v35  ;;  %v10811_v16 = vpop.eup %7345  ;;  %v3217_v58 = vsub.f32 %v13885_v57, %v10805_v20 }
 0x687   : > { %v10802_v42 = vpop.permute.xlu0 %3743  ;;  %13883 = vst [vmem:[#allocation54_spill] sm:$0xff] %v10811_v16  ;;  %v10814_v50 = vpop.eup %7347  ;;  %7353 = vpow2.f32 %v3412_v48 }
 0x688   : > { %13880 = vst [vmem:[#allocation51_spill] sm:$0xff] %v10802_v42  ;;  %v3458_v42 = vmul.f32 1.442695, %v3217_v58  ;;  %v10828_v59 = vpop.eup %7349  ;;  %v13895_v58 = vld [vmem:[#allocation67_spill] sm:$0xff] }
 0x689   : > { %13884 = vst [vmem:[#allocation39_spill] sm:$0xff] %v10814_v50  ;;  %v3201_v34 = vsub.f32 %v13895_v58, %v10699_v45 }
 0x68a   : > { %13890 = vst [vmem:[#allocation42_spill] sm:$0xff] %v10828_v59  ;;  %7355 = vpow2.f32 %v3458_v42 }
 0x68b   : > { %3938 = vperm.xlu1 %7148, %v10809_v35   ;;  %v3197_v35 = vsub.f32 %v13888_v30, %v10572_v13  ;;  %13891 = vst [vmem:[#allocation41_spill] sm:$0xff] %v10830_v60  ;;  %v13894_v13 = vld [vmem:[#allocation83_spill] sm:$0xff] }
 0x68c   : > { %3881 = vperm.xlu2 %7150, %v10811_v16   ;;  %v3420_v16 = vmul.f32 1.442695, %v3198_v9  ;;  %v3220_v48 = vsub.f32 %v13894_v13, %v10805_v20 }
 0x68d   : > { %3878 = vperm.xlu0 %7149, %v10814_v50   ;;  %v3418_v57 = vmul.f32 1.442695, %v3197_v35  ;;  %v10832_v50 = vpop.eup %7351  ;;  %v13897_v35 = vld [vmem:[#allocation66_spill] sm:$0xff]  ;;  %v10856_v58 = vpop.permute.xlu1 %3812 }
 0x68e   : > { %v10822_v18 = vpop.permute.xlu2 %3782  ;;  %13892 = vst [vmem:[#allocation158_spill] sm:$0xff] %v10832_v50  ;;  %v10835_v38 = vpop.eup %7353  ;;  %7357 = vpow2.f32 %v3420_v16  ;;  %v3200_v30 = vsub.f32 %v13897_v35, %v10699_v45  ;;  %v3464_v60 = vmul.f32 1.442695, %v3220_v48  ;;  %v13903_v48 = vld [vmem:[#allocation70_spill] sm:$0xff] }
 0x68f   : > { %13887 = vst [vmem:[#allocation38_spill] sm:$0xff] %v10822_v18  ;;  %v10826_v56 = vpop.permute.xlu0 %3752  ;;  %7359 = vpow2.f32 %v3418_v57  ;;  %v13902_v57 = vld [vmem:[#allocation85_spill] sm:$0xff] }
 0x690   : > { %13889 = vst [vmem:[#allocation154_spill] sm:$0xff] %v10826_v56  ;;  %v10849_v42 = vpop.eup %7355  ;;  %v3424_v56 = vmul.f32 1.442695, %v3200_v30  ;;  %7361 = vpow2.f32 %v3464_v60  ;;  %v3223_v35 = vsub.f32 %v13902_v57, %v10805_v20 }
 0x691   : > { %13893 = vst [vmem:[#allocation45_spill] sm:$0xff] %v10835_v38 }
 0x692   : > { %13898 = vst [vmem:[#allocation56_spill] sm:$0xff] %v10849_v42 }
 0x693   : > { %3947 = vperm.xlu1 %7148, %v10828_v59   ;;  %13901 = vst [vmem:[#allocation57_spill] sm:$0xff] %v10856_v58  ;;  %v3470_v58 = vmul.f32 1.442695, %v3223_v35 }
 0x694   : > { %3890 = vperm.xlu2 %7150, %v10832_v50   ;;  %v3426_v50 = vmul.f32 1.442695, %v3201_v34  ;;  %v10851_v13 = vpop.eup %7357  ;;  %v3204_v34 = vsub.f32 %v13903_v48, %v10699_v45 }
 0x695   : > { %3887 = vperm.xlu0 %7149, %v10835_v38   ;;  %13899 = vst [vmem:[#allocation48_spill] sm:$0xff] %v10851_v13  ;;  %v10854_v16 = vpop.eup %7359  ;;  %v13905_v38 = vld [vmem:[#allocation69_spill] sm:$0xff] }
 0x696   : > { %v10843_v9 = vpop.permute.xlu2 %3791  ;;  %13900 = vst [vmem:[#allocation141_spill] sm:$0xff] %v10854_v16  ;;  %7363 = vpow2.f32 %v3426_v50  ;;  %v10870_v60 = vpop.eup %7361 }
 0x697   : > { %13896 = vst [vmem:[#allocation44_spill] sm:$0xff] %v10843_v9  ;;  %v10847_v59 = vpop.permute.xlu0 %3761  ;;  %7365 = vpow2.f32 %v3424_v56  ;;  %v13909_v56 = vld [vmem:[#allocation88_spill] sm:$0xff] }
 0x698   : > { %13906 = vst [vmem:[#allocation50_spill] sm:$0xff] %v10870_v60  ;;  %7367 = vpow2.f32 %v3470_v58  ;;  %v3226_v48 = vsub.f32 %v13909_v56, %v10805_v20 }
 0x69a   : > { %v3476_v58 = vmul.f32 1.442695, %v3226_v48 }
 0x69b   : > { %3956 = vperm.xlu1 %7148, %v10849_v42   ;;  %v3203_v42 = vsub.f32 %v13905_v38, %v10699_v45  ;;  %v13910_v38 = vld [vmem:[#allocation73_spill] sm:$0xff] }
 0x69c   : > { %3899 = vperm.xlu2 %7150, %v10851_v13   ;;  %v3432_v13 = vmul.f32 1.442695, %v3204_v34  ;;  %v10872_v57 = vpop.eup %7363  ;;  %v3207_v35 = vsub.f32 %v13910_v38, %v10699_v45  ;;  %v10883_v34 = vpop.permute.xlu1 %3821 }
 0x69d   : > { %3896 = vperm.xlu0 %7149, %v10854_v16   ;;  %v3430_v18 = vmul.f32 1.442695, %v3203_v42  ;;  %13907 = vst [vmem:[#allocation59_spill] sm:$0xff] %v10872_v57  ;;  %v10875_v50 = vpop.eup %7365 }
 0x69e   : > { %v10864_v30 = vpop.permute.xlu2 %3800  ;;  %13908 = vst [vmem:[#allocation53_spill] sm:$0xff] %v10875_v50  ;;  %7369 = vpow2.f32 %v3432_v13  ;;  %v10891_v21 = vpop.eup %7367 }
 0x69f   : > { %13904 = vst [vmem:[#allocation47_spill] sm:$0xff] %v10864_v30  ;;  %v10868_v9 = vpop.permute.xlu0 %3770  ;;  %7371 = vpow2.f32 %v3430_v18  ;;  %v13918_v18 = vld [vmem:[#allocation91_spill] sm:$0xff] }
 0x6a0   : > { %13911 = vst [vmem:[#allocation144_spill] sm:$0xff] %v10883_v34  ;;  %7373 = vpow2.f32 %v3476_v58  ;;  %v3229_v38 = vsub.f32 %v13918_v18, %v10805_v20 }
 0x6a1   : > { %13915 = vst [vmem:[#allocation147_spill] sm:$0xff] %v10891_v21 }
 0x6a2   : > { %v3482_v58 = vmul.f32 1.442695, %v3229_v38 }
 0x6a3   : > { %3965 = vperm.xlu1 %7148, %v10870_v60   ;;  %v13913_v60 = vld [vmem:[#allocation72_spill] sm:$0xff] }
 0x6a4   : > { %3908 = vperm.xlu2 %7150, %v10872_v57   ;;  %v3206_v16 = vsub.f32 %v13913_v60, %v10699_v45  ;;  %v3438_v57 = vmul.f32 1.442695, %v3207_v35  ;;  %v13919_v60 = vld [vmem:[#allocation76_spill] sm:$0xff] }
 0x6a5   : > { %3905 = vperm.xlu0 %7149, %v10875_v50   ;;  %v10893_v50 = vpop.eup %7369  ;;  %v3210_v48 = vsub.f32 %v13919_v60, %v10699_v45 }
 0x6a6   : > { %v10885_v42 = vpop.permute.xlu2 %3809  ;;  %v3436_v56 = vmul.f32 1.442695, %v3206_v16  ;;  %13916 = vst [vmem:[#allocation65_spill] sm:$0xff] %v10893_v50  ;;  %v10896_v13 = vpop.eup %7371  ;;  %7375 = vpow2.f32 %v3438_v57  ;;  %v13921_v16 = vld [vmem:[#allocation75_spill] sm:$0xff] }
 0x6a7   : > { %13912 = vst [vmem:[#allocation62_spill] sm:$0xff] %v10885_v42  ;;  %v10889_v30 = vpop.permute.xlu0 %3779  ;;  %v10910_v42 = vpop.permute.xlu1 %3830 }
 0x6a8   : > { %13914 = vst [vmem:[#allocation52_spill] sm:$0xff] %v10889_v30  ;;  %7377 = vpow2.f32 %v3436_v56  ;;  %v10912_v30 = vpop.eup %7373  ;;  %v13926_v56 = vld [vmem:[#allocation79_spill] sm:$0xff] }
 0x6a9   : > { %13917 = vst [vmem:[#allocation55_spill] sm:$0xff] %v10896_v13  ;;  %7379 = vpow2.f32 %v3482_v58  ;;  %v3213_v60 = vsub.f32 %v13926_v56, %v10699_v45 }
 0x6aa   : > { %13922 = vst [vmem:[#allocation68_spill] sm:$0xff] %v10910_v42 }
 0x6ab   : > { %3974 = vperm.xlu1 %7148, %v10891_v21   ;;  %v3209_v21 = vsub.f32 %v13921_v16, %v10699_v45  ;;  %13923 = vst [vmem:[#allocation149_spill] sm:$0xff] %v10912_v30 }
 0x6ac   : > { %3917 = vperm.xlu2 %7150, %v10893_v50   ;;  %v3444_v50 = vmul.f32 1.442695, %v3210_v48 }
 0x6ad   : > { %3914 = vperm.xlu0 %7149, %v10896_v13   ;;  %v3442_v18 = vmul.f32 1.442695, %v3209_v21  ;;  %v10914_v13 = vpop.eup %7375  ;;  %v13928_v21 = vld [vmem:[#allocation78_spill] sm:$0xff] }
 0x6ae   : > { %v10904_v35 = vpop.permute.xlu2 %3818  ;;  %13924 = vst [vmem:[#allocation153_spill] sm:$0xff] %v10914_v13  ;;  %v10917_v57 = vpop.eup %7377  ;;  %7381 = vpow2.f32 %v3444_v50  ;;  %v3212_v48 = vsub.f32 %v13928_v21, %v10699_v45  ;;  %v13936_v21 = vld [vmem:[#allocation183_spill] sm:$0xff] }
 0x6af   : > { %13920 = vst [vmem:[#allocation150_spill] sm:$0xff] %v10904_v35  ;;  %v10908_v34 = vpop.permute.xlu0 %3788  ;;  %7383 = vpow2.f32 %v3442_v18  ;;  %v10929_v35 = vpop.eup %7379  ;;  %v13934_v18 = vld [vmem:[#allocation82_spill] sm:$0xff] }
 0x6b0   : > { %13925 = vst [vmem:[#allocation71_spill] sm:$0xff] %v10917_v57  ;;  %v10931_v42 = vpop.permute.xlu1 %3839  ;;  %v3448_v58 = vmul.f32 1.442695, %v3212_v48  ;;  %v3216_v56 = vsub.f32 %v13934_v18, %v10805_v20  ;;  %v3215_v48 = vsub.f32 %v13936_v21, %v10699_v45  ;;  %v13943_v45 = vld [vmem:[#allocation84_spill] sm:$0xff] }
 0x6b1   : > { %13930 = vst [vmem:[#allocation74_spill] sm:$0xff] %v10929_v35 }
 0x6b2   : > { %13931 = vst [vmem:[#allocation156_spill] sm:$0xff] %v10931_v42 }
 0x6b3   : > { %3983 = vperm.xlu1 %7148, %v10912_v30   ;;  %v3450_v30 = vmul.f32 1.442695, %v3213_v60 }
 0x6b4   : > { %3926 = vperm.xlu2 %7150, %v10914_v13   ;;  %v10933_v13 = vpop.eup %7381 }
 0x6b5   : > { %3923 = vperm.xlu0 %7149, %v10917_v57   ;;  %13932 = vst [vmem:[#allocation58_spill] sm:$0xff] %v10933_v13  ;;  %v10936_v50 = vpop.eup %7383  ;;  %7385 = vpow2.f32 %v3450_v30  ;;  %v13941_v30 = vld [vmem:[#allocation81_spill] sm:$0xff] }
 0x6b6   : > { %v10923_v38 = vpop.permute.xlu2 %3827  ;;  %13933 = vst [vmem:[#allocation77_spill] sm:$0xff] %v10936_v50  ;;  %7387 = vpow2.f32 %v3448_v58  ;;  %v3219_v58 = vsub.f32 %v13941_v30, %v10805_v20 }
 0x6b7   : > { %13927 = vst [vmem:[#allocation152_spill] sm:$0xff] %v10923_v38  ;;  %v10927_v16 = vpop.permute.xlu0 %3797 }
 0x6b8   : > { %13929 = vst [vmem:[#allocation157_spill] sm:$0xff] %v10927_v16  ;;  %v3456_v16 = vmul.f32 1.442695, %v3216_v56  ;;  %v3218_v56 = vsub.f32 %v13943_v45, %v10805_v20 }
 0x6ba   : > { %7389 = vpow2.f32 %v3456_v16  ;;  %v13946_v16 = vld [vmem:[#allocation87_spill] sm:$0xff] }
 0x6bb   : > { %3992 = vperm.xlu1 %7148, %v10929_v35   ;;  %v3454_v35 = vmul.f32 1.442695, %v3215_v48  ;;  %v10948_v38 = vpop.eup %7385  ;;  %v3462_v48 = vmul.f32 1.442695, %v3219_v58  ;;  %v3222_v30 = vsub.f32 %v13946_v16, %v10805_v20  ;;  %v13949_v58 = vld [vmem:[#allocation86_spill] sm:$0xff] }
 0x6bc   : > { %3935 = vperm.xlu2 %7150, %v10933_v13   ;;  %13938 = vst [vmem:[#allocation80_spill] sm:$0xff] %v10948_v38  ;;  %v10950_v42 = vpop.eup %7387  ;;  %v10952_v13 = vpop.permute.xlu1 %3848  ;;  %v3221_v45 = vsub.f32 %v13949_v58, %v10805_v20  ;;  %v13955_v58 = vld [vmem:[#allocation186_spill] sm:$0xff] }
 0x6bd   : > { %3932 = vperm.xlu0 %7149, %v10936_v50   ;;  %13939 = vst [vmem:[#allocation64_spill] sm:$0xff] %v10950_v42  ;;  %7391 = vpow2.f32 %v3454_v35  ;;  %v3460_v50 = vmul.f32 1.442695, %v3218_v56 }
 0x6be   : > { %v10942_v60 = vpop.permute.xlu2 %3836  ;;  %13940 = vst [vmem:[#allocation63_spill] sm:$0xff] %v10952_v13  ;;  %7393 = vpow2.f32 %v3462_v48  ;;  %v13953_v48 = vld [vmem:[#allocation90_spill] sm:$0xff] }
 0x6bf   : > { %13935 = vst [vmem:[#allocation61_spill] sm:$0xff] %v10942_v60  ;;  %v10946_v57 = vpop.permute.xlu0 %3806  ;;  %7395 = vpow2.f32 %v3460_v50  ;;  %v3225_v16 = vsub.f32 %v13953_v48, %v10805_v20 }
 0x6c0   : > { %13937 = vst [vmem:[#allocation60_spill] sm:$0xff] %v10946_v57  ;;  %v10964_v57 = vpop.eup %7389 }
 0x6c1   : > { %13944 = vst [vmem:[#allocation67_spill] sm:$0xff] %v10964_v57 }
 0x6c3   : > { %v10966_v13 = vpop.eup %7391 }
 0x6c4   : > { %3944 = vperm.xlu2 %7150, %v10948_v38   ;;  %13945 = vst [vmem:[#allocation66_spill] sm:$0xff] %v10966_v13  ;;  %v10972_v35 = vpop.permute.xlu1 %3857  ;;  %v3468_v38 = vmul.f32 1.442695, %v3222_v30  ;;  %v10980_v60 = vpop.eup %7393 }
 0x6c5   : > { %3941 = vperm.xlu0 %7149, %v10950_v42   ;;  %13947 = vst [vmem:[#allocation85_spill] sm:$0xff] %v10972_v35 }
 0x6c6   : > { %v10958_v18 = vpop.permute.xlu2 %3845  ;;  %13951 = vst [vmem:[#allocation88_spill] sm:$0xff] %v10980_v60  ;;  %7397 = vpow2.f32 %v3468_v38  ;;  %v13960_v38 = vld [vmem:[#allocation89_spill] sm:$0xff] }
 0x6c7   : > { %13942 = vst [vmem:[#allocation83_spill] sm:$0xff] %v10958_v18  ;;  %v10962_v21 = vpop.permute.xlu0 %3815  ;;  %v3466_v18 = vmul.f32 1.442695, %v3221_v45 }
 0x6c9   : > { %7399 = vpow2.f32 %v3466_v18  ;;  %v3228_v18 = vsub.f32 %v13960_v38, %v10805_v20 }
 0x6cc   : > { %3953 = vperm.xlu2 %7150, %v10964_v57   ;;  %v10982_v57 = vpop.eup %7395  ;;  %v10994_v45 = vpop.permute.xlu1 %3866 }
 0x6cd   : > { %3950 = vperm.xlu0 %7149, %v10966_v13   ;;  %13952 = vst [vmem:[#allocation73_spill] sm:$0xff] %v10982_v57  ;;  %v3224_v13 = vsub.f32 %v13955_v58, %v10805_v20  ;;  %v10996_v35 = vpop.eup %7397  ;;  %v13962_v58 = vld [vmem:[#allocation189_spill] sm:$0xff] }
 0x6ce   : > { %v10974_v42 = vpop.permute.xlu2 %3854  ;;  %13957 = vst [vmem:[#allocation76_spill] sm:$0xff] %v10994_v45 }
 0x6cf   : > { %13948 = vst [vmem:[#allocation70_spill] sm:$0xff] %v10974_v42  ;;  %v10978_v56 = vpop.permute.xlu0 %3824  ;;  %v3474_v42 = vmul.f32 1.442695, %v3225_v16 }
 0x6d0   : > { %13950 = vst [vmem:[#allocation69_spill] sm:$0xff] %v10978_v56  ;;  %v3472_v56 = vmul.f32 1.442695, %v3224_v13  ;;  %v3480_v13 = vmul.f32 1.442695, %v3228_v18  ;;  %v13969_v18 = vld [vmem:[#allocation93_spill] sm:$0xff] }
 0x6d1   : > { %13958 = vst [vmem:[#allocation75_spill] sm:$0xff] %v10996_v35  ;;  %7401 = vpow2.f32 %v3474_v42  ;;  %v13967_v42 = vld [vmem:[#allocation92_spill] sm:$0xff] }
 0x6d2   : > { %7403 = vpow2.f32 %v3472_v56  ;;  %v3231_v56 = vsub.f32 %v13967_v42, %v10805_v20 }
 0x6d3   : > { %7405 = vpow2.f32 %v3480_v13 }
 0x6d4   : > { %3962 = vperm.xlu2 %7150, %v10980_v60   ;;  %v10998_v60 = vpop.eup %7399 }
 0x6d5   : > { %3959 = vperm.xlu0 %7149, %v10982_v57   ;;  %13959 = vst [vmem:[#allocation79_spill] sm:$0xff] %v10998_v60  ;;  %v3227_v57 = vsub.f32 %v13962_v58, %v10805_v20  ;;  %v3230_v58 = vsub.f32 %v13969_v18, %v10805_v20 }
 0x6d6   : > { %v10988_v50 = vpop.permute.xlu2 %3863 }
 0x6d7   : > { %13954 = vst [vmem:[#allocation72_spill] sm:$0xff] %v10988_v50  ;;  %v10992_v30 = vpop.permute.xlu0 %3833  ;;  %v3478_v45 = vmul.f32 1.442695, %v3227_v57  ;;  %v11012_v50 = vpop.eup %7401  ;;  %v3486_v57 = vmul.f32 1.442695, %v3231_v56 }
 0x6d8   : > { %13956 = vst [vmem:[#allocation91_spill] sm:$0xff] %v10992_v30  ;;  %v11010_v30 = vpop.permute.xlu1 %3875 }
 0x6d9   : > { %13964 = vst [vmem:[#allocation183_spill] sm:$0xff] %v11010_v30  ;;  %7407 = vpow2.f32 %v3478_v45 }
 0x6da   : > { %13965 = vst [vmem:[#allocation81_spill] sm:$0xff] %v11012_v50  ;;  %7409 = vpow2.f32 %v3486_v57 }
 0x6dc   : > { %3971 = vperm.xlu2 %7150, %v10996_v35   ;;  %v11014_v35 = vpop.eup %7403 }
 0x6dd   : > { %3968 = vperm.xlu0 %7149, %v10998_v60   ;;  %13966 = vst [vmem:[#allocation84_spill] sm:$0xff] %v11014_v35 }
 0x6de   : > { %v11004_v48 = vpop.permute.xlu2 %3872 }
 0x6df   : > { %13961 = vst [vmem:[#allocation78_spill] sm:$0xff] %v11004_v48  ;;  %v11008_v16 = vpop.permute.xlu0 %3842  ;;  %v11026_v48 = vpop.eup %7405 }
 0x6e0   : > { %13963 = vst [vmem:[#allocation82_spill] sm:$0xff] %v11008_v16  ;;  %v3484_v16 = vmul.f32 1.442695, %v3230_v58  ;;  %v11028_v30 = vpop.eup %7407 }
 0x6e1   : > { %13971 = vst [vmem:[#allocation90_spill] sm:$0xff] %v11026_v48  ;;  %v11038_v20 = vpop.eup %7409 }
 0x6e2   : > { %13972 = vst [vmem:[#allocation186_spill] sm:$0xff] %v11028_v30  ;;  %7411 = vpow2.f32 %v3484_v16 }
 0x6e3   : > { %13975 = vst [vmem:[#allocation92_spill] sm:$0xff] %v11038_v20 }
 0x6e4   : > { %3980 = vperm.xlu2 %7150, %v11012_v50   ;;  %v11030_v50 = vpop.permute.xlu1 %3884 }
 0x6e5   : > { %3977 = vperm.xlu0 %7149, %v11014_v35   ;;  %13973 = vst [vmem:[#allocation89_spill] sm:$0xff] %v11030_v50  ;;  %v4032_v50 = vperm.slane %v10477_v43, %v9738_v54 }
 0x6e6   : > { %v11020_v38 = vpop.permute.xlu2 %3881 }
 0x6e7   : > { %13968 = vst [vmem:[#allocation87_spill] sm:$0xff] %v11020_v38  ;;  %v11024_v60 = vpop.permute.xlu0 %3851  ;;  %v4063_v38 = vperm.slane %v10741_v1, %v9738_v54  ;;  %v4036_v1 = vperm.slane %v10565_v62, %v9752_v24 }
 0x6e8   : > { %13970 = vst [vmem:[#allocation86_spill] sm:$0xff] %v11024_v60  ;;  %v11040_v42 = vpop.eup %7411 }
 0x6e9   : > { %13976 = vst [vmem:[#allocation93_spill] sm:$0xff] %v11040_v42 }
 0x6ec   : > { %3989 = vperm.xlu2 %7150, %v11026_v48   ;;  %v11044_v56 = vpop.permute.xlu1 %3893 }
 0x6ed   : > { %3986 = vperm.xlu0 %7149, %v11028_v30   ;;  %13977 = vst [vmem:[#allocation209_spill] sm:$0xff] %v11044_v56 }
 0x6ee   : > { %v11034_v13 = vpop.permute.xlu2 %3890 }
 0x6ef   : > { %13974 = vst [vmem:[#allocation189_spill] sm:$0xff] %v11034_v13  ;;  %v11036_v45 = vpop.permute.xlu0 %3860 }
 0x6f4   : > { %3998 = vperm.xlu2 %7150, %v11038_v20   ;;  %v11052_v30 = vpop.permute.xlu1 %3902 }
 0x6f5   : > { %3995 = vperm.xlu0 %7149, %v11040_v42   ;;  %13980 = vst [vmem:[#allocation212_spill] sm:$0xff] %v11052_v30  ;;  %v4000_v30 = vperm.slane %v10461_v4, %v9731_v47 }
 0x6f6   : > { %v11048_v58 = vpop.permute.xlu2 %3899 }
 0x6f7   : > { %v11046_v18 = vpop.permute.xlu0 %3869  ;;  %13978 = vst [vmem:[#allocation210_spill] sm:$0xff] %v11048_v58  ;;  %v4031_v58 = vperm.slane %v10544_v23, %v9731_v47 }
 0x6f9   : > { %v4033_v23 = vsel %vm2795_vm2, %v4032_v50, %v4031_v58 }
 0x6fc   : > { %v11058_v35 = vpop.permute.xlu1 %3911 }
 0x6fe   : > { %v11054_v16 = vpop.permute.xlu2 %3908 }
 0x6ff   : > { %v11050_v57 = vpop.permute.xlu0 %3878 }
 0x700   : > { %13979 = vst [vmem:[#allocation211_spill] sm:$0xff] %v11050_v57 }
 0x704   : > { %v11064_v42 = vpop.permute.xlu1 %3920 }
 0x705   : > { %13983 = vst [vmem:[#allocation215_spill] sm:$0xff] %v11064_v42 }
 0x706   : > { %v11060_v60 = vpop.permute.xlu2 %3917 }
 0x707   : > { %v11056_v48 = vpop.permute.xlu0 %3887 }
 0x708   : > { %13981 = vst [vmem:[#allocation213_spill] sm:$0xff] %v11056_v48  ;;  %v4034_v48 = vperm.slane %v10635_v63, %v9743_v40  ;;  %v4062_v63 = vperm.slane %v10585_v49, %v9731_v47 }
 0x70a   : > { %v4035_v43 = vsel %vm2799_vm3, %v4034_v48, %v4033_v23  ;;  %v4040_v48 = vperm.slane %v10656_v39, %v9770_v53  ;;  %v4069_v23 = vperm.slane %v10762_v0, %v9765_v29  ;;  %v4009_v39 = vperm.slane %v10438_v6, %v9770_v53 }
 0x70b   : > { %v4037_v49 = vsel %vm2803_vm4, %v4036_v1, %v4035_v43  ;;  %v4042_v43 = vperm.slane %v10589_v41, %v9776_v27  ;;  %v4094_v1 = vperm.slane %v10779_v5, %v9738_v54  ;;  %v4098_v5 = vperm.slane %v10868_v9, %v9752_v24 }
 0x70c   : > { %v11085_v57 = vpop.permute.xlu1 %3929  ;;  %v4017_v9 = vperm.slane %v10481_v7, %v9814_v22  ;;  %v4100_v7 = vperm.slane %v10798_v10, %v9765_v29  ;;  %v13992_v10 = vld [vmem:[#allocation52_spill] sm:$0xff] }
 0x70e   : > { %v11066_v56 = vpop.permute.xlu2 %3926 }
 0x70f   : > { %v11062_v20 = vpop.permute.xlu0 %3896  ;;  %13984 = vst [vmem:[#allocation216_spill] sm:$0xff] %v11066_v56  ;;  %v4001_v56 = vperm.slane %v10404_v36, %v9738_v54  ;;  %v4007_v36 = vperm.slane %v10506_v33, %v9765_v29  ;;  %v4038_v33 = vperm.slane %v10498_v25, %v9765_v29 }
 0x710   : > { %13982 = vst [vmem:[#allocation214_spill] sm:$0xff] %v11062_v20  ;;  %v4003_v20 = vperm.slane %v10485_v17, %v9743_v40 }
 0x711   : > { %v4002_v4 = vsel %vm2795_vm2, %v4001_v56, %v4000_v30  ;;  %v4005_v30 = vperm.slane %v10421_v2, %v9752_v24  ;;  %v4064_v56 = vsel %vm2795_vm2, %v4063_v38, %v4062_v63  ;;  %v4011_v2 = vperm.slane %v10527_v55, %v9776_v27 }
 0x712   : > { %v4004_v17 = vsel %vm2799_vm3, %v4003_v20, %v4002_v4  ;;  %v4065_v20 = vperm.slane %v10673_v26, %v9743_v40  ;;  %v4067_v26 = vperm.slane %v10606_v46, %v9752_v24  ;;  %v4039_v25 = vsel %vm2807_vm5, %v4038_v33, %v4037_v49 }
 0x713   : > { %v4006_v62 = vsel %vm2803_vm4, %v4005_v30, %v4004_v17  ;;  %v4041_v4 = vsel %vm13985_vm10, %v4040_v48, %v4039_v25  ;;  %v4093_v63 = vperm.slane %v10847_v59, %v9731_v47  ;;  %v4015_v46 = vperm.slane %v10548_v11, %v9811_v51 }
 0x714   : > { %v4008_v58 = vsel %vm2807_vm5, %v4007_v36, %v4006_v62  ;;  %v4066_v38 = vsel %vm2799_vm3, %v4065_v20, %v4064_v56  ;;  %v11137_v59 = vpop.permute.xlu1 %3938  ;;  %v4013_v30 = vperm.slane %v10457_v14, %v9786_v3  ;;  %v4043_v41 = vsel %vm2815_vm7, %v4042_v43, %v4041_v4  ;;  %v13990_v43 = vld [vmem:[#allocation34_spill] sm:$0xff] }
 0x715   : > { %v4010_v55 = vsel %vm13986_vm12, %v4009_v39, %v4008_v58  ;;  %v4068_v0 = vsel %vm2803_vm4, %v4067_v26, %v4066_v38  ;;  %v4046_v56 = vperm.slane %v10677_v8, %v9811_v51  ;;  %v4071_v49 = vperm.slane %v10692_v28, %v9770_v53 }
 0x716   : > { %v11098_v50 = vpop.permute.xlu2 %3935  ;;  %v4012_v6 = vsel %vm2815_vm7, %v4011_v2, %v4010_v55  ;;  %v4070_v36 = vsel %vm2807_vm5, %v4069_v23, %v4068_v0  ;;  %v4044_v11 = vperm.slane %v10519_v37, %v9786_v3  ;;  %v4095_v48 = vsel %vm2795_vm2, %v4094_v1, %v4093_v63  ;;  %v13989_v63 = vld [vmem:[#allocation122_spill] sm:$0xff] }
 0x717   : > { %v11068_v13 = vpop.permute.xlu0 %3905  ;;  %v4014_v14 = vsel %vm13213_vm8, %v4013_v30, %v4012_v6  ;;  %v4096_v33 = vperm.slane %v10724_v61, %v9743_v40  ;;  %v4072_v8 = vsel %vm13985_vm10, %v4071_v49, %v4070_v36  ;;  %v4075_v28 = vperm.slane %v10783_v52, %v9786_v3 }
 0x718   : > { %v4016_v62 = vsel %vm13210_vm9, %v4015_v46, %v4014_v14  ;;  %v4073_v37 = vperm.slane %v10627_v31, %v9776_v27  ;;  %v4045_v58 = vsel %vm13213_vm8, %v4044_v11, %v4043_v41  ;;  %v4048_v61 = vperm.slane %v10610_v12, %v9814_v22  ;;  %v13999_v14 = vld [vmem:[#allocation106_spill] sm:$0xff] }
 0x719   : > { %v4047_v2 = vsel %vm13210_vm9, %v4046_v56, %v4045_v58  ;;  %v4097_v38 = vsel %vm2799_vm3, %v4096_v33, %v4095_v48  ;;  %vm13987_vm12 = vcmask 654912   ;;  %v4021_v31 = vperm.slane %v10569_v44, %v9837_v32  ;;  %v13991_v44 = vld [vmem:[#allocation100_spill] sm:$0xff]  ;;  %v13995_v56 = vld [vmem:[#allocation51_spill] sm:$0xff] }
 0x71a   : > { %v4074_v23 = vsel %vm2815_vm7, %v4073_v37, %v4072_v8  ;;  %v4099_v52 = vsel %vm2803_vm4, %v4098_v5, %v4097_v38  ;;  %v4018_v39 = vsel %vm13987_vm12, %v4017_v9, %v4016_v62  ;;  %v4019_v4 = vperm.slane %v10453_v19, %v9808_v15  ;;  %vm13988_vm10 = vmmov %vm13987_vm12  ;;  %v13994_v19 = vld [vmem:[#allocation43_spill] sm:$0xff]  ;;  %v14000_v8 = vld [vmem:[#allocation113_spill] sm:$0xff] }
 0x71b   : > { %v4076_v26 = vsel %vm13213_vm8, %v4075_v28, %v4074_v23  ;;  %v4049_v12 = vsel %vm13988_vm10, %v4048_v61, %v4047_v2  ;;  %v4052_v55 = vperm.slane %v13989_v63, %v9837_v32  ;;  %v4077_v0 = vperm.slane %v13990_v43, %v9811_v51  ;;  %v13998_v5 = vld [vmem:[#allocation207_spill] sm:$0xff]  ;;  %v14002_v37 = vld [vmem:[#allocation206_spill] sm:$0xff]  ;;  %v14003_v58 = vld [vmem:[#allocation104_spill] sm:$0xff] }
 0x71c   : > { %v4050_v6 = vperm.slane %v13991_v44, %v9808_v15  ;;  %v4101_v46 = vsel %vm2807_vm5, %v4100_v7, %v4099_v52  ;;  %v4104_v36 = vperm.slane %v13992_v10, %v9776_v27  ;;  %vm13993_vm12 = vcmask 720512   ;;  %v11197_v11 = vpop.permute.xlu1 %3947  ;;  %v14006_v23 = vld [vmem:[#allocation21_spill] sm:$0xff]  ;;  %v14010_v43 = vld [vmem:[#allocation208_spill] sm:$0xff] }
 0x71d   : > { %v4020_v1 = vsel %vm13993_vm12, %v4019_v4, %v4018_v39  ;;  %v4102_v30 = vperm.slane %v13994_v19, %v9770_v53  ;;  %v4078_v41 = vsel %vm13210_vm9, %v4077_v0, %v4076_v26  ;;  %v4081_v49 = vperm.slane %v13995_v56, %v9808_v15  ;;  %13996 = vst [vmem:[#allocation122_spill] sm:$0xff] %v11197_v11  ;;  %vm14001_vm6 = vmmov %vm13993_vm12  ;;  %v14009_v4 = vld [vmem:[#allocation38_spill] sm:$0xff]  ;;  %v14011_v0 = vld [vmem:[#allocation128_spill] sm:$0xff] }
 0x71e   : > { %v11151_v20 = vpop.permute.xlu2 %3944  ;;  %vm13997_vm10 = vcmask 786112   ;;  %v4025_v33 = vperm.slane %v13999_v14, %v13998_v5  ;;  %v4079_v28 = vperm.slane %v14000_v8, %v9814_v22  ;;  %v4051_v62 = vsel %vm14001_vm6, %v4050_v6, %v4049_v12  ;;  %vm14008_vm1 = vmmov %vm14001_vm6  ;;  %v14012_v6 = vld [vmem:[#allocation135_spill] sm:$0xff]  ;;  %v14014_v19 = vld [vmem:[#allocation124_spill] sm:$0xff] }
 0x71f   : > { %v11091_v42 = vpop.permute.xlu0 %3914  ;;  %v4022_v48 = vsel %vm13997_vm10, %v4021_v31, %v4020_v1  ;;  %v4023_v9 = vperm.slane %v14003_v58, %v14002_v37  ;;  %vm14004_vm12 = vmmov %vm13997_vm10  ;;  %v4103_v38 = vsel %vm14005_vm11, %v4102_v30, %v4101_v46  ;;  %v4054_v52 = vperm.slane %v14006_v23, %v14002_v37 }
 0x720   : > { %v4053_v2 = vsel %vm14004_vm12, %v4052_v55, %v4051_v62  ;;  %vm14007_vm10 = vcmask 654912   ;;  %v4105_v31 = vsel %vm2815_vm7, %v4104_v36, %v4103_v38  ;;  %v4106_v12 = vperm.slane %v14009_v4, %v9786_v3  ;;  %v14013_v36 = vld [vmem:[#allocation98_spill] sm:$0xff]  ;;  %v14018_v62 = vld [vmem:[#allocation25_spill] sm:$0xff] }
 0x721   : > { %v4080_v39 = vsel %vm14007_vm10, %v4079_v28, %v4078_v41  ;;  %v4024_v26 = vsel %vm13209_vm13, %v4023_v9, %v4022_v48  ;;  %v4055_v55 = vsel %vm13209_vm13, %v4054_v52, %v4053_v2  ;;  %v4058_v44 = vperm.slane %v14011_v0, %v14010_v43  ;;  %v14019_v2 = vld [vmem:[#allocation143_spill] sm:$0xff]  ;;  %v14020_v38 = vld [vmem:[#allocation117_spill] sm:$0xff]  ;;  %v14021_v52 = vld [vmem:[#allocation62_spill] sm:$0xff] }
 0x722   : > { %v4082_v7 = vsel %vm14008_vm1, %v4081_v49, %v4080_v39  ;;  %v4026_v63 = vsel %vm13208_vm14, %v4025_v33, %v4024_v26  ;;  %v4083_v46 = vperm.slane %v14012_v6, %v9837_v32  ;;  %v4027_v1 = vperm.slane %v14013_v36, %v14010_v43  ;;  %v14015_v49 = vld [vmem:[#allocation29_spill] sm:$0xff]  ;;  %vm14016_vm1 = vmmov %vm14004_vm12  ;;  %v14017_v33 = vld [vmem:[#allocation154_spill] sm:$0xff] }
 0x723   : > { %v4056_v30 = vperm.slane %v14014_v19, %v13998_v5  ;;  %v4107_v41 = vsel %vm13213_vm8, %v4106_v12, %v4105_v31  ;;  %v4110_v56 = vperm.slane %v10908_v34, %v9814_v22  ;;  %v4108_v48 = vperm.slane %v14015_v49, %v9811_v51  ;;  %vm14022_vm6 = vmmov %vm14007_vm10  ;;  %v14025_v36 = vld [vmem:[#allocation44_spill] sm:$0xff]  ;;  %v14026_v19 = vld [vmem:[#allocation126_spill] sm:$0xff] }
 0x724   : > { %v4084_v14 = vsel %vm14016_vm1, %v4083_v46, %v4082_v7  ;;  %v4087_v8 = vperm.slane %v14017_v33, %v13998_v5  ;;  %v11240_v28 = vsel %vm13207_vm15, %v4027_v1, %v4026_v63  ;;  %v4085_v58 = vperm.slane %v14018_v62, %v14002_v37  ;;  %v11257_v63 = vpop.permute.xlu1 %3956  ;;  %vm14040_vm12 = vmmov %vm14016_vm1  ;;  %v11315_v0 = vld [vmem:[#allocation2] sm:$0xff] }
 0x725   : > { %v4057_v9 = vsel %vm13208_vm14, %v4056_v30, %v4055_v55  ;;  %v4060_v23 = vperm.slane %v14020_v38, %v14019_v2  ;;  %v4124_v39 = vperm.slane %v14021_v52, %v9731_v47  ;;  %v4109_v31 = vsel %vm13210_vm9, %v4108_v48, %v4107_v41  ;;  %v14023_v55 = vld [vmem:[#allocation107_spill] sm:$0xff] }
 0x726   : > { %v11209_v61 = vpop.permute.xlu2 %3953  ;;  %v4059_v34 = vsel %vm13207_vm15, %v4058_v44, %v4057_v9  ;;  %v4086_v26 = vsel %vm13209_vm13, %v4085_v58, %v4084_v14  ;;  %v4111_v7 = vsel %vm14022_vm6, %v4110_v56, %v4109_v31  ;;  %v4127_v4 = vperm.slane %v10962_v21, %v9743_v40  ;;  %v14024_v44 = vld [vmem:[#allocation57_spill] sm:$0xff]  ;;  %v14030_v14 = vld [vmem:[#allocation36_spill] sm:$0xff]  ;;  %v11320_v62 = vld [vmem:[%s14042_s5] sm:$0xff]  }
 0x727   : > { %v11129_v17 = vpop.permute.xlu0 %3923  ;;  %v4156_v12 = vperm.slane %v11036_v45, %v9738_v54  ;;  %v4125_v6 = vperm.slane %v14024_v44, %v9738_v54  ;;  %v4088_v46 = vsel %vm13208_vm14, %v4087_v8, %v4086_v26  ;;  %v4112_v1 = vperm.slane %v14025_v36, %v9808_v15  ;;  %v14028_v45 = vld [vmem:[#allocation27_spill] sm:$0xff]  ;;  %v14029_v56 = vld [vmem:[#allocation85_spill] sm:$0xff]  ;;  %v14034_v44 = vld [vmem:[#allocation68_spill] sm:$0xff] }
 0x728   : > { %v11269_v21 = vsel %vm13206_vm0, %v4060_v23, %v4059_v34  ;;  %v4089_v41 = vperm.slane %v14028_v45, %v14010_v43  ;;  %v4155_v49 = vperm.slane %v14029_v56, %v9731_v47  ;;  %v4114_v33 = vperm.slane %v14030_v14, %v9837_v32  ;;  %v14031_v8 = vld [vmem:[#allocation41_spill] sm:$0xff]  ;;  %v14033_v34 = vld [vmem:[#allocation144_spill] sm:$0xff]  ;;  %v14035_v45 = vld [vmem:[#allocation150_spill] sm:$0xff] }
 0x729   : > { %14027 = vst [vmem:[#allocation34_spill] sm:$0xff] %v11269_v21  ;;  %v4126_v58 = vsel %vm2795_vm2, %v4125_v6, %v4124_v39  ;;  %vm14032_vm11 = vcmask 720512   ;;  %v4131_v52 = vperm.slane %v14033_v34, %v9765_v29  ;;  %v4129_v39 = vperm.slane %v14035_v45, %v9752_v24  ;;  %v14038_v56 = vld [vmem:[#allocation156_spill] sm:$0xff]  ;;  %v14041_v34 = vld [vmem:[#allocation69_spill] sm:$0xff] }
 0x72a   : > { %v4113_v9 = vsel %vm14032_vm11, %v4112_v1, %v4111_v7  ;;  %v11286_v23 = vsel %vm13207_vm15, %v4089_v41, %v4088_v46  ;;  %v4128_v31 = vsel %vm2799_vm3, %v4127_v4, %v4126_v58  ;;  %v4157_v26 = vsel %vm2795_vm2, %v4156_v12, %v4155_v49  ;;  %v14036_v7 = vld [vmem:[#allocation72_spill] sm:$0xff]  ;;  %v14037_v1 = vld [vmem:[#allocation47_spill] sm:$0xff] }
 0x72b   : > { %v4158_v6 = vperm.slane %v14036_v7, %v9743_v40  ;;  %v4186_v46 = vperm.slane %v11068_v13, %v9731_v47  ;;  %v14039_v12 = vld [vmem:[#allocation152_spill] sm:$0xff]  ;;  %v11307_v14 = vsel %vm14040_vm12, %v4114_v33, %v4113_v9  ;;  %v4130_v58 = vsel %vm2803_vm4, %v4129_v39, %v4128_v31 }
 0x72c   : > { %v4135_v49 = vperm.slane %v14039_v12, %v9776_v27  ;;  %v4133_v45 = vperm.slane %v14041_v34, %v9770_v53  ;;  %v4187_v13 = vperm.slane %v11054_v16, %v9738_v54  ;;  %v13204_v33 = vunpack.c.l.bf16 %v11320_v62  ;;  %v11336_v4 = vpop.permute.xlu1 %3965 }
 0x72d   : > { %v4159_v7 = vsel %vm2799_vm3, %v4158_v6, %v4157_v26  ;;  %v4735_v9 = vperm.slane %v11315_v0, 0  ;;  %v4720_v39 = vrot.slane %v11315_v0, 1  ;;  %v14043_v26 = vld [vmem:[#allocation76_spill] sm:$0xff]  ;;  %v4162_v16 = vperm.slane %v11046_v18, %v9765_v29 }
 0x72e   : > { %v11275_v48 = vpop.permute.xlu2 %3962  ;;  %v4160_v6 = vperm.slane %v14043_v26, %v9752_v24  ;;  %v4188_v12 = vsel %vm2795_vm2, %v4187_v13, %v4186_v46  ;;  %v4191_v34 = vperm.slane %v11091_v42, %v9752_v24  ;;  %v4132_v30 = vsel %vm2807_vm5, %v4131_v52, %v4130_v58  ;;  %v14044_v26 = vld [vmem:[#allocation183_spill] sm:$0xff]  ;;  %v14046_v46 = vld [vmem:[#allocation78_spill] sm:$0xff] }
 0x72f   : > { %v11177_v25 = vpop.permute.xlu0 %3932  ;;  %v4189_v41 = vperm.slane %v11058_v35, %v9743_v40  ;;  %v4751_v36 = vmul.f32 %v13204_v33, %v4735_v9  ;;  %v4736_v31 = vperm.slane %v4720_v39, 0  ;;  %v4166_v21 = vperm.slane %v14044_v26, %v9776_v27  ;;  %v11355_v26 = vld [vmem:[%s14042_s5 + $0x8] sm:$0xff]  }
 0x730   : > { %vm14045_vm10 = vcmask 392512   ;;  %v4164_v13 = vperm.slane %v14046_v46, %v9770_v53  ;;  %v4161_v42 = vsel %vm2803_vm4, %v4160_v6, %v4159_v7  ;;  %vm14047_vm1 = vcmask 261120  }
 0x731   : > { %v4134_v18 = vsel %vm14045_vm10, %v4133_v45, %v4132_v30  ;;  %v4190_v58 = vsel %vm2799_vm3, %v4189_v41, %v4188_v12  ;;  %v4759_v11 = vsel %vm14047_vm1, %v4751_v36, 0.0  ;;  %v14048_v9 = vunpack.c.h.bf16 %v11320_v62  ;;  %vm14049_vm6 = vmmov %vm14047_vm1 }
 0x732   : > { %v4722_v30 = vrot.slane %v11315_v0, 3  ;;  %v4163_v45 = vsel %vm2807_vm5, %v4162_v16, %v4161_v42  ;;  %v4192_v7 = vsel %vm2803_vm4, %v4191_v34, %v4190_v58  ;;  %v4217_v41 = vperm.slane %v11209_v61, %v9731_v47  ;;  %4760 = vadd.xlane.f32.xlu2 %v4759_v11  ;;  %v14050_v16 = vld [vmem:[#allocation91_spill] sm:$0xff]  ;;  %vm14052_vm11 = vmmov %vm14045_vm10 }
 0x733   : > { %v4752_v39 = vmul.f32 %v14048_v9, %v4736_v31  ;;  %v13203_v36 = vunpack.c.h.bf16 %v11355_v26  ;;  %v4193_v31 = vperm.slane %v11060_v60, %v9765_v29  ;;  %v4136_v9 = vsel %vm2815_vm7, %v4135_v49, %v4134_v18  ;;  %v14051_v34 = vld [vmem:[#allocation215_spill] sm:$0xff]  ;;  %vm14054_vm12 = vmmov %vm14047_vm1 }
 0x734   : > { %v4738_v46 = vperm.slane %v4722_v30, 0  ;;  %v4139_v42 = vperm.slane %v14050_v16, %v9811_v51  ;;  %v4195_v58 = vperm.slane %v14051_v34, %v9770_v53  ;;  %v4218_v11 = vperm.slane %v11257_v63, %v9738_v54  ;;  %v14053_v60 = vld [vmem:[#allocation211_spill] sm:$0xff]  ;;  %v11386_v63 = vld [vmem:[%s14042_s5 + $0x10] sm:$0xff]   ;;  %v3975_v33 = vpop.permute.xlu1 %3974 }
 0x735   : > { %v4762_v12 = vsel %vm14049_vm6, %v4752_v39, 0.0  ;;  %v4165_v61 = vsel %vm14052_vm11, %v4164_v13, %v4163_v45  ;;  %v4194_v39 = vsel %vm2807_vm5, %v4193_v31, %v4192_v7  ;;  %v4197_v30 = vperm.slane %v11129_v17, %v9776_v27  ;;  %vm14063_vm6 = vmmov %vm14045_vm10 }
 0x736   : > { %v11347_v35 = vpop.permute.xlu2 %3971  ;;  %4763 = vadd.xlane.f32.xlu0 %v4762_v12  ;;  %v4754_v49 = vmul.f32 %v13203_v36, %v4738_v46  ;;  %v4219_v18 = vsel %vm2795_vm2, %v4218_v11, %v4217_v41  ;;  %v4723_v13 = vrot.slane %v11315_v0, 4  ;;  %v4724_v45 = vrot.slane %v11315_v0, 5  ;;  %vm14064_vm11 = vmmov %vm14047_vm1 }
 0x737   : > { %v11225_v10 = vpop.permute.xlu0 %3941  ;;  %v13205_v41 = vunpack.c.h.bf16 %v11386_v63  ;;  %v4167_v46 = vsel %vm2815_vm7, %v4166_v21, %v4165_v61  ;;  %v4222_v17 = vperm.slane %v11275_v48, %v9752_v24  ;;  %v4196_v31 = vsel %vm14045_vm10, %v4195_v58, %v4194_v39 }
 0x738   : > { %v4768_v7 = vsel %vm14054_vm12, %v4754_v49, 0.0  ;;  %v4739_v34 = vperm.slane %v4723_v13, 0  ;;  %v4740_v11 = vperm.slane %v4724_v45, 0  ;;  %v4198_v21 = vsel %vm2815_vm7, %v4197_v30, %v4196_v31  ;;  %v14057_v45 = vld [vmem:[#allocation87_spill] sm:$0xff] }
 0x739   : > { %v14059_v39 = vunpack.c.l.bf16 %v11386_v63  ;;  %vm14065_vm12 = vcmask 654912  }
 0x73a   : > { %4769 = vadd.xlane.f32.xlu2 %v4768_v7  ;;  %v4756_v13 = vmul.f32 %v13205_v41, %v4740_v11  ;;  %v14061_v7 = vld [vmem:[#allocation89_spill] sm:$0xff]  ;;  %vm14067_vm10 = vmmov %vm14065_vm12  ;;  %v4230_v41 = vperm.slane %v3975_v33, %v9786_v3  ;;  %v14071_v33 = vperm.slane %v14038_v56, %v9808_v15  ;;  %v14077_v56 = vld [vmem:[#allocation214_spill] sm:$0xff] }
 0x73b   : > { %v4755_v30 = vmul.f32 %v14059_v39, %v4739_v34  ;;  %v4203_v34 = vperm.slane %v11177_v25, %v9814_v22 }
 0x73e   : > { %v3981_v58 = vpop.permute.xlu2 %3980 }
 0x73f   : > { %v11283_v38 = vpop.permute.xlu0 %3950 }
 0x747   : > { %v3960_v52 = vpop.permute.xlu0 %3959 }
 0x748   : > { %v4220_v6 = vperm.slane %v3960_v52, %v9743_v40  ;;  %v4168_v52 = vperm.slane %v14053_v60, %v9786_v3  ;;  %v14055_v60 = vld [vmem:[#allocation157_spill] sm:$0xff] }
 0x749   : > { %v4116_v36 = vperm.slane %v14055_v60, %v14002_v37 }
 0x74a   : > { %v4221_v12 = vsel %vm2799_vm3, %v4220_v6, %v4219_v18  ;;  %v14056_v6 = vperm.slane %v14034_v44, %v9786_v3  ;;  %v4169_v18 = vsel %vm13213_vm8, %v4168_v52, %v4167_v46  ;;  %v4170_v44 = vperm.slane %v14057_v45, %v9811_v51 }
 0x74b   : > { %v4223_v48 = vsel %vm2803_vm4, %v4222_v17, %v4221_v12  ;;  %v4224_v52 = vperm.slane %v11336_v4, %v9765_v29  ;;  %v14060_v12 = vld [vmem:[#allocation61_spill] sm:$0xff]  ;;  %v4172_v46 = vperm.slane %v14061_v7, %v9814_v22  ;;  %v14066_v7 = vld [vmem:[#allocation82_spill] sm:$0xff] }
 0x74c   : > { %v4138_v49 = vsel %vm13213_vm8, %v14056_v6, %v4136_v9  ;;  %v14058_v9 = vld [vmem:[#allocation216_spill] sm:$0xff]  ;;  %v4141_v31 = vperm.slane %v14060_v12, %v9814_v22  ;;  %v4171_v11 = vsel %vm13210_vm9, %v4170_v44, %v4169_v18  ;;  %v14062_v6 = vld [vmem:[#allocation213_spill] sm:$0xff]  ;;  %v4726_v18 = vrot.slane %v11315_v0, 7 }
 0x74d   : > { %v4199_v60 = vperm.slane %v14058_v9, %v9786_v3  ;;  %v4140_v17 = vsel %vm13210_vm9, %v4139_v42, %v4138_v49  ;;  %v4174_v45 = vperm.slane %v14062_v6, %v9808_v15  ;;  %v4225_v9 = vsel %vm2807_vm5, %v4224_v52, %v4223_v48  ;;  %v11435_v42 = vld [vmem:[%s14042_s5 + $0x18] sm:$0xff]  }
 0x74e   : > { %v4725_v49 = vrot.slane %v11315_v0, 6  ;;  %v4771_v48 = vsel %vm14064_vm11, %v4755_v30, 0.0  ;;  %v13214_v25 = vunpack.c.h.bf16 %v11435_v42  ;;  %v4201_v44 = vperm.slane %v11085_v57, %v9811_v51 }
 0x74f   : > { %v3969_v16 = vpop.permute.xlu0 %3968  ;;  %v4200_v4 = vsel %vm13213_vm8, %v4199_v60, %v4198_v21  ;;  %v4228_v21 = vperm.slane %v11347_v35, %v9776_v27  ;;  %v4742_v12 = vperm.slane %v4726_v18, 0  ;;  %v4173_v6 = vsel %vm14067_vm10, %v4172_v46, %v4171_v11  ;;  %4772 = vadd.xlane.f32.xlu2 %v4771_v48  ;;  %v3984_v11 = vpop.permute.xlu1 %3983 }
 0x750   : > { %v4226_v61 = vperm.slane %v3969_v16, %v9770_v53  ;;  %v4774_v16 = vsel %vm14047_vm1, %v4756_v13, 0.0  ;;  %v13211_v13 = vunpack.c.l.bf16 %v11435_v42  ;;  %v4741_v52 = vperm.slane %v4725_v49, 0  ;;  %v14069_v49 = vld [vmem:[#allocation189_spill] sm:$0xff] }
 0x751   : > { %4775 = vadd.xlane.f32.xlu0 %v4774_v16  ;;  %v4145_v16 = vperm.slane %v14066_v7, %v9837_v32  ;;  %vm14068_vm1 = vcmask 720512   ;;  %v4758_v57 = vmul.f32 %v13214_v25, %v4742_v12  ;;  %v4176_v46 = vperm.slane %v14069_v49, %v9837_v32  ;;  %v14079_v7 = vld [vmem:[#allocation63_spill] sm:$0xff] }
 0x752   : > { %v4227_v39 = vsel %vm14063_vm6, %v4226_v61, %v4225_v9  ;;  %v4142_v61 = vsel %vm14065_vm12, %v4141_v31, %v4140_v17  ;;  %v4175_v9 = vsel %vm14068_vm1, %v4174_v45, %v4173_v6  ;;  %v4202_v31 = vsel %vm13210_vm9, %v4201_v44, %v4200_v4  ;;  %vm14070_vm6 = vmmov %vm14067_vm10 }
 0x753   : > { %v4229_v35 = vsel %vm2815_vm7, %v4228_v21, %v4227_v39  ;;  %v4117_v17 = vsel %vm13209_vm13, %v4116_v36, %v11307_v14  ;;  %v4204_v39 = vsel %vm14070_vm6, %v4203_v34, %v4202_v31  ;;  %v4757_v45 = vmul.f32 %v13211_v13, %v4741_v52  ;;  %vm14072_vm11 = vmmov %vm14068_vm1  ;;  %v14074_v36 = vld [vmem:[#allocation83_spill] sm:$0xff] }
 0x754   : > { %v4144_v4 = vsel %vm14072_vm11, %v14071_v33, %v4142_v61  ;;  %v4205_v18 = vperm.slane %v11098_v50, %v9808_v15  ;;  %v4231_v21 = vsel %vm13213_vm8, %v4230_v41, %v4229_v35  ;;  %vm14073_vm12 = vcmask 261120   ;;  %vm14078_vm6 = vmmov %vm14072_vm11 }
 0x755   : > { %v4780_v14 = vsel %vm14073_vm12, %v4758_v57, 0.0  ;;  %v4147_v48 = vperm.slane %v14074_v36, %v14002_v37  ;;  %vm14075_vm10 = vcmask 786112   ;;  %v4180_v61 = vperm.slane %v14077_v56, %v13998_v5  ;;  %vm14081_vm11 = vmmov %vm14073_vm12  ;;  %v14091_v56 = vld [vmem:[#allocation70_spill] sm:$0xff] }
 0x756   : > { %v4146_v34 = vsel %vm14075_vm10, %v4145_v16, %v4144_v4  ;;  %vm14076_vm1 = vmmov %vm14075_vm10  ;;  %v4206_v50 = vsel %vm14078_vm6, %v4205_v18, %v4204_v39  ;;  %v4209_v41 = vperm.slane %v11225_v10, %v14002_v37  ;;  %v4234_v12 = vperm.slane %v3981_v58, %v9814_v22  ;;  %v14080_v16 = vld [vmem:[#allocation209_spill] sm:$0xff]  ;;  %v14083_v58 = vld [vmem:[#allocation86_spill] sm:$0xff] }
 0x757   : > { %v3978_v60 = vpop.permute.xlu0 %3977  ;;  %v4177_v44 = vsel %vm14076_vm1, %v4176_v46, %v4175_v9  ;;  %v4149_v6 = vperm.slane %v14079_v7, %v13998_v5  ;;  %v4178_v35 = vperm.slane %v14080_v16, %v14002_v37  ;;  %v4777_v9 = vsel %vm14081_vm11, %v4757_v45, 0.0  ;;  %vm14085_vm10 = vmmov %vm14076_vm1  ;;  %v14087_v18 = vld [vmem:[#allocation60_spill] sm:$0xff]  ;;  %v3993_v7 = vpop.permute.xlu1 %3992 }
 0x758   : > { %v4232_v30 = vperm.slane %v3978_v60, %v9811_v51  ;;  %v3990_v60 = vpop.permute.xlu2 %3989  ;;  %v14082_v31 = vperm.slane %v14037_v1, %v13998_v5  ;;  %v4148_v10 = vsel %vm13209_vm13, %v4147_v48, %v4146_v34  ;;  %v4151_v49 = vperm.slane %v14083_v58, %v14010_v43  ;;  %4778 = vadd.xlane.f32.xlu2 %v4777_v9  ;;  %v14088_v48 = vld [vmem:[#allocation210_spill] sm:$0xff]  ;;  %vm14089_vm1 = vmmov %vm14078_vm6  ;;  %v14094_v9 = vld [vmem:[#allocation212_spill] sm:$0xff] }
 0x759   : > { %4781 = vadd.xlane.f32.xlu0 %v4780_v14  ;;  %vm14084_vm12 = vcmask 654912   ;;  %v4179_v33 = vsel %vm13209_vm13, %v4178_v35, %v4177_v44  ;;  %v4236_v4 = vperm.slane %v3984_v11, %v9808_v15  ;;  %v14086_v1 = vperm.slane %v14026_v19, %v14019_v2  ;;  %vm14092_vm6 = vmmov %vm14085_vm10  ;;  %v14096_v58 = vld [vmem:[#allocation34_spill] sm:$0xff] }
 0x75a   : > { %v4233_v52 = vsel %vm13210_vm9, %v4232_v30, %v4231_v21  ;;  %v4207_v30 = vperm.slane %v11137_v59, %v9837_v32  ;;  %v4119_v57 = vsel %vm13208_vm14, %v14082_v31, %v4117_v17  ;;  %v4122_v21 = vperm.slane %v14087_v18, %v14019_v2 }
 0x75b   : > { %v4235_v46 = vsel %vm14084_vm12, %v4234_v12, %v4233_v52  ;;  %v4092_v17 = vsel %vm13206_vm0, %v14086_v1, %v11286_v23  ;;  %v4181_v14 = vsel %vm13208_vm14, %v4180_v61, %v4179_v33  ;;  %v4150_v11 = vsel %vm13208_vm14, %v4149_v6, %v4148_v10 }
 0x75c   : > { %v4208_v59 = vsel %vm14085_vm10, %v4207_v30, %v4206_v50  ;;  %v4182_v34 = vperm.slane %v14088_v48, %v14010_v43  ;;  %v4211_v44 = vperm.slane %v11151_v20, %v13998_v5  ;;  %v4237_v19 = vsel %vm14089_vm1, %v4236_v4, %v4235_v46 }
 0x75d   : > { %v4210_v36 = vsel %vm13209_vm13, %v4209_v41, %v4208_v59  ;;  %v14090_v23 = vperm.slane %v14031_v8, %v14010_v43  ;;  %v4153_v61 = vperm.slane %v14091_v56, %v14019_v2  ;;  %v4152_v50 = vsel %vm13207_vm15, %v4151_v49, %v4150_v11 }
 0x75e   : > { %v4183_v12 = vsel %vm13207_vm15, %v4182_v34, %v4181_v14  ;;  %v4212_v6 = vsel %vm13208_vm14, %v4211_v44, %v4210_v36  ;;  %v4215_v20 = vperm.slane %v11283_v38, %v14019_v2  ;;  %v4240_v16 = vperm.slane %v3990_v60, %v14002_v37 }
 0x75f   : > { %v3987_v39 = vpop.permute.xlu0 %3986  ;;  %v4121_v52 = vsel %vm13207_vm15, %v14090_v23, %v4119_v57  ;;  %v14093_v8 = vperm.slane %v14023_v55, %v14019_v2  ;;  %v4184_v31 = vperm.slane %v14094_v9, %v14019_v2  ;;  %v14095_v57 = vld [vmem:[#allocation122_spill] sm:$0xff]  ;;  %vm14097_vm11 = vcmask 1041409  }
 0x760   : > { %v4238_v45 = vperm.slane %v3987_v39, %v9837_v32  ;;  %v4123_v30 = vsel %vm13206_vm0, %v4122_v21, %v4121_v52  ;;  %v4213_v10 = vperm.slane %v14095_v57, %v14010_v43  ;;  %v4154_v38 = vsel %vm13206_vm0, %v4153_v61, %v4152_v50  ;;  %v3999_v60 = vpop.permute.xlu2 %3998 }
 0x761   : > { %v4030_v35 = vsel %vm13206_vm0, %v14093_v8, %v11240_v28  ;;  %v4721_v55 = vrot.slane %v11315_v0, 2  ;;  %vm14098_vm12 = vcmask 1042434   ;;  %v4242_v39 = vperm.slane %v3993_v7, %v13998_v5 }
 0x762   : > { %v4239_v41 = vsel %vm14092_vm6, %v4238_v45, %v4237_v19  ;;  %v4248_v49 = vsel %vm14097_vm11, %v14096_v58, %v4030_v35  ;;  %v4185_v4 = vsel %vm13206_vm0, %v4184_v31, %v4183_v12  ;;  %v4214_v59 = vsel %vm13207_vm15, %v4213_v10, %v4212_v6 }
 0x763   : > { %v4241_v46 = vsel %vm13209_vm13, %v4240_v16, %v4239_v41  ;;  %v4249_v28 = vsel %vm14098_vm12, %v4092_v17, %v4248_v49  ;;  %vm14099_vm10 = vcmask 1043459   ;;  %v4216_v18 = vsel %vm13206_vm0, %v4215_v20, %v4214_v59 }
 0x764   : > { %v4250_v45 = vsel %vm14099_vm10, %v4123_v30, %v4249_v28  ;;  %v4246_v21 = vperm.slane %v3999_v60, %v14019_v2  ;;  %v4243_v14 = vsel %vm13208_vm14, %v4242_v39, %v4241_v46  ;;  %vm14100_vm1 = vcmask 1044484  }
 0x765   : > { %v4251_v0 = vsel %vm14100_vm1, %v4154_v38, %v4250_v45  ;;  %vm14101_vm6 = vcmask 1045509   ;;  %v13212_v11 = vunpack.c.l.bf16 %v11355_v26  ;;  %v4737_v48 = vperm.slane %v4721_v55, 0 }
 0x766   : > { %v4252_v36 = vsel %vm14101_vm6, %v4185_v4, %v4251_v0  ;;  %vm14102_vm11 = vcmask 1046534   ;;  %vm14103_vm12 = vcmask 1047559   ;;  %vm14104_vm10 = vcmask 261120  }
 0x767   : > { %v3996_v33 = vpop.permute.xlu0 %3995  ;;  %v4253_v44 = vsel %vm14102_vm11, %v4216_v18, %v4252_v36  ;;  %v4753_v23 = vmul.f32 %v13212_v11, %v4737_v48 }
 0x768   : > { %v4244_v1 = vperm.slane %v3996_v33, %v14010_v43 }
 0x769   : > { %v4765_v52 = vsel %vm14104_vm10, %v4753_v23, 0.0 }
 0x76a   : > { %v4245_v17 = vsel %vm13207_vm15, %v4244_v1, %v4243_v14 }
 0x76b   : > { %v4247_v34 = vsel %vm13206_vm0, %v4246_v21, %v4245_v17 }
 0x76c   : > { %v4254_v19 = vsel %vm14103_vm12, %v4247_v34, %v4253_v44 }
 0x76d   : > { %4256 = vadd.xlane.f32.xlu1 %v4254_v19 }
 0x775   : > { %4766 = vadd.xlane.f32.xlu1 %v4765_v52 }
 0x7a5   : > { %v4761_v56 = vpop.xlane.xlu2 %4760 }
 0x7a6   : > { %vm4783_vm1 = vcmp.gt.f32.partialorder %v4761_v56, 0.0  ;;  %v4791_v30 = vmul.f32 0.2, %v4761_v56 }
 0x7a8   : > { %v11591_v49 = vsel %vm4783_vm1, %v4761_v56, %v4791_v30 }
 0x7a9   : > { %v4764_v6 = vpop.xlane.xlu0 %4763  ;;  %v4815_v4 = vperm.slane %v11591_v49, %v9731_v47 }
 0x7aa   : > { %v4792_v9 = vmul.f32 0.2, %v4764_v6  ;;  %vm4784_vm6 = vcmp.gt.f32.partialorder %v4764_v6, 0.0 }
 0x7ac   : > { %v11593_v38 = vsel %vm4784_vm6, %v4764_v6, %v4792_v9 }
 0x7ad   : > { %v4770_v7 = vpop.xlane.xlu2 %4769  ;;  %v4816_v59 = vperm.slane %v11593_v38, %v9731_v47 }
 0x7ae   : > { %v4794_v31 = vmul.f32 0.2, %v4770_v7  ;;  %vm4786_vm11 = vcmp.gt.f32.partialorder %v4770_v7, 0.0 }
 0x7b0   : > { %v11595_v60 = vsel %vm4786_vm11, %v4770_v7, %v4794_v31 }
 0x7b1   : > { %v4818_v45 = vperm.slane %v11595_v60, %v9731_v47 }
 0x7c2   : > { %v4773_v39 = vpop.xlane.xlu2 %4772 }
 0x7c3   : > { %vm4787_vm13 = vcmp.gt.f32.partialorder %v4773_v39, 0.0 }
 0x7c4   : > { %v4776_v18 = vpop.xlane.xlu0 %4775 }
 0x7c5   : > { %vm4788_vm9 = vcmp.gt.f32.partialorder %v4776_v18, 0.0 }
 0x7cb   : > { %v4779_v13 = vpop.xlane.xlu2 %4778 }
 0x7e0   : > { %v11564_v61 = vpop.xlane.xlu1 %4256 }
 0x7e1   : > { %v4259_v50 = vperm.slane %v11564_v61, 0  ;;  %v11568_v41 = vperm.slane %v11564_v61, 1  ;;  %v11571_v12 = vperm.slane %v11564_v61, 5  ;;  %v11575_v20 = vperm.slane %v11564_v61, 2 }
 0x7e2   : > { %v11580_v8 = vperm.slane %v11564_v61, 6  ;;  %v11585_v57 = vperm.slane %v11564_v61, 3  ;;  %v11616_v14 = vperm.slane %v11564_v61, 4 }
 0x7e3   : > { %7413 = vrcp.f32 %v4259_v50  ;;  %v4284_v0 = vand.u32 2147483647, %v4259_v50  ;;  %v4286_v17 = vand.u32 2147483648, %v4259_v50  ;;  %vm4280_vm12 = vweird.f32 %v4259_v50 }
 0x7e4   : > { %7415 = vrcp.f32 %v11568_v41  ;;  %v4314_v34 = vand.u32 2147483647, %v11568_v41  ;;  %v4316_v19 = vand.u32 2147483648, %v11568_v41  ;;  %v4436_v6 = vand.u32 2147483648, %v11571_v12 }
 0x7e5   : > { %7417 = vrcp.f32 %v11571_v12  ;;  %vm11631_vm6 = vcmp.eq.f32.partialorder %v4284_v0, 8.507059e+37  ;;  %v4287_v9 = vor.u32 1.1754944e-38, %v4286_v17  ;;  %vm4310_vm0 = vweird.f32 %v11568_v41 }
 0x7e6   : > { %7419 = vrcp.f32 %v11575_v20  ;;  %vm4430_vm14 = vweird.f32 %v11571_v12 }
 0x7e7   : > { %7421 = vrcp.f32 %v11580_v8 }
 0x7e8   : > { %7423 = vrcp.f32 %v11585_v57 }
 0x7e9   : > { %v11577_v16 = vpop.eup %7413  ;;  %7425 = vrcp.f32 %v11616_v14 }
 0x7ea   : > { %v4276_v35 = vmul.f32 %v11577_v16, %v4259_v50  ;;  %v11588_v10 = vpop.eup %7415  ;;  %vm4281_vm10 = vweird.f32 %v11577_v16 }
 0x7eb   : > { %v11597_v46 = vpop.eup %7417  ;;  %v4306_v55 = vmul.f32 %v11588_v10, %v11568_v41  ;;  %vm11638_vm11 = vmor %vm4280_vm12, %vm4281_vm10  ;;  %vm4311_vm15 = vweird.f32 %v11588_v10  ;;  %vm4460_vm10 = vweird.f32 %v11580_v8 }
 0x7ec   : > { %v4277_v58 = vsub.f32 1.0, %v4276_v35  ;;  %v4426_v28 = vmul.f32 %v11597_v46, %v11571_v12  ;;  %v11604_v33 = vpop.eup %7419  ;;  %vm4431_vm1 = vweird.f32 %v11597_v46 }
 0x7ed   : > { %v11613_v21 = vpop.eup %7421  ;;  %v4307_v48 = vsub.f32 1.0, %v4306_v55  ;;  %v4336_v23 = vmul.f32 %v11604_v33, %v11575_v20  ;;  %vm11653_vm12 = vmor %vm4430_vm14, %vm4431_vm1  ;;  %vm11666_vm1 = vcmp.eq.f32.partialorder %v4314_v34, 8.507059e+37 }
 0x7ee   : > { %v4278_v1 = vmul.f32 %v11577_v16, %v4277_v58  ;;  %v4427_v36 = vsub.f32 1.0, %v4426_v28  ;;  %v4456_v44 = vmul.f32 %v11613_v21, %v11580_v8  ;;  %v11626_v56 = vpop.eup %7423  ;;  %v4434_v28 = vand.u32 2147483647, %v11571_v12  ;;  %v4782_v58 = vpop.xlane.xlu0 %4781 }
 0x7ef   : > { %v4308_v55 = vmul.f32 %v11588_v10, %v4307_v48  ;;  %v4337_v0 = vsub.f32 1.0, %v4336_v23  ;;  %v11649_v17 = vmul.f32 %v11626_v56, %v11585_v57  ;;  %v4795_v23 = vmul.f32 0.2, %v4773_v39  ;;  %v11671_v50 = vpop.eup %7425 }
 0x7f0   : > { %v4428_v52 = vmul.f32 %v11597_v46, %v4427_v36  ;;  %v4279_v7 = vadd.f32 %v11577_v16, %v4278_v1  ;;  %v4457_v35 = vsub.f32 1.0, %v4456_v44  ;;  %v4767_v1 = vpop.xlane.xlu1 %4766  ;;  %v4437_v44 = vor.u32 1.1754944e-38, %v4436_v6 }
 0x7f1   : > { %vm4785_vm14 = vcmp.gt.f32.partialorder %v4767_v1, 0.0  ;;  %v4309_v11 = vadd.f32 %v11588_v10, %v4308_v55  ;;  %vm4435_vm8 = vcmp.eq.f32.partialorder %v4434_v28, 8.507059e+37  ;;  %v11682_v34 = vsel %vm4787_vm13, %v4773_v39, %v4795_v23 }
 0x7f2   : > { %v4429_v31 = vadd.f32 %v11597_v46, %v4428_v52  ;;  %v4458_v36 = vmul.f32 %v11613_v21, %v4457_v35  ;;  %v4283_v12 = vsel %vm11638_vm11, %v11577_v16, %v4279_v7  ;;  %v4796_v52 = vmul.f32 0.2, %v4776_v18 }
 0x7f3   : > { %v4464_v16 = vand.u32 2147483647, %v11580_v8  ;;  %v4793_v7 = vmul.f32 0.2, %v4767_v1  ;;  %vm4461_vm11 = vweird.f32 %v11613_v21  ;;  %vm14118_vm13 = vcmask 1042434  }
 0x7f4   : > { %v4433_v48 = vsel %vm11653_vm12, %v11597_v46, %v4429_v31  ;;  %v11675_v46 = vsel %vm11631_vm6, %v4287_v9, %v4283_v12  ;;  %v4459_v31 = vadd.f32 %v11613_v21, %v4458_v36  ;;  %v11685_v55 = vsel %vm4788_vm9, %v4776_v18, %v4796_v52  ;;  %v14114_v18 = vld [vmem:[#allocation165_spill] sm:$0xff]  ;;  %vm11707_vm9 = vmor %vm4310_vm0, %vm4311_vm15 }
 0x7f5   : > { %v11677_v6 = vsel %vm4435_vm8, %v4437_v44, %v4433_v48  ;;  %v11687_v28 = vsel %vm4785_vm14, %v4767_v1, %v4793_v7  ;;  %vm4789_vm12 = vcmp.gt.f32.partialorder %v4779_v13, 0.0  ;;  %v4797_v9 = vmul.f32 0.2, %v4779_v13  ;;  %v14115_v36 = vld [vmem:[#allocation133_spill] sm:$0xff]  ;;  %vm11726_vm15 = vmor %vm4460_vm10, %vm4461_vm11 }
 0x7f6   : > { %v4817_v30 = vperm.slane %v11687_v28, %v9731_v47  ;;  %vm4790_vm6 = vcmp.gt.f32.partialorder %v4782_v58, 0.0  ;;  %v4798_v12 = vmul.f32 0.2, %v4782_v58  ;;  %v4466_v48 = vand.u32 2147483648, %v11580_v8 }
 0x7f7   : > { %vm14113_vm8 = vcmask 1041409   ;;  %v4290_v1 = vmul.f32 %v14114_v18, %v11675_v46  ;;  %v4439_v44 = vmul.f32 %v14115_v36, %v11677_v6  ;;  %v4819_v52 = vperm.slane %v11682_v34, %v9731_v47 }
 0x7f8   : > { %v4823_v39 = vsel %vm14113_vm8, %v4816_v59, %v4815_v4  ;;  %v11714_v4 = vsel %vm4789_vm12, %v4779_v13, %v4797_v9  ;;  %v11716_v59 = vsel %vm4790_vm6, %v4782_v58, %v4798_v12  ;;  %v4313_v18 = vsel %vm11707_vm9, %v11588_v10, %v4309_v11 }
 0x7f9   : > { %v4824_v7 = vsel %vm14118_vm13, %v4817_v30, %v4823_v39  ;;  %v4338_v36 = vmul.f32 %v11604_v33, %v4337_v0  ;;  %v4820_v13 = vperm.slane %v11685_v55, %v9731_v47  ;;  %vm14121_vm0 = vcmask 1043459   ;;  %4538 = vperm.xlu2 %7150, %v4290_v1   ;;  %4583 = vperm.xlu1 %7148, %v4439_v44   ;;  %v14127_v44 = vld [vmem:[#allocation53_spill] sm:$0xff] }
 0x7fa   : > { %v4825_v58 = vsel %vm14121_vm0, %v4818_v45, %v4824_v7  ;;  %v4317_v11 = vor.u32 1.1754944e-38, %v4316_v19  ;;  %v4463_v8 = vsel %vm11726_vm15, %v11613_v21, %v4459_v31  ;;  %v4821_v10 = vperm.slane %v11714_v4, %v9731_v47 }
 0x7fb   : > { %vm14122_vm10 = vcmask 1044484   ;;  %v4467_v30 = vor.u32 1.1754944e-38, %v4466_v48  ;;  %v4822_v9 = vperm.slane %v11716_v59, %v9731_v47  ;;  %vm14123_vm14 = vcmask 1045509  }
 0x7fc   : > { %v4826_v0 = vsel %vm14122_vm10, %v4819_v52, %v4825_v58  ;;  %vm4831_vm11 = vcmask 64512   ;;  %v11749_v41 = vsel %vm11666_vm1, %v4317_v11, %v4313_v18  ;;  %vm4341_vm12 = vweird.f32 %v11604_v33 }
 0x7fd   : > { %v4827_v45 = vsel %vm14123_vm14, %v4820_v13, %v4826_v0  ;;  %vm4465_vm6 = vcmp.eq.f32.partialorder %v4464_v16, 8.507059e+37  ;;  %vm14124_vm8 = vcmask 1046534   ;;  %v4339_v21 = vadd.f32 %v11604_v33, %v4338_v36  ;;  %v14126_v16 = vld [vmem:[#allocation142_spill] sm:$0xff] }
 0x7fe   : > { %v4828_v25 = vsel %vm14124_vm8, %v4821_v10, %v4827_v45  ;;  %v4367_v19 = vsub.f32 1.0, %v11649_v17  ;;  %v11755_v31 = vsel %vm4465_vm6, %v4467_v30, %v4463_v8  ;;  %vm14125_vm9 = vcmask 1047559   ;;  %v14128_v8 = vld [vmem:[#allocation190_spill] sm:$0xff] }
 0x7ff   : > { %v4829_v12 = vsel %vm14125_vm9, %v4822_v9, %v4828_v25  ;;  %v4346_v48 = vand.u32 2147483648, %v11575_v20  ;;  %vm4340_vm1 = vweird.f32 %v11575_v20  ;;  %v4344_v35 = vand.u32 2147483647, %v11575_v20 }
 0x800   : > { %v4832_v39 = vsel %vm4831_vm11, %v4829_v12, -inf  ;;  %v4320_v1 = vmul.f32 %v14126_v16, %v11749_v41  ;;  %vm4342_vm13 = vmor %vm4340_vm1, %vm4341_vm12  ;;  %v4469_v17 = vmul.f32 %v14127_v44, %v11755_v31  ;;  %v4368_v52 = vmul.f32 %v11626_v56, %v4367_v19 }
 0x801   : > { %4833 = vmax.xlane.f32.xlu0 %v4832_v39  ;;  %v4343_v23 = vsel %vm4342_vm13, %v11604_v33, %v4339_v21  ;;  %v4396_v7 = vmul.f32 %v11671_v50, %v11616_v14  ;;  %v4347_v18 = vor.u32 1.1754944e-38, %v4346_v48  ;;  %vm4345_vm15 = vcmp.eq.f32.partialorder %v4344_v35, 8.507059e+37  ;;  %v14130_v39 = vld [vmem:[#allocation137_spill] sm:$0xff] }
 0x802   : > { %4548 = vperm.xlu2 %7150, %v4320_v1   ;;  %4593 = vperm.xlu1 %7148, %v4469_v17   ;;  %v4266_v20 = vperm.slane %v11564_v61, 7  ;;  %v4369_v13 = vadd.f32 %v11626_v56, %v4368_v52  ;;  %vm4371_vm0 = vweird.f32 %v11626_v56  ;;  %v4376_v33 = vand.u32 2147483648, %v11585_v57  ;;  %v14131_v17 = vld [vmem:[#allocation97_spill] sm:$0xff]  ;;  %v14132_v52 = vld [vmem:[#allocation164_spill] sm:$0xff] }
 0x803   : > { %v11771_v36 = vsel %vm4345_vm15, %v4347_v18, %v4343_v23  ;;  %v4397_v58 = vsub.f32 1.0, %v4396_v7  ;;  %vm4370_vm10 = vweird.f32 %v11585_v57  ;;  %v4374_v11 = vand.u32 2147483647, %v11585_v57 }
 0x804   : > { %v4350_v10 = vmul.f32 %v14128_v8, %v11771_v36  ;;  %vm4372_vm14 = vmor %vm4370_vm10, %vm4371_vm0  ;;  %7427 = vrcp.f32 %v4266_v20  ;;  %v4377_v30 = vor.u32 1.1754944e-38, %v4376_v33  ;;  %vm4401_vm6 = vweird.f32 %v11671_v50  ;;  %v14134_v8 = vld [vmem:[#allocation170_spill] sm:$0xff] }
 0x805   : > { %v4373_v61 = vsel %vm4372_vm14, %v11626_v56, %v4369_v13  ;;  %v4398_v0 = vmul.f32 %v11671_v50, %v4397_v58  ;;  %vm4375_vm12 = vcmp.eq.f32.partialorder %v4374_v11, 8.507059e+37  ;;  %v4406_v57 = vand.u32 2147483648, %v11616_v14  ;;  %v14129_v56 = vld [vmem:[#allocation118_spill] sm:$0xff]  ;;  %v14133_v58 = vld [vmem:[#allocation59_spill] sm:$0xff] }
 0x806   : > { %v11782_v9 = vsel %vm4375_vm12, %v4377_v30, %v4373_v61  ;;  %vm4400_vm8 = vweird.f32 %v11616_v14  ;;  %v4404_v21 = vand.u32 2147483647, %v11616_v14  ;;  %v4289_v35 = vmul.f32 %v14130_v39, %v11675_v46  ;;  %v14135_v30 = vld [vmem:[#allocation56_spill] sm:$0xff] }
 0x807   : > { %v4399_v45 = vadd.f32 %v11671_v50, %v4398_v0  ;;  %v4380_v19 = vmul.f32 %v14129_v56, %v11782_v9  ;;  %vm4402_vm9 = vmor %vm4400_vm8, %vm4401_vm6  ;;  %v4407_v16 = vor.u32 1.1754944e-38, %v4406_v57  ;;  %v4319_v7 = vmul.f32 %v14132_v52, %v11749_v41  ;;  %v14136_v57 = vld [vmem:[#allocation99_spill] sm:$0xff]  ;;  %v14138_v56 = vld [vmem:[#allocation30_spill] sm:$0xff] }
 0x808   : > { %vm4405_vm1 = vcmp.eq.f32.partialorder %v4404_v21, 8.507059e+37  ;;  %v4496_v18 = vand.u32 2147483648, %v4266_v20  ;;  %vm4490_vm15 = vweird.f32 %v4266_v20  ;;  %v4494_v13 = vand.u32 2147483647, %v4266_v20  ;;  %v14137_v21 = vld [vmem:[#allocation114_spill] sm:$0xff] }
 0x809   : > { %v4403_v12 = vsel %vm4402_vm9, %v11671_v50, %v4399_v45  ;;  %v4470_v33 = vmul.f32 %v14133_v58, %v11755_v31  ;;  %vm4627_vm14 = vcmask 523264   ;;  %vm14155_vm12 = vcmask 1041409  }
 0x80a   : > { %4558 = vperm.xlu2 %7150, %v4350_v10   ;;  %v7428_v25 = vpop.eup %7427  ;;  %v11794_v1 = vsel %vm4405_vm1, %v4407_v16, %v4403_v12  ;;  %v4349_v10 = vmul.f32 %v14134_v8, %v11771_v36  ;;  %v4497_v61 = vor.u32 1.1754944e-38, %v4496_v18  ;;  %vm4495_vm10 = vcmp.eq.f32.partialorder %v4494_v13, 8.507059e+37  ;;  %v14139_v12 = vld [vmem:[#allocation67_spill] sm:$0xff] }
 0x80b   : > { %v4486_v48 = vmul.f32 %v7428_v25, %v4266_v20  ;;  %v4410_v14 = vmul.f32 %v14131_v17, %v11794_v1  ;;  %vm4491_vm13 = vweird.f32 %v7428_v25  ;;  %v4379_v20 = vmul.f32 %v14136_v57, %v11782_v9 }
 0x80c   : > { %vm4492_vm0 = vmor %vm4490_vm15, %vm4491_vm13  ;;  %vm14156_vm6 = vcmask 1042434   ;;  %vm14157_vm8 = vcmask 1043459   ;;  %vm14158_vm9 = vcmask 1044484   ;;  %vm14159_vm1 = vcmask 1045509  }
 0x80d   : > { %v4487_v44 = vsub.f32 1.0, %v4486_v48  ;;  %vm14160_vm13 = vcmask 1046534   ;;  %vm14161_vm15 = vcmask 1047559  }
 0x80f   : > { %v4488_v23 = vmul.f32 %v7428_v25, %v4487_v44 }
 0x811   : > { %v4489_v50 = vadd.f32 %v7428_v25, %v4488_v23 }
 0x812   : > { %4568 = vperm.xlu2 %7150, %v4380_v19   ;;  %v4440_v19 = vmul.f32 %v14138_v56, %v11677_v6 }
 0x813   : > { %v4493_v11 = vsel %vm4492_vm0, %v7428_v25, %v4489_v50  ;;  %v4409_v25 = vmul.f32 %v14137_v21, %v11794_v1  ;;  %vm14162_vm0 = vmmov %vm14155_vm12 }
 0x814   : > { %v11804_v0 = vsel %vm4495_vm10, %v4497_v61, %v4493_v11  ;;  %vm14163_vm10 = vmmov %vm14156_vm6 }
 0x815   : > { %4533 = vperm.xlu0 %7149, %v4289_v35   ;;  %v4500_v45 = vmul.f32 %v14135_v30, %v11804_v0  ;;  %v4499_v48 = vmul.f32 %v14139_v12, %v11804_v0  ;;  %v6986_v12 = vld [vmem:[%s14145_s29 + $0x8] sm:$0xff]  }
 0x81a   : > { %4578 = vperm.xlu2 %7150, %v4410_v14  }
 0x81d   : > { %4543 = vperm.xlu0 %7149, %v4319_v7  }
 0x822   : > { %4598 = vperm.xlu2 %7150, %v4470_v33  }
 0x825   : > { %4553 = vperm.xlu0 %7149, %v4349_v10  }
 0x82a   : > { %4608 = vperm.xlu2 %7150, %v4500_v45  }
 0x82d   : > { %4563 = vperm.xlu0 %7149, %v4379_v20  }
 0x835   : > { %4573 = vperm.xlu0 %7149, %v4409_v25  }
 0x83d   : > { %4588 = vperm.xlu0 %7149, %v4440_v19  }
 0x845   : > { %4603 = vperm.xlu0 %7149, %v4499_v48   ;;  %v6987_v48 = vld [vmem:[%s14145_s29 + $0x10] sm:$0xff]  }
 0x853   : > { %v11816_v39 = vpop.permute.xlu2 %4538 }
 0x85c   : > { %v11826_v18 = vpop.permute.xlu2 %4548 }
 0x85d   : > { %14140 = vst [vmem:[#allocation100_spill] sm:$0xff] %v11826_v18 }
 0x874   : > { %v11818_v35 = vpop.xlane.xlu0 %4833 }
 0x875   : > { %v4836_v16 = vperm.slane %v11818_v35, 0  ;;  %v4837_v44 = vperm.slane %v11818_v35, 1  ;;  %v4840_v23 = vperm.slane %v11818_v35, 4  ;;  %v4839_v52 = vperm.slane %v11818_v35, 3 }
 0x876   : > { %v4843_v33 = vperm.slane %v11818_v35, 7 }
 0x877   : > { %v4852_v17 = vsub.f32 %v11591_v49, %v4836_v16  ;;  %v4853_v14 = vsub.f32 %v11593_v38, %v4837_v44  ;;  %v4856_v13 = vsub.f32 %v11682_v34, %v4840_v23  ;;  %v4855_v58 = vsub.f32 %v11595_v60, %v4839_v52  ;;  %v11840_v34 = vpop.permute.xlu2 %4558 }
 0x878   : > { %v4842_v49 = vperm.slane %v11818_v35, 6  ;;  %v4859_v61 = vsub.f32 %v11716_v59, %v4843_v33  ;;  %14141 = vst [vmem:[#allocation52_spill] sm:$0xff] %v11840_v34  ;;  %v6688_v44 = vunpack.c.l.bf16 %v6986_v12  ;;  %v6692_v23 = vunpack.c.l.bf16 %v6987_v48 }
 0x879   : > { %v4860_v7 = vmul.f32 1.442695, %v4852_v17  ;;  %v4862_v50 = vmul.f32 1.442695, %v4853_v14  ;;  %v4868_v11 = vmul.f32 1.442695, %v4856_v13  ;;  %v6689_v52 = vunpack.c.h.bf16 %v6986_v12 }
 0x87a   : > { %v4866_v38 = vmul.f32 1.442695, %v4855_v58  ;;  %v4858_v60 = vsub.f32 %v11714_v4, %v4842_v49  ;;  %v4874_v45 = vmul.f32 1.442695, %v4859_v61  ;;  %v6683_v17 = vld [vmem:[%s14145_s29] sm:$0xff]   ;;  %v6988_v14 = vld [vmem:[%s14145_s29 + $0x18] sm:$0xff]   ;;  %v6693_v58 = vunpack.c.h.bf16 %v6987_v48 }
 0x87b   : > { %7429 = vpow2.f32 %v4862_v50  ;;  %v6684_v50 = vunpack.c.l.bf16 %v6683_v17  ;;  %v6696_v13 = vunpack.c.l.bf16 %v6988_v14  ;;  %v6685_v33 = vunpack.c.h.bf16 %v6683_v17 }
 0x87c   : > { %7431 = vpow2.f32 %v4860_v7  ;;  %v4872_v57 = vmul.f32 1.442695, %v4858_v60  ;;  %v11876_v7 = vpop.permute.xlu1 %4583  ;;  %v4616_v48 = vmul.f32 %v6693_v58, %v11840_v34 }
 0x87d   : > { %7433 = vpow2.f32 %v4868_v11  ;;  %14147 = vst [vmem:[#allocation104_spill] sm:$0xff] %v11876_v7  ;;  %v6697_v11 = vunpack.c.h.bf16 %v6988_v14  ;;  %v4612_v17 = vmul.f32 %v6685_v33, %v11816_v39 }
 0x87e   : > { %7435 = vpow2.f32 %v4866_v38  ;;  %v6989_v38 = vld [vmem:[%s14145_s29 + $0x20] sm:$0xff]  }
 0x87f   : > { %7437 = vpow2.f32 %v4874_v45  ;;  %v11852_v4 = vpop.permute.xlu2 %4568  ;;  %v4614_v45 = vmul.f32 %v6689_v52, %v11826_v18  ;;  %v6701_v14 = vunpack.c.h.bf16 %v6989_v38  ;;  %v4629_v18 = vsel %vm4627_vm14, %v4612_v17, 0.0 }
 0x880   : > { %7439 = vpow2.f32 %v4872_v57  ;;  %14143 = vst [vmem:[#allocation51_spill] sm:$0xff] %v11852_v4 }
 0x881   : > { %v11832_v8 = vpop.eup %7429 }
 0x882   : > { %v11834_v10 = vpop.eup %7431  ;;  %4888 = vperm.xlu2 %7150, %v11832_v8  }
 0x883   : > { %4885 = vperm.xlu0 %7149, %v11834_v10   ;;  %v11844_v20 = vpop.eup %7433 }
 0x884   : > { %v11846_v21 = vpop.eup %7435 }
 0x885   : > { %v11854_v25 = vpop.eup %7437 }
 0x886   : > { %v11856_v56 = vpop.eup %7439 }
 0x887   : > { %v11842_v30 = vpop.permute.xlu0 %4533  ;;  %v11868_v16 = vpop.permute.xlu2 %4578 }
 0x888   : > { %14146 = vst [vmem:[#allocation113_spill] sm:$0xff] %v11868_v16  ;;  %v4611_v57 = vmul.f32 %v6684_v50, %v11842_v30  ;;  %v4638_v50 = vsel %vm4627_vm14, %v4614_v45, 0.0  ;;  %v4620_v45 = vmul.f32 %v6701_v14, %v11868_v16 }
 0x88a   : > { %4897 = vperm.xlu2 %7150, %v11844_v20   ;;  %v4628_v58 = vsel %vm4627_vm14, %v4611_v57, 0.0 }
 0x88b   : > { %4894 = vperm.xlu0 %7149, %v11846_v21  }
 0x88f   : > { %v11850_v59 = vpop.permute.xlu0 %4543 }
 0x890   : > { %14142 = vst [vmem:[#allocation43_spill] sm:$0xff] %v11850_v59  ;;  %v4613_v49 = vmul.f32 %v6688_v44, %v11850_v59  ;;  %v4618_v44 = vmul.f32 %v6697_v11, %v11852_v4  ;;  %v4647_v11 = vsel %vm4627_vm14, %v4616_v48, 0.0  ;;  %v11908_v59 = vpop.permute.xlu1 %4593 }
 0x891   : > { %14150 = vst [vmem:[#allocation128_spill] sm:$0xff] %v11908_v59 }
 0x892   : > { %4906 = vperm.xlu2 %7150, %v11854_v25  }
 0x893   : > { %4903 = vperm.xlu0 %7149, %v11856_v56  }
 0x897   : > { %v11860_v19 = vpop.permute.xlu0 %4553 }
 0x898   : > { %14144 = vst [vmem:[#allocation106_spill] sm:$0xff] %v11860_v19  ;;  %v4615_v61 = vmul.f32 %v6692_v23, %v11860_v19  ;;  %v6991_v23 = vld [vmem:[%s14145_s29 + $0x30] sm:$0xff]   ;;  %v4637_v19 = vsel %vm4627_vm14, %v4613_v49, 0.0  ;;  %v4656_v49 = vsel %vm4627_vm14, %v4618_v44, 0.0 }
 0x899   : > { %v6709_v2 = vunpack.c.h.bf16 %v6991_v23  ;;  %v6708_v4 = vunpack.c.l.bf16 %v6991_v23  ;;  %v4639_v34 = vadd.f32 %v4638_v50, %v4637_v19  ;;  %v4665_v50 = vsel %vm4627_vm14, %v4620_v45, 0.0  ;;  %v6992_v45 = vld [vmem:[%s14145_s29 + $0x38] sm:$0xff]  }
 0x89a   : > { %v4646_v52 = vsel %vm4627_vm14, %v4615_v61, 0.0  ;;  %v6990_v61 = vld [vmem:[%s14145_s29 + $0x28] sm:$0xff]   ;;  %s14363_s29 = smov 96  }
 0x89b   : > { %v4648_v57 = vadd.f32 %v4647_v11, %v4646_v52  ;;  %v6704_v17 = vunpack.c.l.bf16 %v6990_v61  ;;  %v4623_v44 = vmul.f32 %v6708_v4, %v11908_v59  ;;  %v4640_v23 = vrot.slane %v4639_v34, 4 }
 0x89d   : > { %v4649_v5 = vrot.slane %v4648_v57, 4 }
 0x89f   : > { %v11883_v60 = vpop.permute.xlu0 %4563  ;;  %v4650_v4 = vadd.f32 %v4649_v5, %v4648_v57 }
 0x8a0   : > { %14148 = vst [vmem:[#allocation21_spill] sm:$0xff] %v11883_v60  ;;  %v4617_v12 = vmul.f32 %v6696_v13, %v11883_v60  ;;  %v11897_v13 = vpop.permute.xlu2 %4598  ;;  %v6700_v60 = vunpack.c.l.bf16 %v6989_v38  ;;  %v4630_v38 = vadd.f32 %v4629_v18, %v4628_v58  ;;  %v6705_v18 = vunpack.c.h.bf16 %v6990_v61 }
 0x8a1   : > { %14149 = vst [vmem:[#allocation38_spill] sm:$0xff] %v11897_v13  ;;  %v4621_v58 = vmul.f32 %v6704_v17, %v11876_v7 }
 0x8a2   : > { %v4655_v33 = vsel %vm4627_vm14, %v4617_v12, 0.0  ;;  %v4624_v12 = vmul.f32 %v6709_v2, %v11897_v13  ;;  %v4631_v52 = vrot.slane %v4630_v38, 4 }
 0x8a3   : > { %v4657_v43 = vadd.f32 %v4656_v49, %v4655_v33  ;;  %v4682_v33 = vsel %vm4627_vm14, %v4623_v44, 0.0  ;;  %v4673_v61 = vsel %vm4627_vm14, %v4621_v58, 0.0  ;;  %v6713_v44 = vunpack.c.h.bf16 %v6992_v45 }
 0x8a4   : > { %v4683_v16 = vsel %vm4627_vm14, %v4624_v12, 0.0  ;;  %v4632_v59 = vadd.f32 %v4631_v52, %v4630_v38 }
 0x8a5   : > { %v4658_v11 = vrot.slane %v4657_v43, 4  ;;  %v4684_v13 = vadd.f32 %v4683_v16, %v4682_v33 }
 0x8a6   : > { %v4633_v5 = vrot.slane %v4632_v59, 2 }
 0x8a7   : > { %v11911_v48 = vpop.permute.xlu0 %4573 }
 0x8a8   : > { %14151 = vst [vmem:[#allocation135_spill] sm:$0xff] %v11911_v48  ;;  %v4619_v19 = vmul.f32 %v6700_v60, %v11911_v48  ;;  %v4641_v60 = vadd.f32 %v4640_v23, %v4639_v34  ;;  %v4651_v34 = vrot.slane %v4650_v4, 2  ;;  %v11928_v57 = vpop.permute.xlu2 %4608  ;;  %v4634_v58 = vadd.f32 %v4633_v5, %v4632_v59 }
 0x8a9   : > { %14153 = vst [vmem:[#allocation124_spill] sm:$0xff] %v11928_v57  ;;  %v4838_v5 = vperm.slane %v11818_v35, 2 }
 0x8aa   : > { %v4664_v14 = vsel %vm4627_vm14, %v4619_v19, 0.0  ;;  %v4659_v19 = vadd.f32 %v4658_v11, %v4657_v43  ;;  %v4642_v17 = vrot.slane %v4641_v60, 2  ;;  %v6712_v43 = vunpack.c.l.bf16 %v6992_v45 }
 0x8ab   : > { %v4666_v2 = vadd.f32 %v4665_v50, %v4664_v14  ;;  %v4685_v14 = vrot.slane %v4684_v13, 4 }
 0x8ac   : > { %v4660_v38 = vrot.slane %v4659_v19, 2  ;;  %v4643_v11 = vadd.f32 %v4642_v17, %v4641_v60 }
 0x8ad   : > { %v4667_v49 = vrot.slane %v4666_v2, 4 }
 0x8ae   : > { %v4661_v7 = vadd.f32 %v4660_v38, %v4659_v19  ;;  %v4644_v15 = vrot.slane %v4643_v11, 1 }
 0x8af   : > { %v11923_v48 = vpop.permute.xlu0 %4588  ;;  %v4668_v12 = vadd.f32 %v4667_v49, %v4666_v2  ;;  %v4686_v2 = vadd.f32 %v4685_v14, %v4684_v13  ;;  %v4652_v49 = vadd.f32 %v4651_v34, %v4650_v4  ;;  %v4635_v13 = vrot.slane %v4634_v58, 1 }
 0x8b0   : > { %14152 = vst [vmem:[#allocation98_spill] sm:$0xff] %v11923_v48  ;;  %v4622_v50 = vmul.f32 %v6705_v18, %v11923_v48  ;;  %v4626_v18 = vmul.f32 %v6713_v44, %v11928_v57  ;;  %v4662_v17 = vrot.slane %v4661_v7, 1  ;;  %v4645_v19 = vadd.f32 %v4644_v15, %v4643_v11 }
 0x8b1   : > { %v4669_v52 = vrot.slane %v4668_v12, 2  ;;  %v4687_v51 = vrot.slane %v4686_v2, 2  ;;  %v4653_v45 = vrot.slane %v4652_v49, 1  ;;  %v4636_v38 = vadd.f32 %v4635_v13, %v4634_v58 }
 0x8b2   : > { %v4674_v16 = vsel %vm4627_vm14, %v4622_v50, 0.0 }
 0x8b3   : > { %v4675_v23 = vadd.f32 %v4674_v16, %v4673_v61  ;;  %v4670_v32 = vadd.f32 %v4669_v52, %v4668_v12  ;;  %v4692_v61 = vsel %vm4627_vm14, %v4626_v18, 0.0  ;;  %v4688_v16 = vadd.f32 %v4687_v51, %v4686_v2 }
 0x8b4   : > { %v4654_v12 = vadd.f32 %v4653_v45, %v4652_v49 }
 0x8b5   : > { %v4676_v33 = vrot.slane %v4675_v23, 4  ;;  %v4671_v59 = vrot.slane %v4670_v32, 1  ;;  %v4689_v57 = vrot.slane %v4688_v16, 1 }
 0x8b7   : > { %v4677_v48 = vadd.f32 %v4676_v33, %v4675_v23  ;;  %v11931_v37 = vpop.permute.xlu0 %4603  ;;  %v4663_v23 = vadd.f32 %v4662_v17, %v4661_v7  ;;  %v4690_v7 = vadd.f32 %v4689_v57, %v4688_v16 }
 0x8b8   : > { %14154 = vst [vmem:[#allocation29_spill] sm:$0xff] %v11931_v37  ;;  %v4625_v50 = vmul.f32 %v6712_v43, %v11931_v37  ;;  %v4672_v43 = vadd.f32 %v4671_v59, %v4670_v32  ;;  %v4841_v32 = vperm.slane %v11818_v35, 5 }
 0x8b9   : > { %v4678_v22 = vrot.slane %v4677_v48, 2 }
 0x8ba   : > { %v4691_v60 = vsel %vm4627_vm14, %v4625_v50, 0.0  ;;  %v4708_v50 = vsel %vm14155_vm12, %v4645_v19, %v4636_v38  ;;  %vm14164_vm12 = vmmov %vm14157_vm8 }
 0x8bb   : > { %v4679_v14 = vadd.f32 %v4678_v22, %v4677_v48  ;;  %v4693_v4 = vadd.f32 %v4692_v61, %v4691_v60  ;;  %v4709_v22 = vsel %vm14156_vm6, %v4654_v12, %v4708_v50  ;;  %v4854_v48 = vsub.f32 %v11687_v28, %v4838_v5  ;;  %vm14165_vm6 = vmmov %vm14158_vm9 }
 0x8bc   : > { %v4710_v11 = vsel %vm14157_vm8, %v4663_v23, %v4709_v22  ;;  %v4857_v28 = vsub.f32 %v11685_v55, %v4841_v32  ;;  %vm14166_vm8 = vmmov %vm14159_vm1 }
 0x8bd   : > { %v4680_v44 = vrot.slane %v4679_v14, 1  ;;  %v4694_v34 = vrot.slane %v4693_v4, 4  ;;  %v4711_v51 = vsel %vm14158_vm9, %v4672_v43, %v4710_v11  ;;  %v4864_v58 = vmul.f32 1.442695, %v4854_v48  ;;  %vm14167_vm9 = vmmov %vm14160_vm13 }
 0x8be   : > { %v4870_v13 = vmul.f32 1.442695, %v4857_v28 }
 0x8bf   : > { %v4695_v52 = vadd.f32 %v4694_v34, %v4693_v4  ;;  %v4681_v18 = vadd.f32 %v4680_v44, %v4679_v14  ;;  %7441 = vpow2.f32 %v4864_v58 }
 0x8c0   : > { %7443 = vpow2.f32 %v4870_v13 }
 0x8c1   : > { %v4696_v33 = vrot.slane %v4695_v52, 2  ;;  %v4712_v49 = vsel %vm14159_vm1, %v4681_v18, %v4711_v51  ;;  %vm14168_vm1 = vmmov %vm14161_vm15 }
 0x8c2   : > { %v4713_v45 = vsel %vm14160_vm13, %v4690_v7, %v4712_v49 }
 0x8c3   : > { %v4697_v15 = vadd.f32 %v4696_v33, %v4695_v52 }
 0x8c5   : > { %v4698_v2 = vrot.slane %v4697_v15, 1  ;;  %v11948_v17 = vpop.eup %7441 }
 0x8c6   : > { %v11951_v57 = vpop.eup %7443 }
 0x8c7   : > { %v4699_v61 = vadd.f32 %v4698_v2, %v4697_v15 }
 0x8c9   : > { %v4714_v60 = vsel %vm14161_vm15, %v4699_v61, %v4713_v45 }
 0x8ca   : > { %4715 = vrot.lane.b32.xlu1 %v4714_v60, %s13244_s1  ;;  %s13248_s1 = smov 64  }
 0x8d2   : > { %4891 = vperm.xlu1 %7148, %v11948_v17  }
 0x8da   : > { %4900 = vperm.xlu1 %7148, %v11951_v57  }
 0x8dc   : > { %v4889_v14 = vpop.permute.xlu2 %4888 }
 0x8dd   : > { %v4909_v34 = vperm.slane %v4889_v14, %v9731_v47 }
 0x8e4   : > { %v4898_v19 = vpop.permute.xlu2 %4897 }
 0x8e5   : > { %v4912_v43 = vperm.slane %v4898_v19, %v9731_v47 }
 0x8ec   : > { %v4907_v33 = vpop.permute.xlu2 %4906 }
 0x8ed   : > { %v4915_v15 = vperm.slane %v4907_v33, %v9731_v47 }
 0x8f5   : > { %v4886_v35 = vpop.permute.xlu0 %4885 }
 0x8f6   : > { %v4908_v44 = vperm.slane %v4886_v35, %v9731_v47 }
 0x8f8   : > { %v4916_v12 = vsel %vm14162_vm0, %v4909_v34, %v4908_v44 }
 0x8fd   : > { %v4895_v59 = vpop.permute.xlu0 %4894 }
 0x8fe   : > { %v4911_v38 = vperm.slane %v4895_v59, %v9731_v47 }
 0x905   : > { %v4904_v23 = vpop.permute.xlu0 %4903 }
 0x906   : > { %v4914_v22 = vperm.slane %v4904_v23, %v9731_v47 }
 0x93c   : > { %v11954_v4 = vpop.permute.xlu1 %4715 }
 0x944   : > { %v4892_v55 = vpop.permute.xlu1 %4891 }
 0x945   : > { %v4910_v16 = vperm.slane %v4892_v55, %v9731_v47 }
 0x947   : > { %v4917_v5 = vsel %vm14163_vm10, %v4910_v16, %v4916_v12 }
 0x948   : > { %v4918_v52 = vsel %vm14164_vm12, %v4911_v38, %v4917_v5 }
 0x949   : > { %v4919_v48 = vsel %vm14165_vm6, %v4912_v43, %v4918_v52 }
 0x94c   : > { %v4901_v18 = vpop.permute.xlu1 %4900 }
 0x94d   : > { %v4913_v50 = vperm.slane %v4901_v18, %v9731_v47 }
 0x94f   : > { %v4920_v11 = vsel %vm14166_vm8, %v4913_v50, %v4919_v48 }
 0x950   : > { %v4921_v51 = vsel %vm14167_vm9, %v4914_v22, %v4920_v11 }
 0x951   : > { %v4922_v2 = vsel %vm14168_vm1, %v4915_v15, %v4921_v51 }
 0x952   : > { %v4924_v49 = vsel %vm4831_vm11, %v4922_v2, 0.0 }
 0x953   : > { %4925 = vadd.xlane.f32.xlu1 %v4924_v49 }
 0x9c6   : > { %v4926_v7 = vpop.xlane.xlu1 %4925 }
 0x9c7   : > { %v4928_v32 = vperm.slane %v4926_v7, 0  ;;  %v4929_v58 = vperm.slane %v4926_v7, 1  ;;  %v11972_v61 = vperm.slane %v4926_v7, 2  ;;  %v11974_v45 = vperm.slane %v4926_v7, 3 }
 0x9c8   : > { %v11976_v60 = vperm.slane %v4926_v7, 4  ;;  %v11978_v28 = vperm.slane %v4926_v7, 5  ;;  %v11984_v19 = vperm.slane %v4926_v7, 7  ;;  %v11986_v34 = vperm.slane %v4926_v7, 6 }
 0x9c9   : > { %7445 = vrcp.f32 %v4928_v32  ;;  %v4968_v13 = vand.u32 2147483647, %v4929_v58  ;;  %v4970_v35 = vand.u32 2147483648, %v4929_v58  ;;  %v4953_v14 = vand.u32 2147483647, %v4928_v32 }
 0x9ca   : > { %7447 = vrcp.f32 %v4929_v58  ;;  %v4955_v44 = vand.u32 2147483648, %v4928_v32  ;;  %vm4964_vm11 = vweird.f32 %v4929_v58  ;;  %vm4949_vm15 = vweird.f32 %v4928_v32 }
 0x9cb   : > { %7449 = vrcp.f32 %v11972_v61  ;;  %vm11990_vm13 = vcmp.eq.f32.partialorder %v4968_v13, 8.507059e+37  ;;  %v4971_v52 = vor.u32 1.1754944e-38, %v4970_v35  ;;  %vm11996_vm0 = vcmp.eq.f32.partialorder %v4953_v14, 8.507059e+37 }
 0x9cc   : > { %7451 = vrcp.f32 %v11974_v45  ;;  %v4956_v48 = vor.u32 1.1754944e-38, %v4955_v44  ;;  %v5000_v44 = vand.u32 2147483648, %v11974_v45 }
 0x9cd   : > { %7453 = vrcp.f32 %v11976_v60 }
 0x9ce   : > { %7455 = vrcp.f32 %v11978_v28  ;;  %v5001_v33 = vor.u32 1.1754944e-38, %v5000_v44 }
 0x9cf   : > { %v7446_v59 = vpop.eup %7445  ;;  %7457 = vrcp.f32 %v11984_v19 }
 0x9d0   : > { %v7448_v55 = vpop.eup %7447  ;;  %v4945_v16 = vmul.f32 %v7446_v59, %v4928_v32  ;;  %vm4950_vm10 = vweird.f32 %v7446_v59  ;;  %7459 = vrcp.f32 %v11986_v34 }
 0x9d1   : > { %v11988_v12 = vpop.eup %7449  ;;  %v4960_v5 = vmul.f32 %v7448_v55, %v4929_v58  ;;  %vm4965_vm12 = vweird.f32 %v7448_v55  ;;  %vm4951_vm6 = vmor %vm4949_vm15, %vm4950_vm10  ;;  %vm4994_vm15 = vweird.f32 %v11974_v45 }
 0x9d2   : > { %v11994_v23 = vpop.eup %7451  ;;  %v4946_v43 = vsub.f32 1.0, %v4945_v16  ;;  %v4975_v18 = vmul.f32 %v11988_v12, %v11972_v61  ;;  %vm4980_vm8 = vweird.f32 %v11988_v12  ;;  %vm4966_vm9 = vmor %vm4964_vm11, %vm4965_vm12  ;;  %vm4979_vm11 = vweird.f32 %v11972_v61 }
 0x9d3   : > { %v12002_v50 = vpop.eup %7453  ;;  %v4961_v22 = vsub.f32 1.0, %v4960_v5  ;;  %v4990_v15 = vmul.f32 %v11994_v23, %v11974_v45  ;;  %v4985_v5 = vand.u32 2147483648, %v11972_v61  ;;  %vm4995_vm1 = vweird.f32 %v11994_v23 }
 0x9d4   : > { %v12007_v11 = vpop.eup %7455  ;;  %v4947_v51 = vmul.f32 %v7446_v59, %v4946_v43  ;;  %v4976_v2 = vsub.f32 1.0, %v4975_v18  ;;  %v5005_v49 = vmul.f32 %v12002_v50, %v11976_v60  ;;  %vm4996_vm10 = vmor %vm4994_vm15, %vm4995_vm1  ;;  %vm5024_vm1 = vweird.f32 %v11978_v28 }
 0x9d5   : > { %v4962_v7 = vmul.f32 %v7448_v55, %v4961_v22  ;;  %v4991_v13 = vsub.f32 1.0, %v4990_v15  ;;  %v5020_v35 = vmul.f32 %v12007_v11, %v11978_v28 }
 0x9d6   : > { %v4948_v14 = vadd.f32 %v7446_v59, %v4947_v51  ;;  %v4977_v16 = vmul.f32 %v11988_v12, %v4976_v2  ;;  %v5006_v51 = vsub.f32 1.0, %v5005_v49  ;;  %v12023_v2 = vpop.eup %7457 }
 0x9d7   : > { %v4963_v43 = vadd.f32 %v7448_v55, %v4962_v7  ;;  %v4992_v18 = vmul.f32 %v11994_v23, %v4991_v13  ;;  %v5021_v3 = vsub.f32 1.0, %v5020_v35  ;;  %v12042_v38 = vpop.eup %7459  ;;  %v5030_v35 = vand.u32 2147483648, %v11978_v28 }
 0x9d8   : > { %v4952_v22 = vsel %vm4951_vm6, %v7446_v59, %v4948_v14  ;;  %v4978_v15 = vadd.f32 %v11988_v12, %v4977_v16  ;;  %v4983_v59 = vand.u32 2147483647, %v11972_v61  ;;  %v4986_v61 = vor.u32 1.1754944e-38, %v4985_v5 }
 0x9d9   : > { %v4967_v37 = vsel %vm4966_vm9, %v7448_v55, %v4963_v43  ;;  %v4957_v7 = vsel %vm11996_vm0, %v4956_v48, %v4952_v22  ;;  %v4993_v32 = vadd.f32 %v11994_v23, %v4992_v18  ;;  %v4998_v55 = vand.u32 2147483647, %v11974_v45  ;;  %vm4981_vm0 = vmor %vm4979_vm11, %vm4980_vm8 }
 0x9da   : > { %v4972_v13 = vsel %vm11990_vm13, %v4971_v52, %v4967_v37  ;;  %v4958_v58 = vmul.f32 %v11834_v10, %v4957_v7  ;;  %v4982_v37 = vsel %vm4981_vm0, %v11988_v12, %v4978_v15  ;;  %v5007_v10 = vmul.f32 %v12002_v50, %v5006_v51 }
 0x9db   : > { %v4973_v49 = vmul.f32 %v11832_v8, %v4972_v13  ;;  %v4997_v8 = vsel %vm4996_vm10, %v11994_v23, %v4993_v32  ;;  %v5022_v52 = vmul.f32 %v12007_v11, %v5021_v3  ;;  %v5050_v45 = vmul.f32 %v12023_v2, %v11984_v19 }
 0x9dc   : > { %5066 = vperm.xlu0 %7149, %v4958_v58   ;;  %vm4984_vm13 = vcmp.eq.f32.partialorder %v4983_v59, 8.507059e+37  ;;  %vm4999_vm12 = vcmp.eq.f32.partialorder %v4998_v55, 8.507059e+37  ;;  %v5008_v14 = vadd.f32 %v12002_v50, %v5007_v10  ;;  %vm5010_vm6 = vweird.f32 %v12002_v50 }
 0x9dd   : > { %5071 = vperm.xlu2 %7150, %v4973_v49   ;;  %v4987_v48 = vsel %vm4984_vm13, %v4986_v61, %v4982_v37  ;;  %v5002_v12 = vsel %vm4999_vm12, %v5001_v33, %v4997_v8  ;;  %v5035_v23 = vmul.f32 %v12042_v38, %v11986_v34  ;;  %v5023_v16 = vadd.f32 %v12007_v11, %v5022_v52 }
 0x9de   : > { %vm5025_vm8 = vweird.f32 %v12007_v11  ;;  %v5015_v3 = vand.u32 2147483648, %v11976_v60  ;;  %v5051_v44 = vsub.f32 1.0, %v5050_v45  ;;  %v4988_v5 = vmul.f32 %v11948_v17, %v4987_v48 }
 0x9df   : > { %vm5009_vm9 = vweird.f32 %v11976_v60  ;;  %v5013_v43 = vand.u32 2147483647, %v11976_v60  ;;  %v5036_v18 = vsub.f32 1.0, %v5035_v23  ;;  %v5003_v22 = vmul.f32 %v11846_v21, %v5002_v12  ;;  %vm5026_vm15 = vmor %vm5024_vm1, %vm5025_vm8 }
 0x9e0   : > { %v5028_v15 = vand.u32 2147483647, %v11978_v28  ;;  %vm5011_vm11 = vmor %vm5009_vm9, %vm5010_vm6  ;;  %v5027_v17 = vsel %vm5026_vm15, %v12007_v11, %v5023_v16  ;;  %v5016_v32 = vor.u32 1.1754944e-38, %v5015_v3  ;;  %v5052_v60 = vmul.f32 %v12023_v2, %v5051_v44 }
 0x9e1   : > { %v5012_v51 = vsel %vm5011_vm11, %v12002_v50, %v5008_v14  ;;  %v5037_v7 = vmul.f32 %v12042_v38, %v5036_v18  ;;  %v5031_v13 = vor.u32 1.1754944e-38, %v5030_v35  ;;  %vm5014_vm0 = vcmp.eq.f32.partialorder %v5013_v43, 8.507059e+37 }
 0x9e2   : > { %vm5029_vm10 = vcmp.eq.f32.partialorder %v5028_v15, 8.507059e+37  ;;  %v5017_v21 = vsel %vm5014_vm0, %v5016_v32, %v5012_v51  ;;  %vm5040_vm13 = vweird.f32 %v12042_v38  ;;  %v5053_v59 = vadd.f32 %v12023_v2, %v5052_v60 }
 0x9e3   : > { %v5032_v58 = vsel %vm5029_vm10, %v5031_v13, %v5027_v17  ;;  %v5038_v28 = vadd.f32 %v12042_v38, %v5037_v7  ;;  %vm5055_vm12 = vweird.f32 %v12023_v2  ;;  %v5045_v50 = vand.u32 2147483648, %v11986_v34 }
 0x9e4   : > { %5076 = vperm.xlu0 %7149, %v4988_v5   ;;  %v5018_v11 = vmul.f32 %v11844_v20, %v5017_v21  ;;  %v5060_v49 = vand.u32 2147483648, %v11984_v19  ;;  %vm5039_vm6 = vweird.f32 %v11986_v34  ;;  %v5043_v55 = vand.u32 2147483647, %v11986_v34 }
 0x9e5   : > { %5081 = vperm.xlu2 %7150, %v5003_v22   ;;  %v5033_v37 = vmul.f32 %v11951_v57, %v5032_v58  ;;  %vm5054_vm8 = vweird.f32 %v11984_v19  ;;  %v5058_v10 = vand.u32 2147483647, %v11984_v19  ;;  %vm5041_vm9 = vmor %vm5039_vm6, %vm5040_vm13  ;;  %v5046_v61 = vor.u32 1.1754944e-38, %v5045_v50 }
 0x9e6   : > { %vm5056_vm1 = vmor %vm5054_vm8, %vm5055_vm12  ;;  %v5042_v8 = vsel %vm5041_vm9, %v12042_v38, %v5038_v28  ;;  %v5061_v52 = vor.u32 1.1754944e-38, %v5060_v49  ;;  %vm5044_vm11 = vcmp.eq.f32.partialorder %v5043_v55, 8.507059e+37  ;;  %v14173_v38 = vunpack.c.h.bf16 %v11320_v62  ;;  %v6667_v28 = vld [vmem:[%s14183_s11 + $0x8] sm:$0xff] }
 0x9e7   : > { %v5057_v20 = vsel %vm5056_vm1, %v12023_v2, %v5053_v59  ;;  %vm5059_vm15 = vcmp.eq.f32.partialorder %v5058_v10, 8.507059e+37  ;;  %v5047_v45 = vsel %vm5044_vm11, %v5046_v61, %v5042_v8  ;;  %v14174_v2 = vunpack.c.l.bf16 %v11320_v62  ;;  %v6671_v59 = vld [vmem:[%s14184_s12 + $0x8] sm:$0xff]  ;;  %5260 = vmatpush.bf16.msra.mxu2 %v6667_v28  ;;  %v6670_v10 = vld [vmem:[%s14184_s12] sm:$0xff] }
 0x9e8   : > { %v5062_v34 = vsel %vm5059_vm15, %v5061_v52, %v5057_v20  ;;  %v5048_v57 = vmul.f32 %v11856_v56, %v5047_v45  ;;  %vm14175_vm0 = vcmask 261120   ;;  %v14176_v3 = vunpack.c.h.bf16 %v11355_v26  ;;  %5293 = vmatpush.bf16.msra.mxu3 %v6671_v59  ;;  %v6668_v52 = vld [vmem:[%s14183_s11 + $0x10] sm:$0xff] }
 0x9e9   : > { %v5063_v33 = vmul.f32 %v11854_v25, %v5062_v34  ;;  %vm14177_vm10 = vmmov %vm14175_vm0  ;;  %v14179_v22 = vunpack.c.h.bf16 %v11386_v63  ;;  %v14180_v62 = vunpack.c.h.bf16 %v11435_v42  ;;  %v14181_v13 = vunpack.c.l.bf16 %v11355_v26  ;;  %v6669_v26 = vld [vmem:[%s14183_s11 + $0x18] sm:$0xff] }
 0x9ea   : > { %vm14178_vm13 = vmmov %vm14175_vm0  ;;  %5232 = vmatpush.bf16.msra.mxu1 %v6669_v26  ;;  %v14193_v28 = vunpack.c.l.bf16 %v11435_v42 }
 0x9eb   : > { %vm14182_vm12 = vmmov %vm14175_vm0 }
 0x9ec   : > { %5086 = vperm.xlu0 %7149, %v5018_v11   ;;  %vm14185_vm6 = vmmov %vm14175_vm0  ;;  %5294 = vmatpush.bf16.msra.mxu3 %v6670_v10 }
 0x9ed   : > { %5091 = vperm.xlu2 %7150, %v5033_v37   ;;  %vm14186_vm8 = vmmov %vm14175_vm0  ;;  %v6666_v37 = vld [vmem:[%s14183_s11] sm:$0xff]  ;;  %s6286_s11 = scalar_lea.sflag [#allocation8], %s7793_s0 }
 0x9ee   : > { %5261 = vmatpush.bf16.msra.mxu2 %v6666_v37  ;;  %5233 = vmatpush.bf16.msra.mxu1 %v6668_v52  ;;  %vm14190_vm9 = vmmov %vm14175_vm0 }
 0x9ef   : > { %vm14191_vm1 = vmmov %vm14175_vm0 }
 0x9f0   : > { %vm14192_vm11 = vmmov %vm14175_vm0 }
 0x9f1   : > { %vm14194_vm15 = vmmov %vm14175_vm0 }
 0x9f4   : > { %5096 = vperm.xlu0 %7149, %v5048_v57  }
 0x9f5   : > { %5101 = vperm.xlu2 %7150, %v5063_v33   ;;  %v7482_v33 = vld [vmem:[#allocation2] sm:$0xff] }
 0xa37   : > { %v5072_v19 = vpop.permute.xlu2 %5071 }
 0xa38   : > { %v5105_v12 = vmul.f32 %v14173_v38, %v5072_v19  ;;  %v5267_v19 = vpack.c.bf16 %v7482_v33, %v7482_v33  ;;  %v5170_v38 = vld [vmem:[%s5169_s21] sm:$0xf] }
 0xa39   : > { %6599 = vmatmul.msk.bf16.vlgmr.msra.gmra.mxu2 %vm14191_vm1, %v5170_v38 }
 0xa3a   : > { %v5119_v16 = vsel %vm14175_vm0, %v5105_v12, 0.0  ;;  %v764_v12 = vld [vmem:[#allocation3] sm:$0xff]  ;;  %6608 = vmatmul.msk.bf16.vlgmr.msra.gmra.mxu3 %vm14192_vm11, %v5267_v19  ;;  %vm14195_vm0 = vcmask 1041409  }
 0xa3b   : > { %v5120_v5 = vrot.slane %v5119_v16, 4  ;;  %5327 = vrot.lane.b32.xlu0 %v764_v12, %s14189_s8 }
 0xa3d   : > { %v5121_v32 = vadd.f32 %v5120_v5, %v5119_v16  ;;  %v14188_v16 = vunpack.c.l.bf16 %v11386_v63 }
 0xa3f   : > { %v5082_v48 = vpop.permute.xlu2 %5081  ;;  %v5122_v8 = vrot.slane %v5121_v32, 2 }
 0xa40   : > { %v5107_v44 = vmul.f32 %v14176_v3, %v5082_v48 }
 0xa42   : > { %v5133_v18 = vsel %vm14178_vm13, %v5107_v44, 0.0  ;;  %vm14197_vm13 = vcmask 1043459  }
 0xa43   : > { %v5134_v60 = vrot.slane %v5133_v18, 4 }
 0xa45   : > { %v5135_v20 = vadd.f32 %v5134_v60, %v5133_v18 }
 0xa47   : > { %v5092_v35 = vpop.permute.xlu2 %5091 }
 0xa48   : > { %v5109_v15 = vmul.f32 %v14179_v22, %v5092_v35 }
 0xa4a   : > { %v5147_v58 = vsel %vm14182_vm12, %v5109_v15, 0.0  ;;  %vm14198_vm12 = vcmask 1044484  }
 0xa4b   : > { %v5148_v61 = vrot.slane %v5147_v58, 4 }
 0xa4e   : > { %v5067_v14 = vpop.permute.xlu0 %5066 }
 0xa4f   : > { %v5104_v23 = vmul.f32 %v14174_v2, %v5067_v14  ;;  %v5102_v43 = vpop.permute.xlu2 %5101  ;;  %v5123_v14 = vadd.f32 %v5122_v8, %v5121_v32  ;;  %v5136_v2 = vrot.slane %v5135_v20, 2 }
 0xa50   : > { %v5111_v7 = vmul.f32 %v14180_v62, %v5102_v43 }
 0xa51   : > { %v5112_v25 = vsel %vm14177_vm10, %v5104_v23, 0.0  ;;  %v5149_v23 = vadd.f32 %v5148_v61, %v5147_v58  ;;  %v5124_v22 = vrot.slane %v5123_v14, 1  ;;  %v5137_v15 = vadd.f32 %v5136_v2, %v5135_v20 }
 0xa52   : > { %v5113_v56 = vrot.slane %v5112_v25, 4  ;;  %v5161_v49 = vsel %vm14186_vm8, %v5111_v7, 0.0  ;;  %vm14196_vm10 = vcmask 1042434   ;;  %vm14200_vm8 = vcmask 1046534  }
 0xa53   : > { %v5162_v34 = vrot.slane %v5161_v49, 4 }
 0xa54   : > { %v5114_v51 = vadd.f32 %v5113_v56, %v5112_v25 }
 0xa55   : > { %v5163_v25 = vadd.f32 %v5162_v34, %v5161_v49 }
 0xa56   : > { %v5077_v17 = vpop.permute.xlu0 %5076  ;;  %v5115_v50 = vrot.slane %v5114_v51, 2 }
 0xa57   : > { %v5106_v21 = vmul.f32 %v14181_v13, %v5077_v17  ;;  %v5164_v63 = vrot.slane %v5163_v25, 2  ;;  %v5125_v13 = vadd.f32 %v5124_v22, %v5123_v14 }
 0xa58   : > { %v5116_v57 = vadd.f32 %v5115_v50, %v5114_v51  ;;  %v5150_v51 = vrot.slane %v5149_v23, 2 }
 0xa59   : > { %v5126_v11 = vsel %vm14185_vm6, %v5106_v21, 0.0  ;;  %v5138_v21 = vrot.slane %v5137_v15, 1  ;;  %v5180_v8 = vpack.c.bf16 %v5125_v13, %v5125_v13  ;;  %vm14199_vm6 = vcmask 1045509  }
 0xa5a   : > { %v5127_v55 = vrot.slane %v5126_v11, 4  ;;  %v5117_v56 = vrot.slane %v5116_v57, 1  ;;  %v5151_v58 = vadd.f32 %v5150_v51, %v5149_v23 }
 0xa5b   : > { %v5139_v20 = vadd.f32 %v5138_v21, %v5137_v15  ;;  %v5196_v42 = vunpack.c.l.b16 %v5180_v8 }
 0xa5c   : > { %v5128_v45 = vadd.f32 %v5127_v55, %v5126_v11  ;;  %v5118_v7 = vadd.f32 %v5117_v56, %v5116_v57  ;;  %v5165_v11 = vadd.f32 %v5164_v63, %v5163_v25  ;;  %v5152_v61 = vrot.slane %v5151_v58, 1 }
 0xa5e   : > { %v5129_v48 = vrot.slane %v5128_v45, 2  ;;  %v5087_v35 = vpop.permute.xlu0 %5086  ;;  %v5179_v26 = vpack.c.bf16 %v5118_v7, %v5118_v7  ;;  %v5166_v34 = vrot.slane %v5165_v11, 1  ;;  %v5153_v38 = vadd.f32 %v5152_v61, %v5151_v58 }
 0xa5f   : > { %v5108_v3 = vmul.f32 %v14188_v16, %v5087_v35  ;;  %v5182_v35 = vpack.c.bf16 %v5139_v20, %v5139_v20 }
 0xa60   : > { %v5130_v44 = vadd.f32 %v5129_v48, %v5128_v45  ;;  %v5195_v57 = vunpack.c.l.b16 %v5179_v26  ;;  %v5167_v14 = vadd.f32 %v5166_v34, %v5165_v11  ;;  %v5184_v25 = vpack.c.bf16 %v5153_v38, %v5153_v38 }
 0xa61   : > { %v5140_v5 = vsel %vm14190_vm9, %v5108_v3, 0.0  ;;  %vm14201_vm9 = vcmask 1047559  }
 0xa62   : > { %v5131_v43 = vrot.slane %v5130_v44, 1  ;;  %v5141_v18 = vrot.slane %v5140_v5, 4  ;;  %v5203_v2 = vsel %vm14195_vm0, %v5196_v42, %v5195_v57  ;;  %v5200_v15 = vunpack.c.l.b16 %v5184_v25 }
 0xa64   : > { %v5142_v62 = vadd.f32 %v5141_v18, %v5140_v5  ;;  %v5132_v17 = vadd.f32 %v5131_v43, %v5130_v44  ;;  %v5198_v44 = vunpack.c.l.b16 %v5182_v35  ;;  %v5186_v5 = vpack.c.bf16 %v5167_v14, %v5167_v14 }
 0xa66   : > { %v5143_v32 = vrot.slane %v5142_v62, 2  ;;  %v5097_v60 = vpop.permute.xlu0 %5096  ;;  %v5181_v55 = vpack.c.bf16 %v5132_v17, %v5132_v17 }
 0xa67   : > { %v5110_v59 = vmul.f32 %v14193_v28, %v5097_v60 }
 0xa68   : > { %v5144_v50 = vadd.f32 %v5143_v32, %v5142_v62  ;;  %v5197_v33 = vunpack.c.l.b16 %v5181_v55  ;;  %v5202_v62 = vunpack.c.l.b16 %v5186_v5 }
 0xa69   : > { %v5154_v49 = vsel %vm14194_vm15, %v5110_v59, 0.0 }
 0xa6a   : > { %v5145_v37 = vrot.slane %v5144_v50, 1  ;;  %v5155_v10 = vrot.slane %v5154_v49, 4  ;;  %v5204_v23 = vsel %vm14196_vm10, %v5197_v33, %v5203_v2  ;;  %v14203_v2 = vld [vmem:[#allocation168_spill] sm:$0xff] }
 0xa6b   : > { %v5205_v43 = vsel %vm14197_vm13, %v5198_v44, %v5204_v23  ;;  %v4296_v23 = vmul.f32 %v14203_v2, %v11675_v46  ;;  %v14205_v44 = vld [vmem:[#allocation159_spill] sm:$0xff] }
 0xa6c   : > { %v5146_v52 = vadd.f32 %v5145_v37, %v5144_v50  ;;  %v5156_v45 = vadd.f32 %v5155_v10, %v5154_v49  ;;  %v7155_v50 = vld [vmem:[%s12898_s13] ss:$0 sm:$0xff]  ;;  %v4302_v25 = vmul.f32 %v14205_v44, %v11675_v46 }
 0xa6e   : > { %v5183_v19 = vpack.c.bf16 %v5146_v52, %v5146_v52  ;;  %v5157_v48 = vrot.slane %v5156_v45, 2 }
 0xa70   : > { %v5158_v12 = vadd.f32 %v5157_v48, %v5156_v45  ;;  %v5199_v16 = vunpack.c.l.b16 %v5183_v19 }
 0xa72   : > { %v5159_v3 = vrot.slane %v5158_v12, 1  ;;  %v5206_v22 = vsel %vm14198_vm12, %v5199_v16, %v5205_v43  ;;  %v14204_v16 = vld [vmem:[#allocation139_spill] sm:$0xff]  ;;  %v14207_v43 = vld [vmem:[#allocation176_spill] sm:$0xff] }
 0xa73   : > { %v5207_v63 = vsel %vm14199_vm6, %v5200_v15, %v5206_v22  ;;  %v14208_v22 = vld [vmem:[#allocation187_spill] sm:$0xff] }
 0xa74   : > { %v5160_v56 = vadd.f32 %v5159_v3, %v5158_v12  ;;  %v14202_v12 = vld [vmem:[#allocation160_spill] sm:$0xff]  ;;  %v4299_v3 = vmul.f32 %v14204_v16, %v11675_v46  ;;  %v4327_v15 = vmul.f32 %v14208_v22, %v11749_v41 }
 0xa75   : > { %v4293_v14 = vmul.f32 %v14202_v12, %v11675_v46  ;;  %v14221_v22 = vld [vmem:[#allocation120_spill] sm:$0xff] }
 0xa76   : > { %v5185_v18 = vpack.c.bf16 %v5160_v56, %v5160_v56  ;;  %v14206_v56 = vld [vmem:[#allocation178_spill] sm:$0xff] }
 0xa77   : > { %v4321_v5 = vmul.f32 %v14206_v56, %v11749_v41  ;;  %v14219_v56 = vld [vmem:[#allocation130_spill] sm:$0xff] }
 0xa78   : > { %v5201_v51 = vunpack.c.l.b16 %v5185_v18  ;;  %v4324_v18 = vmul.f32 %v14207_v43, %v11749_v41  ;;  %v14220_v43 = vld [vmem:[#allocation109_spill] sm:$0xff] }
 0xa7a   : > { %v5208_v7 = vsel %vm14200_vm8, %v5201_v51, %v5207_v63  ;;  %v14209_v51 = vld [vmem:[#allocation166_spill] sm:$0xff]  ;;  %v14210_v63 = vld [vmem:[#allocation199_spill] sm:$0xff] }
 0xa7b   : > { %v5209_v17 = vsel %vm14201_vm9, %v5202_v62, %v5208_v7  ;;  %v4330_v62 = vmul.f32 %v14209_v51, %v11749_v41  ;;  %v4333_v7 = vmul.f32 %v14210_v63, %v11749_v41  ;;  %vm14250_vm9 = vmmov %vm14191_vm1 }
 0xa7c   : > { %v5210_v32 = vpack.c.b16 %v5209_v17, %v5209_v17  ;;  %v14211_v17 = vld [vmem:[#allocation161_spill] sm:$0xff] }
 0xa7e   : > { %6590 = vmatmul.msk.bf16.vlgmr.msra.gmra.mxu1 %vm14191_vm1, %v5210_v32  ;;  %v4352_v32 = vmul.f32 %v14211_v17, %v11771_v36 }
 0xabc   : > { %v5263_v60 = vpop.f32.mrf.mxu2 }
 0xabd   : > { %v5296_v13 = vpop.f32.mrf.mxu3 }
 0xac4   : > { %v5265_v21 = vpop.f32.mrf.mxu2 }
 0xac5   : > { %v5298_v58 = vpop.f32.mrf.mxu3  ;;  %v14213_v21 = vld [vmem:[#allocation173_spill] sm:$0xff] }
 0xac6   : > { %v4355_v58 = vmul.f32 %v14213_v21, %v11771_v36 }
 0xafb   : > { %v5235_v28 = vpop.f32.mrf.mxu1 }
 0xafc   : > { %v5264_v59 = vadd.f32 %v5263_v60, %v5235_v28  ;;  %v14212_v60 = vld [vmem:[#allocation20_spill] sm:$0xff] }
 0xafe   : > { %v5300_v11 = vadd.f32 %v5296_v13, %v5264_v59  ;;  %v6580_v13 = vmul.f32 -1.442695, %v14212_v60 }
 0xb00   : > { %v5305_v26 = vadd.f32 %v7155_v50, %v5300_v11  ;;  %v14214_v50 = vld [vmem:[#allocation185_spill] sm:$0xff] }
 0xb01   : > { %v4358_v11 = vmul.f32 %v14214_v50, %v11771_v36  ;;  %v6678_v50 = vld [vmem:[%s12899_s14 + $0x30] sm:$0xff] }
 0xb02   : > { %7461 = vtanh.f32 %v5305_v26  ;;  %v6609_v37 = vmul.f32 -1.442695, %v5305_v26  ;;  %v14215_v26 = vld [vmem:[#allocation197_spill] sm:$0xff] }
 0xb03   : > { %v5237_v49 = vpop.f32.mrf.mxu1 }
 0xb04   : > { %7463 = vpow2.f32 %v6609_v37  ;;  %v4361_v49 = vmul.f32 %v14215_v26, %v11771_v36 }
 0xb08   : > { %v7462_v55 = vpop.eup %7461 }
 0xb09   : > { %5332 = vrot.lane.b32.xlu2 %v7462_v55, %s13248_s1 }
 0xb0a   : > { %v7464_v10 = vpop.eup %7463 }
 0xb0b   : > { %v5309_v8 = vadd.f32 1.0, %v7464_v10 }
 0xb0d   : > { %7465 = vrcp.f32 %v5309_v8  ;;  %v5321_v57 = vand.u32 2147483648, %v5309_v8  ;;  %vm5315_vm15 = vweird.f32 %v5309_v8  ;;  %v5319_v33 = vand.u32 2147483647, %v5309_v8 }
 0xb0e   : > { %7467 = vpow2.f32 %v6580_v13  ;;  %v14226_v13 = vld [vmem:[#allocation110_spill] sm:$0xff] }
 0xb0f   : > { %v5322_v48 = vor.u32 1.1754944e-38, %v5321_v57  ;;  %vm5320_vm10 = vcmp.eq.f32.partialorder %v5319_v33, 8.507059e+37  ;;  %v4442_v21 = vmul.f32 %v14226_v13, %v11677_v6  ;;  %v14244_v13 = vld [vmem:[#allocation174_spill] sm:$0xff] }
 0xb13   : > { %v7466_v20 = vpop.eup %7465 }
 0xb14   : > { %v5311_v61 = vmul.f32 %v7466_v20, %v5309_v8  ;;  %vm5316_vm11 = vweird.f32 %v7466_v20  ;;  %v7468_v28 = vpop.eup %7467  ;;  %v5328_v8 = vpop.permute.xlu0 %5327 }
 0xb15   : > { %vm5317_vm0 = vmor %vm5315_vm15, %vm5316_vm11  ;;  %v960_v59 = vadd.f32 1.0, %v7468_v28  ;;  %v14227_v28 = vld [vmem:[#allocation23_spill] sm:$0xff] }
 0xb16   : > { %v5312_v52 = vsub.f32 1.0, %v5311_v61  ;;  %vm14262_vm11 = vmmov %vm14191_vm1 }
 0xb17   : > { %7469 = vrcp.f32 %v960_v59  ;;  %vm966_vm12 = vweird.f32 %v960_v59  ;;  %vm14263_vm15 = vmmov %vm14191_vm1 }
 0xb18   : > { %v5313_v45 = vmul.f32 %v7466_v20, %v5312_v52 }
 0xb1a   : > { %v5314_v34 = vadd.f32 %v7466_v20, %v5313_v45 }
 0xb1c   : > { %v5318_v19 = vsel %vm5317_vm0, %v7466_v20, %v5314_v34  ;;  %v14216_v20 = vld [vmem:[#allocation177_spill] sm:$0xff]  ;;  %vm5572_vm0 = vcmask 257024  }
 0xb1d   : > { %v12146_v42 = vsel %vm5320_vm10, %v5322_v48, %v5318_v19  ;;  %v7470_v55 = vpop.eup %7469  ;;  %v4364_v61 = vmul.f32 %v14216_v20, %v11771_v36  ;;  %v14217_v19 = vld [vmem:[#allocation101_spill] sm:$0xff]  ;;  %vm14267_vm10 = vcmask 392512  }
 0xb1e   : > { %v962_v37 = vmul.f32 %v7470_v55, %v960_v59  ;;  %v5330_v52 = vmul.f32 %v5328_v8, %v12146_v42  ;;  %vm967_vm13 = vweird.f32 %v7470_v55  ;;  %v4383_v48 = vmul.f32 %v14217_v19, %v11782_v9  ;;  %v14230_v8 = vld [vmem:[#allocation132_spill] sm:$0xff] }
 0xb1f   : > { %vm968_vm6 = vmor %vm966_vm12, %vm967_vm13  ;;  %v4454_v20 = vmul.f32 %v14230_v8, %v11677_v6  ;;  %v6674_v8 = vld [vmem:[%s12899_s14 + $0x10] sm:$0xff]  ;;  %vm14270_vm13 = vcmask 523712   ;;  %vm14272_vm12 = vcmask 589312  }
 0xb20   : > { %v963_v10 = vsub.f32 1.0, %v962_v37 }
 0xb22   : > { %v964_v45 = vmul.f32 %v7470_v55, %v963_v10  ;;  %v6676_v10 = vld [vmem:[%s12899_s14 + $0x20] sm:$0xff] }
 0xb24   : > { %v965_v33 = vadd.f32 %v7470_v55, %v964_v45 }
 0xb26   : > { %v969_v12 = vsel %vm968_vm6, %v7470_v55, %v965_v33  ;;  %v14229_v55 = vld [vmem:[#allocation31_spill] sm:$0xff]  ;;  %vm14275_vm6 = vcmask 654912  }
 0xb27   : > { %v4451_v37 = vmul.f32 %v14229_v55, %v11677_v6  ;;  %v14247_v55 = vld [vmem:[#allocation192_spill] sm:$0xff] }
 0xb63   : > { %v5333_v35 = vpop.permute.xlu2 %5332 }
 0xb64   : > { %v5335_v38 = vmul.f32 %v5333_v35, %v12146_v42  ;;  %v972_v35 = vand.u32 2147483648, %v960_v59 }
 0xb66   : > { %5337 = vrot.lane.b32.xlu1 %v5335_v38, %s14189_s8  ;;  %v970_v38 = vand.u32 2147483647, %v960_v59  ;;  %v973_v2 = vor.u32 1.1754944e-38, %v972_v35  ;;  %v4445_v59 = vmul.f32 %v14227_v28, %v11677_v6  ;;  %v6675_v28 = vld [vmem:[%s12899_s14 + $0x18] sm:$0xff] }
 0xb67   : > { %5393 = vmatpush.bf16.msrb.mxu0 %v6675_v28 }
 0xb68   : > { %vm971_vm8 = vcmp.eq.f32.partialorder %v970_v38, 8.507059e+37 }
 0xb6b   : > { %5394 = vmatpush.bf16.msrb.mxu0 %v6674_v8 }
 0xb6e   : > { %5699 = vperm.xlu1 %7148, %v4293_v14  }
 0xb76   : > { %5708 = vperm.xlu1 %7148, %v4296_v23   ;;  %v974_v23 = vsel %vm971_vm8, %v973_v2, %v969_v12  ;;  %vm14277_vm8 = vcmask 720512  }
 0xb77   : > { %v4718_v16 = vmul.f32 %v11954_v4, %v974_v23  ;;  %v14222_v4 = vld [vmem:[#allocation28_spill] sm:$0xff]  ;;  %v14234_v23 = vld [vmem:[#allocation151_spill] sm:$0xff] }
 0xb78   : > { %v4414_v51 = vmul.f32 %v14222_v4, %v11794_v1 }
 0xb7e   : > { %5717 = vperm.xlu1 %7148, %v4299_v3   ;;  %v14218_v3 = vld [vmem:[#allocation102_spill] sm:$0xff] }
 0xb7f   : > { %v4386_v44 = vmul.f32 %v14218_v3, %v11782_v9  ;;  %v14235_v3 = vld [vmem:[#allocation80_spill] sm:$0xff] }
 0xb86   : > { %5726 = vperm.xlu1 %7148, %v4302_v25   ;;  %v5428_v25 = vpack.c.bf16 %v4718_v16, %v4718_v16  ;;  %v4291_v16 = vmul.f32 %v14234_v23, %v11675_v46  ;;  %v14257_v23 = vld [vmem:[#allocation167_spill] sm:$0xff] }
 0xb8e   : > { %5735 = vperm.xlu1 %7148, %v4321_v5   ;;  %v4389_v5 = vmul.f32 %v14219_v56, %v11782_v9 }
 0xb96   : > { %5744 = vperm.xlu1 %7148, %v4324_v18   ;;  %v4392_v18 = vmul.f32 %v14220_v43, %v11782_v9 }
 0xb9e   : > { %5753 = vperm.xlu1 %7148, %v4327_v15   ;;  %v4411_v15 = vmul.f32 %v14221_v22, %v11794_v1 }
 0xba6   : > { %5762 = vperm.xlu1 %7148, %v4330_v62   ;;  %v14223_v62 = vld [vmem:[#allocation129_spill] sm:$0xff] }
 0xba7   : > { %v4417_v63 = vmul.f32 %v14223_v62, %v11794_v1 }
 0xbae   : > { %5771 = vperm.xlu1 %7148, %v4333_v7   ;;  %v14224_v7 = vld [vmem:[#allocation131_spill] sm:$0xff] }
 0xbaf   : > { %v4420_v17 = vmul.f32 %v14224_v7, %v11794_v1 }
 0xbb6   : > { %5780 = vperm.xlu1 %7148, %v4352_v32   ;;  %v14225_v32 = vld [vmem:[#allocation24_spill] sm:$0xff] }
 0xbb7   : > { %v4423_v60 = vmul.f32 %v14225_v32, %v11794_v1  ;;  %v14243_v32 = vld [vmem:[#allocation140_spill] sm:$0xff] }
 0xbbe   : > { %5789 = vperm.xlu1 %7148, %v4355_v58   ;;  %v6679_v58 = vld [vmem:[%s12899_s14 + $0x38] sm:$0xff] }
 0xbbf   : > { %5463 = vmatpush.bf16.msrb.mxu2 %v6679_v58  ;;  %v6681_v58 = vld [vmem:[%s12900_s15 + $0x8] sm:$0xff] }
 0xbc0   : > { %5495 = vmatpush.bf16.msrb.mxu3 %v6681_v58 }
 0xbc3   : > { %5464 = vmatpush.bf16.msrb.mxu2 %v6678_v50  ;;  %v6680_v50 = vld [vmem:[%s12900_s15] sm:$0xff] }
 0xbc4   : > { %5496 = vmatpush.bf16.msrb.mxu3 %v6680_v50 }
 0xbc6   : > { %5798 = vperm.xlu1 %7148, %v4358_v11   ;;  %v14228_v11 = vld [vmem:[#allocation119_spill] sm:$0xff] }
 0xbc7   : > { %v4448_v26 = vmul.f32 %v14228_v11, %v11677_v6  ;;  %v6672_v11 = vld [vmem:[%s12899_s14] sm:$0xff] }
 0xbce   : > { %5807 = vperm.xlu1 %7148, %v4361_v49   ;;  %v6677_v49 = vld [vmem:[%s12899_s14 + $0x28] sm:$0xff] }
 0xbcf   : > { %5465 = vmatpush.bf16.msrb.mxu2 %v6677_v49 }
 0xbd3   : > { %5466 = vmatpush.bf16.msrb.mxu2 %v6676_v10  ;;  %v14248_v10 = vld [vmem:[#allocation19_spill] sm:$0xff] }
 0xbd6   : > { %5816 = vperm.xlu1 %7148, %v4364_v61   ;;  %v14231_v61 = vld [vmem:[#allocation65_spill] sm:$0xff] }
 0xbd8   : > { %v5338_v34 = vpop.permute.xlu1 %5337 }
 0xbd9   : > { %v12180_v57 = vadd.f32 %v5338_v34, %v5330_v52  ;;  %v4473_v52 = vmul.f32 %v14231_v61, %v11755_v31  ;;  %v14232_v34 = vld [vmem:[#allocation153_spill] sm:$0xff]  ;;  %v14251_v61 = vld [vmem:[#allocation148_spill] sm:$0xff] }
 0xbda   : > { %v4476_v33 = vmul.f32 %v14232_v34, %v11755_v31 }
 0xbdb   : > { %7471 = vtanh.f32 %v12180_v57 }
 0xbde   : > { %5825 = vperm.xlu1 %7148, %v4383_v48  }
 0xbe1   : > { %v7472_v14 = vpop.eup %7471 }
 0xbe2   : > { %5343 = vrot.lane.b32.xlu0 %v7472_v14, %s13248_s1  ;;  %v14233_v14 = vld [vmem:[#allocation58_spill] sm:$0xff] }
 0xbe3   : > { %v4479_v2 = vmul.f32 %v14233_v14, %v11755_v31  ;;  %v14256_v14 = vld [vmem:[#allocation193_spill] sm:$0xff] }
 0xbe6   : > { %5834 = vperm.xlu1 %7148, %v4386_v44   ;;  %v4482_v44 = vmul.f32 %v14235_v3, %v11755_v31  ;;  %v14259_v3 = vld [vmem:[#allocation145_spill] sm:$0xff] }
 0xbea   : > { %5430 = vrot.lane.b32.xlu0 %v5428_v25, %s13247_s6  ;;  %v14236_v25 = vld [vmem:[#allocation146_spill] sm:$0xff] }
 0xbeb   : > { %v4294_v56 = vmul.f32 %v14236_v25, %v11675_v46 }
 0xbee   : > { %5843 = vperm.xlu1 %7148, %v4389_v5   ;;  %v14237_v5 = vld [vmem:[#allocation73_spill] sm:$0xff] }
 0xbef   : > { %v4501_v43 = vmul.f32 %v14237_v5, %v11804_v0 }
 0xbf6   : > { %5852 = vperm.xlu1 %7148, %v4392_v18   ;;  %v14238_v18 = vld [vmem:[#allocation172_spill] sm:$0xff] }
 0xbf7   : > { %v4297_v22 = vmul.f32 %v14238_v18, %v11675_v46  ;;  %v14261_v18 = vld [vmem:[#allocation181_spill] sm:$0xff] }
 0xbfe   : > { %5861 = vperm.xlu1 %7148, %v4411_v15   ;;  %v14239_v15 = vld [vmem:[#allocation79_spill] sm:$0xff] }
 0xbff   : > { %v4504_v4 = vmul.f32 %v14239_v15, %v11804_v0  ;;  %v5700_v15 = vpop.permute.xlu1 %5699 }
 0xc06   : > { %5870 = vperm.xlu1 %7148, %v4414_v51   ;;  %v14240_v51 = vld [vmem:[#allocation162_spill] sm:$0xff] }
 0xc07   : > { %v4300_v62 = vmul.f32 %v14240_v51, %v11675_v46 }
 0xc0e   : > { %5879 = vperm.xlu1 %7148, %v4417_v63   ;;  %v14241_v63 = vld [vmem:[#allocation169_spill] sm:$0xff] }
 0xc0f   : > { %v4292_v7 = vmul.f32 %v14241_v63, %v11675_v46 }
 0xc16   : > { %5888 = vperm.xlu1 %7148, %v4420_v17  }
 0xc1e   : > { %5897 = vperm.xlu1 %7148, %v4423_v60   ;;  %v4295_v60 = vmul.f32 %v14243_v32, %v11675_v46 }
 0xc26   : > { %5906 = vperm.xlu1 %7148, %v4442_v21   ;;  %v4322_v21 = vmul.f32 %v14244_v13, %v11749_v41 }
 0xc2e   : > { %5915 = vperm.xlu1 %7148, %v4445_v59   ;;  %v6673_v59 = vld [vmem:[%s12899_s14 + $0x8] sm:$0xff] }
 0xc2f   : > { %5421 = vmatpush.bf16.msrb.mxu1 %v6673_v59 }
 0xc33   : > { %5422 = vmatpush.bf16.msrb.mxu1 %v6672_v11  ;;  %v6035_v11 = vperm.slane %v5700_v15, %v9765_v29 }
 0xc36   : > { %5924 = vperm.xlu1 %7148, %v4448_v26   ;;  %v14245_v26 = vld [vmem:[#allocation163_spill] sm:$0xff] }
 0xc37   : > { %v4298_v49 = vmul.f32 %v14245_v26, %v11675_v46 }
 0xc3e   : > { %5933 = vperm.xlu1 %7148, %v4451_v37   ;;  %v4325_v37 = vmul.f32 %v14247_v55, %v11749_v41 }
 0xc46   : > { %5942 = vperm.xlu1 %7148, %v4454_v20   ;;  %v5349_v20 = vld [vmem:[%s5348_s3] sm:$0xf]  ;;  %s6309_s3 = sshll.u32 %s7797_s24, 4  ;;  %s6310_s3 = int_to_ptr.vmem [resolvable:$true] %s6309_s3 }
 0xc47   : > { %6628 = vmatmul.msk.bf16.vlgmr.msrb.gmra.mxu1 %vm14250_vm9, %v5349_v20  ;;  %vm14282_vm9 = vcmask 851712  }
 0xc4e   : > { %5951 = vperm.xlu1 %7148, %v4473_v52   ;;  %v4301_v52 = vmul.f32 %v14251_v61, %v11675_v46 }
 0xc54   : > { %v5344_v45 = vpop.permute.xlu0 %5343 }
 0xc55   : > { %v5346_v19 = vmul.f32 %v5344_v45, %v12146_v42  ;;  %v766_v42 = vld [vmem:[#allocation5] sm:$0xff] }
 0xc56   : > { %5960 = vperm.xlu1 %7148, %v4476_v33   ;;  %v14252_v45 = vld [vmem:[#allocation194_spill] sm:$0xff]  ;;  %v14253_v33 = vld [vmem:[#allocation175_spill] sm:$0xff] }
 0xc57   : > { %v5366_v48 = vpack.c.bf16 %v5346_v19, %v5346_v19  ;;  %5550 = vrot.lane.b32.xlu0 %v5346_v19, %s14189_s8  ;;  %v4328_v34 = vmul.f32 %v14252_v45, %v11749_v41  ;;  %v4304_v19 = vmul.f32 %v14253_v33, %v11675_v46  ;;  %v14268_v45 = vld [vmem:[#allocation200_spill] sm:$0xff] }
 0xc59   : > { %v5368_v35 = vunpack.c.l.b16 %v5366_v48 }
 0xc5b   : > { %v5369_v38 = vpack.c.b16 %v5368_v35, %v5368_v35 }
 0xc5c   : > { %v5431_v12 = vpop.permute.xlu0 %5430 }
 0xc5d   : > { %5370 = vrot.lane.b32.xlu2 %v5369_v38, %s14189_s8  ;;  %6645 = vmatmul.msk.bf16.vlgmr.msrb.gmra.mxu2 %vm4627_vm14, %v5431_v12  ;;  %vm14249_vm14 = vmmov %vm14191_vm1  ;;  %v14255_v38 = vld [vmem:[#allocation138_spill] sm:$0xff] }
 0xc5e   : > { %5969 = vperm.xlu1 %7148, %v4479_v2   ;;  %6654 = vmatmul.msk.bf16.vlgmr.msrb.gmra.mxu3 %vm14249_vm14, %v14248_v10  ;;  %v4323_v12 = vmul.f32 %v14255_v38, %v11749_v41  ;;  %v4334_v2 = vmul.f32 %v14256_v14, %v11749_v41  ;;  %v14266_v10 = vld [vmem:[#allocation182_spill] sm:$0xff]  ;;  %v14271_v14 = vld [vmem:[#allocation96_spill] sm:$0xff]  ;;  %vm14279_vm14 = vcmask 786112  }
 0xc5f   : > { %5693 = vperm.xlu0 %7149, %v4291_v16   ;;  %v4326_v16 = vmul.f32 %v14257_v23, %v11749_v41 }
 0xc65   : > { %5529 = vrot.lane.b32.xlu2 %v766_v42, %s14189_s8  ;;  %v14258_v42 = vld [vmem:[#allocation188_spill] sm:$0xff] }
 0xc66   : > { %5978 = vperm.xlu1 %7148, %v4482_v44   ;;  %v4329_v44 = vmul.f32 %v14259_v3, %v11749_v41 }
 0xc67   : > { %5702 = vperm.xlu0 %7149, %v4294_v56   ;;  %v14260_v56 = vld [vmem:[#allocation155_spill] sm:$0xff] }
 0xc68   : > { %v4332_v5 = vmul.f32 %v14260_v56, %v11749_v41 }
 0xc6d   : > { %5555 = vrot.lane.b32.xlu2 %v12180_v57, %s13247_s6  ;;  %v14242_v57 = vld [vmem:[#allocation171_spill] sm:$0xff]  ;;  %s6311_s6 = sshll.u32 %s6307_s9, 4  ;;  %s6312_s6 = int_to_ptr.hbm [resolvable:$true] %s6311_s6 }
 0xc6e   : > { %5987 = vperm.xlu1 %7148, %v4501_v43   ;;  %v4303_v17 = vmul.f32 %v14242_v57, %v11675_v46  ;;  %v4353_v46 = vmul.f32 %v14258_v42, %v11771_v36  ;;  %v14273_v42 = vld [vmem:[#allocation203_spill] sm:$0xff]  ;;  %s7497_s1 = sshra.s32 %s6312_s6, 4  ;;  %s7498_s1 = int_to_ptr.hbm [resolvable:$true] %s7497_s1 }
 0xc6f   : > { %5711 = vperm.xlu0 %7149, %v4297_v22   ;;  %v4351_v22 = vmul.f32 %v14261_v18, %v11771_v36  ;;  %v14276_v18 = vld [vmem:[#allocation205_spill] sm:$0xff]  ;;  %s7499_s21 = scalar_lea.hbm %s7498_s1, 4  ;;  %p7504_p1 = scmp.lt.s32.totalorder %s7498_s1, %s12902_s17 }
 0xc70   : > { %p7500_p12 = scmp.ne.s32.totalorder %s7498_s1, %s7499_s21 }
 0xc72   : > { %p7501_p13 = pnand %p7500_p12, %p7775_p4 }
 0xc74   : > { %p7502_p0 = pneg %p7501_p13 }
 0xc75   : > { %5569 = vrot.lane.b32.xlu2 %v5366_v48, %s14189_s8  ;;  %v14254_v48 = vld [vmem:[#allocation184_spill] sm:$0xff] }
 0xc76   : > { %5996 = vperm.xlu1 %7148, %v4504_v4   ;;  %v4331_v35 = vmul.f32 %v14254_v48, %v11749_v41  ;;  %v5709_v41 = vpop.permute.xlu1 %5708 }
 0xc77   : > { %5720 = vperm.xlu0 %7149, %v4300_v62   ;;  %v14264_v62 = vld [vmem:[#allocation195_spill] sm:$0xff] }
 0xc78   : > { %v4354_v63 = vmul.f32 %v14264_v62, %v11771_v36 }
 0xc7d   : > { %5696 = vperm.xlu2 %7150, %v4292_v7  }
 0xc7e   : > { %v5718_v28 = vpop.permute.xlu1 %5717 }
 0xc7f   : > { %5729 = vperm.xlu0 %7149, %v4303_v17   ;;  %v14265_v17 = vld [vmem:[#allocation204_spill] sm:$0xff] }
 0xc80   : > { %v4357_v32 = vmul.f32 %v14265_v17, %v11771_v36  ;;  %v14281_v17 = vld [vmem:[#allocation207_spill] sm:$0xff] }
 0xc85   : > { %5705 = vperm.xlu2 %7150, %v4295_v60   ;;  %v6028_v60 = vperm.slane %v11842_v30, %v9731_v47 }
 0xc87   : > { %5738 = vperm.xlu0 %7149, %v4322_v21   ;;  %v6029_v21 = vperm.slane %v11816_v39, %v9738_v54  ;;  %v4360_v39 = vmul.f32 %v14266_v10, %v11771_v36  ;;  %v14288_v10 = vld [vmem:[#allocation100_spill] sm:$0xff] }
 0xc89   : > { %v6030_v59 = vsel %vm2795_vm2, %v6029_v21, %v6028_v60  ;;  %v14283_v21 = vld [vmem:[#allocation208_spill] sm:$0xff] }
 0xc8d   : > { %5714 = vperm.xlu2 %7150, %v4298_v49  }
 0xc8f   : > { %5747 = vperm.xlu0 %7149, %v4325_v37  }
 0xc95   : > { %5723 = vperm.xlu2 %7150, %v4301_v52  }
 0xc97   : > { %5756 = vperm.xlu0 %7149, %v4328_v34   ;;  %v6041_v34 = vperm.slane %v5709_v41, %v14268_v45 }
 0xc9d   : > { %5732 = vperm.xlu2 %7150, %v4304_v19   ;;  %v5727_v19 = vpop.permute.xlu1 %5726 }
 0xc9f   : > { %5765 = vperm.xlu0 %7149, %v4331_v35   ;;  %v14269_v35 = vld [vmem:[#allocation202_spill] sm:$0xff] }
 0xca5   : > { %5741 = vperm.xlu2 %7150, %v4323_v12   ;;  %v5736_v62 = vpop.permute.xlu1 %5735 }
 0xca7   : > { %5774 = vperm.xlu0 %7149, %v4334_v2   ;;  %v4363_v2 = vmul.f32 %v14271_v14, %v11771_v36 }
 0xcad   : > { %5750 = vperm.xlu2 %7150, %v4326_v16  }
 0xcaf   : > { %5783 = vperm.xlu0 %7149, %v4353_v46  }
 0xcb5   : > { %5759 = vperm.xlu2 %7150, %v4329_v44   ;;  %v14274_v44 = vld [vmem:[#allocation201_spill] sm:$0xff] }
 0xcb7   : > { %v5371_v25 = vpop.permute.xlu2 %5370 }
 0xcb8   : > { %6619 = vmatmul.msk.bf16.vlgmr.msrb.gmra.mxu0 %vm14191_vm1, %v5371_v25  ;;  %v6047_v25 = vperm.slane %v5718_v28, %v14274_v44  ;;  %vm14284_vm1 = vcmask 917312  }
 0xcbd   : > { %5768 = vperm.xlu2 %7150, %v4332_v5  }
 0xcbf   : > { %v12312_v43 = vpop.permute.xlu2 %5529 }
 0xcc5   : > { %5777 = vperm.xlu2 %7150, %v4351_v22  }
 0xcc7   : > { %v5556_v4 = vpop.permute.xlu2 %5555 }
 0xcc8   : > { %5558 = vst.msk [vmem:[#allocation3] sm:$0xff] %vm14262_vm11, %v5556_v4  ;;  %v14278_v4 = vld [vmem:[#allocation103_spill] sm:$0xff]  ;;  %vm14286_vm11 = vcmask 982912  }
 0xcc9   : > { %v5551_v51 = vpop.permute.xlu0 %5550 }
 0xcca   : > { %5553 = vst.msk [vmem:[#allocation2] sm:$0xff] %vm14263_vm15, %v5551_v51  ;;  %v4382_v51 = vmul.f32 %v14278_v4, %v11782_v9  ;;  %vm14290_vm15 = vcmask 1048512  }
 0xccd   : > { %5786 = vperm.xlu2 %7150, %v4354_v63  }
 0xccf   : > { %v5570_v7 = vpop.permute.xlu2 %5569 }
 0xcd0   : > { %5573 = vst.msk [vmem:[%s7797_s24] sm:$0xf] %vm5572_vm0, %v5570_v7  ;;  %v14280_v7 = vld [vmem:[#allocation206_spill] sm:$0xff] }
 0xcd1   : > { %v5694_v57 = vpop.permute.xlu0 %5693 }
 0xcd2   : > { %v6031_v13 = vperm.slane %v5694_v57, %v9743_v40 }
 0xcd4   : > { %v6032_v26 = vsel %vm2799_vm3, %v6031_v13, %v6030_v59  ;;  %v14285_v59 = vld [vmem:[#allocation127_spill] sm:$0xff] }
 0xcd5   : > { %5795 = vperm.xlu2 %7150, %v4357_v32   ;;  %v6053_v32 = vperm.slane %v5727_v19, %v14281_v17 }
 0xcd7   : > { %v5697_v58 = vpop.permute.xlu2 %5696 }
 0xcd8   : > { %v6033_v50 = vperm.slane %v5697_v58, %v9752_v24 }
 0xcd9   : > { %v5703_v49 = vpop.permute.xlu0 %5702 }
 0xcda   : > { %v6034_v55 = vsel %vm2803_vm4, %v6033_v50, %v6032_v26  ;;  %v6037_v30 = vperm.slane %v5703_v49, %v9770_v53  ;;  %v4385_v50 = vmul.f32 %v14285_v59, %v11782_v9  ;;  %v14287_v26 = vld [vmem:[#allocation43_spill] sm:$0xff] }
 0xcdb   : > { %v6036_v37 = vsel %vm2807_vm5, %v6035_v11, %v6034_v55  ;;  %v6059_v49 = vperm.slane %v14287_v26, %v9731_v47  ;;  %v5745_v55 = vpop.permute.xlu1 %5744 }
 0xcdc   : > { %v6038_v8 = vsel %vm14267_vm10, %v6037_v30, %v6036_v37  ;;  %v6062_v30 = vperm.slane %v5736_v62, %v9743_v40 }
 0xcdd   : > { %5804 = vperm.xlu2 %7150, %v4360_v39   ;;  %v6060_v39 = vperm.slane %v14288_v10, %v9738_v54 }
 0xcdf   : > { %v5706_v20 = vpop.permute.xlu2 %5705 }
 0xce0   : > { %v6039_v61 = vperm.slane %v5706_v20, %v9776_v27  ;;  %v12340_v52 = vpop.f32.mrf.mxu2 }
 0xce1   : > { %v5712_v33 = vpop.permute.xlu0 %5711 }
 0xce2   : > { %v6040_v48 = vsel %vm2815_vm7, %v6039_v61, %v6038_v8  ;;  %v6043_v38 = vperm.slane %v5712_v33, %v14269_v35  ;;  %v14289_v8 = vld [vmem:[#allocation143_spill] sm:$0xff] }
 0xce3   : > { %v6042_v12 = vsel %vm14270_vm13, %v6041_v34, %v6040_v48  ;;  %v6061_v34 = vsel %vm2795_vm2, %v6060_v39, %v6059_v49 }
 0xce4   : > { %v6044_v23 = vsel %vm14272_vm12, %v6043_v38, %v6042_v12  ;;  %v6063_v48 = vsel %vm2799_vm3, %v6062_v30, %v6061_v34  ;;  %v14291_v38 = vld [vmem:[#allocation112_spill] sm:$0xff]  ;;  %v5498_v30 = vpop.f32.mrf.mxu3 }
 0xce5   : > { %5813 = vperm.xlu2 %7150, %v4363_v2   ;;  %v4388_v12 = vmul.f32 %v14291_v38, %v11782_v9 }
 0xce7   : > { %v5715_v16 = vpop.permute.xlu2 %5714 }
 0xce8   : > { %v6045_v46 = vperm.slane %v5715_v16, %v14273_v42  ;;  %v5470_v3 = vpop.f32.mrf.mxu2 }
 0xce9   : > { %v5721_v56 = vpop.permute.xlu0 %5720 }
 0xcea   : > { %v6046_v5 = vsel %vm14275_vm6, %v6045_v46, %v6044_v23  ;;  %v6049_v22 = vperm.slane %v5721_v56, %v14276_v18  ;;  %v5754_v23 = vpop.permute.xlu1 %5753  ;;  %v6068_v46 = vperm.slane %v5745_v55, %v9770_v53 }
 0xceb   : > { %v6048_v15 = vsel %vm14277_vm8, %v6047_v25, %v6046_v5 }
 0xcec   : > { %v6050_v63 = vsel %vm14279_vm14, %v6049_v22, %v6048_v15  ;;  %v14292_v22 = vld [vmem:[#allocation111_spill] sm:$0xff] }
 0xced   : > { %5822 = vperm.xlu2 %7150, %v4382_v51   ;;  %v4391_v15 = vmul.f32 %v14292_v22, %v11782_v9  ;;  %v14296_v22 = vld [vmem:[#allocation106_spill] sm:$0xff] }
 0xcef   : > { %v5724_v41 = vpop.permute.xlu2 %5723 }
 0xcf0   : > { %v6051_v57 = vperm.slane %v5724_v41, %v14280_v7 }
 0xcf1   : > { %v5730_v60 = vpop.permute.xlu0 %5729 }
 0xcf2   : > { %v6052_v13 = vsel %vm14282_vm9, %v6051_v57, %v6050_v63  ;;  %v6055_v58 = vperm.slane %v5730_v60, %v14283_v21  ;;  %v6074_v63 = vperm.slane %v5754_v23, %v14269_v35  ;;  %v5763_v57 = vpop.permute.xlu1 %5762  ;;  %v5500_v23 = vpop.f32.mrf.mxu3 }
 0xcf3   : > { %v6054_v28 = vsel %vm14284_vm1, %v6053_v32, %v6052_v13  ;;  %v6080_v49 = vperm.slane %v5763_v57, %v14276_v18 }
 0xcf4   : > { %v6056_v11 = vsel %vm14286_vm11, %v6055_v58, %v6054_v28  ;;  %v14293_v58 = vld [vmem:[#allocation22_spill] sm:$0xff] }
 0xcf5   : > { %5831 = vperm.xlu2 %7150, %v4385_v50   ;;  %v4394_v28 = vmul.f32 %v14293_v58, %v11782_v9  ;;  %v5424_v50 = vpop.f32.mrf.mxu1 }
 0xcf7   : > { %v5733_v37 = vpop.permute.xlu2 %5732 }
 0xcf8   : > { %v6057_v20 = vperm.slane %v5733_v37, %v14289_v8 }
 0xcf9   : > { %v5739_v61 = vpop.permute.xlu0 %5738 }
 0xcfa   : > { %v6058_v33 = vsel %vm14290_vm15, %v6057_v20, %v6056_v11  ;;  %v6064_v19 = vperm.slane %v5739_v61, %v9752_v24  ;;  %v14294_v20 = vld [vmem:[#allocation95_spill] sm:$0xff]  ;;  %v5772_v34 = vpop.permute.xlu1 %5771 }
 0xcfb   : > { %v4413_v61 = vmul.f32 %v14294_v20, %v11794_v1  ;;  %v14302_v20 = vld [vmem:[#allocation46_spill] sm:$0xff] }
 0xcfc   : > { %v6065_v14 = vsel %vm2803_vm4, %v6064_v19, %v6063_v48 }
 0xcfd   : > { %5840 = vperm.xlu2 %7150, %v4388_v12   ;;  %v5426_v48 = vpop.f32.mrf.mxu1 }
 0xcff   : > { %v5742_v2 = vpop.permute.xlu2 %5741 }
 0xd00   : > { %v6066_v16 = vperm.slane %v5742_v2, %v9765_v29 }
 0xd01   : > { %v5748_v3 = vpop.permute.xlu0 %5747 }
 0xd02   : > { %v6067_v25 = vsel %vm2807_vm5, %v6066_v16, %v6065_v14  ;;  %v6070_v56 = vperm.slane %v5748_v3, %v9776_v27  ;;  %v6086_v14 = vperm.slane %v5772_v34, %v14283_v21 }
 0xd03   : > { %v6069_v5 = vsel %vm14267_vm10, %v6068_v46, %v6067_v25  ;;  %v14295_v25 = vld [vmem:[#allocation121_spill] sm:$0xff]  ;;  %vm14297_vm10 = vcmask 1041409  }
 0xd04   : > { %v6071_v4 = vsel %vm2815_vm7, %v6070_v56, %v6069_v5  ;;  %v4416_v56 = vmul.f32 %v14295_v25, %v11794_v1 }
 0xd05   : > { %5849 = vperm.xlu2 %7150, %v4391_v15   ;;  %v6090_v15 = vperm.slane %v14296_v22, %v9731_v47 }
 0xd07   : > { %v5751_v51 = vpop.permute.xlu2 %5750 }
 0xd08   : > { %v6072_v62 = vperm.slane %v5751_v51, %v14268_v45  ;;  %v5781_v51 = vpop.permute.xlu1 %5780 }
 0xd09   : > { %v5757_v41 = vpop.permute.xlu0 %5756 }
 0xd0a   : > { %v6073_v32 = vsel %vm14270_vm13, %v6072_v62, %v6071_v4  ;;  %v6076_v60 = vperm.slane %v5757_v41, %v14273_v42  ;;  %v14298_v62 = vld [vmem:[#allocation52_spill] sm:$0xff]  ;;  %vm14300_vm13 = vcmask 392512  }
 0xd0b   : > { %v6075_v13 = vsel %vm14272_vm12, %v6074_v63, %v6073_v32  ;;  %v6091_v63 = vperm.slane %v14298_v62, %v9738_v54  ;;  %v6095_v32 = vperm.slane %v5781_v51, %v9752_v24  ;;  %v14310_v62 = vld [vmem:[#allocation180_spill] sm:$0xff] }
 0xd0c   : > { %v6077_v59 = vsel %vm14275_vm6, %v6076_v60, %v6075_v13 }
 0xd0d   : > { %5858 = vperm.xlu2 %7150, %v4394_v28   ;;  %v6092_v60 = vsel %vm2795_vm2, %v6091_v63, %v6090_v15  ;;  %v14309_v15 = vld [vmem:[#allocation94_spill] sm:$0xff]  ;;  %v4390_v63 = vmul.f32 %v14310_v62, %v11782_v9 }
 0xd0e   : > { %v4387_v51 = vmul.f32 %v14309_v15, %v11782_v9 }
 0xd0f   : > { %v5760_v11 = vpop.permute.xlu2 %5759 }
 0xd10   : > { %v6078_v26 = vperm.slane %v5760_v11, %v14274_v44 }
 0xd11   : > { %v5766_v55 = vpop.permute.xlu0 %5765 }
 0xd12   : > { %v6079_v37 = vsel %vm14277_vm8, %v6078_v26, %v6077_v59  ;;  %v6082_v10 = vperm.slane %v5766_v55, %v14280_v7 }
 0xd13   : > { %v6081_v39 = vsel %vm14279_vm14, %v6080_v49, %v6079_v37 }
 0xd14   : > { %v6083_v19 = vsel %vm14282_vm9, %v6082_v10, %v6081_v39  ;;  %v14301_v10 = vld [vmem:[#allocation108_spill] sm:$0xff]  ;;  %vm14320_vm9 = vcmask 523712  }
 0xd15   : > { %5867 = vperm.xlu2 %7150, %v4413_v61   ;;  %v4422_v39 = vmul.f32 %v14301_v10, %v11794_v1  ;;  %v4441_v61 = vmul.f32 %v14302_v20, %v11677_v6 }
 0xd17   : > { %v5769_v38 = vpop.permute.xlu2 %5768 }
 0xd18   : > { %v6084_v12 = vperm.slane %v5769_v38, %v14281_v17  ;;  %v7156_v38 = vld [vmem:[%s12901_s16] ss:$0 sm:$0xff] }
 0xd19   : > { %v5775_v2 = vpop.permute.xlu0 %5774 }
 0xd1a   : > { %v6085_v16 = vsel %vm14284_vm1, %v6084_v12, %v6083_v19  ;;  %v6088_v46 = vperm.slane %v5775_v2, %v14289_v8  ;;  %vm14321_vm1 = vcmask 589312  }
 0xd1b   : > { %v6087_v3 = vsel %vm14286_vm11, %v6086_v14, %v6085_v16  ;;  %v14304_v16 = vld [vmem:[#allocation191_spill] sm:$0xff]  ;;  %vm14323_vm11 = vcmask 654912  }
 0xd1c   : > { %v6089_v5 = vsel %vm14290_vm15, %v6088_v46, %v6087_v3  ;;  %v4356_v46 = vmul.f32 %v14304_v16, %v11771_v36  ;;  %v14305_v3 = vld [vmem:[#allocation136_spill] sm:$0xff]  ;;  %v14316_v16 = vld [vmem:[#allocation134_spill] sm:$0xff]  ;;  %vm14325_vm15 = vcmask 720512  }
 0xd1d   : > { %v12413_v4 = vsel %vm14297_vm10, %v6089_v5, %v6058_v33  ;;  %5876 = vperm.xlu2 %7150, %v4416_v56   ;;  %v14299_v33 = vld [vmem:[#allocation105_spill] sm:$0xff]  ;;  %v14308_v5 = vld [vmem:[#allocation196_spill] sm:$0xff]  ;;  %vm14326_vm10 = vcmask 786112  }
 0xd1e   : > { %v4419_v59 = vmul.f32 %v14299_v33, %v11794_v1  ;;  %v4384_v22 = vmul.f32 %v14308_v5, %v11782_v9 }
 0xd1f   : > { %v5778_v41 = vpop.permute.xlu2 %5777 }
 0xd20   : > { %v6093_v57 = vperm.slane %v5778_v41, %v9743_v40  ;;  %v5790_v41 = vpop.permute.xlu1 %5789 }
 0xd21   : > { %v5784_v58 = vpop.permute.xlu0 %5783  ;;  %v6101_v10 = vperm.slane %v5790_v41, %v9776_v27  ;;  %v14318_v41 = vld [vmem:[#allocation39_spill] sm:$0xff] }
 0xd22   : > { %v6094_v13 = vsel %vm2799_vm3, %v6093_v57, %v6092_v60  ;;  %v6097_v11 = vperm.slane %v5784_v58, %v9765_v29  ;;  %v14312_v58 = vld [vmem:[#allocation116_spill] sm:$0xff] }
 0xd23   : > { %v6096_v28 = vsel %vm2803_vm4, %v6095_v32, %v6094_v13 }
 0xd24   : > { %v6098_v55 = vsel %vm2807_vm5, %v6097_v11, %v6096_v28  ;;  %v4412_v28 = vmul.f32 %v14312_v58, %v11794_v1 }
 0xd25   : > { %5885 = vperm.xlu2 %7150, %v4419_v59   ;;  %v14313_v59 = vld [vmem:[#allocation123_spill] sm:$0xff] }
 0xd26   : > { %v4415_v11 = vmul.f32 %v14313_v59, %v11794_v1 }
 0xd27   : > { %v5787_v26 = vpop.permute.xlu2 %5786 }
 0xd28   : > { %v6099_v49 = vperm.slane %v5787_v26, %v9770_v53  ;;  %v5799_v60 = vpop.permute.xlu1 %5798 }
 0xd2a   : > { %v6100_v37 = vsel %vm14300_vm13, %v6099_v49, %v6098_v55  ;;  %vm14328_vm13 = vcmask 851712  }
 0xd2d   : > { %5894 = vperm.xlu2 %7150, %v4422_v39   ;;  %v14314_v39 = vld [vmem:[#allocation125_spill] sm:$0xff] }
 0xd2e   : > { %v4418_v20 = vmul.f32 %v14314_v39, %v11794_v1 }
 0xd2f   : > { %v5796_v32 = vpop.permute.xlu2 %5795 }
 0xd30   : > { %v12459_v49 = vpop.permute.xlu1 %5807 }
 0xd35   : > { %5903 = vperm.xlu2 %7150, %v4441_v61   ;;  %v5396_v34 = vpop.f32.mrf.mxu0  ;;  %v6102_v61 = vsel %vm2815_vm7, %v6101_v10, %v6100_v37 }
 0xd36   : > { %v5425_v19 = vadd.f32 %v5424_v50, %v5396_v34  ;;  %v4359_v50 = vmul.f32 %v14305_v3, %v11771_v36 }
 0xd37   : > { %v12455_v33 = vpop.permute.xlu2 %5804 }
 0xd38   : > { %v5472_v48 = vadd.f32 %v12340_v52, %v5425_v19  ;;  %v14306_v52 = vld [vmem:[#allocation115_spill] sm:$0xff]  ;;  %v12467_v34 = vpop.permute.xlu1 %5816 }
 0xd39   : > { %v4362_v25 = vmul.f32 %v14306_v52, %v11771_v36  ;;  %v14311_v36 = vld [vmem:[#allocation198_spill] sm:$0xff] }
 0xd3a   : > { %v5502_v12 = vadd.f32 %v5498_v30, %v5472_v48  ;;  %v14307_v30 = vld [vmem:[#allocation179_spill] sm:$0xff]  ;;  %v4393_v57 = vmul.f32 %v14311_v36, %v11782_v9  ;;  %v4446_v36 = vmul.f32 %v14318_v41, %v11677_v6 }
 0xd3b   : > { %v4381_v56 = vmul.f32 %v14307_v30, %v11782_v9 }
 0xd3c   : > { %v5507_v14 = vadd.f32 %v7156_v38, %v5502_v12  ;;  %v14315_v38 = vld [vmem:[#allocation37_spill] sm:$0xff] }
 0xd3d   : > { %v5398_v2 = vpop.f32.mrf.mxu0  ;;  %v4421_v12 = vmul.f32 %v14315_v38, %v11794_v1 }
 0xd3e   : > { %7473 = vtanh.f32 %v5507_v14  ;;  %v6655_v13 = vmul.f32 -1.442695, %v5507_v14 }
 0xd3f   : > { %v12461_v9 = vpop.permute.xlu2 %5813 }
 0xd40   : > { %7475 = vpow2.f32 %v6655_v13  ;;  %v12473_v2 = vpop.permute.xlu1 %5825 }
 0xd44   : > { %v7474_v23 = vpop.eup %7473 }
 0xd45   : > { %5534 = vrot.lane.b32.xlu0 %v7474_v23, %s14303_s10 }
 0xd46   : > { %v7476_v26 = vpop.eup %7475 }
 0xd47   : > { %v5511_v55 = vadd.f32 1.0, %v7476_v26  ;;  %v12469_v48 = vpop.permute.xlu2 %5822 }
 0xd49   : > { %7477 = vrcp.f32 %v5511_v55  ;;  %v5523_v52 = vand.u32 2147483648, %v5511_v55  ;;  %vm5517_vm6 = vweird.f32 %v5511_v55  ;;  %v5521_v30 = vand.u32 2147483647, %v5511_v55 }
 0xd4b   : > { %v5524_v15 = vor.u32 1.1754944e-38, %v5523_v52  ;;  %vm5522_vm14 = vcmp.eq.f32.partialorder %v5521_v30, 8.507059e+37  ;;  %v14327_v52 = vld [vmem:[#allocation141_spill] sm:$0xff] }
 0xd4c   : > { %v4452_v30 = vmul.f32 %v14327_v52, %v11677_v6 }
 0xd4d   : > { %5792 = vperm.xlu0 %7149, %v4356_v46   ;;  %v4424_v46 = vmul.f32 %v14316_v16, %v11794_v1 }
 0xd4f   : > { %v7478_v19 = vpop.eup %7477 }
 0xd50   : > { %v5513_v14 = vmul.f32 %v7478_v19, %v5511_v55  ;;  %vm5518_vm12 = vweird.f32 %v7478_v19  ;;  %v6107_v55 = vperm.slane %v5799_v60, %v14273_v42  ;;  %v6111_v60 = vperm.slane %v12455_v33, %v14276_v18 }
 0xd51   : > { %vm5519_vm8 = vmor %vm5517_vm6, %vm5518_vm12  ;;  %vm14330_vm12 = vcmask 917312   ;;  %vm14331_vm6 = vcmask 982912  }
 0xd52   : > { %v5514_v23 = vsub.f32 1.0, %v5513_v14 }
 0xd54   : > { %v5515_v3 = vmul.f32 %v7478_v19, %v5514_v23  ;;  %v14324_v23 = vld [vmem:[#allocation54_spill] sm:$0xff] }
 0xd55   : > { %5801 = vperm.xlu0 %7149, %v4359_v50   ;;  %v12477_v50 = vpop.permute.xlu2 %5831  ;;  %v4447_v16 = vmul.f32 %v14324_v23, %v11677_v6 }
 0xd56   : > { %v5516_v37 = vadd.f32 %v7478_v19, %v5515_v3 }
 0xd5d   : > { %5810 = vperm.xlu0 %7149, %v4362_v25   ;;  %v12479_v25 = vpop.permute.xlu1 %5834  ;;  %v12483_v1 = vpop.permute.xlu2 %5840 }
 0xd65   : > { %5819 = vperm.xlu0 %7149, %v4381_v56   ;;  %v14317_v56 = vld [vmem:[#allocation32_spill] sm:$0xff]  ;;  %v12497_v26 = vpop.permute.xlu2 %5849 }
 0xd66   : > { %v4443_v5 = vmul.f32 %v14317_v56, %v11677_v6 }
 0xd6d   : > { %5828 = vperm.xlu0 %7149, %v4384_v22   ;;  %v5520_v22 = vsel %vm5519_vm8, %v7478_v19, %v5516_v37  ;;  %v12515_v3 = vpop.permute.xlu2 %5858  ;;  %vm14333_vm8 = vcmask 1048512  }
 0xd75   : > { %5837 = vperm.xlu0 %7149, %v4387_v51   ;;  %v12485_v51 = vsel %vm5522_vm14, %v5524_v15, %v5520_v22  ;;  %vm14339_vm14 = vcmask 392512  }
 0xd7d   : > { %5846 = vperm.xlu0 %7149, %v4390_v63  }
 0xd85   : > { %5855 = vperm.xlu0 %7149, %v4393_v57   ;;  %v12491_v57 = vpop.permute.xlu1 %5843 }
 0xd8d   : > { %5864 = vperm.xlu0 %7149, %v4412_v28   ;;  %v14319_v28 = vld [vmem:[#allocation33_spill] sm:$0xff] }
 0xd8e   : > { %v4444_v59 = vmul.f32 %v14319_v28, %v11677_v6 }
 0xd95   : > { %5873 = vperm.xlu0 %7149, %v4415_v11   ;;  %v6105_v11 = vperm.slane %v5796_v32, %v14269_v35 }
 0xd9d   : > { %5882 = vperm.xlu0 %7149, %v4418_v20   ;;  %v14322_v20 = vld [vmem:[#allocation45_spill] sm:$0xff] }
 0xd9e   : > { %v4449_v19 = vmul.f32 %v14322_v20, %v11677_v6  ;;  %v14336_v20 = vld [vmem:[#allocation48_spill] sm:$0xff] }
 0xda5   : > { %5891 = vperm.xlu0 %7149, %v4421_v12   ;;  %v12505_v12 = vpop.permute.xlu1 %5852 }
 0xdad   : > { %5900 = vperm.xlu0 %7149, %v4424_v46   ;;  %v12521_v22 = vpop.permute.xlu1 %5861 }
 0xdb5   : > { %5909 = vperm.xlu0 %7149, %v4443_v5   ;;  %v12551_v23 = vpop.permute.xlu1 %5870 }
 0xdb7   : > { %v5535_v62 = vpop.permute.xlu0 %5534 }
 0xdb8   : > { %v5537_v63 = vmul.f32 %v5535_v62, %v12485_v51  ;;  %v6117_v62 = vperm.slane %v12461_v9, %v14283_v21  ;;  %v14335_v9 = vld [vmem:[#allocation51_spill] sm:$0xff] }
 0xdba   : > { %5539 = vrot.lane.b32.xlu2 %v5537_v63, %s14189_s8  ;;  %v6119_v63 = vperm.slane %v12467_v34, %v14289_v8  ;;  %v6122_v34 = vperm.slane %v14335_v9, %v9738_v54 }
 0xdbd   : > { %5918 = vperm.xlu0 %7149, %v4446_v36  }
 0xdbf   : > { %v5793_v13 = vpop.permute.xlu0 %5792 }
 0xdc0   : > { %v6103_v58 = vperm.slane %v5793_v13, %v14268_v45  ;;  %v14332_v13 = vld [vmem:[#allocation40_spill] sm:$0xff] }
 0xdc2   : > { %v6104_v10 = vsel %vm14320_vm9, %v6103_v58, %v6102_v61  ;;  %5912 = vperm.xlu2 %7150, %v4444_v59   ;;  %v6113_v61 = vperm.slane %v12459_v49, %v14280_v7  ;;  %v14329_v49 = vld [vmem:[#allocation158_spill] sm:$0xff]  ;;  %v4471_v58 = vmul.f32 %v14332_v13, %v11755_v31  ;;  %v14334_v59 = vld [vmem:[#allocation21_spill] sm:$0xff] }
 0xdc3   : > { %v6106_v39 = vsel %vm14321_vm1, %v6105_v11, %v6104_v10  ;;  %v4450_v15 = vmul.f32 %v14329_v49, %v11677_v6  ;;  %v6121_v11 = vperm.slane %v14334_v59, %v9731_v47 }
 0xdc4   : > { %v6108_v38 = vsel %vm14323_vm11, %v6107_v55, %v6106_v39  ;;  %v12539_v55 = vpop.permute.xlu2 %5867 }
 0xdc5   : > { %5927 = vperm.xlu0 %7149, %v4449_v19   ;;  %v4453_v19 = vmul.f32 %v14336_v20, %v11677_v6 }
 0xdc7   : > { %v5802_v14 = vpop.permute.xlu0 %5801 }
 0xdc8   : > { %v6109_v32 = vperm.slane %v5802_v14, %v14274_v44  ;;  %v6123_v14 = vsel %vm2795_vm2, %v6122_v34, %v6121_v11  ;;  %v6140_v11 = vperm.slane %v12491_v57, %v14274_v44  ;;  %v6144_v57 = vperm.slane %v12497_v26, %v14280_v7 }
 0xdca   : > { %v6110_v46 = vsel %vm14325_vm15, %v6109_v32, %v6108_v38  ;;  %5921 = vperm.xlu2 %7150, %v4447_v16   ;;  %v6126_v38 = vperm.slane %v12469_v48, %v9752_v24  ;;  %v6128_v32 = vperm.slane %v12473_v2, %v9765_v29  ;;  %v14338_v2 = vld [vmem:[#allocation55_spill] sm:$0xff] }
 0xdcb   : > { %v6112_v37 = vsel %vm14326_vm10, %v6111_v60, %v6110_v46 }
 0xdcc   : > { %v6114_v56 = vsel %vm14328_vm13, %v6113_v61, %v6112_v37  ;;  %v14337_v61 = vld [vmem:[#allocation26_spill] sm:$0xff]  ;;  %v12558_v37 = vpop.permute.xlu2 %5876 }
 0xdcd   : > { %5936 = vperm.xlu0 %7149, %v4452_v30   ;;  %v4474_v46 = vmul.f32 %v14337_v61, %v11755_v31  ;;  %v4472_v30 = vmul.f32 %v14338_v2, %v11755_v31 }
 0xdcf   : > { %v5811_v5 = vpop.permute.xlu0 %5810 }
 0xdd0   : > { %v6115_v33 = vperm.slane %v5811_v5, %v14281_v17  ;;  %v6134_v5 = vperm.slane %v12479_v25, %v14268_v45  ;;  %v6138_v25 = vperm.slane %v12483_v1, %v14273_v42 }
 0xdd2   : > { %v6116_v41 = vsel %vm14330_vm12, %v6115_v33, %v6114_v56  ;;  %5930 = vperm.xlu2 %7150, %v4450_v15   ;;  %v6132_v56 = vperm.slane %v12477_v50, %v9776_v27  ;;  %v14340_v15 = vld [vmem:[#allocation49_spill] sm:$0xff]  ;;  %v14341_v50 = vld [vmem:[#allocation71_spill] sm:$0xff] }
 0xdd3   : > { %v6118_v36 = vsel %vm14331_vm6, %v6117_v62, %v6116_v41  ;;  %v4477_v62 = vmul.f32 %v14340_v15, %v11755_v31  ;;  %v14346_v15 = vld [vmem:[#allocation88_spill] sm:$0xff] }
 0xdd4   : > { %v12535_v28 = vsel %vm14333_vm8, %v6119_v63, %v6118_v36  ;;  %v12571_v63 = vpop.permute.xlu1 %5879  ;;  %v12579_v59 = vpop.permute.xlu2 %5885 }
 0xdd5   : > { %5945 = vperm.xlu0 %7149, %v4471_v58   ;;  %v4475_v58 = vmul.f32 %v14341_v50, %v11755_v31 }
 0xdd7   : > { %v5820_v10 = vpop.permute.xlu0 %5819 }
 0xdd8   : > { %v6124_v39 = vperm.slane %v5820_v10, %v9743_v40  ;;  %v14342_v10 = vld [vmem:[#allocation35_spill] sm:$0xff] }
 0xdda   : > { %v6125_v16 = vsel %vm2799_vm3, %v6124_v39, %v6123_v14  ;;  %5939 = vperm.xlu2 %7150, %v4453_v19   ;;  %v4480_v39 = vmul.f32 %v14342_v10, %v11755_v31  ;;  %v14343_v14 = vld [vmem:[#allocation77_spill] sm:$0xff] }
 0xddb   : > { %v6127_v60 = vsel %vm2803_vm4, %v6126_v38, %v6125_v16  ;;  %v6146_v16 = vperm.slane %v12505_v12, %v14281_v17  ;;  %v14345_v12 = vld [vmem:[#allocation64_spill] sm:$0xff] }
 0xddc   : > { %v6129_v6 = vsel %vm2807_vm5, %v6128_v32, %v6127_v60  ;;  %v12588_v19 = vpop.permute.xlu1 %5888  ;;  %v4478_v32 = vmul.f32 %v14343_v14, %v11755_v31  ;;  %v12598_v61 = vpop.permute.xlu2 %5894  ;;  %v14353_v14 = vld [vmem:[#allocation104_spill] sm:$0xff] }
 0xddd   : > { %5954 = vperm.xlu0 %7149, %v4474_v46  }
 0xddf   : > { %v5829_v48 = vpop.permute.xlu0 %5828 }
 0xde0   : > { %v6130_v52 = vperm.slane %v5829_v48, %v9770_v53 }
 0xde2   : > { %v6131_v33 = vsel %vm14339_vm14, %v6130_v52, %v6129_v6  ;;  %5948 = vperm.xlu2 %7150, %v4472_v30   ;;  %v14344_v6 = vld [vmem:[#allocation42_spill] sm:$0xff]  ;;  %vm14351_vm14 = vcmask 1042434  }
 0xde3   : > { %v6133_v49 = vsel %vm2815_vm7, %v6132_v56, %v6131_v33  ;;  %v4483_v48 = vmul.f32 %v14344_v6, %v11755_v31  ;;  %v4481_v56 = vmul.f32 %v14345_v12, %v11755_v31  ;;  %v14354_v6 = vld [vmem:[#allocation75_spill] sm:$0xff] }
 0xde4   : > { %v6135_v41 = vsel %vm14320_vm9, %v6134_v5, %v6133_v49  ;;  %v12604_v30 = vpop.permute.xlu1 %5897  ;;  %v6150_v5 = vperm.slane %v12515_v3, %v14289_v8  ;;  %v5904_v50 = vpop.permute.xlu2 %5903  ;;  %v14349_v3 = vld [vmem:[#allocation98_spill] sm:$0xff]  ;;  %vm14352_vm9 = vcmask 1043459  }
 0xde5   : > { %5963 = vperm.xlu0 %7149, %v4477_v62   ;;  %v4502_v62 = vmul.f32 %v14346_v15, %v11804_v0 }
 0xde7   : > { %v5838_v36 = vpop.permute.xlu0 %5837 }
 0xde8   : > { %v6136_v13 = vperm.slane %v5838_v36, %v14269_v35 }
 0xdea   : > { %v6137_v9 = vsel %vm14321_vm1, %v6136_v13, %v6135_v41  ;;  %5957 = vperm.xlu2 %7150, %v4475_v58   ;;  %v14347_v41 = vld [vmem:[#allocation135_spill] sm:$0xff]  ;;  %v6155_v13 = vperm.slane %v12521_v22, %v9743_v40  ;;  %v14348_v58 = vld [vmem:[#allocation113_spill] sm:$0xff]  ;;  %v6186_v22 = vperm.slane %v5904_v50, %v9743_v40  ;;  %vm14355_vm1 = vcmask 392512  }
 0xdeb   : > { %v6139_v34 = vsel %vm14323_vm11, %v6138_v25, %v6137_v9  ;;  %v6152_v36 = vperm.slane %v14347_v41, %v9731_v47  ;;  %v6153_v25 = vperm.slane %v14348_v58, %v9738_v54  ;;  %vm14357_vm11 = vcmask 523712   ;;  %v14359_v50 = vld [vmem:[#allocation147_spill] sm:$0xff] }
 0xdec   : > { %v6141_v20 = vsel %vm14325_vm15, %v6140_v11, %v6139_v34  ;;  %v6184_v11 = vperm.slane %v14349_v3, %v9738_v54  ;;  %v14350_v34 = vld [vmem:[#allocation66_spill] sm:$0xff]  ;;  %vm14358_vm15 = vcmask 589312   ;;  %v4506_v58 = vmul.f32 %v14359_v50, %v11804_v0 }
 0xded   : > { %5972 = vperm.xlu0 %7149, %v4480_v39   ;;  %v4484_v10 = vmul.f32 %v14350_v34, %v11755_v31  ;;  %v6277_v39 = vsel %vm14351_vm14, %v12535_v28, %v12413_v4  ;;  %v6159_v31 = vperm.slane %v12539_v55, %v9765_v29  ;;  %v5907_v4 = vpop.permute.xlu1 %5906  ;;  %vm14367_vm14 = vcmask 982912  }
 0xdee   : > { %v6188_v55 = vperm.slane %v5907_v4, %v9752_v24  ;;  %v14368_v4 = vld [vmem:[#allocation81_spill] sm:$0xff] }
 0xdef   : > { %v5847_v38 = vpop.permute.xlu0 %5846 }
 0xdf0   : > { %v6142_v1 = vperm.slane %v5847_v38, %v14276_v18 }
 0xdf2   : > { %v6143_v60 = vsel %vm14326_vm10, %v6142_v1, %v6141_v20  ;;  %5966 = vperm.xlu2 %7150, %v4478_v32   ;;  %v6154_v20 = vsel %vm2795_vm2, %v6153_v25, %v6152_v36  ;;  %v6183_v32 = vperm.slane %v14353_v14, %v9731_v47  ;;  %v6171_v25 = vperm.slane %v12579_v59, %v14274_v44 }
 0xdf3   : > { %v6145_v46 = vsel %vm14328_vm13, %v6144_v57, %v6143_v60  ;;  %v6156_v57 = vsel %vm2799_vm3, %v6155_v13, %v6154_v20  ;;  %vm14360_vm10 = vcmask 654912   ;;  %vm14361_vm13 = vcmask 720512  }
 0xdf4   : > { %v6147_v52 = vsel %vm14330_vm12, %v6146_v16, %v6145_v46  ;;  %v6161_v16 = vperm.slane %v12551_v23, %v9770_v53  ;;  %v6185_v60 = vsel %vm2795_vm2, %v6184_v11, %v6183_v32  ;;  %v5532_v11 = vmul.f32 %v12312_v43, %v12485_v51 }
 0xdf5   : > { %5981 = vperm.xlu0 %7149, %v4483_v48   ;;  %v4505_v48 = vmul.f32 %v14354_v6, %v11804_v0  ;;  %vm14362_vm12 = vcmask 786112   ;;  %v6179_v43 = vperm.slane %v12604_v30, %v14283_v21  ;;  %v14369_v30 = vld [vmem:[#allocation74_spill] sm:$0xff] }
 0xdf7   : > { %v5856_v2 = vpop.permute.xlu0 %5855 }
 0xdf8   : > { %v6148_v26 = vperm.slane %v5856_v2, %v14283_v21 }
 0xdfa   : > { %v6149_v33 = vsel %vm14331_vm6, %v6148_v26, %v6147_v52  ;;  %5975 = vperm.xlu2 %7150, %v4481_v56   ;;  %v6187_v52 = vsel %vm2799_vm3, %v6186_v22, %v6185_v60  ;;  %v14356_v56 = vld [vmem:[#allocation50_spill] sm:$0xff]  ;;  %v5916_v22 = vpop.permute.xlu1 %5915  ;;  %vm14365_vm6 = vcmask 851712  }
 0xdfb   : > { %v6151_v49 = vsel %vm14333_vm8, %v6150_v5, %v6149_v33  ;;  %v6189_v23 = vsel %vm2803_vm4, %v6188_v55, %v6187_v52  ;;  %v4503_v5 = vmul.f32 %v14356_v56, %v11804_v0  ;;  %v6165_v33 = vperm.slane %v12558_v37, %v14268_v45  ;;  %v14372_v55 = vld [vmem:[#allocation84_spill] sm:$0xff] }
 0xdfc   : > { %v6278_v1 = vsel %vm14352_vm9, %v6151_v49, %v6277_v39  ;;  %v6167_v49 = vperm.slane %v12571_v63, %v14269_v35  ;;  %v6173_v37 = vperm.slane %v12588_v19, %v14276_v18  ;;  %v14364_v19 = vld [vmem:[#allocation149_spill] sm:$0xff]  ;;  %vm14366_vm8 = vcmask 917312  }
 0xdfd   : > { %5990 = vperm.xlu0 %7149, %v4502_v62   ;;  %v4509_v20 = vmul.f32 %v14364_v19, %v11804_v0  ;;  %vm14370_vm9 = vcmask 1048512  }
 0xdff   : > { %v5865_v9 = vpop.permute.xlu0 %5864 }
 0xe00   : > { %v6157_v38 = vperm.slane %v5865_v9, %v9752_v24 }
 0xe02   : > { %v6158_v28 = vsel %vm2803_vm4, %v6157_v38, %v6156_v57  ;;  %5984 = vperm.xlu2 %7150, %v4484_v10   ;;  %v6177_v38 = vperm.slane %v12598_v61, %v14281_v17 }
 0xe03   : > { %v6160_v46 = vsel %vm2807_vm5, %v6159_v31, %v6158_v28  ;;  %v4508_v28 = vmul.f32 %v14368_v4, %v11804_v0 }
 0xe04   : > { %v6162_v2 = vsel %vm14355_vm1, %v6161_v16, %v6160_v46  ;;  %v4512_v46 = vmul.f32 %v14369_v30, %v11804_v0  ;;  %vm14371_vm1 = vcmask 1044484  }
 0xe05   : > { %5999 = vperm.xlu0 %7149, %v4505_v48   ;;  %v5925_v48 = vpop.permute.xlu1 %5924 }
 0xe07   : > { %v5874_v26 = vpop.permute.xlu0 %5873 }
 0xe08   : > { %v6163_v12 = vperm.slane %v5874_v26, %v9776_v27  ;;  %v4507_v26 = vmul.f32 %v14372_v55, %v11804_v0 }
 0xe0a   : > { %v6164_v15 = vsel %vm2815_vm7, %v6163_v12, %v6162_v2  ;;  %5993 = vperm.xlu2 %7150, %v4503_v5   ;;  %v14373_v12 = vld [vmem:[#allocation90_spill] sm:$0xff] }
 0xe0b   : > { %v6166_v62 = vsel %vm14357_vm11, %v6165_v33, %v6164_v15  ;;  %v4511_v56 = vmul.f32 %v14373_v12, %v11804_v0  ;;  %v6194_v15 = vperm.slane %v5916_v22, %v9776_v27  ;;  %vm14374_vm11 = vcmask 392512  }
 0xe0c   : > { %v6168_v41 = vsel %vm14358_vm15, %v6167_v49, %v6166_v62  ;;  %vm14377_vm15 = vcmask 523712  }
 0xe0f   : > { %v5883_v36 = vpop.permute.xlu0 %5882 }
 0xe10   : > { %v6169_v13 = vperm.slane %v5883_v36, %v14273_v42  ;;  %v14375_v36 = vld [vmem:[#allocation186_spill] sm:$0xff] }
 0xe12   : > { %v6170_v63 = vsel %vm14360_vm10, %v6169_v13, %v6168_v41  ;;  %6002 = vperm.xlu2 %7150, %v4506_v58   ;;  %v4510_v13 = vmul.f32 %v14375_v36, %v11804_v0  ;;  %v5934_v58 = vpop.permute.xlu1 %5933  ;;  %vm14378_vm10 = vcmask 589312  }
 0xe13   : > { %v6172_v3 = vsel %vm14361_vm13, %v6171_v25, %v6170_v63  ;;  %v14376_v25 = vld [vmem:[#allocation92_spill] sm:$0xff]  ;;  %vm14379_vm13 = vcmask 654912  }
 0xe14   : > { %v5540_v9 = vpop.permute.xlu2 %5539  ;;  %v6174_v34 = vsel %vm14362_vm12, %v6173_v37, %v6172_v3  ;;  %v4514_v37 = vmul.f32 %v14376_v25, %v11804_v0  ;;  %vm14380_vm12 = vcmask 720512  }
 0xe15   : > { %v5542_v10 = vadd.f32 %v5540_v9, %v5532_v11 }
 0xe17   : > { %7479 = vtanh.f32 %v5542_v10  ;;  %5565 = vrot.lane.b32.xlu0 %v5542_v10, %s14363_s29  ;;  %v5892_v39 = vpop.permute.xlu0 %5891 }
 0xe18   : > { %v6175_v59 = vperm.slane %v5892_v39, %v14280_v7 }
 0xe1a   : > { %v6176_v14 = vsel %vm14365_vm6, %v6175_v59, %v6174_v34  ;;  %6011 = vperm.xlu2 %7150, %v4509_v20   ;;  %v5943_v59 = vpop.permute.xlu1 %5942  ;;  %vm14381_vm6 = vcmask 786112  }
 0xe1b   : > { %v6178_v32 = vsel %vm14366_vm8, %v6177_v38, %v6176_v14  ;;  %v6206_v38 = vperm.slane %v5934_v58, %v14280_v7  ;;  %vm14382_vm8 = vcmask 851712  }
 0xe1c   : > { %v5913_v57 = vpop.permute.xlu2 %5912  ;;  %v6180_v31 = vsel %vm14367_vm14, %v6179_v43, %v6178_v32  ;;  %vm14383_vm14 = vcmask 917312  }
 0xe1d   : > { %v7480_v16 = vpop.eup %7479  ;;  %v6192_v49 = vperm.slane %v5913_v57, %v9770_v53 }
 0xe1e   : > { %5545 = vrot.lane.b32.xlu1 %v7480_v16, %s14303_s10 }
 0xe1f   : > { %6008 = vperm.xlu0 %7149, %v4508_v28   ;;  %v5901_v60 = vpop.permute.xlu0 %5900 }
 0xe20   : > { %v6181_v61 = vperm.slane %v5901_v60, %v14289_v8  ;;  %v6212_v60 = vperm.slane %v5943_v59, %v14289_v8 }
 0xe22   : > { %v6182_v6 = vsel %vm14370_vm9, %v6181_v61, %v6180_v31  ;;  %6020 = vperm.xlu2 %7150, %v4512_v46   ;;  %v5952_v4 = vpop.permute.xlu1 %5951  ;;  %vm14384_vm9 = vcmask 982912  }
 0xe23   : > { %v12689_v52 = vsel %vm14371_vm1, %v6182_v6, %v6278_v1  ;;  %vm14385_vm1 = vcmask 1048512   ;;  %v14386_v6 = vld [vmem:[#allocation38_spill] sm:$0xff] }
 0xe24   : > { %v5922_v2 = vpop.permute.xlu2 %5921 }
 0xe25   : > { %v6198_v11 = vperm.slane %v5922_v2, %v14269_v35  ;;  %v14387_v2 = vld [vmem:[#allocation128_spill] sm:$0xff] }
 0xe26   : > { %6005 = vperm.xlu1 %7148, %v4507_v26   ;;  %v6214_v55 = vperm.slane %v14387_v2, %v9731_v47 }
 0xe27   : > { %6017 = vperm.xlu0 %7149, %v4511_v56   ;;  %v5910_v5 = vpop.permute.xlu0 %5909 }
 0xe28   : > { %v6190_v33 = vperm.slane %v5910_v5, %v9765_v29 }
 0xe2a   : > { %v6191_v62 = vsel %vm2807_vm5, %v6190_v33, %v6189_v23  ;;  %v6200_v23 = vperm.slane %v5925_v48, %v14273_v42  ;;  %v6215_v48 = vperm.slane %v14386_v6, %v9738_v54  ;;  %v14388_v6 = vld [vmem:[#allocation29_spill] sm:$0xff] }
 0xe2b   : > { %v6193_v1 = vsel %vm14374_vm11, %v6192_v49, %v6191_v62  ;;  %v6221_v49 = vperm.slane %v5952_v4, %v9765_v29  ;;  %v5961_v62 = vpop.permute.xlu1 %5960 }
 0xe2c   : > { %v5931_v41 = vpop.permute.xlu2 %5930  ;;  %v6195_v50 = vsel %vm2815_vm7, %v6194_v15, %v6193_v1  ;;  %v6216_v33 = vsel %vm2795_vm2, %v6215_v48, %v6214_v55  ;;  %v6227_v58 = vperm.slane %v5961_v62, %v14268_v45  ;;  %v6245_v48 = vperm.slane %v14388_v6, %v9731_v47  ;;  %v14389_v55 = vld [vmem:[#allocation124_spill] sm:$0xff] }
 0xe2d   : > { %v6204_v22 = vperm.slane %v5931_v41, %v14276_v18 }
 0xe2e   : > { %6014 = vperm.xlu1 %7148, %v4510_v13  }
 0xe2f   : > { %6026 = vperm.xlu0 %7149, %v4514_v37   ;;  %v5919_v63 = vpop.permute.xlu0 %5918 }
 0xe30   : > { %v6196_v3 = vperm.slane %v5919_v63, %v14268_v45 }
 0xe32   : > { %v6197_v9 = vsel %vm14377_vm15, %v6196_v3, %v6195_v50 }
 0xe33   : > { %v6199_v34 = vsel %vm14378_vm10, %v6198_v11, %v6197_v9  ;;  %v5970_v11 = vpop.permute.xlu1 %5969 }
 0xe34   : > { %v6201_v10 = vsel %vm14379_vm13, %v6200_v23, %v6199_v34  ;;  %v5940_v39 = vpop.permute.xlu2 %5939 }
 0xe35   : > { %v6210_v28 = vperm.slane %v5940_v39, %v14283_v21 }
 0xe37   : > { %v5928_v19 = vpop.permute.xlu0 %5927 }
 0xe38   : > { %v6202_v20 = vperm.slane %v5928_v19, %v14274_v44 }
 0xe3a   : > { %v6203_v43 = vsel %vm14380_vm12, %v6202_v20, %v6201_v10  ;;  %v6233_v10 = vperm.slane %v5970_v11, %v14274_v44 }
 0xe3b   : > { %v6205_v14 = vsel %vm14381_vm6, %v6204_v22, %v6203_v43  ;;  %v5979_v22 = vpop.permute.xlu1 %5978 }
 0xe3c   : > { %v6207_v32 = vsel %vm14382_vm8, %v6206_v38, %v6205_v14  ;;  %v5949_v57 = vpop.permute.xlu2 %5948 }
 0xe3d   : > { %v6219_v56 = vperm.slane %v5949_v57, %v9752_v24 }
 0xe3f   : > { %v5937_v31 = vpop.permute.xlu0 %5936 }
 0xe40   : > { %v6208_v16 = vperm.slane %v5937_v31, %v14281_v17 }
 0xe42   : > { %v6209_v61 = vsel %vm14383_vm14, %v6208_v16, %v6207_v32  ;;  %v6239_v32 = vperm.slane %v5979_v22, %v14281_v17 }
 0xe43   : > { %v6211_v30 = vsel %vm14384_vm9, %v6210_v28, %v6209_v61  ;;  %v5988_v61 = vpop.permute.xlu1 %5987 }
 0xe44   : > { %v12723_v46 = vsel %vm14385_vm1, %v6212_v60, %v6211_v30  ;;  %v5958_v5 = vpop.permute.xlu2 %5957  ;;  %v6248_v2 = vperm.slane %v5988_v61, %v9743_v40 }
 0xe45   : > { %v6225_v50 = vperm.slane %v5958_v5, %v9776_v27 }
 0xe47   : > { %v5946_v26 = vpop.permute.xlu0 %5945 }
 0xe48   : > { %v6217_v12 = vperm.slane %v5946_v26, %v9743_v40  ;;  %v6246_v26 = vperm.slane %v14389_v55, %v9738_v54 }
 0xe4a   : > { %v6218_v15 = vsel %vm2799_vm3, %v6217_v12, %v6216_v33 }
 0xe4b   : > { %v6220_v1 = vsel %vm2803_vm4, %v6219_v56, %v6218_v15  ;;  %v6247_v56 = vsel %vm2795_vm2, %v6246_v26, %v6245_v48  ;;  %v5997_v62 = vpop.permute.xlu1 %5996  ;;  %vm14390_vm2 = vmmov %vm14374_vm11 }
 0xe4c   : > { %v6222_v41 = vsel %vm2807_vm5, %v6221_v49, %v6220_v1  ;;  %v5967_v37 = vpop.permute.xlu2 %5966  ;;  %v6249_v33 = vsel %vm2799_vm3, %v6248_v2, %v6247_v56  ;;  %v6254_v1 = vperm.slane %v5997_v62, %v9770_v53  ;;  %vm14391_vm3 = vcmask 261120  }
 0xe4d   : > { %v6231_v34 = vperm.slane %v5967_v37, %v14273_v42 }
 0xe4f   : > { %v5955_v36 = vpop.permute.xlu0 %5954 }
 0xe50   : > { %v6223_v13 = vperm.slane %v5955_v36, %v9770_v53 }
 0xe52   : > { %v6224_v25 = vsel %vm14374_vm11, %v6223_v13, %v6222_v41 }
 0xe53   : > { %v6226_v63 = vsel %vm2815_vm7, %v6225_v50, %v6224_v25 }
 0xe54   : > { %v6228_v3 = vsel %vm14377_vm15, %v6227_v58, %v6226_v63  ;;  %v5976_v20 = vpop.permute.xlu2 %5975 }
 0xe55   : > { %v6237_v14 = vperm.slane %v5976_v20, %v14280_v7 }
 0xe57   : > { %v5964_v23 = vpop.permute.xlu0 %5963 }
 0xe58   : > { %v6229_v9 = vperm.slane %v5964_v23, %v14269_v35 }
 0xe5a   : > { %v6230_v39 = vsel %vm14378_vm10, %v6229_v9, %v6228_v3 }
 0xe5b   : > { %v6232_v59 = vsel %vm14379_vm13, %v6231_v34, %v6230_v39 }
 0xe5c   : > { %v6234_v19 = vsel %vm14380_vm12, %v6233_v10, %v6232_v59  ;;  %v5985_v4 = vpop.permute.xlu2 %5984 }
 0xe5f   : > { %v5973_v38 = vpop.permute.xlu0 %5972 }
 0xe60   : > { %v6235_v43 = vperm.slane %v5973_v38, %v14276_v18 }
 0xe62   : > { %v6236_v57 = vsel %vm14381_vm6, %v6235_v43, %v6234_v19 }
 0xe63   : > { %v6238_v31 = vsel %vm14382_vm8, %v6237_v14, %v6236_v57 }
 0xe64   : > { %v6240_v16 = vsel %vm14383_vm14, %v6239_v32, %v6238_v31  ;;  %v5994_v49 = vpop.permute.xlu2 %5993 }
 0xe65   : > { %v6252_v47 = vperm.slane %v5994_v49, %v9765_v29 }
 0xe67   : > { %v5982_v28 = vpop.permute.xlu0 %5981 }
 0xe68   : > { %v6241_v60 = vperm.slane %v5982_v28, %v14283_v21 }
 0xe6a   : > { %v6242_v30 = vsel %vm14384_vm9, %v6241_v60, %v6240_v16 }
 0xe6f   : > { %v5991_v12 = vpop.permute.xlu0 %5990 }
 0xe70   : > { %v6250_v5 = vperm.slane %v5991_v12, %v9752_v24 }
 0xe72   : > { %v6251_v15 = vsel %vm2803_vm4, %v6250_v5, %v6249_v33 }
 0xe73   : > { %v6253_v40 = vsel %vm2807_vm5, %v6252_v47, %v6251_v15 }
 0xe74   : > { %v6255_v24 = vsel %vm14390_vm2, %v6254_v1, %v6253_v40 }
 0xe77   : > { %v6000_v54 = vpop.permute.xlu0 %5999 }
 0xe78   : > { %v6256_v41 = vperm.slane %v6000_v54, %v9776_v27 }
 0xe7a   : > { %v6257_v36 = vsel %vm2815_vm7, %v6256_v41, %v6255_v24 }
 0xe89   : > { %v5566_v13 = vpop.permute.xlu0 %5565 }
 0xe8a   : > { %5568 = vst.msk [vmem:[#allocation5] sm:$0xff] %vm14391_vm3, %v5566_v13 }
 0xe90   : > { %v5546_v50 = vpop.permute.xlu1 %5545 }
 0xe91   : > { %v5548_v58 = vmul.f32 %v5546_v50, %v12485_v51 }
 0xe93   : > { %5560 = vrot.lane.b32.xlu1 %v5548_v58, %s14189_s8  ;;  %v5574_v29 = vpack.c.bf16 %v5548_v58, %v5548_v58 }
 0xe9b   : > { %5576 = vrot.lane.b32.xlu1 %v5574_v29, %s14189_s8  ;;  %s7503_s8 = scalar_lea.hbm %s12902_s17, 32 }
 0xe9c   : > { %p7505_p2 = scmp.lt.s32.totalorder %s7503_s8, %s7499_s21 }
 0xe9e   : > { %p7506_p3 = por %p7505_p2, %p7504_p1 }
 0xea0   : > { %p7507_p5 = pnand %p7506_p3, %p7502_p0 }
 0xea2   : > { %7510 = shalt.err (!%p7507_p5)
}
 0xea3   : > { %7059 = dma.vmem_to_hbm [thread:$0]  (%p7775_p4), %s6310_s3, 64, %s6312_s6, %s6286_s11   ;;  %v14392_v53 = vld [vmem:[#allocation93_spill] sm:$0xff]  ;;  %vm14393_vm4 = vcmask 1045509   ;;  %v6006_v25 = vpop.permute.xlu1 %6005  ;;  %v6243_v37 = vperm.slane %v5985_v4, %v14289_v8  ;;  %vm14394_vm5 = vmmov %vm14385_vm1  ;;  %vm14395_vm7 = vcmask 1046534   ;;  %v6003_v23 = vpop.permute.xlu2 %6002 }
 0xea4   : > { %v4513_v27 = vmul.f32 %v14392_v53, %v11804_v0  ;;  %v6280_v51 = vsel %vm14393_vm4, %v12723_v46, %v12689_v52  ;;  %v6009_v9 = vpop.permute.xlu0 %6008  ;;  %v6260_v0 = vperm.slane %v6006_v25, %v14269_v35  ;;  %vm14396_vm1 = vmmov %vm14391_vm3  ;;  %s6322_s24 = scalar_lea.hbm %s12903_s18, %s12105_s2  ;;  %v6258_v52 = vperm.slane %v6003_v23, %v14268_v45  ;;  %s14397_s0 = sadd.s32 4294967295, %s7621_s23  }
 0xea5   : > { %v6244_v63 = vsel %vm14394_vm5, %v6243_v37, %v6242_v30  ;;  %s12808_s7 = sand.u32 1, %s14397_s0   ;;  %vm14398_vm11 = vmmov %vm14377_vm15  ;;  %s6324_s5 = sshll.u32 %s7799_s25, 4  ;;  %v6262_v59 = vperm.slane %v6009_v9, %v14273_v42  ;;  %s6325_s5 = int_to_ptr.vmem [resolvable:$true] %s6324_s5 }
 0xea6   : > { %6023 = vperm.xlu1 %7148, %v4513_v27   ;;  %v6281_v3 = vsel %vm14395_vm7, %v6244_v63, %v6280_v51  ;;  %v6259_v10 = vsel %vm14398_vm11, %v6258_v52, %v6257_v36  ;;  %s6326_s9 = sshll.u32 %s6322_s24, 4  ;;  %vm14399_vm15 = vmmov %vm14378_vm10  ;;  %s6291_s2 = scalar_lea.sflag [#allocation10], %s12808_s7  ;;  %s6327_s9 = int_to_ptr.hbm [resolvable:$true] %s6326_s9 }
 0xea7   : > { %v6261_v35 = vsel %vm14399_vm15, %v6260_v0, %v6259_v10  ;;  %vm14400_vm10 = vmmov %vm14379_vm13  ;;  %s7525_s3 = sshra.s32 %s6327_s9, 4  ;;  %s7531_s21 = scalar_lea.hbm %s12903_s18, 32  ;;  %s7526_s3 = int_to_ptr.hbm [resolvable:$true] %s7525_s3 }
 0xea8   : > { %v6263_v19 = vsel %vm14400_vm10, %v6262_v59, %v6261_v35  ;;  %s7527_s6 = scalar_lea.hbm %s7526_s3, 4  ;;  %p7532_p10 = scmp.lt.s32.totalorder %s7526_s3, %s12903_s18 }
 0xea9   : > { %p7528_p6 = scmp.ne.s32.totalorder %s7526_s3, %s7527_s6  ;;  %p7533_p11 = scmp.lt.s32.totalorder %s7531_s21, %s7527_s6 }
 0xeab   : > { %v6015_v11 = vpop.permute.xlu1 %6014  ;;  %v6012_v46 = vpop.permute.xlu2 %6011  ;;  %p7529_p7 = pnand %p7528_p6, %p7775_p4  ;;  %p7534_p12 = por %p7533_p11, %p7532_p10 }
 0xeac   : > { %v6018_v39 = vpop.permute.xlu0 %6017  ;;  %v6266_v45 = vperm.slane %v6015_v11, %v14276_v18  ;;  %v6264_v22 = vperm.slane %v6012_v46, %v14274_v44 }
 0xead   : > { %p7530_p9 = pneg %p7529_p7 }
 0xeaf   : > { %p7535_p13 = pnand %p7534_p12, %p7530_p9 }
 0xf05   : > { %v5561_v34 = vpop.permute.xlu1 %5560 }
 0xf06   : > { %5563 = vst.msk [vmem:[#allocation4] sm:$0xff] %vm14396_vm1, %v5561_v34 }
 0xf0d   : > { %v5577_v20 = vpop.permute.xlu1 %5576 }
 0xf0e   : > { %5579 = vst.msk [vmem:[%s7799_s25] sm:$0xf] %vm5572_vm0, %v5577_v20 }
 0xf0f   : > { %7538 = shalt.err (!%p7535_p13)
}
 0xf10   : > { %7060 = dma.vmem_to_hbm [thread:$0]  (%p7775_p4), %s6325_s5, 64, %s6327_s9, %s6291_s2   ;;  %vm14401_vm0 = vmmov %vm14380_vm12  ;;  %v6021_v18 = vpop.permute.xlu2 %6020  ;;  %v6268_v38 = vperm.slane %v6018_v39, %v14280_v7  ;;  %v6027_v14 = vpop.permute.xlu0 %6026 }
 0xf11   : > { %v6265_v42 = vsel %vm14401_vm0, %v6264_v22, %v6263_v19  ;;  %s6661_s25 = sshll.u32 %s7613_s22, 3  ;;  %vm14402_vm13 = vmmov %vm14381_vm6  ;;  %v6270_v32 = vperm.slane %v6021_v18, %v14281_v17  ;;  %s6339_s22 = sshll.u32 %s7801_s27, 4  ;;  %v6274_v16 = vperm.slane %v6027_v14, %v14289_v8  ;;  %s6340_s22 = int_to_ptr.vmem [resolvable:$true] %s6339_s22 }
 0xf12   : > { %v6267_v44 = vsel %vm14402_vm13, %v6266_v45, %v6265_v42  ;;  %s6337_s12 = scalar_lea.hbm %s12904_s19, %s6661_s25  ;;  %vm14403_vm12 = vmmov %vm14382_vm8  ;;  %s7559_s6 = scalar_lea.hbm %s12904_s19, 64 }
 0xf13   : > { %v6269_v43 = vsel %vm14403_vm12, %v6268_v38, %v6267_v44  ;;  %s6341_s24 = sshll.u32 %s6337_s12, 4  ;;  %vm14404_vm6 = vmmov %vm14383_vm14  ;;  %s6342_s24 = int_to_ptr.hbm [resolvable:$true] %s6341_s24 }
 0xf14   : > { %v6271_v7 = vsel %vm14404_vm6, %v6270_v32, %v6269_v43  ;;  %vm14405_vm8 = vmmov %vm14384_vm9  ;;  %vm14407_vm9 = vcmask 1047559   ;;  %s7553_s0 = sshra.s32 %s6342_s24, 4  ;;  %s7554_s0 = int_to_ptr.hbm [resolvable:$true] %s7553_s0 }
 0xf15   : > { %vm14406_vm14 = vmmov %vm14394_vm5  ;;  %s7555_s5 = scalar_lea.hbm %s7554_s0, 8  ;;  %p7560_p3 = scmp.lt.s32.totalorder %s7554_s0, %s12904_s19 }
 0xf16   : > { %p7556_p0 = scmp.ne.s32.totalorder %s7554_s0, %s7555_s5  ;;  %p7561_p5 = scmp.lt.s32.totalorder %s7559_s6, %s7555_s5 }
 0xf18   : > { %v6024_v57 = vpop.permute.xlu1 %6023  ;;  %p7557_p1 = pnand %p7556_p0, %p7775_p4  ;;  %p7562_p6 = por %p7561_p5, %p7560_p3 }
 0xf19   : > { %v6272_v31 = vperm.slane %v6024_v57, %v14283_v21 }
 0xf1a   : > { %p7558_p2 = pneg %p7557_p1 }
 0xf1b   : > { %v6273_v4 = vsel %vm14405_vm8, %v6272_v31, %v6271_v7 }
 0xf1c   : > { %v6275_v28 = vsel %vm14406_vm14, %v6274_v16, %v6273_v4  ;;  %p7563_p7 = pnand %p7562_p6, %p7558_p2 }
 0xf1d   : > { %v6282_v60 = vsel %vm14407_vm9, %v6275_v28, %v6281_v3 }
 0xf1e   : > { %6284 = vst [vmem:[%s7801_s27] sm:$0xff] %v6282_v60 }
 0xf1f   : > { %7566 = shalt.err (!%p7563_p7)
}
 0xf20   : > { %7061 = dma.vmem_to_hbm [thread:$0]  (%p7775_p4), %s6340_s22, 128, %s6342_s24, %s6291_s2  }
 0xf21 PF: > { %p7075_p9 = scmp.ge.s32.totalorder %s7621_s23, 2  ;;  %s6353_s27 = sand.u32 1, %s7601_s20  }
 0xf22   : > { %s6354_s21 = scalar_lea.sflag [#allocation8], %s6353_s27 }
 0xf23   : > { %p7066_p10 = pnand %p7075_p9, %p7784_p8 }
 0xf25   : > { %p7067_p11 = pneg %p7066_p10 }
 0xf27   : > { %7592 = dma.done.wait (%p7067_p11), %s6354_s21, 64  }
 0xf28   : > { %7594 = vsyncadd (%p7067_p11), %s6354_s21, 4294967232  ;;  %s14408_s10 = sadd.s32 4294967294, %s7621_s23  }
 0xf29   : > { %s6363_s29 = sand.u32 1, %s14408_s10  }
 0xf2a   : > { %s6364_s25 = scalar_lea.sflag [#allocation10], %s6363_s29 }
 0xf2b   : > { %7596 = dma.done.wait (%p7067_p11), %s6364_s25, 192  }
 0xf2c   : > { %7598 = vsyncadd (%p7067_p11), %s6364_s25, 4294967104  ;;  %s38_s23 = sadd.s32 1, %s7621_s23   ;;  %s14409_s20 = sld [smem:[#allocation14_spill]] }
 0xf2d   : > { %p35_p4 = scmp.ge.s32.totalorder %s38_s23, 10   ;;  %s14410_s21 = sld [smem:[#allocation15_spill]] }
 0xf2e   : > { %s14411_s1 = sld [smem:[#allocation18_spill]] }
 0xf2f   : > { %s14412_s22 = sld [smem:[#allocation16_spill]]  ;;  %37 = sbr.rel (!%p35_p4) target bundleno = 19 (0x13), region = 176 }
 0xf30   : > { %s14413_s2 = sld [smem:[#allocation17_spill]] }
 0xf34   :  { %6380 = vsyncpa [#allocation8], 1 }
 0xf35   :  { %6382 = vsyncpa [#allocation8 + $0x1], 1 }
 0xf36   :  { %6383 = vsyncpa [#allocation10], 1 }
 0xf37   :  { %6385 = vsyncpa [#allocation10 + $0x1], 1 }

</bundles_post_ra>
